<compile_context>
chip_gen: v5e
topology: v5e:2x2
jax: 0.10.0
libtpu: 0.0.40
codegen_flags: <defaults>
</compile_context>

<pallas_src>
import jax
import jax.numpy as jnp
from jax.experimental import pallas as pl
from jax.experimental.pallas import tpu as pltpu

NUM_CLASSES = 2
STEM_OUT = 2048      # inception_v3 model.fc.in_features
FC_UNITS = 512       # extra_fc_units in __init__
KSIZE = 3
STRIDE = 2
KDIM = 3 * KSIZE * KSIZE          # 27 = Cin*KH*KW
K_PAD = 32                        # zero-padded contraction dim (aligned loads)
TP = 2048                         # position tile (few grid steps, ~0.35us/step)
TC = 1024                         # output-channel tile (CT=2 -> v7x megacore @ B=1)
CPAD = 128                        # lane-padded logits width (avoids masked vst)


# ---------------------------------------------------------------------------
# glue: pad + im2col (pure reshapes / slicing, stays in plain JAX, bf16)
# ---------------------------------------------------------------------------
def _im2col(x, k=KSIZE, s=STRIDE):
    B, C, H, W = x.shape
    OH = (H - k) // s + 1
    OW = (W - k) // s + 1
    cols = []
    for dh in range(k):
        for dw in range(k):
            cols.append(x[:, :, dh:dh + s * OH:s, dw:dw + s * OW:s])  # [B,C,OH,OW]
    p = jnp.stack(cols, axis=2)                          # [B, C, k*k, OH, OW]
    p = p.transpose(0, 3, 4, 1, 2).reshape(B, OH * OW, C * k * k)
    return p, OH, OW                                     # patch order == (Cin, KH, KW)


# ---------------------------------------------------------------------------
# one-time weight preparation (NOT on the per-call path)
# ---------------------------------------------------------------------------
def prepare_params(params):
    # conv weight [Cout, Cin, KH, KW] -> [K_PAD, Cout] with the bias folded
    # into row KDIM (the kernel's "valid"/ones column multiplies it).
    w_mat = params["w_conv"].reshape(STEM_OUT, -1).T.astype(jnp.float32)     # (27, 2048)
    w_aug = jnp.concatenate(
        [w_mat,
         params["b_conv"].reshape(1, -1).astype(jnp.float32),
         jnp.zeros((K_PAD - KDIM - 1, STEM_OUT), jnp.float32)], axis=0)
    w_conv_aug = w_aug.astype(jnp.bfloat16)                                  # (32, 2048)

    # Collapse the activation-free head:
    #   y = (f @ w_fc^T + b_fc) @ w_out^T + b_out = f @ (w_fc^T @ w_out^T) + b_head
    w_head = (params["w_fc"].T @ params["w_out"].T).astype(jnp.float32)      # (2048, 2)
    w_head_pad = jnp.pad(w_head, ((0, 0), (0, CPAD - NUM_CLASSES)))          # (2048, 128)
    b_head = (params["b_fc"] @ params["w_out"].T + params["b_out"]).astype(jnp.float32)

    return {"w_conv_aug": w_conv_aug, "w_head_pad": w_head_pad, "b_head": b_head}


# ---------------------------------------------------------------------------
# fused kernel: conv stem (im2col matmul, bf16 in / f32 acc) + bias (folded) +
# ReLU + spatial-sum accumulation + collapsed classifier head in the epilogue.
# Grid (batch, Cout tile, position tile); position axis is the reduction.
# ---------------------------------------------------------------------------
def _stem_head_kernel(p_ref, w_ref, wh_ref, o_ref, acc_ref):
    t = pl.program_id(2)

    @pl.when(t == 0)
    def _():
        acc_ref[...] = jnp.zeros_like(acc_ref)

    # (TP, K) bf16 x (K, TC) bf16 -> (TP, TC) f32 on the MXU.  The conv bias is
    # folded into the matmul via the "valid" indicator column, which is 0 for
    # zero-padded positions — so no in-kernel position mask is needed either.
    y = jnp.maximum(
        jnp.dot(p_ref[0], w_ref[...], preferred_element_type=jnp.float32), 0.0)

    # Partial spatial sum down to 8 sublanes (pure VPU adds).  The final 8->1
    # reduce is absorbed by the head matmul below (MXU), so no XLU reduce.
    acc_ref[...] += y.reshape(TP // 8, 8, TC).sum(axis=0)

    @pl.when(t == pl.num_programs(2) - 1)
    def _():
        # Fused collapsed head: (8, TC) f32 @ (TC, 128) f32 -> (8, 128).
        # Sum over 8 sublanes + the CT axis, /npos (GAP) and + b_head happen
        # outside on a tiny (B, CT, 8, 128) array.
        o_ref[0, 0] = jnp.dot(acc_ref[...], wh_ref[...],
                              preferred_element_type=jnp.float32)


def _stem_head_call(patches, w_conv_aug, w_head_pad):
    B, P_pad, K = patches.shape
    Cout = w_conv_aug.shape[1]
    assert P_pad % TP == 0 and Cout % TC == 0 and K == K_PAD
    T = P_pad // TP
    CT = Cout // TC
    return pl.pallas_call(
        _stem_head_kernel,
        out_shape=jax.ShapeDtypeStruct((B, CT, 8, CPAD), jnp.float32),
        grid=(B, CT, T),
        in_specs=[
            pl.BlockSpec((1, TP, K), lambda b, c, t: (b, t, 0)),      # patches
            pl.BlockSpec((K, TC), lambda b, c, t: (0, c)),            # conv w (+bias row)
            pl.BlockSpec((TC, CPAD), lambda b, c, t: (c, 0)),         # folded head w
        ],
        out_specs=pl.BlockSpec((1, 1, 8, CPAD), lambda b, c, t: (b, c, 0, 0)),
        scratch_shapes=[pltpu.VMEM((8, TC), jnp.float32)],
        compiler_params=pltpu.CompilerParams(
            dimension_semantics=("parallel", "parallel", "arbitrary"),
            vmem_limit_bytes=32 * 1024 * 1024),
    )(patches, w_conv_aug, w_head_pad)


# ---------------------------------------------------------------------------
# full forward (per-call path; takes pre-folded weights from prepare_params)
# ---------------------------------------------------------------------------
def cnn_classifier_forward(x, prep):
    # bf16 BEFORE pad/im2col: halves glue HBM traffic; MXU accumulates in f32.
    x = x.astype(jnp.bfloat16)
    # nn.functional.pad(x, pad=(85, 86, 85, 86)): W -> (85, 86), H -> (85, 86)
    x = jnp.pad(x, ((0, 0), (0, 0), (85, 86), (85, 86)))

    patches, OH, OW = _im2col(x)                         # [B, P, 27] bf16
    npos = OH * OW
    T = pl.cdiv(npos, TP)
    P_pad = T * TP
    patches = jnp.pad(patches, ((0, 0), (0, P_pad - npos), (0, K_PAD - KDIM)))

    # "valid" indicator column: 1.0 on real positions (multiplies the folded
    # bias row), 0.0 on the zero-padded tail (so it contributes nothing).
    valid = (jnp.arange(P_pad) < npos).astype(jnp.bfloat16)
    patches = patches.at[:, :, KDIM].set(valid[None, :])

    partial = _stem_head_call(patches, prep["w_conv_aug"], prep["w_head_pad"])
    # (B, CT, 8, 128) -> logits: sum partials, apply GAP 1/npos, add head bias.
    logits = partial.sum(axis=(1, 2)) * (1.0 / npos)
    return logits[:, :NUM_CLASSES] + prep["b_head"][None, :]


def _reference_forward(x, params):
    """Plain-JAX reference (same bf16-input / f32-accumulate stem precision)."""
    x = x.astype(jnp.bfloat16)
    x = jnp.pad(x, ((0, 0), (0, 0), (85, 86), (85, 86)))
    patches, OH, OW = _im2col(x)
    w_conv_mat = params["w_conv"].reshape(STEM_OUT, -1).T
    y = jnp.einsum("bpk,kc->bpc", patches, w_conv_mat.astype(jnp.bfloat16),
                   preferred_element_type=jnp.float32)
    y = jnp.maximum(y + params["b_conv"][None, None, :], 0.0)
    feats = y.mean(axis=1)
    h = feats @ params["w_fc"].T + params["b_fc"]
    return h @ params["w_out"].T + params["b_out"]


# ---------------------------------------------------------------------------
if __name__ == "__main__":
    key = jax.random.PRNGKey(0)
    kx, kwc, kbc, kwf, kbf, kwo, kbo = jax.random.split(key, 7)

    # small example input consistent with NCHW 3-channel images
    x = jax.random.normal(kx, (2, 3, 16, 16), dtype=jnp.float32)

    params = {
        "w_conv": jax.random.normal(kwc, (STEM_OUT, 3, KSIZE, KSIZE), jnp.float32) * 0.05,
        "b_conv": jax.random.normal(kbc, (STEM_OUT,), jnp.float32) * 0.02,
        "w_fc":   jax.random.normal(kwf, (FC_UNITS, STEM_OUT), jnp.float32) * 0.02,
        "b_fc":   jax.random.normal(kbf, (FC_UNITS,), jnp.float32) * 0.02,
        "w_out":  jax.random.normal(kwo, (NUM_CLASSES, FC_UNITS), jnp.float32) * 0.02,
        "b_out":  jax.random.normal(kbo, (NUM_CLASSES,), jnp.float32) * 0.02,
    }

    prep = jax.block_until_ready(prepare_params(params))   # one-time weight prep
    forward = jax.jit(cnn_classifier_forward)

    y_pred = jax.block_until_ready(forward(x, prep))
    assert y_pred.shape == (2, NUM_CLASSES), y_pred.shape
    assert bool(jnp.all(jnp.isfinite(y_pred)))

    y_ref = jax.block_until_ready(_reference_forward(x, params))
    assert bool(jnp.allclose(y_pred, y_ref, atol=5e-3, rtol=5e-3)), (y_pred, y_ref)

    print("KERNEL_OK")
</pallas_src>

<mosaic_0001>
module attributes {stable_mosaic.version = 11 : i64} {
  func.func @_stem_head_kernel(%arg0: i32, %arg1: i32, %arg2: i32, %arg3: memref<1x2048x32xbf16, #tpu.memory_space<vmem>>, %arg4: memref<32x1024xbf16, #tpu.memory_space<vmem>>, %arg5: memref<1024x128xf32, #tpu.memory_space<vmem>>, %arg6: memref<1x1x8x128xf32, #tpu.memory_space<vmem>>, %arg7: memref<8x1024xf32, #tpu.memory_space<vmem>>) attributes {dimension_semantics = [#tpu.dimension_semantics<parallel>, #tpu.dimension_semantics<parallel>, #tpu.dimension_semantics<arbitrary>], iteration_bounds = array<i64: 2, 2, 5>, scalar_prefetch = 0 : i64, scratch_operands = 1 : i64, tpu.core_type = #tpu.core_type<tc>, window_params = [{transform_indices = @transform_0, window_bounds = array<i64: 1, 2048, 32>}, {transform_indices = @transform_1, window_bounds = array<i64: 32, 1024>}, {transform_indices = @transform_2, window_bounds = array<i64: 1024, 128>}, {transform_indices = @transform_3, window_bounds = array<i64: 1, 1, 8, 128>}]} {
    %c0_i32 = arith.constant 0 : i32
    %0 = arith.cmpi eq, %arg2, %c0_i32 : i32
    %1 = arith.extui %0 : i1 to i32
    %c0_i32_0 = arith.constant 0 : i32
    %2 = arith.cmpi ne, %1, %c0_i32_0 : i32
    scf.if %2 {
      %cst_12 = arith.constant 0.000000e+00 : f32
      %17 = vector.broadcast %cst_12 : f32 to vector<8x1024xf32>
      %c0_13 = arith.constant 0 : index
      %c0_14 = arith.constant 0 : index
      %18 = vector.load %arg7[%c0_13, %c0_14] : memref<8x1024xf32, #tpu.memory_space<vmem>>, vector<8x1024xf32>
      tpu.vector_store %arg7[%c0_13, %c0_14], %17 {strides = array<i32>} : memref<8x1024xf32, #tpu.memory_space<vmem>>, vector<8x1024xf32>,
    } else {
    }
    %c0 = arith.constant 0 : index
    %c0_1 = arith.constant 0 : index
    %c0_2 = arith.constant 0 : index
    %3 = vector.load %arg3[%c0, %c0_1, %c0_2] : memref<1x2048x32xbf16, #tpu.memory_space<vmem>>, vector<1x2048x32xbf16>
    %4 = vector.shape_cast %3 : vector<1x2048x32xbf16> to vector<2048x32xbf16>
    %c0_3 = arith.constant 0 : index
    %c0_4 = arith.constant 0 : index
    %5 = vector.load %arg4[%c0_3, %c0_4] : memref<32x1024xbf16, #tpu.memory_space<vmem>>, vector<32x1024xbf16>
    %cst = arith.constant dense<0.000000e+00> : vector<2048x1024xf32>
    %6 = tpu.matmul %4, %5, %cst {dimension_numbers = #tpu.dot_dimension_numbers<[1], [0], [0], [1], [0, 0, 1, 1], [], []>} : vector<2048x32xbf16>, vector<32x1024xbf16>, vector<2048x1024xf32> -> vector<2048x1024xf32>
    %cst_5 = arith.constant 0.000000e+00 : f32
    %7 = vector.broadcast %cst_5 : f32 to vector<2048x1024xf32>
    %8 = arith.maximumf %6, %7 : vector<2048x1024xf32>
    %c0_6 = arith.constant 0 : index
    %c0_7 = arith.constant 0 : index
    %9 = vector.load %arg7[%c0_6, %c0_7] : memref<8x1024xf32, #tpu.memory_space<vmem>>, vector<8x1024xf32>
    %10 = vector.shape_cast %8 : vector<2048x1024xf32> to vector<256x8x1024xf32>
    %cst_8 = arith.constant dense<0.000000e+00> : vector<8x1024xf32>
    %11 = vector.multi_reduction <add>, %10, %cst_8 [0] : vector<256x8x1024xf32> to vector<8x1024xf32>
    %12 = arith.addf %9, %11 : vector<8x1024xf32>
    %c0_9 = arith.constant 0 : index
    %c0_10 = arith.constant 0 : index
    %13 = vector.load %arg7[%c0_9, %c0_10] : memref<8x1024xf32, #tpu.memory_space<vmem>>, vector<8x1024xf32>
    tpu.vector_store %arg7[%c0_9, %c0_10], %12 {strides = array<i32>} : memref<8x1024xf32, #tpu.memory_space<vmem>>, vector<8x1024xf32>,
    %c4_i32 = arith.constant 4 : i32
    %14 = arith.cmpi eq, %arg2, %c4_i32 : i32
    %15 = arith.extui %14 : i1 to i32
    %c0_i32_11 = arith.constant 0 : i32
    %16 = arith.cmpi ne, %15, %c0_i32_11 : i32
    scf.if %16 {
      %c0_12 = arith.constant 0 : index
      %c0_13 = arith.constant 0 : index
      %17 = vector.load %arg7[%c0_12, %c0_13] : memref<8x1024xf32, #tpu.memory_space<vmem>>, vector<8x1024xf32>
      %c0_14 = arith.constant 0 : index
      %c0_15 = arith.constant 0 : index
      %18 = vector.load %arg5[%c0_14, %c0_15] : memref<1024x128xf32, #tpu.memory_space<vmem>>, vector<1024x128xf32>
      %cst_16 = arith.constant dense<0.000000e+00> : vector<8x128xf32>
      %19 = tpu.matmul %17, %18, %cst_16 {dimension_numbers = #tpu.dot_dimension_numbers<[1], [0], [0], [1], [0, 0, 1, 1], [], []>} : vector<8x1024xf32>, vector<1024x128xf32>, vector<8x128xf32> -> vector<8x128xf32>
      %c0_17 = arith.constant 0 : index
      %c0_18 = arith.constant 0 : index
      %c0_19 = arith.constant 0 : index
      %c0_20 = arith.constant 0 : index
      %20 = vector.load %arg6[%c0_17, %c0_18, %c0_19, %c0_20] : memref<1x1x8x128xf32, #tpu.memory_space<vmem>>, vector<1x1x8x128xf32>
      %21 = vector.shape_cast %20 : vector<1x1x8x128xf32> to vector<8x128xf32>
      %22 = vector.shape_cast %19 : vector<8x128xf32> to vector<1x1x8x128xf32>
      tpu.vector_store %arg6[%c0_17, %c0_18, %c0_19, %c0_20], %22 {strides = array<i32>} : memref<1x1x8x128xf32, #tpu.memory_space<vmem>>, vector<1x1x8x128xf32>,
    } else {
    }
    return
  }
  func.func @transform_0(%arg0: i32, %arg1: i32, %arg2: i32) -> (i32, i32, i32) {
    %c0_i32 = arith.constant 0 : i32
    %c0_i32_0 = arith.constant 0 : i32
    return %arg0, %arg2, %c0_i32 : i32, i32, i32
  }
  func.func @transform_1(%arg0: i32, %arg1: i32, %arg2: i32) -> (i32, i32) {
    %c0_i32 = arith.constant 0 : i32
    %c0_i32_0 = arith.constant 0 : i32
    return %c0_i32, %arg1 : i32, i32
  }
  func.func @transform_2(%arg0: i32, %arg1: i32, %arg2: i32) -> (i32, i32) {
    %c0_i32 = arith.constant 0 : i32
    %c0_i32_0 = arith.constant 0 : i32
    return %arg1, %c0_i32 : i32, i32
  }
  func.func @transform_3(%arg0: i32, %arg1: i32, %arg2: i32) -> (i32, i32, i32, i32) {
    %c0_i32 = arith.constant 0 : i32
    %c0_i32_0 = arith.constant 0 : i32
    %c0_i32_1 = arith.constant 0 : i32
    return %arg0, %arg1, %c0_i32, %c0_i32_0 : i32, i32, i32, i32
  }
}

</mosaic_0001>

<bundles_post_ra>
// kernel: cnn_classifier_forward.1
= control target key start
LH: loop header
LB: loop body
LE: loop exit
PB: predicated region body
PF: predicated region fallthrough
CT: control target
= control target key end

     0   :  { %s15203_s0 = inlined_call_operand.vmem [shape: bf16[2,10240,32], index: 0, kind: input, shape index: {}]   ;;  %s15204_s1 = inlined_call_operand.vmem [shape: bf16[32,2048], index: 1, kind: input, shape index: {}]   ;;  %s15205_s2 = inlined_call_operand.vmem [shape: f32[2048,128], index: 2, kind: input, shape index: {}]   ;;  %s15206_s3 = inlined_call_operand.vmem [shape: f32[2,2,8,128], index: 3, kind: output, shape index: {}]  }
   0x1   :  { %15207 = sst [smem:[#allocation5_spill]] %s15204_s1 }
   0x2   :  { %s13483_s12 = smov 0   ;;  %s13485_s13 = smov 0  }
   0x3   :  { %s13487_s14 = smov 0   ;;  %s13489_s15 = smov 0  }
   0x4   :  { %s13491_s16 = smov 0   ;;  %s13493_s17 = smov 0  }
   0x5   :  { %s13495_s18 = smov 0   ;;  %s13497_s19 = smov 0  }
   0x6   :  { %s13499_s20 = smov 0  }
   0x7 LB: > { %s25_s21 = sadd.s32 1, %s13448_s17  ;;  %s28_s22 = sadd.s32 1, %s13452_s18  ;;  %s13460_s20 = sphi %s13499_s20, %s13_s20   ;;  %s13456_s19 = sphi %s13497_s19, %s15218_s19   ;;  %s13452_s18 = sphi %s13495_s18, %s15217_s18   ;;  %s13448_s17 = sphi %s13493_s17, %s15216_s17   ;;  %s13444_s16 = sphi %s13491_s16, %s15215_s16   ;;  %s13440_s15 = sphi %s13489_s15, %s15214_s15   ;;  %s13436_s14 = sphi %s13487_s14, %s15213_s14   ;;  %s13432_s13 = sphi %s13485_s13, %s15212_s13   ;;  %s13428_s12 = sphi %s13483_s12, %s15211_s12  }
   0x8   : > { %p26_p0 = scmp.ge.s32.totalorder %s25_s21, 5  ;;  %p74_p1 = scmp.ne.s32.totalorder %s13432_s13, %s13428_s12 }
   0x9   : > { %p75_p2 = scmp.eq.s32.totalorder %s13460_s20, 0  ;;  %s32_s23 = sadd.s32 1, %s13456_s19 }
   0xa   : > { %s15220_s21 = smov (%p26_p0, %s25_s21), 0  ;;  %s15222_s22 = smov (!%p26_p0, %s28_s22), %s13452_s18 }
   0xb   : > { %p30_p3 = scmp.ge.s32.totalorder %s15222_s22, 2  ;;  %p76_p4 = por %p75_p2, %p74_p1 }
   0xc   : > { %s67_s25 = sadd.s32 1, %s13432_s13  ;;  %p11427_p7 = scmp.ge.s32.totalorder %s13460_s20, 20 }
   0xd   : > { %s15224_s22 = smov (%p30_p3, %s15222_s22), 0  ;;  %s15226_s23 = smov (!%p30_p3, %s32_s23), %s13456_s19 }
   0xe   : > { %s64_s24 = ssub.s32 %s13452_s18, %s15224_s22  ;;  %p34_p5 = scmp.ge.s32.totalorder %s15226_s23, 2 }
   0xf   : > { %p65_p6 = scmp.eq.s32.totalorder %s64_s24, 0  ;;  %154 = sbr.rel (%p11427_p7) target bundleno = 46 (0x2e), region = 16 }
  0x10   : > { %s15228_s23 = smov (%p34_p5, %s15226_s23), 0 }
  0x11   : > { %15208 = sst [smem:[#allocation4_spill]] %s15228_s23 }
  0x12   : > { %s13546_s26 = scalar_select %p65_p6, %s13432_s13, %s67_s25  }
  0x14   : > { %170 = sbr.rel (!%p76_p4) target bundleno = 46 (0x2e), region = 24  ;;  %s172_s27 = sand.u32 (%p76_p4), 1, %s13432_s13  }
  0x15   : > { %s13043_s28 = sshll.u32 (%p76_p4), %s13452_s18, 5  ;;  %s11428_s29 = sshll.u32 (%p76_p4), %s172_s27, 7 }
  0x16   : > { %s15209_s1 = sld [smem:[#allocation5_spill]] (%p76_p4)  ;;  %s174_s6 = scalar_lea.vmem (%p76_p4), [#allocation3], %s11428_s29 }
  0x1c   : > { %s13554_s5 = scalar_lea.vmem %s15209_s1, %s13043_s28 }
  0x1d   : > { %v190_v0 = vld [vmem:[%s13554_s5] sm:$0xff]  ;;  %v192_v1 = vld [vmem:[%s13554_s5 + $0x8] sm:$0xff]  ;;  %v194_v2 = vld [vmem:[%s13554_s5 + $0x10] sm:$0xff] }
  0x1e   : > { %191 = vst [vmem:[%s174_s6] sm:$0xff] %v190_v0  ;;  %v196_v3 = vld [vmem:[%s13554_s5 + $0x18] sm:$0xff]  ;;  %v198_v4 = vld [vmem:[%s13554_s5 + $0x40] sm:$0xff]  ;;  %v200_v5 = vld [vmem:[%s13554_s5 + $0x48] sm:$0xff] }
  0x1f   : > { %193 = vst [vmem:[%s174_s6 + $0x8] sm:$0xff] %v192_v1  ;;  %v202_v6 = vld [vmem:[%s13554_s5 + $0x50] sm:$0xff]  ;;  %v204_v7 = vld [vmem:[%s13554_s5 + $0x58] sm:$0xff]  ;;  %v206_v8 = vld [vmem:[%s13554_s5 + $0x80] sm:$0xff] }
  0x20   : > { %195 = vst [vmem:[%s174_s6 + $0x10] sm:$0xff] %v194_v2  ;;  %v208_v9 = vld [vmem:[%s13554_s5 + $0x88] sm:$0xff]  ;;  %v210_v10 = vld [vmem:[%s13554_s5 + $0x90] sm:$0xff]  ;;  %v212_v11 = vld [vmem:[%s13554_s5 + $0x98] sm:$0xff] }
  0x21   : > { %197 = vst [vmem:[%s174_s6 + $0x18] sm:$0xff] %v196_v3  ;;  %v214_v12 = vld [vmem:[%s13554_s5 + $0xc0] sm:$0xff]  ;;  %v216_v13 = vld [vmem:[%s13554_s5 + $0xc8] sm:$0xff]  ;;  %v218_v14 = vld [vmem:[%s13554_s5 + $0xd0] sm:$0xff] }
  0x22   : > { %199 = vst [vmem:[%s174_s6 + $0x20] sm:$0xff] %v198_v4  ;;  %v220_v15 = vld [vmem:[%s13554_s5 + $0xd8] sm:$0xff] }
  0x23   : > { %201 = vst [vmem:[%s174_s6 + $0x28] sm:$0xff] %v200_v5 }
  0x24   : > { %203 = vst [vmem:[%s174_s6 + $0x30] sm:$0xff] %v202_v6 }
  0x25   : > { %205 = vst [vmem:[%s174_s6 + $0x38] sm:$0xff] %v204_v7 }
  0x26   : > { %207 = vst [vmem:[%s174_s6 + $0x40] sm:$0xff] %v206_v8 }
  0x27   : > { %209 = vst [vmem:[%s174_s6 + $0x48] sm:$0xff] %v208_v9 }
  0x28   : > { %211 = vst [vmem:[%s174_s6 + $0x50] sm:$0xff] %v210_v10 }
  0x29   : > { %213 = vst [vmem:[%s174_s6 + $0x58] sm:$0xff] %v212_v11 }
  0x2a   : > { %215 = vst [vmem:[%s174_s6 + $0x60] sm:$0xff] %v214_v12 }
  0x2b   : > { %217 = vst [vmem:[%s174_s6 + $0x68] sm:$0xff] %v216_v13 }
  0x2c   : > { %219 = vst [vmem:[%s174_s6 + $0x70] sm:$0xff] %v218_v14 }
  0x2d   : > { %221 = vst [vmem:[%s174_s6 + $0x78] sm:$0xff] %v220_v15 }
  0x2e PF: > { %p11431_p8 = scmp.ge.s32.totalorder %s13460_s20, 1  ;;  %p235_p9 = scmp.lt.s32.totalorder %s13460_s20, 21 }
  0x30   : > { %p236_p10 = pnand %p11431_p8, %p235_p9 }
  0x31   : > { %s242_s7 = sand.u32 (!%p236_p10), 1, %s13428_s12   ;;  %s11433_s8 = sshll.u32 (!%p236_p10), %s13436_s14, 8 }
  0x32   : > { %239 = sbr.rel (%p236_p10) target bundleno = 4520 (0x11a8), region = 51  ;;  %s11432_s9 = sshll.u32 (!%p236_p10), %s242_s7, 7 }
  0x33   : > { %p283_p11 = scmp.lt.s32.totalorder (!%p236_p10), %s13444_s16, 1  ;;  %p285_p12 = scmp.lt.s32.totalorder (!%p236_p10), %s11433_s8, 1279 }
  0x34   : > { %s11435_s11 = sshll.u32 (!%p236_p10), %s13440_s15, 7  ;;  %p301_p0 = scmp.lt.s32.totalorder (!%p236_p10), %s13440_s15, 1 }
  0x35   : > { %p294_p13 = scmp.lt.s32.totalorder (!%p236_p10), %s11435_s11, 255  ;;  %p11439_p1 = scmp.ne.s32.totalorder (!%p236_p10), %s13436_s14, 0 }
  0x37   : > { %s15230_s16 = smov (!%p283_p11, %s13444_s16), 1  ;;  %s15232_s8 = smov (!%p285_p12, %s11433_s8), 1279 }
  0x38   : > { %s13188_s10 = smul.u32 1280, %s15230_s16  ;;  %s11437_s30 = sshll.u32 %s15230_s16, 1 }
  0x39   : > { %s15234_s11 = smov (!%p294_p13, %s11435_s11), 255  ;;  %s15236_s15 = smov (!%p301_p0, %s13440_s15), 1 }
  0x3a   : > { %s288_s24 = sadd.s32 %s13188_s10, %s15232_s8  ;;  %s11436_s12 = sshll.u32 %s15234_s11, 3 }
  0x3b   : > { %s11434_s25 = sshll.u32 %s288_s24, 2  ;;  %s13589_s6 = scalar_lea.vmem %s15205_s2, %s11436_s12 }
  0x3c   : > { %s13583_s29 = scalar_lea.vmem %s15203_s0, %s11434_s25  ;;  %s304_s7 = sadd.s32 %s11437_s30, %s15236_s15 }
  0x3d   : > { %s11438_s1 = sshll.u32 %s304_s7, 3  ;;  %s13596_s24 = scalar_lea.vmem [#allocation3], %s11432_s9 }
  0x3e   : > { %s13594_s10 = scalar_lea.vmem %s15206_s3, %s11438_s1  ;;  %311 = sbr.rel (%p11439_p1) target bundleno = 76 (0x4c), region = 59 }
  0x43   : > { %v13462_v16 = vmov 0.0  }
  0x44   : > { %312 = vst [vmem:[#allocation2 + $0x30] sm:$0xff] %v13462_v16 }
  0x45   : > { %313 = vst [vmem:[#allocation2] sm:$0xff] %v13462_v16 }
  0x46   : > { %314 = vst [vmem:[#allocation2 + $0x18] sm:$0xff] %v13462_v16 }
  0x47   : > { %315 = vst [vmem:[#allocation2 + $0x10] sm:$0xff] %v13462_v16 }
  0x48   : > { %316 = vst [vmem:[#allocation2 + $0x8] sm:$0xff] %v13462_v16 }
  0x49   : > { %317 = vst [vmem:[#allocation2 + $0x20] sm:$0xff] %v13462_v16 }
  0x4a   : > { %318 = vst [vmem:[#allocation2 + $0x28] sm:$0xff] %v13462_v16 }
  0x4b   : > { %319 = vst [vmem:[#allocation2 + $0x38] sm:$0xff] %v13462_v16 }
  0x4c PF: > { %v11986_v17 = vld [vmem:[%s13596_s24 + $0x40] sm:$0xf]  ;;  %v13180_v19 = vld [vmem:[%s13596_s24 + $0x44] sm:$0xf]  ;;  %v11994_v22 = vld [vmem:[%s13596_s24 + $0x48] sm:$0xf] }
  0x4d   : > { %v13184_v18 = vld [vmem:[%s13596_s24 + $0x5c] sm:$0xf0]  ;;  %v11988_v21 = vld [vmem:[%s13596_s24 + $0x60] sm:$0xf0]  ;;  %v13185_v23 = vld [vmem:[%s13596_s24 + $0x64] sm:$0xf0] }
  0x4e   : > { %v11987_v20 = vor.u32 %v13184_v18, %v11986_v17  ;;  %v11991_v24 = vor.u32 %v13180_v19, %v11988_v21  ;;  %v11995_v25 = vor.u32 %v13185_v23, %v11994_v22  ;;  %v13181_v26 = vld [vmem:[%s13596_s24 + $0x4c] sm:$0xf]  ;;  %v11954_v28 = vld [vmem:[%s13596_s24] sm:$0xf]  ;;  %v13172_v31 = vld [vmem:[%s13596_s24 + $0x4] sm:$0xf] }
  0x4f   : > { %v11996_v27 = vld [vmem:[%s13596_s24 + $0x68] sm:$0xf0]  ;;  %v13176_v30 = vld [vmem:[%s13596_s24 + $0x1c] sm:$0xf0]  ;;  %v11956_v32 = vld [vmem:[%s13596_s24 + $0x20] sm:$0xf0] }
  0x50   : > { %1703 = vmatpush.bf16.msra.mxu0 %v11987_v20  ;;  %v11999_v29 = vor.u32 %v13181_v26, %v11996_v27  ;;  %2352 = vmatpush.bf16.msra.mxu1 %v11991_v24  ;;  %v11955_v33 = vor.u32 %v13176_v30, %v11954_v28  ;;  %v11959_v34 = vor.u32 %v13172_v31, %v11956_v32  ;;  %v11962_v35 = vld [vmem:[%s13596_s24 + $0x8] sm:$0xf]  ;;  %v13173_v37 = vld [vmem:[%s13596_s24 + $0xc] sm:$0xf]  ;;  %v13044_v40 = vld [vmem:[%s13583_s29] sm:$0xff]  ;;  %vm1312_vm0 = vcmask 261120  }
  0x51   : > { %3001 = vmatpush.bf16.msra.mxu2 %v11995_v25  ;;  %v13177_v36 = vld [vmem:[%s13596_s24 + $0x24] sm:$0xf0]  ;;  %v11964_v39 = vld [vmem:[%s13596_s24 + $0x28] sm:$0xf0]  ;;  %v12010_v41 = vld [vmem:[%s13596_s24 + $0x58] sm:$0xf] }
  0x52   : > { %3650 = vmatpush.bf16.msra.mxu3 %v11999_v29  ;;  %v11963_v38 = vor.u32 %v13177_v36, %v11962_v35  ;;  %v11967_v42 = vor.u32 %v13173_v37, %v11964_v39  ;;  %v13187_v43 = vld [vmem:[%s13596_s24 + $0x74] sm:$0xf0]  ;;  %v13183_v44 = vld [vmem:[%s13596_s24 + $0x5c] sm:$0xf]  ;;  %v12002_v48 = vld [vmem:[%s13596_s24 + $0x50] sm:$0xf] }
  0x53   : > { %v12012_v45 = vld [vmem:[%s13596_s24 + $0x78] sm:$0xf0]  ;;  %v12011_v46 = vor.u32 %v13187_v43, %v12010_v41  ;;  %v13186_v49 = vld [vmem:[%s13596_s24 + $0x6c] sm:$0xf0]  ;;  %v13182_v50 = vld [vmem:[%s13596_s24 + $0x54] sm:$0xf] }
  0x54   : > { %1704 = vmatpush.bf16.msra.mxu0 %v11955_v33  ;;  %v12015_v47 = vor.u32 %v13183_v44, %v12012_v45  ;;  %2353 = vmatpush.bf16.msra.mxu1 %v11959_v34  ;;  %v12003_v51 = vor.u32 %v13186_v49, %v12002_v48  ;;  %v12004_v52 = vld [vmem:[%s13596_s24 + $0x70] sm:$0xf0]  ;;  %v13045_v54 = vld [vmem:[%s13583_s29 + $0x8] sm:$0xff]  ;;  %v13047_v56 = vld [vmem:[%s13583_s29 + $0x18] sm:$0xff]  ;;  %p13040_p2 = scmp.ne.s32.totalorder %s13436_s14, 4 }
  0x55   : > { %3002 = vmatpush.bf16.msra.mxu2 %v11963_v38  ;;  %v12007_v53 = vor.u32 %v13182_v50, %v12004_v52  ;;  %v13046_v55 = vld [vmem:[%s13583_s29 + $0x10] sm:$0xff]  ;;  %v13048_v57 = vld [vmem:[%s13583_s29 + $0x20] sm:$0xff]  ;;  %v13049_v58 = vld [vmem:[%s13583_s29 + $0x28] sm:$0xff] }
  0x56   : > { %3651 = vmatpush.bf16.msra.mxu3 %v11967_v42  ;;  %v13050_v59 = vld [vmem:[%s13583_s29 + $0x30] sm:$0xff]  ;;  %v13051_v60 = vld [vmem:[%s13583_s29 + $0x38] sm:$0xff]  ;;  %v13052_v61 = vld [vmem:[%s13583_s29 + $0x40] sm:$0xff] }
  0x57   : > { %12016 = vmatmul.msk.bf16.vlgmr.msra.gmra.mxu0 %vm1312_vm0, %v13044_v40  ;;  %12144 = vmatmul.msk.bf16.vlgmr.msra.gmra.mxu1 %vm1312_vm0, %v13044_v40  ;;  %v13053_v11 = vld [vmem:[%s13583_s29 + $0x48] sm:$0xff]  ;;  %v13054_v38 = vld [vmem:[%s13583_s29 + $0x50] sm:$0xff] }
  0x58   : > { %12272 = vmatmul.msk.bf16.vlgmr.msra.gmra.mxu2 %vm1312_vm0, %v13044_v40  ;;  %4299 = vmatpush.bf16.msrb.mxu0 %v12003_v51 }
  0x59   : > { %5597 = vmatpush.bf16.msrb.mxu2 %v12011_v46  ;;  %12400 = vmatmul.msk.bf16.vlgmr.msra.gmra.mxu3 %vm1312_vm0, %v13044_v40 }
  0x5a   : > { %6246 = vmatpush.bf16.msrb.mxu3 %v12015_v47  ;;  %4948 = vmatpush.bf16.msrb.mxu1 %v12007_v53 }
  0x67   : > { %12017 = vmatmul.msk.bf16.gmra.mxu0 %vm1312_vm0, %v13045_v54  ;;  %12145 = vmatmul.msk.bf16.gmra.mxu1 %vm1312_vm0, %v13045_v54 }
  0x68   : > { %12273 = vmatmul.msk.bf16.gmra.mxu2 %vm1312_vm0, %v13045_v54 }
  0x69   : > { %12401 = vmatmul.msk.bf16.gmra.mxu3 %vm1312_vm0, %v13045_v54 }
  0x77   : > { %12018 = vmatmul.msk.bf16.gmra.mxu0 %vm1312_vm0, %v13046_v55  ;;  %12146 = vmatmul.msk.bf16.gmra.mxu1 %vm1312_vm0, %v13046_v55 }
  0x78   : > { %12274 = vmatmul.msk.bf16.gmra.mxu2 %vm1312_vm0, %v13046_v55 }
  0x79   : > { %12402 = vmatmul.msk.bf16.gmra.mxu3 %vm1312_vm0, %v13046_v55 }
  0x87   : > { %12019 = vmatmul.msk.bf16.gmra.mxu0 %vm1312_vm0, %v13047_v56  ;;  %12147 = vmatmul.msk.bf16.gmra.mxu1 %vm1312_vm0, %v13047_v56 }
  0x88   : > { %12275 = vmatmul.msk.bf16.gmra.mxu2 %vm1312_vm0, %v13047_v56 }
  0x89   : > { %12403 = vmatmul.msk.bf16.gmra.mxu3 %vm1312_vm0, %v13047_v56 }
  0x97   : > { %12020 = vmatmul.msk.bf16.gmra.mxu0 %vm1312_vm0, %v13048_v57  ;;  %12148 = vmatmul.msk.bf16.gmra.mxu1 %vm1312_vm0, %v13048_v57 }
  0x98   : > { %12276 = vmatmul.msk.bf16.gmra.mxu2 %vm1312_vm0, %v13048_v57 }
  0x99   : > { %12404 = vmatmul.msk.bf16.gmra.mxu3 %vm1312_vm0, %v13048_v57 }
  0xa7   : > { %12021 = vmatmul.msk.bf16.gmra.mxu0 %vm1312_vm0, %v13049_v58  ;;  %12149 = vmatmul.msk.bf16.gmra.mxu1 %vm1312_vm0, %v13049_v58 }
  0xa8   : > { %12277 = vmatmul.msk.bf16.gmra.mxu2 %vm1312_vm0, %v13049_v58 }
  0xa9   : > { %12405 = vmatmul.msk.bf16.gmra.mxu3 %vm1312_vm0, %v13049_v58 }
  0xb7   : > { %12022 = vmatmul.msk.bf16.gmra.mxu0 %vm1312_vm0, %v13050_v59  ;;  %12150 = vmatmul.msk.bf16.gmra.mxu1 %vm1312_vm0, %v13050_v59 }
  0xb8   : > { %12278 = vmatmul.msk.bf16.gmra.mxu2 %vm1312_vm0, %v13050_v59 }
  0xb9   : > { %12406 = vmatmul.msk.bf16.gmra.mxu3 %vm1312_vm0, %v13050_v59 }
  0xc7   : > { %12023 = vmatmul.msk.bf16.gmra.mxu0 %vm1312_vm0, %v13051_v60  ;;  %12151 = vmatmul.msk.bf16.gmra.mxu1 %vm1312_vm0, %v13051_v60 }
  0xc8   : > { %12279 = vmatmul.msk.bf16.gmra.mxu2 %vm1312_vm0, %v13051_v60 }
  0xc9   : > { %12407 = vmatmul.msk.bf16.gmra.mxu3 %vm1312_vm0, %v13051_v60 }
  0xd4   : > { %v1706_v62 = vpop.f32.mrf.mxu0  ;;  %v2355_v63 = vpop.f32.mrf.mxu1 }
  0xd5   : > { %v6889_v3 = vmax.f32 %v1706_v62, 0.0  ;;  %v6890_v6 = vmax.f32 %v2355_v63, 0.0  ;;  %v13055_v63 = vld [vmem:[%s13583_s29 + $0x58] sm:$0xff] }
  0xd7   : > { %12024 = vmatmul.msk.bf16.gmra.mxu0 %vm1312_vm0, %v13052_v61  ;;  %12152 = vmatmul.msk.bf16.gmra.mxu1 %vm1312_vm0, %v13052_v61 }
  0xd8   : > { %12280 = vmatmul.msk.bf16.gmra.mxu2 %vm1312_vm0, %v13052_v61 }
  0xd9   : > { %12408 = vmatmul.msk.bf16.gmra.mxu3 %vm1312_vm0, %v13052_v61 }
  0xdb   : > { %v3004_v0 = vpop.f32.mrf.mxu2 }
  0xdc   : > { %v3653_v1 = vpop.f32.mrf.mxu3  ;;  %v1708_v2 = vpop.f32.mrf.mxu0  ;;  %v6891_v12 = vmax.f32 %v3004_v0, 0.0 }
  0xdd   : > { %v6897_v4 = vmax.f32 %v1708_v2, 0.0  ;;  %v2357_v5 = vpop.f32.mrf.mxu1  ;;  %v6892_v16 = vmax.f32 %v3653_v1, 0.0 }
  0xde   : > { %v6898_v7 = vmax.f32 %v2357_v5, 0.0 }
  0xdf   : > { %v8945_v8 = vadd.f32 %v6897_v4, %v6889_v3 }
  0xe0   : > { %v9200_v9 = vadd.f32 %v6898_v7, %v6890_v6 }
  0xe3   : > { %v3006_v10 = vpop.f32.mrf.mxu2 }
  0xe4   : > { %v6899_v13 = vmax.f32 %v3006_v10, 0.0  ;;  %v3655_v14 = vpop.f32.mrf.mxu3  ;;  %v1711_v15 = vpop.f32.mrf.mxu0 }
  0xe5   : > { %v6900_v17 = vmax.f32 %v3655_v14, 0.0  ;;  %v6905_v18 = vmax.f32 %v1711_v15, 0.0  ;;  %v2360_v19 = vpop.f32.mrf.mxu1 }
  0xe6   : > { %v9455_v20 = vadd.f32 %v6899_v13, %v6891_v12  ;;  %v6906_v21 = vmax.f32 %v2360_v19, 0.0 }
  0xe7   : > { %v9710_v22 = vadd.f32 %v6900_v17, %v6892_v16  ;;  %v8946_v23 = vadd.f32 %v8945_v8, %v6905_v18  ;;  %12025 = vmatmul.msk.bf16.gmra.mxu0 %vm1312_vm0, %v13053_v11  ;;  %12153 = vmatmul.msk.bf16.gmra.mxu1 %vm1312_vm0, %v13053_v11 }
  0xe8   : > { %v9201_v24 = vadd.f32 %v9200_v9, %v6906_v21  ;;  %12281 = vmatmul.msk.bf16.gmra.mxu2 %vm1312_vm0, %v13053_v11 }
  0xe9   : > { %12409 = vmatmul.msk.bf16.gmra.mxu3 %vm1312_vm0, %v13053_v11 }
  0xeb   : > { %v3009_v25 = vpop.f32.mrf.mxu2 }
  0xec   : > { %v6907_v26 = vmax.f32 %v3009_v25, 0.0  ;;  %v3658_v27 = vpop.f32.mrf.mxu3  ;;  %v1713_v28 = vpop.f32.mrf.mxu0 }
  0xed   : > { %v6908_v29 = vmax.f32 %v3658_v27, 0.0  ;;  %v6913_v30 = vmax.f32 %v1713_v28, 0.0  ;;  %v2362_v31 = vpop.f32.mrf.mxu1 }
  0xee   : > { %v9456_v32 = vadd.f32 %v9455_v20, %v6907_v26  ;;  %v6914_v33 = vmax.f32 %v2362_v31, 0.0 }
  0xef   : > { %v9711_v34 = vadd.f32 %v9710_v22, %v6908_v29  ;;  %v8947_v35 = vadd.f32 %v8946_v23, %v6913_v30 }
  0xf0   : > { %v9202_v36 = vadd.f32 %v9201_v24, %v6914_v33  ;;  %v13056_v24 = vld [vmem:[%s13583_s29 + $0x60] sm:$0xff] }
  0xf3   : > { %v3011_v37 = vpop.f32.mrf.mxu2 }
  0xf4   : > { %v6915_v39 = vmax.f32 %v3011_v37, 0.0  ;;  %v3660_v40 = vpop.f32.mrf.mxu3  ;;  %v1716_v41 = vpop.f32.mrf.mxu0 }
  0xf5   : > { %v6916_v42 = vmax.f32 %v3660_v40, 0.0  ;;  %v6921_v43 = vmax.f32 %v1716_v41, 0.0  ;;  %v2365_v44 = vpop.f32.mrf.mxu1 }
  0xf6   : > { %v9457_v45 = vadd.f32 %v9456_v32, %v6915_v39  ;;  %v6922_v46 = vmax.f32 %v2365_v44, 0.0 }
  0xf7   : > { %v9712_v47 = vadd.f32 %v9711_v34, %v6916_v42  ;;  %v8948_v48 = vadd.f32 %v8947_v35, %v6921_v43  ;;  %12026 = vmatmul.msk.bf16.gmra.mxu0 %vm1312_vm0, %v13054_v38  ;;  %12154 = vmatmul.msk.bf16.gmra.mxu1 %vm1312_vm0, %v13054_v38 }
  0xf8   : > { %v9203_v49 = vadd.f32 %v9202_v36, %v6922_v46  ;;  %12282 = vmatmul.msk.bf16.gmra.mxu2 %vm1312_vm0, %v13054_v38 }
  0xf9   : > { %12410 = vmatmul.msk.bf16.gmra.mxu3 %vm1312_vm0, %v13054_v38 }
  0xfb   : > { %v3014_v50 = vpop.f32.mrf.mxu2 }
  0xfc   : > { %v6923_v51 = vmax.f32 %v3014_v50, 0.0  ;;  %v3663_v52 = vpop.f32.mrf.mxu3  ;;  %v1718_v53 = vpop.f32.mrf.mxu0 }
  0xfd   : > { %v6924_v54 = vmax.f32 %v3663_v52, 0.0  ;;  %v6929_v55 = vmax.f32 %v1718_v53, 0.0  ;;  %v2367_v56 = vpop.f32.mrf.mxu1 }
  0xfe   : > { %v9458_v57 = vadd.f32 %v9457_v45, %v6923_v51  ;;  %v6930_v58 = vmax.f32 %v2367_v56, 0.0 }
  0xff   : > { %v9713_v59 = vadd.f32 %v9712_v47, %v6924_v54  ;;  %v8949_v60 = vadd.f32 %v8948_v48, %v6929_v55 }
 0x100   : > { %v9204_v61 = vadd.f32 %v9203_v49, %v6930_v58  ;;  %v13057_v49 = vld [vmem:[%s13583_s29 + $0x68] sm:$0xff] }
 0x103   : > { %v3016_v62 = vpop.f32.mrf.mxu2 }
 0x104   : > { %v6931_v0 = vmax.f32 %v3016_v62, 0.0  ;;  %v3665_v1 = vpop.f32.mrf.mxu3  ;;  %v1721_v2 = vpop.f32.mrf.mxu0 }
 0x105   : > { %v6932_v3 = vmax.f32 %v3665_v1, 0.0  ;;  %v6937_v4 = vmax.f32 %v1721_v2, 0.0  ;;  %v2370_v5 = vpop.f32.mrf.mxu1 }
 0x106   : > { %v9459_v6 = vadd.f32 %v9458_v57, %v6931_v0  ;;  %v6938_v7 = vmax.f32 %v2370_v5, 0.0 }
 0x107   : > { %v9714_v8 = vadd.f32 %v9713_v59, %v6932_v3  ;;  %v8950_v9 = vadd.f32 %v8949_v60, %v6937_v4  ;;  %12027 = vmatmul.msk.bf16.gmra.mxu0 %vm1312_vm0, %v13055_v63  ;;  %12155 = vmatmul.msk.bf16.gmra.mxu1 %vm1312_vm0, %v13055_v63 }
 0x108   : > { %v9205_v10 = vadd.f32 %v9204_v61, %v6938_v7  ;;  %12283 = vmatmul.msk.bf16.gmra.mxu2 %vm1312_vm0, %v13055_v63 }
 0x109   : > { %12411 = vmatmul.msk.bf16.gmra.mxu3 %vm1312_vm0, %v13055_v63 }
 0x10b   : > { %v3019_v11 = vpop.f32.mrf.mxu2 }
 0x10c   : > { %v6939_v12 = vmax.f32 %v3019_v11, 0.0  ;;  %v3668_v13 = vpop.f32.mrf.mxu3  ;;  %v1723_v14 = vpop.f32.mrf.mxu0 }
 0x10d   : > { %v6940_v15 = vmax.f32 %v3668_v13, 0.0  ;;  %v6945_v16 = vmax.f32 %v1723_v14, 0.0  ;;  %v2372_v17 = vpop.f32.mrf.mxu1 }
 0x10e   : > { %v9460_v18 = vadd.f32 %v9459_v6, %v6939_v12  ;;  %v6946_v19 = vmax.f32 %v2372_v17, 0.0 }
 0x10f   : > { %v9715_v20 = vadd.f32 %v9714_v8, %v6940_v15  ;;  %v8951_v21 = vadd.f32 %v8950_v9, %v6945_v16 }
 0x110   : > { %v9206_v22 = vadd.f32 %v9205_v10, %v6946_v19  ;;  %v13058_v10 = vld [vmem:[%s13583_s29 + $0x70] sm:$0xff] }
 0x113   : > { %v3021_v23 = vpop.f32.mrf.mxu2 }
 0x114   : > { %v6947_v25 = vmax.f32 %v3021_v23, 0.0  ;;  %v3670_v26 = vpop.f32.mrf.mxu3  ;;  %v1726_v27 = vpop.f32.mrf.mxu0 }
 0x115   : > { %v6948_v28 = vmax.f32 %v3670_v26, 0.0  ;;  %v6953_v29 = vmax.f32 %v1726_v27, 0.0  ;;  %v2375_v30 = vpop.f32.mrf.mxu1 }
 0x116   : > { %v9461_v31 = vadd.f32 %v9460_v18, %v6947_v25  ;;  %v6954_v32 = vmax.f32 %v2375_v30, 0.0 }
 0x117   : > { %v9716_v33 = vadd.f32 %v9715_v20, %v6948_v28  ;;  %v8952_v34 = vadd.f32 %v8951_v21, %v6953_v29  ;;  %12028 = vmatmul.msk.bf16.gmra.mxu0 %vm1312_vm0, %v13056_v24  ;;  %12156 = vmatmul.msk.bf16.gmra.mxu1 %vm1312_vm0, %v13056_v24 }
 0x118   : > { %v9207_v35 = vadd.f32 %v9206_v22, %v6954_v32  ;;  %12284 = vmatmul.msk.bf16.gmra.mxu2 %vm1312_vm0, %v13056_v24 }
 0x119   : > { %12412 = vmatmul.msk.bf16.gmra.mxu3 %vm1312_vm0, %v13056_v24 }
 0x11b   : > { %v3024_v36 = vpop.f32.mrf.mxu2 }
 0x11c   : > { %v6955_v37 = vmax.f32 %v3024_v36, 0.0  ;;  %v3673_v38 = vpop.f32.mrf.mxu3  ;;  %v1728_v39 = vpop.f32.mrf.mxu0 }
 0x11d   : > { %v6956_v40 = vmax.f32 %v3673_v38, 0.0  ;;  %v6961_v41 = vmax.f32 %v1728_v39, 0.0  ;;  %v2377_v42 = vpop.f32.mrf.mxu1 }
 0x11e   : > { %v9462_v43 = vadd.f32 %v9461_v31, %v6955_v37  ;;  %v6962_v44 = vmax.f32 %v2377_v42, 0.0 }
 0x11f   : > { %v9717_v45 = vadd.f32 %v9716_v33, %v6956_v40  ;;  %v8953_v46 = vadd.f32 %v8952_v34, %v6961_v41 }
 0x120   : > { %v9208_v47 = vadd.f32 %v9207_v35, %v6962_v44  ;;  %v13059_v35 = vld [vmem:[%s13583_s29 + $0x78] sm:$0xff] }
 0x123   : > { %v3026_v48 = vpop.f32.mrf.mxu2 }
 0x124   : > { %v6963_v50 = vmax.f32 %v3026_v48, 0.0  ;;  %v3675_v51 = vpop.f32.mrf.mxu3  ;;  %v1731_v52 = vpop.f32.mrf.mxu0 }
 0x125   : > { %v6964_v53 = vmax.f32 %v3675_v51, 0.0  ;;  %v6969_v54 = vmax.f32 %v1731_v52, 0.0  ;;  %v2380_v55 = vpop.f32.mrf.mxu1 }
 0x126   : > { %v9463_v56 = vadd.f32 %v9462_v43, %v6963_v50  ;;  %v6970_v57 = vmax.f32 %v2380_v55, 0.0 }
 0x127   : > { %v9718_v58 = vadd.f32 %v9717_v45, %v6964_v53  ;;  %v8954_v59 = vadd.f32 %v8953_v46, %v6969_v54  ;;  %12029 = vmatmul.msk.bf16.gmra.mxu0 %vm1312_vm0, %v13057_v49  ;;  %12157 = vmatmul.msk.bf16.gmra.mxu1 %vm1312_vm0, %v13057_v49 }
 0x128   : > { %v9209_v60 = vadd.f32 %v9208_v47, %v6970_v57  ;;  %12285 = vmatmul.msk.bf16.gmra.mxu2 %vm1312_vm0, %v13057_v49 }
 0x129   : > { %12413 = vmatmul.msk.bf16.gmra.mxu3 %vm1312_vm0, %v13057_v49 }
 0x12b   : > { %v3029_v61 = vpop.f32.mrf.mxu2 }
 0x12c   : > { %v6971_v62 = vmax.f32 %v3029_v61, 0.0  ;;  %v3678_v63 = vpop.f32.mrf.mxu3  ;;  %v1733_v0 = vpop.f32.mrf.mxu0 }
 0x12d   : > { %v6972_v1 = vmax.f32 %v3678_v63, 0.0  ;;  %v6977_v2 = vmax.f32 %v1733_v0, 0.0  ;;  %v2382_v3 = vpop.f32.mrf.mxu1 }
 0x12e   : > { %v9464_v4 = vadd.f32 %v9463_v56, %v6971_v62  ;;  %v6978_v5 = vmax.f32 %v2382_v3, 0.0 }
 0x12f   : > { %v9719_v6 = vadd.f32 %v9718_v58, %v6972_v1  ;;  %v8955_v7 = vadd.f32 %v8954_v59, %v6977_v2 }
 0x130   : > { %v9210_v8 = vadd.f32 %v9209_v60, %v6978_v5  ;;  %v13060_v60 = vld [vmem:[%s13583_s29 + $0x80] sm:$0xff] }
 0x133   : > { %v3031_v9 = vpop.f32.mrf.mxu2 }
 0x134   : > { %v6979_v11 = vmax.f32 %v3031_v9, 0.0  ;;  %v3680_v12 = vpop.f32.mrf.mxu3  ;;  %v1736_v13 = vpop.f32.mrf.mxu0 }
 0x135   : > { %v6980_v14 = vmax.f32 %v3680_v12, 0.0  ;;  %v6985_v15 = vmax.f32 %v1736_v13, 0.0  ;;  %v2385_v16 = vpop.f32.mrf.mxu1 }
 0x136   : > { %v9465_v17 = vadd.f32 %v9464_v4, %v6979_v11  ;;  %v6986_v18 = vmax.f32 %v2385_v16, 0.0 }
 0x137   : > { %v9720_v19 = vadd.f32 %v9719_v6, %v6980_v14  ;;  %v8956_v20 = vadd.f32 %v8955_v7, %v6985_v15  ;;  %12030 = vmatmul.msk.bf16.gmra.mxu0 %vm1312_vm0, %v13058_v10  ;;  %12158 = vmatmul.msk.bf16.gmra.mxu1 %vm1312_vm0, %v13058_v10 }
 0x138   : > { %v9211_v21 = vadd.f32 %v9210_v8, %v6986_v18  ;;  %12286 = vmatmul.msk.bf16.gmra.mxu2 %vm1312_vm0, %v13058_v10 }
 0x139   : > { %12414 = vmatmul.msk.bf16.gmra.mxu3 %vm1312_vm0, %v13058_v10 }
 0x13b   : > { %v3034_v22 = vpop.f32.mrf.mxu2 }
 0x13c   : > { %v6987_v23 = vmax.f32 %v3034_v22, 0.0  ;;  %v3683_v24 = vpop.f32.mrf.mxu3  ;;  %v1738_v25 = vpop.f32.mrf.mxu0 }
 0x13d   : > { %v6988_v26 = vmax.f32 %v3683_v24, 0.0  ;;  %v6993_v27 = vmax.f32 %v1738_v25, 0.0  ;;  %v2387_v28 = vpop.f32.mrf.mxu1 }
 0x13e   : > { %v9466_v29 = vadd.f32 %v9465_v17, %v6987_v23  ;;  %v6994_v30 = vmax.f32 %v2387_v28, 0.0 }
 0x13f   : > { %v9721_v31 = vadd.f32 %v9720_v19, %v6988_v26  ;;  %v8957_v32 = vadd.f32 %v8956_v20, %v6993_v27 }
 0x140   : > { %v9212_v33 = vadd.f32 %v9211_v21, %v6994_v30  ;;  %v13061_v21 = vld [vmem:[%s13583_s29 + $0x88] sm:$0xff] }
 0x143   : > { %v3036_v34 = vpop.f32.mrf.mxu2 }
 0x144   : > { %v6995_v36 = vmax.f32 %v3036_v34, 0.0  ;;  %v3685_v37 = vpop.f32.mrf.mxu3  ;;  %v1741_v38 = vpop.f32.mrf.mxu0 }
 0x145   : > { %v6996_v39 = vmax.f32 %v3685_v37, 0.0  ;;  %v7001_v40 = vmax.f32 %v1741_v38, 0.0  ;;  %v2390_v41 = vpop.f32.mrf.mxu1 }
 0x146   : > { %v9467_v42 = vadd.f32 %v9466_v29, %v6995_v36  ;;  %v7002_v43 = vmax.f32 %v2390_v41, 0.0 }
 0x147   : > { %v9722_v44 = vadd.f32 %v9721_v31, %v6996_v39  ;;  %v8958_v45 = vadd.f32 %v8957_v32, %v7001_v40  ;;  %12031 = vmatmul.msk.bf16.gmra.mxu0 %vm1312_vm0, %v13059_v35  ;;  %12159 = vmatmul.msk.bf16.gmra.mxu1 %vm1312_vm0, %v13059_v35 }
 0x148   : > { %v9213_v46 = vadd.f32 %v9212_v33, %v7002_v43  ;;  %12287 = vmatmul.msk.bf16.gmra.mxu2 %vm1312_vm0, %v13059_v35 }
 0x149   : > { %12415 = vmatmul.msk.bf16.gmra.mxu3 %vm1312_vm0, %v13059_v35 }
 0x14b   : > { %v3039_v47 = vpop.f32.mrf.mxu2 }
 0x14c   : > { %v7003_v48 = vmax.f32 %v3039_v47, 0.0  ;;  %v3688_v49 = vpop.f32.mrf.mxu3  ;;  %v1743_v50 = vpop.f32.mrf.mxu0 }
 0x14d   : > { %v7004_v51 = vmax.f32 %v3688_v49, 0.0  ;;  %v7009_v52 = vmax.f32 %v1743_v50, 0.0  ;;  %v2392_v53 = vpop.f32.mrf.mxu1 }
 0x14e   : > { %v9468_v54 = vadd.f32 %v9467_v42, %v7003_v48  ;;  %v7010_v55 = vmax.f32 %v2392_v53, 0.0 }
 0x14f   : > { %v9723_v56 = vadd.f32 %v9722_v44, %v7004_v51  ;;  %v8959_v57 = vadd.f32 %v8958_v45, %v7009_v52 }
 0x150   : > { %v9214_v58 = vadd.f32 %v9213_v46, %v7010_v55  ;;  %v13062_v46 = vld [vmem:[%s13583_s29 + $0x90] sm:$0xff] }
 0x153   : > { %v3041_v59 = vpop.f32.mrf.mxu2 }
 0x154   : > { %v7011_v61 = vmax.f32 %v3041_v59, 0.0  ;;  %v3690_v62 = vpop.f32.mrf.mxu3  ;;  %v1746_v63 = vpop.f32.mrf.mxu0 }
 0x155   : > { %v7012_v0 = vmax.f32 %v3690_v62, 0.0  ;;  %v7017_v1 = vmax.f32 %v1746_v63, 0.0  ;;  %v2395_v2 = vpop.f32.mrf.mxu1 }
 0x156   : > { %v9469_v3 = vadd.f32 %v9468_v54, %v7011_v61  ;;  %v7018_v4 = vmax.f32 %v2395_v2, 0.0 }
 0x157   : > { %v9724_v5 = vadd.f32 %v9723_v56, %v7012_v0  ;;  %v8960_v6 = vadd.f32 %v8959_v57, %v7017_v1  ;;  %12032 = vmatmul.msk.bf16.gmra.mxu0 %vm1312_vm0, %v13060_v60  ;;  %12160 = vmatmul.msk.bf16.gmra.mxu1 %vm1312_vm0, %v13060_v60 }
 0x158   : > { %v9215_v7 = vadd.f32 %v9214_v58, %v7018_v4  ;;  %12288 = vmatmul.msk.bf16.gmra.mxu2 %vm1312_vm0, %v13060_v60 }
 0x159   : > { %12416 = vmatmul.msk.bf16.gmra.mxu3 %vm1312_vm0, %v13060_v60 }
 0x15b   : > { %v3044_v8 = vpop.f32.mrf.mxu2 }
 0x15c   : > { %v7019_v9 = vmax.f32 %v3044_v8, 0.0  ;;  %v3693_v10 = vpop.f32.mrf.mxu3  ;;  %v1748_v11 = vpop.f32.mrf.mxu0 }
 0x15d   : > { %v7020_v12 = vmax.f32 %v3693_v10, 0.0  ;;  %v7025_v13 = vmax.f32 %v1748_v11, 0.0  ;;  %v2397_v14 = vpop.f32.mrf.mxu1 }
 0x15e   : > { %v9470_v15 = vadd.f32 %v9469_v3, %v7019_v9  ;;  %v7026_v16 = vmax.f32 %v2397_v14, 0.0 }
 0x15f   : > { %v9725_v17 = vadd.f32 %v9724_v5, %v7020_v12  ;;  %v8961_v18 = vadd.f32 %v8960_v6, %v7025_v13 }
 0x160   : > { %v9216_v19 = vadd.f32 %v9215_v7, %v7026_v16  ;;  %v13063_v7 = vld [vmem:[%s13583_s29 + $0x98] sm:$0xff] }
 0x163   : > { %v3046_v20 = vpop.f32.mrf.mxu2 }
 0x164   : > { %v7027_v22 = vmax.f32 %v3046_v20, 0.0  ;;  %v3695_v23 = vpop.f32.mrf.mxu3  ;;  %v1751_v24 = vpop.f32.mrf.mxu0 }
 0x165   : > { %v7028_v25 = vmax.f32 %v3695_v23, 0.0  ;;  %v7033_v26 = vmax.f32 %v1751_v24, 0.0  ;;  %v2400_v27 = vpop.f32.mrf.mxu1 }
 0x166   : > { %v9471_v28 = vadd.f32 %v9470_v15, %v7027_v22  ;;  %v7034_v29 = vmax.f32 %v2400_v27, 0.0 }
 0x167   : > { %v9726_v30 = vadd.f32 %v9725_v17, %v7028_v25  ;;  %v8962_v31 = vadd.f32 %v8961_v18, %v7033_v26  ;;  %12033 = vmatmul.msk.bf16.gmra.mxu0 %vm1312_vm0, %v13061_v21  ;;  %12161 = vmatmul.msk.bf16.gmra.mxu1 %vm1312_vm0, %v13061_v21 }
 0x168   : > { %v9217_v32 = vadd.f32 %v9216_v19, %v7034_v29  ;;  %12289 = vmatmul.msk.bf16.gmra.mxu2 %vm1312_vm0, %v13061_v21 }
 0x169   : > { %12417 = vmatmul.msk.bf16.gmra.mxu3 %vm1312_vm0, %v13061_v21 }
 0x16b   : > { %v3049_v33 = vpop.f32.mrf.mxu2 }
 0x16c   : > { %v7035_v34 = vmax.f32 %v3049_v33, 0.0  ;;  %v3698_v35 = vpop.f32.mrf.mxu3  ;;  %v1753_v36 = vpop.f32.mrf.mxu0 }
 0x16d   : > { %v7036_v37 = vmax.f32 %v3698_v35, 0.0  ;;  %v7041_v38 = vmax.f32 %v1753_v36, 0.0  ;;  %v2402_v39 = vpop.f32.mrf.mxu1 }
 0x16e   : > { %v9472_v40 = vadd.f32 %v9471_v28, %v7035_v34  ;;  %v7042_v41 = vmax.f32 %v2402_v39, 0.0 }
 0x16f   : > { %v9727_v42 = vadd.f32 %v9726_v30, %v7036_v37  ;;  %v8963_v43 = vadd.f32 %v8962_v31, %v7041_v38 }
 0x170   : > { %v9218_v44 = vadd.f32 %v9217_v32, %v7042_v41  ;;  %v13064_v32 = vld [vmem:[%s13583_s29 + $0xa0] sm:$0xff] }
 0x173   : > { %v3051_v45 = vpop.f32.mrf.mxu2 }
 0x174   : > { %v7043_v47 = vmax.f32 %v3051_v45, 0.0  ;;  %v3700_v48 = vpop.f32.mrf.mxu3  ;;  %v1756_v49 = vpop.f32.mrf.mxu0 }
 0x175   : > { %v7044_v50 = vmax.f32 %v3700_v48, 0.0  ;;  %v7049_v51 = vmax.f32 %v1756_v49, 0.0  ;;  %v2405_v52 = vpop.f32.mrf.mxu1 }
 0x176   : > { %v9473_v53 = vadd.f32 %v9472_v40, %v7043_v47  ;;  %v7050_v54 = vmax.f32 %v2405_v52, 0.0 }
 0x177   : > { %v9728_v55 = vadd.f32 %v9727_v42, %v7044_v50  ;;  %v8964_v56 = vadd.f32 %v8963_v43, %v7049_v51  ;;  %12034 = vmatmul.msk.bf16.gmra.mxu0 %vm1312_vm0, %v13062_v46  ;;  %12162 = vmatmul.msk.bf16.gmra.mxu1 %vm1312_vm0, %v13062_v46 }
 0x178   : > { %v9219_v57 = vadd.f32 %v9218_v44, %v7050_v54  ;;  %12290 = vmatmul.msk.bf16.gmra.mxu2 %vm1312_vm0, %v13062_v46 }
 0x179   : > { %12418 = vmatmul.msk.bf16.gmra.mxu3 %vm1312_vm0, %v13062_v46 }
 0x17b   : > { %v3054_v58 = vpop.f32.mrf.mxu2 }
 0x17c   : > { %v7051_v59 = vmax.f32 %v3054_v58, 0.0  ;;  %v3703_v60 = vpop.f32.mrf.mxu3  ;;  %v1758_v61 = vpop.f32.mrf.mxu0 }
 0x17d   : > { %v7052_v62 = vmax.f32 %v3703_v60, 0.0  ;;  %v7057_v63 = vmax.f32 %v1758_v61, 0.0  ;;  %v2407_v0 = vpop.f32.mrf.mxu1 }
 0x17e   : > { %v9474_v1 = vadd.f32 %v9473_v53, %v7051_v59  ;;  %v7058_v2 = vmax.f32 %v2407_v0, 0.0 }
 0x17f   : > { %v9729_v3 = vadd.f32 %v9728_v55, %v7052_v62  ;;  %v8965_v4 = vadd.f32 %v8964_v56, %v7057_v63 }
 0x180   : > { %v9220_v5 = vadd.f32 %v9219_v57, %v7058_v2  ;;  %v13065_v57 = vld [vmem:[%s13583_s29 + $0xa8] sm:$0xff] }
 0x183   : > { %v3056_v6 = vpop.f32.mrf.mxu2 }
 0x184   : > { %v7059_v8 = vmax.f32 %v3056_v6, 0.0  ;;  %v3705_v9 = vpop.f32.mrf.mxu3  ;;  %v1761_v10 = vpop.f32.mrf.mxu0 }
 0x185   : > { %v7060_v11 = vmax.f32 %v3705_v9, 0.0  ;;  %v7065_v12 = vmax.f32 %v1761_v10, 0.0  ;;  %v2410_v13 = vpop.f32.mrf.mxu1 }
 0x186   : > { %v9475_v14 = vadd.f32 %v9474_v1, %v7059_v8  ;;  %v7066_v15 = vmax.f32 %v2410_v13, 0.0 }
 0x187   : > { %v9730_v16 = vadd.f32 %v9729_v3, %v7060_v11  ;;  %v8966_v17 = vadd.f32 %v8965_v4, %v7065_v12  ;;  %12035 = vmatmul.msk.bf16.gmra.mxu0 %vm1312_vm0, %v13063_v7  ;;  %12163 = vmatmul.msk.bf16.gmra.mxu1 %vm1312_vm0, %v13063_v7 }
 0x188   : > { %v9221_v18 = vadd.f32 %v9220_v5, %v7066_v15  ;;  %12291 = vmatmul.msk.bf16.gmra.mxu2 %vm1312_vm0, %v13063_v7 }
 0x189   : > { %12419 = vmatmul.msk.bf16.gmra.mxu3 %vm1312_vm0, %v13063_v7 }
 0x18b   : > { %v3059_v19 = vpop.f32.mrf.mxu2 }
 0x18c   : > { %v7067_v20 = vmax.f32 %v3059_v19, 0.0  ;;  %v3708_v21 = vpop.f32.mrf.mxu3  ;;  %v1763_v22 = vpop.f32.mrf.mxu0 }
 0x18d   : > { %v7068_v23 = vmax.f32 %v3708_v21, 0.0  ;;  %v7073_v24 = vmax.f32 %v1763_v22, 0.0  ;;  %v2412_v25 = vpop.f32.mrf.mxu1 }
 0x18e   : > { %v9476_v26 = vadd.f32 %v9475_v14, %v7067_v20  ;;  %v7074_v27 = vmax.f32 %v2412_v25, 0.0 }
 0x18f   : > { %v9731_v28 = vadd.f32 %v9730_v16, %v7068_v23  ;;  %v8967_v29 = vadd.f32 %v8966_v17, %v7073_v24 }
 0x190   : > { %v9222_v30 = vadd.f32 %v9221_v18, %v7074_v27  ;;  %v13066_v18 = vld [vmem:[%s13583_s29 + $0xb0] sm:$0xff] }
 0x193   : > { %v3061_v31 = vpop.f32.mrf.mxu2 }
 0x194   : > { %v7075_v33 = vmax.f32 %v3061_v31, 0.0  ;;  %v3710_v34 = vpop.f32.mrf.mxu3  ;;  %v1766_v35 = vpop.f32.mrf.mxu0 }
 0x195   : > { %v7076_v36 = vmax.f32 %v3710_v34, 0.0  ;;  %v7081_v37 = vmax.f32 %v1766_v35, 0.0  ;;  %v2415_v38 = vpop.f32.mrf.mxu1 }
 0x196   : > { %v9477_v39 = vadd.f32 %v9476_v26, %v7075_v33  ;;  %v7082_v40 = vmax.f32 %v2415_v38, 0.0 }
 0x197   : > { %v9732_v41 = vadd.f32 %v9731_v28, %v7076_v36  ;;  %v8968_v42 = vadd.f32 %v8967_v29, %v7081_v37  ;;  %12036 = vmatmul.msk.bf16.gmra.mxu0 %vm1312_vm0, %v13064_v32  ;;  %12164 = vmatmul.msk.bf16.gmra.mxu1 %vm1312_vm0, %v13064_v32 }
 0x198   : > { %v9223_v43 = vadd.f32 %v9222_v30, %v7082_v40  ;;  %12292 = vmatmul.msk.bf16.gmra.mxu2 %vm1312_vm0, %v13064_v32 }
 0x199   : > { %12420 = vmatmul.msk.bf16.gmra.mxu3 %vm1312_vm0, %v13064_v32 }
 0x19b   : > { %v3064_v44 = vpop.f32.mrf.mxu2 }
 0x19c   : > { %v7083_v45 = vmax.f32 %v3064_v44, 0.0  ;;  %v3713_v46 = vpop.f32.mrf.mxu3  ;;  %v1768_v47 = vpop.f32.mrf.mxu0 }
 0x19d   : > { %v7084_v48 = vmax.f32 %v3713_v46, 0.0  ;;  %v7089_v49 = vmax.f32 %v1768_v47, 0.0  ;;  %v2417_v50 = vpop.f32.mrf.mxu1 }
 0x19e   : > { %v9478_v51 = vadd.f32 %v9477_v39, %v7083_v45  ;;  %v7090_v52 = vmax.f32 %v2417_v50, 0.0 }
 0x19f   : > { %v9733_v53 = vadd.f32 %v9732_v41, %v7084_v48  ;;  %v8969_v54 = vadd.f32 %v8968_v42, %v7089_v49 }
 0x1a0   : > { %v9224_v55 = vadd.f32 %v9223_v43, %v7090_v52  ;;  %v13067_v43 = vld [vmem:[%s13583_s29 + $0xb8] sm:$0xff] }
 0x1a3   : > { %v3066_v56 = vpop.f32.mrf.mxu2 }
 0x1a4   : > { %v7091_v58 = vmax.f32 %v3066_v56, 0.0  ;;  %v3715_v59 = vpop.f32.mrf.mxu3  ;;  %v1771_v60 = vpop.f32.mrf.mxu0 }
 0x1a5   : > { %v7092_v61 = vmax.f32 %v3715_v59, 0.0  ;;  %v7097_v62 = vmax.f32 %v1771_v60, 0.0  ;;  %v2420_v63 = vpop.f32.mrf.mxu1 }
 0x1a6   : > { %v9479_v0 = vadd.f32 %v9478_v51, %v7091_v58  ;;  %v7098_v1 = vmax.f32 %v2420_v63, 0.0 }
 0x1a7   : > { %v9734_v2 = vadd.f32 %v9733_v53, %v7092_v61  ;;  %v8970_v3 = vadd.f32 %v8969_v54, %v7097_v62  ;;  %12037 = vmatmul.msk.bf16.gmra.mxu0 %vm1312_vm0, %v13065_v57  ;;  %12165 = vmatmul.msk.bf16.gmra.mxu1 %vm1312_vm0, %v13065_v57 }
 0x1a8   : > { %v9225_v4 = vadd.f32 %v9224_v55, %v7098_v1  ;;  %12293 = vmatmul.msk.bf16.gmra.mxu2 %vm1312_vm0, %v13065_v57 }
 0x1a9   : > { %12421 = vmatmul.msk.bf16.gmra.mxu3 %vm1312_vm0, %v13065_v57 }
 0x1ab   : > { %v3069_v5 = vpop.f32.mrf.mxu2 }
 0x1ac   : > { %v7099_v6 = vmax.f32 %v3069_v5, 0.0  ;;  %v3718_v7 = vpop.f32.mrf.mxu3  ;;  %v1773_v8 = vpop.f32.mrf.mxu0 }
 0x1ad   : > { %v7100_v9 = vmax.f32 %v3718_v7, 0.0  ;;  %v7105_v10 = vmax.f32 %v1773_v8, 0.0  ;;  %v2422_v11 = vpop.f32.mrf.mxu1 }
 0x1ae   : > { %v9480_v12 = vadd.f32 %v9479_v0, %v7099_v6  ;;  %v7106_v13 = vmax.f32 %v2422_v11, 0.0 }
 0x1af   : > { %v9735_v14 = vadd.f32 %v9734_v2, %v7100_v9  ;;  %v8971_v15 = vadd.f32 %v8970_v3, %v7105_v10 }
 0x1b0   : > { %v9226_v16 = vadd.f32 %v9225_v4, %v7106_v13  ;;  %v13068_v4 = vld [vmem:[%s13583_s29 + $0xc0] sm:$0xff] }
 0x1b3   : > { %v3071_v17 = vpop.f32.mrf.mxu2 }
 0x1b4   : > { %v7107_v19 = vmax.f32 %v3071_v17, 0.0  ;;  %v3720_v20 = vpop.f32.mrf.mxu3  ;;  %v1776_v21 = vpop.f32.mrf.mxu0 }
 0x1b5   : > { %v7108_v22 = vmax.f32 %v3720_v20, 0.0  ;;  %v7113_v23 = vmax.f32 %v1776_v21, 0.0  ;;  %v2425_v24 = vpop.f32.mrf.mxu1 }
 0x1b6   : > { %v9481_v25 = vadd.f32 %v9480_v12, %v7107_v19  ;;  %v7114_v26 = vmax.f32 %v2425_v24, 0.0 }
 0x1b7   : > { %v9736_v27 = vadd.f32 %v9735_v14, %v7108_v22  ;;  %v8972_v28 = vadd.f32 %v8971_v15, %v7113_v23  ;;  %12038 = vmatmul.msk.bf16.gmra.mxu0 %vm1312_vm0, %v13066_v18  ;;  %12166 = vmatmul.msk.bf16.gmra.mxu1 %vm1312_vm0, %v13066_v18 }
 0x1b8   : > { %v9227_v29 = vadd.f32 %v9226_v16, %v7114_v26  ;;  %12294 = vmatmul.msk.bf16.gmra.mxu2 %vm1312_vm0, %v13066_v18 }
 0x1b9   : > { %12422 = vmatmul.msk.bf16.gmra.mxu3 %vm1312_vm0, %v13066_v18 }
 0x1bb   : > { %v3074_v30 = vpop.f32.mrf.mxu2 }
 0x1bc   : > { %v7115_v31 = vmax.f32 %v3074_v30, 0.0  ;;  %v3723_v32 = vpop.f32.mrf.mxu3  ;;  %v1778_v33 = vpop.f32.mrf.mxu0 }
 0x1bd   : > { %v7116_v34 = vmax.f32 %v3723_v32, 0.0  ;;  %v7121_v35 = vmax.f32 %v1778_v33, 0.0  ;;  %v2427_v36 = vpop.f32.mrf.mxu1 }
 0x1be   : > { %v9482_v37 = vadd.f32 %v9481_v25, %v7115_v31  ;;  %v7122_v38 = vmax.f32 %v2427_v36, 0.0 }
 0x1bf   : > { %v9737_v39 = vadd.f32 %v9736_v27, %v7116_v34  ;;  %v8973_v40 = vadd.f32 %v8972_v28, %v7121_v35 }
 0x1c0   : > { %v9228_v41 = vadd.f32 %v9227_v29, %v7122_v38  ;;  %v13069_v29 = vld [vmem:[%s13583_s29 + $0xc8] sm:$0xff] }
 0x1c3   : > { %v3076_v42 = vpop.f32.mrf.mxu2 }
 0x1c4   : > { %v7123_v44 = vmax.f32 %v3076_v42, 0.0  ;;  %v3725_v45 = vpop.f32.mrf.mxu3  ;;  %v1781_v46 = vpop.f32.mrf.mxu0 }
 0x1c5   : > { %v7124_v47 = vmax.f32 %v3725_v45, 0.0  ;;  %v7129_v48 = vmax.f32 %v1781_v46, 0.0  ;;  %v2430_v49 = vpop.f32.mrf.mxu1 }
 0x1c6   : > { %v9483_v50 = vadd.f32 %v9482_v37, %v7123_v44  ;;  %v7130_v51 = vmax.f32 %v2430_v49, 0.0 }
 0x1c7   : > { %v9738_v52 = vadd.f32 %v9737_v39, %v7124_v47  ;;  %v8974_v53 = vadd.f32 %v8973_v40, %v7129_v48  ;;  %12039 = vmatmul.msk.bf16.gmra.mxu0 %vm1312_vm0, %v13067_v43  ;;  %12167 = vmatmul.msk.bf16.gmra.mxu1 %vm1312_vm0, %v13067_v43 }
 0x1c8   : > { %v9229_v54 = vadd.f32 %v9228_v41, %v7130_v51  ;;  %12295 = vmatmul.msk.bf16.gmra.mxu2 %vm1312_vm0, %v13067_v43 }
 0x1c9   : > { %12423 = vmatmul.msk.bf16.gmra.mxu3 %vm1312_vm0, %v13067_v43 }
 0x1cb   : > { %v3079_v55 = vpop.f32.mrf.mxu2 }
 0x1cc   : > { %v7131_v56 = vmax.f32 %v3079_v55, 0.0  ;;  %v3728_v57 = vpop.f32.mrf.mxu3  ;;  %v1783_v58 = vpop.f32.mrf.mxu0 }
 0x1cd   : > { %v7132_v59 = vmax.f32 %v3728_v57, 0.0  ;;  %v7137_v60 = vmax.f32 %v1783_v58, 0.0  ;;  %v2432_v61 = vpop.f32.mrf.mxu1 }
 0x1ce   : > { %v9484_v62 = vadd.f32 %v9483_v50, %v7131_v56  ;;  %v7138_v63 = vmax.f32 %v2432_v61, 0.0 }
 0x1cf   : > { %v9739_v0 = vadd.f32 %v9738_v52, %v7132_v59  ;;  %v8975_v1 = vadd.f32 %v8974_v53, %v7137_v60 }
 0x1d0   : > { %v9230_v2 = vadd.f32 %v9229_v54, %v7138_v63  ;;  %v13070_v54 = vld [vmem:[%s13583_s29 + $0xd0] sm:$0xff] }
 0x1d3   : > { %v3081_v3 = vpop.f32.mrf.mxu2 }
 0x1d4   : > { %v7139_v5 = vmax.f32 %v3081_v3, 0.0  ;;  %v3730_v6 = vpop.f32.mrf.mxu3  ;;  %v1786_v7 = vpop.f32.mrf.mxu0 }
 0x1d5   : > { %v7140_v8 = vmax.f32 %v3730_v6, 0.0  ;;  %v7145_v9 = vmax.f32 %v1786_v7, 0.0  ;;  %v2435_v10 = vpop.f32.mrf.mxu1 }
 0x1d6   : > { %v9485_v11 = vadd.f32 %v9484_v62, %v7139_v5  ;;  %v7146_v12 = vmax.f32 %v2435_v10, 0.0 }
 0x1d7   : > { %v9740_v13 = vadd.f32 %v9739_v0, %v7140_v8  ;;  %v8976_v14 = vadd.f32 %v8975_v1, %v7145_v9  ;;  %12040 = vmatmul.msk.bf16.gmra.mxu0 %vm1312_vm0, %v13068_v4  ;;  %12168 = vmatmul.msk.bf16.gmra.mxu1 %vm1312_vm0, %v13068_v4 }
 0x1d8   : > { %v9231_v15 = vadd.f32 %v9230_v2, %v7146_v12  ;;  %12296 = vmatmul.msk.bf16.gmra.mxu2 %vm1312_vm0, %v13068_v4 }
 0x1d9   : > { %12424 = vmatmul.msk.bf16.gmra.mxu3 %vm1312_vm0, %v13068_v4 }
 0x1db   : > { %v3084_v16 = vpop.f32.mrf.mxu2 }
 0x1dc   : > { %v7147_v17 = vmax.f32 %v3084_v16, 0.0  ;;  %v3733_v18 = vpop.f32.mrf.mxu3  ;;  %v1788_v19 = vpop.f32.mrf.mxu0 }
 0x1dd   : > { %v7148_v20 = vmax.f32 %v3733_v18, 0.0  ;;  %v7153_v21 = vmax.f32 %v1788_v19, 0.0  ;;  %v2437_v22 = vpop.f32.mrf.mxu1 }
 0x1de   : > { %v9486_v23 = vadd.f32 %v9485_v11, %v7147_v17  ;;  %v7154_v24 = vmax.f32 %v2437_v22, 0.0 }
 0x1df   : > { %v9741_v25 = vadd.f32 %v9740_v13, %v7148_v20  ;;  %v8977_v26 = vadd.f32 %v8976_v14, %v7153_v21 }
 0x1e0   : > { %v9232_v27 = vadd.f32 %v9231_v15, %v7154_v24  ;;  %v13071_v15 = vld [vmem:[%s13583_s29 + $0xd8] sm:$0xff] }
 0x1e3   : > { %v3086_v28 = vpop.f32.mrf.mxu2 }
 0x1e4   : > { %v7155_v30 = vmax.f32 %v3086_v28, 0.0  ;;  %v3735_v31 = vpop.f32.mrf.mxu3  ;;  %v1791_v32 = vpop.f32.mrf.mxu0 }
 0x1e5   : > { %v7156_v33 = vmax.f32 %v3735_v31, 0.0  ;;  %v7161_v34 = vmax.f32 %v1791_v32, 0.0  ;;  %v2440_v35 = vpop.f32.mrf.mxu1 }
 0x1e6   : > { %v9487_v36 = vadd.f32 %v9486_v23, %v7155_v30  ;;  %v7162_v37 = vmax.f32 %v2440_v35, 0.0 }
 0x1e7   : > { %v9742_v38 = vadd.f32 %v9741_v25, %v7156_v33  ;;  %v8978_v39 = vadd.f32 %v8977_v26, %v7161_v34  ;;  %12041 = vmatmul.msk.bf16.gmra.mxu0 %vm1312_vm0, %v13069_v29  ;;  %12169 = vmatmul.msk.bf16.gmra.mxu1 %vm1312_vm0, %v13069_v29 }
 0x1e8   : > { %v9233_v40 = vadd.f32 %v9232_v27, %v7162_v37  ;;  %12297 = vmatmul.msk.bf16.gmra.mxu2 %vm1312_vm0, %v13069_v29 }
 0x1e9   : > { %12425 = vmatmul.msk.bf16.gmra.mxu3 %vm1312_vm0, %v13069_v29 }
 0x1eb   : > { %v3089_v41 = vpop.f32.mrf.mxu2 }
 0x1ec   : > { %v7163_v42 = vmax.f32 %v3089_v41, 0.0  ;;  %v3738_v43 = vpop.f32.mrf.mxu3  ;;  %v1793_v44 = vpop.f32.mrf.mxu0 }
 0x1ed   : > { %v7164_v45 = vmax.f32 %v3738_v43, 0.0  ;;  %v7169_v46 = vmax.f32 %v1793_v44, 0.0  ;;  %v2442_v47 = vpop.f32.mrf.mxu1 }
 0x1ee   : > { %v9488_v48 = vadd.f32 %v9487_v36, %v7163_v42  ;;  %v7170_v49 = vmax.f32 %v2442_v47, 0.0 }
 0x1ef   : > { %v9743_v50 = vadd.f32 %v9742_v38, %v7164_v45  ;;  %v8979_v51 = vadd.f32 %v8978_v39, %v7169_v46 }
 0x1f0   : > { %v9234_v52 = vadd.f32 %v9233_v40, %v7170_v49  ;;  %v13072_v40 = vld [vmem:[%s13583_s29 + $0xe0] sm:$0xff] }
 0x1f3   : > { %v3091_v53 = vpop.f32.mrf.mxu2 }
 0x1f4   : > { %v7171_v55 = vmax.f32 %v3091_v53, 0.0  ;;  %v3740_v56 = vpop.f32.mrf.mxu3  ;;  %v1796_v57 = vpop.f32.mrf.mxu0 }
 0x1f5   : > { %v7172_v58 = vmax.f32 %v3740_v56, 0.0  ;;  %v7177_v59 = vmax.f32 %v1796_v57, 0.0  ;;  %v2445_v60 = vpop.f32.mrf.mxu1 }
 0x1f6   : > { %v9489_v61 = vadd.f32 %v9488_v48, %v7171_v55  ;;  %v7178_v62 = vmax.f32 %v2445_v60, 0.0 }
 0x1f7   : > { %v9744_v63 = vadd.f32 %v9743_v50, %v7172_v58  ;;  %v8980_v0 = vadd.f32 %v8979_v51, %v7177_v59  ;;  %12042 = vmatmul.msk.bf16.gmra.mxu0 %vm1312_vm0, %v13070_v54  ;;  %12170 = vmatmul.msk.bf16.gmra.mxu1 %vm1312_vm0, %v13070_v54 }
 0x1f8   : > { %v9235_v1 = vadd.f32 %v9234_v52, %v7178_v62  ;;  %12298 = vmatmul.msk.bf16.gmra.mxu2 %vm1312_vm0, %v13070_v54 }
 0x1f9   : > { %12426 = vmatmul.msk.bf16.gmra.mxu3 %vm1312_vm0, %v13070_v54 }
 0x1fb   : > { %v3094_v2 = vpop.f32.mrf.mxu2 }
 0x1fc   : > { %v7179_v3 = vmax.f32 %v3094_v2, 0.0  ;;  %v3743_v4 = vpop.f32.mrf.mxu3  ;;  %v1798_v5 = vpop.f32.mrf.mxu0 }
 0x1fd   : > { %v7180_v6 = vmax.f32 %v3743_v4, 0.0  ;;  %v7185_v7 = vmax.f32 %v1798_v5, 0.0  ;;  %v2447_v8 = vpop.f32.mrf.mxu1 }
 0x1fe   : > { %v9490_v9 = vadd.f32 %v9489_v61, %v7179_v3  ;;  %v7186_v10 = vmax.f32 %v2447_v8, 0.0 }
 0x1ff   : > { %v9745_v11 = vadd.f32 %v9744_v63, %v7180_v6  ;;  %v8981_v12 = vadd.f32 %v8980_v0, %v7185_v7 }
 0x200   : > { %v9236_v13 = vadd.f32 %v9235_v1, %v7186_v10  ;;  %v13073_v1 = vld [vmem:[%s13583_s29 + $0xe8] sm:$0xff] }
 0x203   : > { %v3096_v14 = vpop.f32.mrf.mxu2 }
 0x204   : > { %v7187_v16 = vmax.f32 %v3096_v14, 0.0  ;;  %v3745_v17 = vpop.f32.mrf.mxu3  ;;  %v1801_v18 = vpop.f32.mrf.mxu0 }
 0x205   : > { %v7188_v19 = vmax.f32 %v3745_v17, 0.0  ;;  %v7193_v20 = vmax.f32 %v1801_v18, 0.0  ;;  %v2450_v21 = vpop.f32.mrf.mxu1 }
 0x206   : > { %v9491_v22 = vadd.f32 %v9490_v9, %v7187_v16  ;;  %v7194_v23 = vmax.f32 %v2450_v21, 0.0 }
 0x207   : > { %v9746_v24 = vadd.f32 %v9745_v11, %v7188_v19  ;;  %v8982_v25 = vadd.f32 %v8981_v12, %v7193_v20  ;;  %12043 = vmatmul.msk.bf16.gmra.mxu0 %vm1312_vm0, %v13071_v15  ;;  %12171 = vmatmul.msk.bf16.gmra.mxu1 %vm1312_vm0, %v13071_v15 }
 0x208   : > { %v9237_v26 = vadd.f32 %v9236_v13, %v7194_v23  ;;  %12299 = vmatmul.msk.bf16.gmra.mxu2 %vm1312_vm0, %v13071_v15 }
 0x209   : > { %12427 = vmatmul.msk.bf16.gmra.mxu3 %vm1312_vm0, %v13071_v15 }
 0x20b   : > { %v3099_v27 = vpop.f32.mrf.mxu2 }
 0x20c   : > { %v7195_v28 = vmax.f32 %v3099_v27, 0.0  ;;  %v3748_v29 = vpop.f32.mrf.mxu3  ;;  %v1803_v30 = vpop.f32.mrf.mxu0 }
 0x20d   : > { %v7196_v31 = vmax.f32 %v3748_v29, 0.0  ;;  %v7201_v32 = vmax.f32 %v1803_v30, 0.0  ;;  %v2452_v33 = vpop.f32.mrf.mxu1 }
 0x20e   : > { %v9492_v34 = vadd.f32 %v9491_v22, %v7195_v28  ;;  %v7202_v35 = vmax.f32 %v2452_v33, 0.0 }
 0x20f   : > { %v9747_v36 = vadd.f32 %v9746_v24, %v7196_v31  ;;  %v8983_v37 = vadd.f32 %v8982_v25, %v7201_v32 }
 0x210   : > { %v9238_v38 = vadd.f32 %v9237_v26, %v7202_v35  ;;  %v13074_v26 = vld [vmem:[%s13583_s29 + $0xf0] sm:$0xff] }
 0x213   : > { %v3101_v39 = vpop.f32.mrf.mxu2 }
 0x214   : > { %v7203_v41 = vmax.f32 %v3101_v39, 0.0  ;;  %v3750_v42 = vpop.f32.mrf.mxu3  ;;  %v1806_v43 = vpop.f32.mrf.mxu0 }
 0x215   : > { %v7204_v44 = vmax.f32 %v3750_v42, 0.0  ;;  %v7209_v45 = vmax.f32 %v1806_v43, 0.0  ;;  %v2455_v46 = vpop.f32.mrf.mxu1 }
 0x216   : > { %v9493_v47 = vadd.f32 %v9492_v34, %v7203_v41  ;;  %v7210_v48 = vmax.f32 %v2455_v46, 0.0 }
 0x217   : > { %v9748_v49 = vadd.f32 %v9747_v36, %v7204_v44  ;;  %v8984_v50 = vadd.f32 %v8983_v37, %v7209_v45  ;;  %12044 = vmatmul.msk.bf16.gmra.mxu0 %vm1312_vm0, %v13072_v40  ;;  %12172 = vmatmul.msk.bf16.gmra.mxu1 %vm1312_vm0, %v13072_v40 }
 0x218   : > { %v9239_v51 = vadd.f32 %v9238_v38, %v7210_v48  ;;  %12300 = vmatmul.msk.bf16.gmra.mxu2 %vm1312_vm0, %v13072_v40 }
 0x219   : > { %12428 = vmatmul.msk.bf16.gmra.mxu3 %vm1312_vm0, %v13072_v40 }
 0x21b   : > { %v3104_v52 = vpop.f32.mrf.mxu2 }
 0x21c   : > { %v7211_v53 = vmax.f32 %v3104_v52, 0.0  ;;  %v3753_v54 = vpop.f32.mrf.mxu3  ;;  %v1808_v55 = vpop.f32.mrf.mxu0 }
 0x21d   : > { %v7212_v56 = vmax.f32 %v3753_v54, 0.0  ;;  %v7217_v57 = vmax.f32 %v1808_v55, 0.0  ;;  %v2457_v58 = vpop.f32.mrf.mxu1 }
 0x21e   : > { %v9494_v59 = vadd.f32 %v9493_v47, %v7211_v53  ;;  %v7218_v60 = vmax.f32 %v2457_v58, 0.0 }
 0x21f   : > { %v9749_v61 = vadd.f32 %v9748_v49, %v7212_v56  ;;  %v8985_v62 = vadd.f32 %v8984_v50, %v7217_v57 }
 0x220   : > { %v9240_v63 = vadd.f32 %v9239_v51, %v7218_v60  ;;  %v13075_v51 = vld [vmem:[%s13583_s29 + $0xf8] sm:$0xff] }
 0x223   : > { %v3106_v0 = vpop.f32.mrf.mxu2 }
 0x224   : > { %v7219_v2 = vmax.f32 %v3106_v0, 0.0  ;;  %v3755_v3 = vpop.f32.mrf.mxu3  ;;  %v1811_v4 = vpop.f32.mrf.mxu0 }
 0x225   : > { %v7220_v5 = vmax.f32 %v3755_v3, 0.0  ;;  %v7225_v6 = vmax.f32 %v1811_v4, 0.0  ;;  %v2460_v7 = vpop.f32.mrf.mxu1 }
 0x226   : > { %v9495_v8 = vadd.f32 %v9494_v59, %v7219_v2  ;;  %v7226_v9 = vmax.f32 %v2460_v7, 0.0 }
 0x227   : > { %v9750_v10 = vadd.f32 %v9749_v61, %v7220_v5  ;;  %v8986_v11 = vadd.f32 %v8985_v62, %v7225_v6  ;;  %12045 = vmatmul.msk.bf16.gmra.mxu0 %vm1312_vm0, %v13073_v1  ;;  %12173 = vmatmul.msk.bf16.gmra.mxu1 %vm1312_vm0, %v13073_v1 }
 0x228   : > { %v9241_v12 = vadd.f32 %v9240_v63, %v7226_v9  ;;  %12301 = vmatmul.msk.bf16.gmra.mxu2 %vm1312_vm0, %v13073_v1 }
 0x229   : > { %12429 = vmatmul.msk.bf16.gmra.mxu3 %vm1312_vm0, %v13073_v1 }
 0x22b   : > { %v3109_v13 = vpop.f32.mrf.mxu2 }
 0x22c   : > { %v7227_v14 = vmax.f32 %v3109_v13, 0.0  ;;  %v3758_v15 = vpop.f32.mrf.mxu3  ;;  %v1813_v16 = vpop.f32.mrf.mxu0 }
 0x22d   : > { %v7228_v17 = vmax.f32 %v3758_v15, 0.0  ;;  %v7233_v18 = vmax.f32 %v1813_v16, 0.0  ;;  %v2462_v19 = vpop.f32.mrf.mxu1 }
 0x22e   : > { %v9496_v20 = vadd.f32 %v9495_v8, %v7227_v14  ;;  %v7234_v21 = vmax.f32 %v2462_v19, 0.0 }
 0x22f   : > { %v9751_v22 = vadd.f32 %v9750_v10, %v7228_v17  ;;  %v8987_v23 = vadd.f32 %v8986_v11, %v7233_v18 }
 0x230   : > { %v9242_v24 = vadd.f32 %v9241_v12, %v7234_v21  ;;  %v13076_v12 = vld [vmem:[%s13583_s29 + $0x100] sm:$0xff] }
 0x233   : > { %v3111_v25 = vpop.f32.mrf.mxu2 }
 0x234   : > { %v7235_v27 = vmax.f32 %v3111_v25, 0.0  ;;  %v3760_v28 = vpop.f32.mrf.mxu3  ;;  %v1816_v29 = vpop.f32.mrf.mxu0 }
 0x235   : > { %v7236_v30 = vmax.f32 %v3760_v28, 0.0  ;;  %v7241_v31 = vmax.f32 %v1816_v29, 0.0  ;;  %v2465_v32 = vpop.f32.mrf.mxu1 }
 0x236   : > { %v9497_v33 = vadd.f32 %v9496_v20, %v7235_v27  ;;  %v7242_v34 = vmax.f32 %v2465_v32, 0.0 }
 0x237   : > { %v9752_v35 = vadd.f32 %v9751_v22, %v7236_v30  ;;  %v8988_v36 = vadd.f32 %v8987_v23, %v7241_v31  ;;  %12046 = vmatmul.msk.bf16.gmra.mxu0 %vm1312_vm0, %v13074_v26  ;;  %12174 = vmatmul.msk.bf16.gmra.mxu1 %vm1312_vm0, %v13074_v26 }
 0x238   : > { %v9243_v37 = vadd.f32 %v9242_v24, %v7242_v34  ;;  %12302 = vmatmul.msk.bf16.gmra.mxu2 %vm1312_vm0, %v13074_v26 }
 0x239   : > { %12430 = vmatmul.msk.bf16.gmra.mxu3 %vm1312_vm0, %v13074_v26 }
 0x23b   : > { %v3114_v38 = vpop.f32.mrf.mxu2 }
 0x23c   : > { %v7243_v39 = vmax.f32 %v3114_v38, 0.0  ;;  %v3763_v40 = vpop.f32.mrf.mxu3  ;;  %v1818_v41 = vpop.f32.mrf.mxu0 }
 0x23d   : > { %v7244_v42 = vmax.f32 %v3763_v40, 0.0  ;;  %v7249_v43 = vmax.f32 %v1818_v41, 0.0  ;;  %v2467_v44 = vpop.f32.mrf.mxu1 }
 0x23e   : > { %v9498_v45 = vadd.f32 %v9497_v33, %v7243_v39  ;;  %v7250_v46 = vmax.f32 %v2467_v44, 0.0 }
 0x23f   : > { %v9753_v47 = vadd.f32 %v9752_v35, %v7244_v42  ;;  %v8989_v48 = vadd.f32 %v8988_v36, %v7249_v43 }
 0x240   : > { %v9244_v49 = vadd.f32 %v9243_v37, %v7250_v46  ;;  %v13077_v37 = vld [vmem:[%s13583_s29 + $0x108] sm:$0xff] }
 0x243   : > { %v3116_v50 = vpop.f32.mrf.mxu2 }
 0x244   : > { %v7251_v52 = vmax.f32 %v3116_v50, 0.0  ;;  %v3765_v53 = vpop.f32.mrf.mxu3  ;;  %v1821_v54 = vpop.f32.mrf.mxu0 }
 0x245   : > { %v7252_v55 = vmax.f32 %v3765_v53, 0.0  ;;  %v7257_v56 = vmax.f32 %v1821_v54, 0.0  ;;  %v2470_v57 = vpop.f32.mrf.mxu1 }
 0x246   : > { %v9499_v58 = vadd.f32 %v9498_v45, %v7251_v52  ;;  %v7258_v59 = vmax.f32 %v2470_v57, 0.0 }
 0x247   : > { %v9754_v60 = vadd.f32 %v9753_v47, %v7252_v55  ;;  %v8990_v61 = vadd.f32 %v8989_v48, %v7257_v56  ;;  %12047 = vmatmul.msk.bf16.gmra.mxu0 %vm1312_vm0, %v13075_v51  ;;  %12175 = vmatmul.msk.bf16.gmra.mxu1 %vm1312_vm0, %v13075_v51 }
 0x248   : > { %v9245_v62 = vadd.f32 %v9244_v49, %v7258_v59  ;;  %12303 = vmatmul.msk.bf16.gmra.mxu2 %vm1312_vm0, %v13075_v51 }
 0x249   : > { %12431 = vmatmul.msk.bf16.gmra.mxu3 %vm1312_vm0, %v13075_v51 }
 0x24b   : > { %v3119_v63 = vpop.f32.mrf.mxu2 }
 0x24c   : > { %v7259_v0 = vmax.f32 %v3119_v63, 0.0  ;;  %v3768_v1 = vpop.f32.mrf.mxu3  ;;  %v1823_v2 = vpop.f32.mrf.mxu0 }
 0x24d   : > { %v7260_v3 = vmax.f32 %v3768_v1, 0.0  ;;  %v7265_v4 = vmax.f32 %v1823_v2, 0.0  ;;  %v2472_v5 = vpop.f32.mrf.mxu1 }
 0x24e   : > { %v9500_v6 = vadd.f32 %v9499_v58, %v7259_v0  ;;  %v7266_v7 = vmax.f32 %v2472_v5, 0.0 }
 0x24f   : > { %v9755_v8 = vadd.f32 %v9754_v60, %v7260_v3  ;;  %v8991_v9 = vadd.f32 %v8990_v61, %v7265_v4 }
 0x250   : > { %v9246_v10 = vadd.f32 %v9245_v62, %v7266_v7  ;;  %v13078_v62 = vld [vmem:[%s13583_s29 + $0x110] sm:$0xff] }
 0x253   : > { %v3121_v11 = vpop.f32.mrf.mxu2 }
 0x254   : > { %v7267_v13 = vmax.f32 %v3121_v11, 0.0  ;;  %v3770_v14 = vpop.f32.mrf.mxu3  ;;  %v1826_v15 = vpop.f32.mrf.mxu0 }
 0x255   : > { %v7268_v16 = vmax.f32 %v3770_v14, 0.0  ;;  %v7273_v17 = vmax.f32 %v1826_v15, 0.0  ;;  %v2475_v18 = vpop.f32.mrf.mxu1 }
 0x256   : > { %v9501_v19 = vadd.f32 %v9500_v6, %v7267_v13  ;;  %v7274_v20 = vmax.f32 %v2475_v18, 0.0 }
 0x257   : > { %v9756_v21 = vadd.f32 %v9755_v8, %v7268_v16  ;;  %v8992_v22 = vadd.f32 %v8991_v9, %v7273_v17  ;;  %12048 = vmatmul.msk.bf16.gmra.mxu0 %vm1312_vm0, %v13076_v12  ;;  %12176 = vmatmul.msk.bf16.gmra.mxu1 %vm1312_vm0, %v13076_v12 }
 0x258   : > { %v9247_v23 = vadd.f32 %v9246_v10, %v7274_v20  ;;  %12304 = vmatmul.msk.bf16.gmra.mxu2 %vm1312_vm0, %v13076_v12 }
 0x259   : > { %12432 = vmatmul.msk.bf16.gmra.mxu3 %vm1312_vm0, %v13076_v12 }
 0x25b   : > { %v3124_v24 = vpop.f32.mrf.mxu2 }
 0x25c   : > { %v7275_v25 = vmax.f32 %v3124_v24, 0.0  ;;  %v3773_v26 = vpop.f32.mrf.mxu3  ;;  %v1828_v27 = vpop.f32.mrf.mxu0 }
 0x25d   : > { %v7276_v28 = vmax.f32 %v3773_v26, 0.0  ;;  %v7281_v29 = vmax.f32 %v1828_v27, 0.0  ;;  %v2477_v30 = vpop.f32.mrf.mxu1 }
 0x25e   : > { %v9502_v31 = vadd.f32 %v9501_v19, %v7275_v25  ;;  %v7282_v32 = vmax.f32 %v2477_v30, 0.0 }
 0x25f   : > { %v9757_v33 = vadd.f32 %v9756_v21, %v7276_v28  ;;  %v8993_v34 = vadd.f32 %v8992_v22, %v7281_v29 }
 0x260   : > { %v9248_v35 = vadd.f32 %v9247_v23, %v7282_v32  ;;  %v13079_v23 = vld [vmem:[%s13583_s29 + $0x118] sm:$0xff] }
 0x263   : > { %v3126_v36 = vpop.f32.mrf.mxu2 }
 0x264   : > { %v7283_v38 = vmax.f32 %v3126_v36, 0.0  ;;  %v3775_v39 = vpop.f32.mrf.mxu3  ;;  %v1831_v40 = vpop.f32.mrf.mxu0 }
 0x265   : > { %v7284_v41 = vmax.f32 %v3775_v39, 0.0  ;;  %v7289_v42 = vmax.f32 %v1831_v40, 0.0  ;;  %v2480_v43 = vpop.f32.mrf.mxu1 }
 0x266   : > { %v9503_v44 = vadd.f32 %v9502_v31, %v7283_v38  ;;  %v7290_v45 = vmax.f32 %v2480_v43, 0.0 }
 0x267   : > { %v9758_v46 = vadd.f32 %v9757_v33, %v7284_v41  ;;  %v8994_v47 = vadd.f32 %v8993_v34, %v7289_v42  ;;  %12049 = vmatmul.msk.bf16.gmra.mxu0 %vm1312_vm0, %v13077_v37  ;;  %12177 = vmatmul.msk.bf16.gmra.mxu1 %vm1312_vm0, %v13077_v37 }
 0x268   : > { %v9249_v48 = vadd.f32 %v9248_v35, %v7290_v45  ;;  %12305 = vmatmul.msk.bf16.gmra.mxu2 %vm1312_vm0, %v13077_v37 }
 0x269   : > { %12433 = vmatmul.msk.bf16.gmra.mxu3 %vm1312_vm0, %v13077_v37 }
 0x26b   : > { %v3129_v49 = vpop.f32.mrf.mxu2 }
 0x26c   : > { %v7291_v50 = vmax.f32 %v3129_v49, 0.0  ;;  %v3778_v51 = vpop.f32.mrf.mxu3  ;;  %v1833_v52 = vpop.f32.mrf.mxu0 }
 0x26d   : > { %v7292_v53 = vmax.f32 %v3778_v51, 0.0  ;;  %v7297_v54 = vmax.f32 %v1833_v52, 0.0  ;;  %v2482_v55 = vpop.f32.mrf.mxu1 }
 0x26e   : > { %v9504_v56 = vadd.f32 %v9503_v44, %v7291_v50  ;;  %v7298_v57 = vmax.f32 %v2482_v55, 0.0 }
 0x26f   : > { %v9759_v58 = vadd.f32 %v9758_v46, %v7292_v53  ;;  %v8995_v59 = vadd.f32 %v8994_v47, %v7297_v54 }
 0x270   : > { %v9250_v60 = vadd.f32 %v9249_v48, %v7298_v57  ;;  %v13080_v48 = vld [vmem:[%s13583_s29 + $0x120] sm:$0xff] }
 0x273   : > { %v3131_v61 = vpop.f32.mrf.mxu2 }
 0x274   : > { %v7299_v63 = vmax.f32 %v3131_v61, 0.0  ;;  %v3780_v0 = vpop.f32.mrf.mxu3  ;;  %v1836_v1 = vpop.f32.mrf.mxu0 }
 0x275   : > { %v7300_v2 = vmax.f32 %v3780_v0, 0.0  ;;  %v7305_v3 = vmax.f32 %v1836_v1, 0.0  ;;  %v2485_v4 = vpop.f32.mrf.mxu1 }
 0x276   : > { %v9505_v5 = vadd.f32 %v9504_v56, %v7299_v63  ;;  %v7306_v6 = vmax.f32 %v2485_v4, 0.0 }
 0x277   : > { %v9760_v7 = vadd.f32 %v9759_v58, %v7300_v2  ;;  %v8996_v8 = vadd.f32 %v8995_v59, %v7305_v3  ;;  %12050 = vmatmul.msk.bf16.gmra.mxu0 %vm1312_vm0, %v13078_v62  ;;  %12178 = vmatmul.msk.bf16.gmra.mxu1 %vm1312_vm0, %v13078_v62 }
 0x278   : > { %v9251_v9 = vadd.f32 %v9250_v60, %v7306_v6  ;;  %12306 = vmatmul.msk.bf16.gmra.mxu2 %vm1312_vm0, %v13078_v62 }
 0x279   : > { %12434 = vmatmul.msk.bf16.gmra.mxu3 %vm1312_vm0, %v13078_v62 }
 0x27b   : > { %v3134_v10 = vpop.f32.mrf.mxu2 }
 0x27c   : > { %v7307_v11 = vmax.f32 %v3134_v10, 0.0  ;;  %v3783_v12 = vpop.f32.mrf.mxu3  ;;  %v1838_v13 = vpop.f32.mrf.mxu0 }
 0x27d   : > { %v7308_v14 = vmax.f32 %v3783_v12, 0.0  ;;  %v7313_v15 = vmax.f32 %v1838_v13, 0.0  ;;  %v2487_v16 = vpop.f32.mrf.mxu1 }
 0x27e   : > { %v9506_v17 = vadd.f32 %v9505_v5, %v7307_v11  ;;  %v7314_v18 = vmax.f32 %v2487_v16, 0.0 }
 0x27f   : > { %v9761_v19 = vadd.f32 %v9760_v7, %v7308_v14  ;;  %v8997_v20 = vadd.f32 %v8996_v8, %v7313_v15 }
 0x280   : > { %v9252_v21 = vadd.f32 %v9251_v9, %v7314_v18  ;;  %v13081_v9 = vld [vmem:[%s13583_s29 + $0x128] sm:$0xff] }
 0x283   : > { %v3136_v22 = vpop.f32.mrf.mxu2 }
 0x284   : > { %v7315_v24 = vmax.f32 %v3136_v22, 0.0  ;;  %v3785_v25 = vpop.f32.mrf.mxu3  ;;  %v1841_v26 = vpop.f32.mrf.mxu0 }
 0x285   : > { %v7316_v27 = vmax.f32 %v3785_v25, 0.0  ;;  %v7321_v28 = vmax.f32 %v1841_v26, 0.0  ;;  %v2490_v29 = vpop.f32.mrf.mxu1 }
 0x286   : > { %v9507_v30 = vadd.f32 %v9506_v17, %v7315_v24  ;;  %v7322_v31 = vmax.f32 %v2490_v29, 0.0 }
 0x287   : > { %v9762_v32 = vadd.f32 %v9761_v19, %v7316_v27  ;;  %v8998_v33 = vadd.f32 %v8997_v20, %v7321_v28  ;;  %12051 = vmatmul.msk.bf16.gmra.mxu0 %vm1312_vm0, %v13079_v23  ;;  %12179 = vmatmul.msk.bf16.gmra.mxu1 %vm1312_vm0, %v13079_v23 }
 0x288   : > { %v9253_v34 = vadd.f32 %v9252_v21, %v7322_v31  ;;  %12307 = vmatmul.msk.bf16.gmra.mxu2 %vm1312_vm0, %v13079_v23 }
 0x289   : > { %12435 = vmatmul.msk.bf16.gmra.mxu3 %vm1312_vm0, %v13079_v23 }
 0x28b   : > { %v3139_v35 = vpop.f32.mrf.mxu2 }
 0x28c   : > { %v7323_v36 = vmax.f32 %v3139_v35, 0.0  ;;  %v3788_v37 = vpop.f32.mrf.mxu3  ;;  %v1843_v38 = vpop.f32.mrf.mxu0 }
 0x28d   : > { %v7324_v39 = vmax.f32 %v3788_v37, 0.0  ;;  %v7329_v40 = vmax.f32 %v1843_v38, 0.0  ;;  %v2492_v41 = vpop.f32.mrf.mxu1 }
 0x28e   : > { %v9508_v42 = vadd.f32 %v9507_v30, %v7323_v36  ;;  %v7330_v43 = vmax.f32 %v2492_v41, 0.0 }
 0x28f   : > { %v9763_v44 = vadd.f32 %v9762_v32, %v7324_v39  ;;  %v8999_v45 = vadd.f32 %v8998_v33, %v7329_v40 }
 0x290   : > { %v9254_v46 = vadd.f32 %v9253_v34, %v7330_v43  ;;  %v13082_v34 = vld [vmem:[%s13583_s29 + $0x130] sm:$0xff] }
 0x293   : > { %v3141_v47 = vpop.f32.mrf.mxu2 }
 0x294   : > { %v7331_v49 = vmax.f32 %v3141_v47, 0.0  ;;  %v3790_v50 = vpop.f32.mrf.mxu3  ;;  %v1846_v51 = vpop.f32.mrf.mxu0 }
 0x295   : > { %v7332_v52 = vmax.f32 %v3790_v50, 0.0  ;;  %v7337_v53 = vmax.f32 %v1846_v51, 0.0  ;;  %v2495_v54 = vpop.f32.mrf.mxu1 }
 0x296   : > { %v9509_v55 = vadd.f32 %v9508_v42, %v7331_v49  ;;  %v7338_v56 = vmax.f32 %v2495_v54, 0.0 }
 0x297   : > { %v9764_v57 = vadd.f32 %v9763_v44, %v7332_v52  ;;  %v9000_v58 = vadd.f32 %v8999_v45, %v7337_v53  ;;  %12052 = vmatmul.msk.bf16.gmra.mxu0 %vm1312_vm0, %v13080_v48  ;;  %12180 = vmatmul.msk.bf16.gmra.mxu1 %vm1312_vm0, %v13080_v48 }
 0x298   : > { %v9255_v59 = vadd.f32 %v9254_v46, %v7338_v56  ;;  %12308 = vmatmul.msk.bf16.gmra.mxu2 %vm1312_vm0, %v13080_v48 }
 0x299   : > { %12436 = vmatmul.msk.bf16.gmra.mxu3 %vm1312_vm0, %v13080_v48 }
 0x29b   : > { %v3144_v60 = vpop.f32.mrf.mxu2 }
 0x29c   : > { %v7339_v61 = vmax.f32 %v3144_v60, 0.0  ;;  %v3793_v62 = vpop.f32.mrf.mxu3  ;;  %v1848_v63 = vpop.f32.mrf.mxu0 }
 0x29d   : > { %v7340_v0 = vmax.f32 %v3793_v62, 0.0  ;;  %v7345_v1 = vmax.f32 %v1848_v63, 0.0  ;;  %v2497_v2 = vpop.f32.mrf.mxu1 }
 0x29e   : > { %v9510_v3 = vadd.f32 %v9509_v55, %v7339_v61  ;;  %v7346_v4 = vmax.f32 %v2497_v2, 0.0 }
 0x29f   : > { %v9765_v5 = vadd.f32 %v9764_v57, %v7340_v0  ;;  %v9001_v6 = vadd.f32 %v9000_v58, %v7345_v1 }
 0x2a0   : > { %v9256_v7 = vadd.f32 %v9255_v59, %v7346_v4  ;;  %v13083_v59 = vld [vmem:[%s13583_s29 + $0x138] sm:$0xff] }
 0x2a3   : > { %v3146_v8 = vpop.f32.mrf.mxu2 }
 0x2a4   : > { %v7347_v10 = vmax.f32 %v3146_v8, 0.0  ;;  %v3795_v11 = vpop.f32.mrf.mxu3  ;;  %v1851_v12 = vpop.f32.mrf.mxu0 }
 0x2a5   : > { %v7348_v13 = vmax.f32 %v3795_v11, 0.0  ;;  %v7353_v14 = vmax.f32 %v1851_v12, 0.0  ;;  %v2500_v15 = vpop.f32.mrf.mxu1 }
 0x2a6   : > { %v9511_v16 = vadd.f32 %v9510_v3, %v7347_v10  ;;  %v7354_v17 = vmax.f32 %v2500_v15, 0.0 }
 0x2a7   : > { %v9766_v18 = vadd.f32 %v9765_v5, %v7348_v13  ;;  %v9002_v19 = vadd.f32 %v9001_v6, %v7353_v14  ;;  %12053 = vmatmul.msk.bf16.gmra.mxu0 %vm1312_vm0, %v13081_v9  ;;  %12181 = vmatmul.msk.bf16.gmra.mxu1 %vm1312_vm0, %v13081_v9 }
 0x2a8   : > { %v9257_v20 = vadd.f32 %v9256_v7, %v7354_v17  ;;  %12309 = vmatmul.msk.bf16.gmra.mxu2 %vm1312_vm0, %v13081_v9 }
 0x2a9   : > { %12437 = vmatmul.msk.bf16.gmra.mxu3 %vm1312_vm0, %v13081_v9 }
 0x2ab   : > { %v3149_v21 = vpop.f32.mrf.mxu2 }
 0x2ac   : > { %v7355_v22 = vmax.f32 %v3149_v21, 0.0  ;;  %v3798_v23 = vpop.f32.mrf.mxu3  ;;  %v1853_v24 = vpop.f32.mrf.mxu0 }
 0x2ad   : > { %v7356_v25 = vmax.f32 %v3798_v23, 0.0  ;;  %v7361_v26 = vmax.f32 %v1853_v24, 0.0  ;;  %v2502_v27 = vpop.f32.mrf.mxu1 }
 0x2ae   : > { %v9512_v28 = vadd.f32 %v9511_v16, %v7355_v22  ;;  %v7362_v29 = vmax.f32 %v2502_v27, 0.0 }
 0x2af   : > { %v9767_v30 = vadd.f32 %v9766_v18, %v7356_v25  ;;  %v9003_v31 = vadd.f32 %v9002_v19, %v7361_v26 }
 0x2b0   : > { %v9258_v32 = vadd.f32 %v9257_v20, %v7362_v29  ;;  %v13084_v20 = vld [vmem:[%s13583_s29 + $0x140] sm:$0xff] }
 0x2b3   : > { %v3151_v33 = vpop.f32.mrf.mxu2 }
 0x2b4   : > { %v7363_v35 = vmax.f32 %v3151_v33, 0.0  ;;  %v3800_v36 = vpop.f32.mrf.mxu3  ;;  %v1856_v37 = vpop.f32.mrf.mxu0 }
 0x2b5   : > { %v7364_v38 = vmax.f32 %v3800_v36, 0.0  ;;  %v7369_v39 = vmax.f32 %v1856_v37, 0.0  ;;  %v2505_v40 = vpop.f32.mrf.mxu1 }
 0x2b6   : > { %v9513_v41 = vadd.f32 %v9512_v28, %v7363_v35  ;;  %v7370_v42 = vmax.f32 %v2505_v40, 0.0 }
 0x2b7   : > { %v9768_v43 = vadd.f32 %v9767_v30, %v7364_v38  ;;  %v9004_v44 = vadd.f32 %v9003_v31, %v7369_v39  ;;  %12054 = vmatmul.msk.bf16.gmra.mxu0 %vm1312_vm0, %v13082_v34  ;;  %12182 = vmatmul.msk.bf16.gmra.mxu1 %vm1312_vm0, %v13082_v34 }
 0x2b8   : > { %v9259_v45 = vadd.f32 %v9258_v32, %v7370_v42  ;;  %12310 = vmatmul.msk.bf16.gmra.mxu2 %vm1312_vm0, %v13082_v34 }
 0x2b9   : > { %12438 = vmatmul.msk.bf16.gmra.mxu3 %vm1312_vm0, %v13082_v34 }
 0x2bb   : > { %v3154_v46 = vpop.f32.mrf.mxu2 }
 0x2bc   : > { %v7371_v47 = vmax.f32 %v3154_v46, 0.0  ;;  %v3803_v48 = vpop.f32.mrf.mxu3  ;;  %v1858_v49 = vpop.f32.mrf.mxu0 }
 0x2bd   : > { %v7372_v50 = vmax.f32 %v3803_v48, 0.0  ;;  %v7377_v51 = vmax.f32 %v1858_v49, 0.0  ;;  %v2507_v52 = vpop.f32.mrf.mxu1 }
 0x2be   : > { %v9514_v53 = vadd.f32 %v9513_v41, %v7371_v47  ;;  %v7378_v54 = vmax.f32 %v2507_v52, 0.0 }
 0x2bf   : > { %v9769_v55 = vadd.f32 %v9768_v43, %v7372_v50  ;;  %v9005_v56 = vadd.f32 %v9004_v44, %v7377_v51 }
 0x2c0   : > { %v9260_v57 = vadd.f32 %v9259_v45, %v7378_v54  ;;  %v13085_v45 = vld [vmem:[%s13583_s29 + $0x148] sm:$0xff] }
 0x2c3   : > { %v3156_v58 = vpop.f32.mrf.mxu2 }
 0x2c4   : > { %v7379_v60 = vmax.f32 %v3156_v58, 0.0  ;;  %v3805_v61 = vpop.f32.mrf.mxu3  ;;  %v1861_v62 = vpop.f32.mrf.mxu0 }
 0x2c5   : > { %v7380_v63 = vmax.f32 %v3805_v61, 0.0  ;;  %v7385_v0 = vmax.f32 %v1861_v62, 0.0  ;;  %v2510_v1 = vpop.f32.mrf.mxu1 }
 0x2c6   : > { %v9515_v2 = vadd.f32 %v9514_v53, %v7379_v60  ;;  %v7386_v3 = vmax.f32 %v2510_v1, 0.0 }
 0x2c7   : > { %v9770_v4 = vadd.f32 %v9769_v55, %v7380_v63  ;;  %v9006_v5 = vadd.f32 %v9005_v56, %v7385_v0  ;;  %12055 = vmatmul.msk.bf16.gmra.mxu0 %vm1312_vm0, %v13083_v59  ;;  %12183 = vmatmul.msk.bf16.gmra.mxu1 %vm1312_vm0, %v13083_v59 }
 0x2c8   : > { %v9261_v6 = vadd.f32 %v9260_v57, %v7386_v3  ;;  %12311 = vmatmul.msk.bf16.gmra.mxu2 %vm1312_vm0, %v13083_v59 }
 0x2c9   : > { %12439 = vmatmul.msk.bf16.gmra.mxu3 %vm1312_vm0, %v13083_v59 }
 0x2cb   : > { %v3159_v7 = vpop.f32.mrf.mxu2 }
 0x2cc   : > { %v7387_v8 = vmax.f32 %v3159_v7, 0.0  ;;  %v3808_v9 = vpop.f32.mrf.mxu3  ;;  %v1863_v10 = vpop.f32.mrf.mxu0 }
 0x2cd   : > { %v7388_v11 = vmax.f32 %v3808_v9, 0.0  ;;  %v7393_v12 = vmax.f32 %v1863_v10, 0.0  ;;  %v2512_v13 = vpop.f32.mrf.mxu1 }
 0x2ce   : > { %v9516_v14 = vadd.f32 %v9515_v2, %v7387_v8  ;;  %v7394_v15 = vmax.f32 %v2512_v13, 0.0 }
 0x2cf   : > { %v9771_v16 = vadd.f32 %v9770_v4, %v7388_v11  ;;  %v9007_v17 = vadd.f32 %v9006_v5, %v7393_v12 }
 0x2d0   : > { %v9262_v18 = vadd.f32 %v9261_v6, %v7394_v15  ;;  %v13086_v6 = vld [vmem:[%s13583_s29 + $0x150] sm:$0xff] }
 0x2d3   : > { %v3161_v19 = vpop.f32.mrf.mxu2 }
 0x2d4   : > { %v7395_v21 = vmax.f32 %v3161_v19, 0.0  ;;  %v3810_v22 = vpop.f32.mrf.mxu3  ;;  %v1866_v23 = vpop.f32.mrf.mxu0 }
 0x2d5   : > { %v7396_v24 = vmax.f32 %v3810_v22, 0.0  ;;  %v7401_v25 = vmax.f32 %v1866_v23, 0.0  ;;  %v2515_v26 = vpop.f32.mrf.mxu1 }
 0x2d6   : > { %v9517_v27 = vadd.f32 %v9516_v14, %v7395_v21  ;;  %v7402_v28 = vmax.f32 %v2515_v26, 0.0 }
 0x2d7   : > { %v9772_v29 = vadd.f32 %v9771_v16, %v7396_v24  ;;  %v9008_v30 = vadd.f32 %v9007_v17, %v7401_v25  ;;  %12056 = vmatmul.msk.bf16.gmra.mxu0 %vm1312_vm0, %v13084_v20  ;;  %12184 = vmatmul.msk.bf16.gmra.mxu1 %vm1312_vm0, %v13084_v20 }
 0x2d8   : > { %v9263_v31 = vadd.f32 %v9262_v18, %v7402_v28  ;;  %12312 = vmatmul.msk.bf16.gmra.mxu2 %vm1312_vm0, %v13084_v20 }
 0x2d9   : > { %12440 = vmatmul.msk.bf16.gmra.mxu3 %vm1312_vm0, %v13084_v20 }
 0x2db   : > { %v3164_v32 = vpop.f32.mrf.mxu2 }
 0x2dc   : > { %v7403_v33 = vmax.f32 %v3164_v32, 0.0  ;;  %v3813_v34 = vpop.f32.mrf.mxu3  ;;  %v1868_v35 = vpop.f32.mrf.mxu0 }
 0x2dd   : > { %v7404_v36 = vmax.f32 %v3813_v34, 0.0  ;;  %v7409_v37 = vmax.f32 %v1868_v35, 0.0  ;;  %v2517_v38 = vpop.f32.mrf.mxu1 }
 0x2de   : > { %v9518_v39 = vadd.f32 %v9517_v27, %v7403_v33  ;;  %v7410_v40 = vmax.f32 %v2517_v38, 0.0 }
 0x2df   : > { %v9773_v41 = vadd.f32 %v9772_v29, %v7404_v36  ;;  %v9009_v42 = vadd.f32 %v9008_v30, %v7409_v37 }
 0x2e0   : > { %v9264_v43 = vadd.f32 %v9263_v31, %v7410_v40  ;;  %v13087_v31 = vld [vmem:[%s13583_s29 + $0x158] sm:$0xff] }
 0x2e3   : > { %v3166_v44 = vpop.f32.mrf.mxu2 }
 0x2e4   : > { %v7411_v46 = vmax.f32 %v3166_v44, 0.0  ;;  %v3815_v47 = vpop.f32.mrf.mxu3  ;;  %v1871_v48 = vpop.f32.mrf.mxu0 }
 0x2e5   : > { %v7412_v49 = vmax.f32 %v3815_v47, 0.0  ;;  %v7417_v50 = vmax.f32 %v1871_v48, 0.0  ;;  %v2520_v51 = vpop.f32.mrf.mxu1 }
 0x2e6   : > { %v9519_v52 = vadd.f32 %v9518_v39, %v7411_v46  ;;  %v7418_v53 = vmax.f32 %v2520_v51, 0.0 }
 0x2e7   : > { %v9774_v54 = vadd.f32 %v9773_v41, %v7412_v49  ;;  %v9010_v55 = vadd.f32 %v9009_v42, %v7417_v50  ;;  %12057 = vmatmul.msk.bf16.gmra.mxu0 %vm1312_vm0, %v13085_v45  ;;  %12185 = vmatmul.msk.bf16.gmra.mxu1 %vm1312_vm0, %v13085_v45 }
 0x2e8   : > { %v9265_v56 = vadd.f32 %v9264_v43, %v7418_v53  ;;  %12313 = vmatmul.msk.bf16.gmra.mxu2 %vm1312_vm0, %v13085_v45 }
 0x2e9   : > { %12441 = vmatmul.msk.bf16.gmra.mxu3 %vm1312_vm0, %v13085_v45 }
 0x2eb   : > { %v3169_v57 = vpop.f32.mrf.mxu2 }
 0x2ec   : > { %v7419_v58 = vmax.f32 %v3169_v57, 0.0  ;;  %v3818_v59 = vpop.f32.mrf.mxu3  ;;  %v1873_v60 = vpop.f32.mrf.mxu0 }
 0x2ed   : > { %v7420_v61 = vmax.f32 %v3818_v59, 0.0  ;;  %v7425_v62 = vmax.f32 %v1873_v60, 0.0  ;;  %v2522_v63 = vpop.f32.mrf.mxu1 }
 0x2ee   : > { %v9520_v0 = vadd.f32 %v9519_v52, %v7419_v58  ;;  %v7426_v1 = vmax.f32 %v2522_v63, 0.0 }
 0x2ef   : > { %v9775_v2 = vadd.f32 %v9774_v54, %v7420_v61  ;;  %v9011_v3 = vadd.f32 %v9010_v55, %v7425_v62 }
 0x2f0   : > { %v9266_v4 = vadd.f32 %v9265_v56, %v7426_v1  ;;  %v13088_v56 = vld [vmem:[%s13583_s29 + $0x160] sm:$0xff] }
 0x2f3   : > { %v3171_v5 = vpop.f32.mrf.mxu2 }
 0x2f4   : > { %v7427_v7 = vmax.f32 %v3171_v5, 0.0  ;;  %v3820_v8 = vpop.f32.mrf.mxu3  ;;  %v1876_v9 = vpop.f32.mrf.mxu0 }
 0x2f5   : > { %v7428_v10 = vmax.f32 %v3820_v8, 0.0  ;;  %v7433_v11 = vmax.f32 %v1876_v9, 0.0  ;;  %v2525_v12 = vpop.f32.mrf.mxu1 }
 0x2f6   : > { %v9521_v13 = vadd.f32 %v9520_v0, %v7427_v7  ;;  %v7434_v14 = vmax.f32 %v2525_v12, 0.0 }
 0x2f7   : > { %v9776_v15 = vadd.f32 %v9775_v2, %v7428_v10  ;;  %v9012_v16 = vadd.f32 %v9011_v3, %v7433_v11  ;;  %12058 = vmatmul.msk.bf16.gmra.mxu0 %vm1312_vm0, %v13086_v6  ;;  %12186 = vmatmul.msk.bf16.gmra.mxu1 %vm1312_vm0, %v13086_v6 }
 0x2f8   : > { %v9267_v17 = vadd.f32 %v9266_v4, %v7434_v14  ;;  %12314 = vmatmul.msk.bf16.gmra.mxu2 %vm1312_vm0, %v13086_v6 }
 0x2f9   : > { %12442 = vmatmul.msk.bf16.gmra.mxu3 %vm1312_vm0, %v13086_v6 }
 0x2fb   : > { %v3174_v18 = vpop.f32.mrf.mxu2 }
 0x2fc   : > { %v7435_v19 = vmax.f32 %v3174_v18, 0.0  ;;  %v3823_v20 = vpop.f32.mrf.mxu3  ;;  %v1878_v21 = vpop.f32.mrf.mxu0 }
 0x2fd   : > { %v7436_v22 = vmax.f32 %v3823_v20, 0.0  ;;  %v7441_v23 = vmax.f32 %v1878_v21, 0.0  ;;  %v2527_v24 = vpop.f32.mrf.mxu1 }
 0x2fe   : > { %v9522_v25 = vadd.f32 %v9521_v13, %v7435_v19  ;;  %v7442_v26 = vmax.f32 %v2527_v24, 0.0 }
 0x2ff   : > { %v9777_v27 = vadd.f32 %v9776_v15, %v7436_v22  ;;  %v9013_v28 = vadd.f32 %v9012_v16, %v7441_v23 }
 0x300   : > { %v9268_v29 = vadd.f32 %v9267_v17, %v7442_v26  ;;  %v13089_v17 = vld [vmem:[%s13583_s29 + $0x168] sm:$0xff] }
 0x303   : > { %v3176_v30 = vpop.f32.mrf.mxu2 }
 0x304   : > { %v7443_v32 = vmax.f32 %v3176_v30, 0.0  ;;  %v3825_v33 = vpop.f32.mrf.mxu3  ;;  %v1881_v34 = vpop.f32.mrf.mxu0 }
 0x305   : > { %v7444_v35 = vmax.f32 %v3825_v33, 0.0  ;;  %v7449_v36 = vmax.f32 %v1881_v34, 0.0  ;;  %v2530_v37 = vpop.f32.mrf.mxu1 }
 0x306   : > { %v9523_v38 = vadd.f32 %v9522_v25, %v7443_v32  ;;  %v7450_v39 = vmax.f32 %v2530_v37, 0.0 }
 0x307   : > { %v9778_v40 = vadd.f32 %v9777_v27, %v7444_v35  ;;  %v9014_v41 = vadd.f32 %v9013_v28, %v7449_v36  ;;  %12059 = vmatmul.msk.bf16.gmra.mxu0 %vm1312_vm0, %v13087_v31  ;;  %12187 = vmatmul.msk.bf16.gmra.mxu1 %vm1312_vm0, %v13087_v31 }
 0x308   : > { %v9269_v42 = vadd.f32 %v9268_v29, %v7450_v39  ;;  %12315 = vmatmul.msk.bf16.gmra.mxu2 %vm1312_vm0, %v13087_v31 }
 0x309   : > { %12443 = vmatmul.msk.bf16.gmra.mxu3 %vm1312_vm0, %v13087_v31 }
 0x30b   : > { %v3179_v43 = vpop.f32.mrf.mxu2 }
 0x30c   : > { %v7451_v44 = vmax.f32 %v3179_v43, 0.0  ;;  %v3828_v45 = vpop.f32.mrf.mxu3  ;;  %v1883_v46 = vpop.f32.mrf.mxu0 }
 0x30d   : > { %v7452_v47 = vmax.f32 %v3828_v45, 0.0  ;;  %v7457_v48 = vmax.f32 %v1883_v46, 0.0  ;;  %v2532_v49 = vpop.f32.mrf.mxu1 }
 0x30e   : > { %v9524_v50 = vadd.f32 %v9523_v38, %v7451_v44  ;;  %v7458_v51 = vmax.f32 %v2532_v49, 0.0 }
 0x30f   : > { %v9779_v52 = vadd.f32 %v9778_v40, %v7452_v47  ;;  %v9015_v53 = vadd.f32 %v9014_v41, %v7457_v48 }
 0x310   : > { %v9270_v54 = vadd.f32 %v9269_v42, %v7458_v51  ;;  %v13090_v42 = vld [vmem:[%s13583_s29 + $0x170] sm:$0xff] }
 0x313   : > { %v3181_v55 = vpop.f32.mrf.mxu2 }
 0x314   : > { %v7459_v57 = vmax.f32 %v3181_v55, 0.0  ;;  %v3830_v58 = vpop.f32.mrf.mxu3  ;;  %v1886_v59 = vpop.f32.mrf.mxu0 }
 0x315   : > { %v7460_v60 = vmax.f32 %v3830_v58, 0.0  ;;  %v7465_v61 = vmax.f32 %v1886_v59, 0.0  ;;  %v2535_v62 = vpop.f32.mrf.mxu1 }
 0x316   : > { %v9525_v63 = vadd.f32 %v9524_v50, %v7459_v57  ;;  %v7466_v0 = vmax.f32 %v2535_v62, 0.0 }
 0x317   : > { %v9780_v1 = vadd.f32 %v9779_v52, %v7460_v60  ;;  %v9016_v2 = vadd.f32 %v9015_v53, %v7465_v61  ;;  %12060 = vmatmul.msk.bf16.gmra.mxu0 %vm1312_vm0, %v13088_v56  ;;  %12188 = vmatmul.msk.bf16.gmra.mxu1 %vm1312_vm0, %v13088_v56 }
 0x318   : > { %v9271_v3 = vadd.f32 %v9270_v54, %v7466_v0  ;;  %12316 = vmatmul.msk.bf16.gmra.mxu2 %vm1312_vm0, %v13088_v56 }
 0x319   : > { %12444 = vmatmul.msk.bf16.gmra.mxu3 %vm1312_vm0, %v13088_v56 }
 0x31b   : > { %v3184_v4 = vpop.f32.mrf.mxu2 }
 0x31c   : > { %v7467_v5 = vmax.f32 %v3184_v4, 0.0  ;;  %v3833_v6 = vpop.f32.mrf.mxu3  ;;  %v1888_v7 = vpop.f32.mrf.mxu0 }
 0x31d   : > { %v7468_v8 = vmax.f32 %v3833_v6, 0.0  ;;  %v7473_v9 = vmax.f32 %v1888_v7, 0.0  ;;  %v2537_v10 = vpop.f32.mrf.mxu1 }
 0x31e   : > { %v9526_v11 = vadd.f32 %v9525_v63, %v7467_v5  ;;  %v7474_v12 = vmax.f32 %v2537_v10, 0.0 }
 0x31f   : > { %v9781_v13 = vadd.f32 %v9780_v1, %v7468_v8  ;;  %v9017_v14 = vadd.f32 %v9016_v2, %v7473_v9 }
 0x320   : > { %v9272_v15 = vadd.f32 %v9271_v3, %v7474_v12  ;;  %v13091_v3 = vld [vmem:[%s13583_s29 + $0x178] sm:$0xff] }
 0x323   : > { %v3186_v16 = vpop.f32.mrf.mxu2 }
 0x324   : > { %v7475_v18 = vmax.f32 %v3186_v16, 0.0  ;;  %v3835_v19 = vpop.f32.mrf.mxu3  ;;  %v1891_v20 = vpop.f32.mrf.mxu0 }
 0x325   : > { %v7476_v21 = vmax.f32 %v3835_v19, 0.0  ;;  %v7481_v22 = vmax.f32 %v1891_v20, 0.0  ;;  %v2540_v23 = vpop.f32.mrf.mxu1 }
 0x326   : > { %v9527_v24 = vadd.f32 %v9526_v11, %v7475_v18  ;;  %v7482_v25 = vmax.f32 %v2540_v23, 0.0 }
 0x327   : > { %v9782_v26 = vadd.f32 %v9781_v13, %v7476_v21  ;;  %v9018_v27 = vadd.f32 %v9017_v14, %v7481_v22  ;;  %12061 = vmatmul.msk.bf16.gmra.mxu0 %vm1312_vm0, %v13089_v17  ;;  %12189 = vmatmul.msk.bf16.gmra.mxu1 %vm1312_vm0, %v13089_v17 }
 0x328   : > { %v9273_v28 = vadd.f32 %v9272_v15, %v7482_v25  ;;  %12317 = vmatmul.msk.bf16.gmra.mxu2 %vm1312_vm0, %v13089_v17 }
 0x329   : > { %12445 = vmatmul.msk.bf16.gmra.mxu3 %vm1312_vm0, %v13089_v17 }
 0x32b   : > { %v3189_v29 = vpop.f32.mrf.mxu2 }
 0x32c   : > { %v7483_v30 = vmax.f32 %v3189_v29, 0.0  ;;  %v3838_v31 = vpop.f32.mrf.mxu3  ;;  %v1893_v32 = vpop.f32.mrf.mxu0 }
 0x32d   : > { %v7484_v33 = vmax.f32 %v3838_v31, 0.0  ;;  %v7489_v34 = vmax.f32 %v1893_v32, 0.0  ;;  %v2542_v35 = vpop.f32.mrf.mxu1 }
 0x32e   : > { %v9528_v36 = vadd.f32 %v9527_v24, %v7483_v30  ;;  %v7490_v37 = vmax.f32 %v2542_v35, 0.0 }
 0x32f   : > { %v9783_v38 = vadd.f32 %v9782_v26, %v7484_v33  ;;  %v9019_v39 = vadd.f32 %v9018_v27, %v7489_v34 }
 0x330   : > { %v9274_v40 = vadd.f32 %v9273_v28, %v7490_v37  ;;  %v13092_v28 = vld [vmem:[%s13583_s29 + $0x180] sm:$0xff] }
 0x333   : > { %v3191_v41 = vpop.f32.mrf.mxu2 }
 0x334   : > { %v7491_v43 = vmax.f32 %v3191_v41, 0.0  ;;  %v3840_v44 = vpop.f32.mrf.mxu3  ;;  %v1896_v45 = vpop.f32.mrf.mxu0 }
 0x335   : > { %v7492_v46 = vmax.f32 %v3840_v44, 0.0  ;;  %v7497_v47 = vmax.f32 %v1896_v45, 0.0  ;;  %v2545_v48 = vpop.f32.mrf.mxu1 }
 0x336   : > { %v9529_v49 = vadd.f32 %v9528_v36, %v7491_v43  ;;  %v7498_v50 = vmax.f32 %v2545_v48, 0.0 }
 0x337   : > { %v9784_v51 = vadd.f32 %v9783_v38, %v7492_v46  ;;  %v9020_v52 = vadd.f32 %v9019_v39, %v7497_v47  ;;  %12062 = vmatmul.msk.bf16.gmra.mxu0 %vm1312_vm0, %v13090_v42  ;;  %12190 = vmatmul.msk.bf16.gmra.mxu1 %vm1312_vm0, %v13090_v42 }
 0x338   : > { %v9275_v53 = vadd.f32 %v9274_v40, %v7498_v50  ;;  %12318 = vmatmul.msk.bf16.gmra.mxu2 %vm1312_vm0, %v13090_v42 }
 0x339   : > { %12446 = vmatmul.msk.bf16.gmra.mxu3 %vm1312_vm0, %v13090_v42 }
 0x33b   : > { %v3194_v54 = vpop.f32.mrf.mxu2 }
 0x33c   : > { %v7499_v55 = vmax.f32 %v3194_v54, 0.0  ;;  %v3843_v56 = vpop.f32.mrf.mxu3  ;;  %v1898_v57 = vpop.f32.mrf.mxu0 }
 0x33d   : > { %v7500_v58 = vmax.f32 %v3843_v56, 0.0  ;;  %v7505_v59 = vmax.f32 %v1898_v57, 0.0  ;;  %v2547_v60 = vpop.f32.mrf.mxu1 }
 0x33e   : > { %v9530_v61 = vadd.f32 %v9529_v49, %v7499_v55  ;;  %v7506_v62 = vmax.f32 %v2547_v60, 0.0 }
 0x33f   : > { %v9785_v63 = vadd.f32 %v9784_v51, %v7500_v58  ;;  %v9021_v0 = vadd.f32 %v9020_v52, %v7505_v59 }
 0x340   : > { %v9276_v1 = vadd.f32 %v9275_v53, %v7506_v62  ;;  %v13093_v53 = vld [vmem:[%s13583_s29 + $0x188] sm:$0xff] }
 0x343   : > { %v3196_v2 = vpop.f32.mrf.mxu2 }
 0x344   : > { %v7507_v4 = vmax.f32 %v3196_v2, 0.0  ;;  %v3845_v5 = vpop.f32.mrf.mxu3  ;;  %v1901_v6 = vpop.f32.mrf.mxu0 }
 0x345   : > { %v7508_v7 = vmax.f32 %v3845_v5, 0.0  ;;  %v7513_v8 = vmax.f32 %v1901_v6, 0.0  ;;  %v2550_v9 = vpop.f32.mrf.mxu1 }
 0x346   : > { %v9531_v10 = vadd.f32 %v9530_v61, %v7507_v4  ;;  %v7514_v11 = vmax.f32 %v2550_v9, 0.0 }
 0x347   : > { %v9786_v12 = vadd.f32 %v9785_v63, %v7508_v7  ;;  %v9022_v13 = vadd.f32 %v9021_v0, %v7513_v8  ;;  %12063 = vmatmul.msk.bf16.gmra.mxu0 %vm1312_vm0, %v13091_v3  ;;  %12191 = vmatmul.msk.bf16.gmra.mxu1 %vm1312_vm0, %v13091_v3 }
 0x348   : > { %v9277_v14 = vadd.f32 %v9276_v1, %v7514_v11  ;;  %12319 = vmatmul.msk.bf16.gmra.mxu2 %vm1312_vm0, %v13091_v3 }
 0x349   : > { %12447 = vmatmul.msk.bf16.gmra.mxu3 %vm1312_vm0, %v13091_v3 }
 0x34b   : > { %v3199_v15 = vpop.f32.mrf.mxu2 }
 0x34c   : > { %v7515_v16 = vmax.f32 %v3199_v15, 0.0  ;;  %v3848_v17 = vpop.f32.mrf.mxu3  ;;  %v1903_v18 = vpop.f32.mrf.mxu0 }
 0x34d   : > { %v7516_v19 = vmax.f32 %v3848_v17, 0.0  ;;  %v7521_v20 = vmax.f32 %v1903_v18, 0.0  ;;  %v2552_v21 = vpop.f32.mrf.mxu1 }
 0x34e   : > { %v9532_v22 = vadd.f32 %v9531_v10, %v7515_v16  ;;  %v7522_v23 = vmax.f32 %v2552_v21, 0.0 }
 0x34f   : > { %v9787_v24 = vadd.f32 %v9786_v12, %v7516_v19  ;;  %v9023_v25 = vadd.f32 %v9022_v13, %v7521_v20 }
 0x350   : > { %v9278_v26 = vadd.f32 %v9277_v14, %v7522_v23  ;;  %v13094_v14 = vld [vmem:[%s13583_s29 + $0x190] sm:$0xff] }
 0x353   : > { %v3201_v27 = vpop.f32.mrf.mxu2 }
 0x354   : > { %v7523_v29 = vmax.f32 %v3201_v27, 0.0  ;;  %v3850_v30 = vpop.f32.mrf.mxu3  ;;  %v1906_v31 = vpop.f32.mrf.mxu0 }
 0x355   : > { %v7524_v32 = vmax.f32 %v3850_v30, 0.0  ;;  %v7529_v33 = vmax.f32 %v1906_v31, 0.0  ;;  %v2555_v34 = vpop.f32.mrf.mxu1 }
 0x356   : > { %v9533_v35 = vadd.f32 %v9532_v22, %v7523_v29  ;;  %v7530_v36 = vmax.f32 %v2555_v34, 0.0 }
 0x357   : > { %v9788_v37 = vadd.f32 %v9787_v24, %v7524_v32  ;;  %v9024_v38 = vadd.f32 %v9023_v25, %v7529_v33  ;;  %12064 = vmatmul.msk.bf16.gmra.mxu0 %vm1312_vm0, %v13092_v28  ;;  %12192 = vmatmul.msk.bf16.gmra.mxu1 %vm1312_vm0, %v13092_v28 }
 0x358   : > { %v9279_v39 = vadd.f32 %v9278_v26, %v7530_v36  ;;  %12320 = vmatmul.msk.bf16.gmra.mxu2 %vm1312_vm0, %v13092_v28 }
 0x359   : > { %12448 = vmatmul.msk.bf16.gmra.mxu3 %vm1312_vm0, %v13092_v28 }
 0x35b   : > { %v3204_v40 = vpop.f32.mrf.mxu2 }
 0x35c   : > { %v7531_v41 = vmax.f32 %v3204_v40, 0.0  ;;  %v3853_v42 = vpop.f32.mrf.mxu3  ;;  %v1908_v43 = vpop.f32.mrf.mxu0 }
 0x35d   : > { %v7532_v44 = vmax.f32 %v3853_v42, 0.0  ;;  %v7537_v45 = vmax.f32 %v1908_v43, 0.0  ;;  %v2557_v46 = vpop.f32.mrf.mxu1 }
 0x35e   : > { %v9534_v47 = vadd.f32 %v9533_v35, %v7531_v41  ;;  %v7538_v48 = vmax.f32 %v2557_v46, 0.0 }
 0x35f   : > { %v9789_v49 = vadd.f32 %v9788_v37, %v7532_v44  ;;  %v9025_v50 = vadd.f32 %v9024_v38, %v7537_v45 }
 0x360   : > { %v9280_v51 = vadd.f32 %v9279_v39, %v7538_v48  ;;  %v13095_v39 = vld [vmem:[%s13583_s29 + $0x198] sm:$0xff] }
 0x363   : > { %v3206_v52 = vpop.f32.mrf.mxu2 }
 0x364   : > { %v7539_v54 = vmax.f32 %v3206_v52, 0.0  ;;  %v3855_v55 = vpop.f32.mrf.mxu3  ;;  %v1911_v56 = vpop.f32.mrf.mxu0 }
 0x365   : > { %v7540_v57 = vmax.f32 %v3855_v55, 0.0  ;;  %v7545_v58 = vmax.f32 %v1911_v56, 0.0  ;;  %v2560_v59 = vpop.f32.mrf.mxu1 }
 0x366   : > { %v9535_v60 = vadd.f32 %v9534_v47, %v7539_v54  ;;  %v7546_v61 = vmax.f32 %v2560_v59, 0.0 }
 0x367   : > { %v9790_v62 = vadd.f32 %v9789_v49, %v7540_v57  ;;  %v9026_v63 = vadd.f32 %v9025_v50, %v7545_v58  ;;  %12065 = vmatmul.msk.bf16.gmra.mxu0 %vm1312_vm0, %v13093_v53  ;;  %12193 = vmatmul.msk.bf16.gmra.mxu1 %vm1312_vm0, %v13093_v53 }
 0x368   : > { %v9281_v0 = vadd.f32 %v9280_v51, %v7546_v61  ;;  %12321 = vmatmul.msk.bf16.gmra.mxu2 %vm1312_vm0, %v13093_v53 }
 0x369   : > { %12449 = vmatmul.msk.bf16.gmra.mxu3 %vm1312_vm0, %v13093_v53 }
 0x36b   : > { %v3209_v1 = vpop.f32.mrf.mxu2 }
 0x36c   : > { %v7547_v2 = vmax.f32 %v3209_v1, 0.0  ;;  %v3858_v3 = vpop.f32.mrf.mxu3  ;;  %v1913_v4 = vpop.f32.mrf.mxu0 }
 0x36d   : > { %v7548_v5 = vmax.f32 %v3858_v3, 0.0  ;;  %v7553_v6 = vmax.f32 %v1913_v4, 0.0  ;;  %v2562_v7 = vpop.f32.mrf.mxu1 }
 0x36e   : > { %v9536_v8 = vadd.f32 %v9535_v60, %v7547_v2  ;;  %v7554_v9 = vmax.f32 %v2562_v7, 0.0 }
 0x36f   : > { %v9791_v10 = vadd.f32 %v9790_v62, %v7548_v5  ;;  %v9027_v11 = vadd.f32 %v9026_v63, %v7553_v6 }
 0x370   : > { %v9282_v12 = vadd.f32 %v9281_v0, %v7554_v9  ;;  %v13096_v0 = vld [vmem:[%s13583_s29 + $0x1a0] sm:$0xff] }
 0x373   : > { %v3211_v13 = vpop.f32.mrf.mxu2 }
 0x374   : > { %v7555_v15 = vmax.f32 %v3211_v13, 0.0  ;;  %v3860_v16 = vpop.f32.mrf.mxu3  ;;  %v1916_v17 = vpop.f32.mrf.mxu0 }
 0x375   : > { %v7556_v18 = vmax.f32 %v3860_v16, 0.0  ;;  %v7561_v19 = vmax.f32 %v1916_v17, 0.0  ;;  %v2565_v20 = vpop.f32.mrf.mxu1 }
 0x376   : > { %v9537_v21 = vadd.f32 %v9536_v8, %v7555_v15  ;;  %v7562_v22 = vmax.f32 %v2565_v20, 0.0 }
 0x377   : > { %v9792_v23 = vadd.f32 %v9791_v10, %v7556_v18  ;;  %v9028_v24 = vadd.f32 %v9027_v11, %v7561_v19  ;;  %12066 = vmatmul.msk.bf16.gmra.mxu0 %vm1312_vm0, %v13094_v14  ;;  %12194 = vmatmul.msk.bf16.gmra.mxu1 %vm1312_vm0, %v13094_v14 }
 0x378   : > { %v9283_v25 = vadd.f32 %v9282_v12, %v7562_v22  ;;  %12322 = vmatmul.msk.bf16.gmra.mxu2 %vm1312_vm0, %v13094_v14 }
 0x379   : > { %12450 = vmatmul.msk.bf16.gmra.mxu3 %vm1312_vm0, %v13094_v14 }
 0x37b   : > { %v3214_v26 = vpop.f32.mrf.mxu2 }
 0x37c   : > { %v7563_v27 = vmax.f32 %v3214_v26, 0.0  ;;  %v3863_v28 = vpop.f32.mrf.mxu3  ;;  %v1918_v29 = vpop.f32.mrf.mxu0 }
 0x37d   : > { %v7564_v30 = vmax.f32 %v3863_v28, 0.0  ;;  %v7569_v31 = vmax.f32 %v1918_v29, 0.0  ;;  %v2567_v32 = vpop.f32.mrf.mxu1 }
 0x37e   : > { %v9538_v33 = vadd.f32 %v9537_v21, %v7563_v27  ;;  %v7570_v34 = vmax.f32 %v2567_v32, 0.0 }
 0x37f   : > { %v9793_v35 = vadd.f32 %v9792_v23, %v7564_v30  ;;  %v9029_v36 = vadd.f32 %v9028_v24, %v7569_v31 }
 0x380   : > { %v9284_v37 = vadd.f32 %v9283_v25, %v7570_v34  ;;  %v13097_v25 = vld [vmem:[%s13583_s29 + $0x1a8] sm:$0xff] }
 0x383   : > { %v3216_v38 = vpop.f32.mrf.mxu2 }
 0x384   : > { %v7571_v40 = vmax.f32 %v3216_v38, 0.0  ;;  %v3865_v41 = vpop.f32.mrf.mxu3  ;;  %v1921_v42 = vpop.f32.mrf.mxu0 }
 0x385   : > { %v7572_v43 = vmax.f32 %v3865_v41, 0.0  ;;  %v7577_v44 = vmax.f32 %v1921_v42, 0.0  ;;  %v2570_v45 = vpop.f32.mrf.mxu1 }
 0x386   : > { %v9539_v46 = vadd.f32 %v9538_v33, %v7571_v40  ;;  %v7578_v47 = vmax.f32 %v2570_v45, 0.0 }
 0x387   : > { %v9794_v48 = vadd.f32 %v9793_v35, %v7572_v43  ;;  %v9030_v49 = vadd.f32 %v9029_v36, %v7577_v44  ;;  %12067 = vmatmul.msk.bf16.gmra.mxu0 %vm1312_vm0, %v13095_v39  ;;  %12195 = vmatmul.msk.bf16.gmra.mxu1 %vm1312_vm0, %v13095_v39 }
 0x388   : > { %v9285_v50 = vadd.f32 %v9284_v37, %v7578_v47  ;;  %12323 = vmatmul.msk.bf16.gmra.mxu2 %vm1312_vm0, %v13095_v39 }
 0x389   : > { %12451 = vmatmul.msk.bf16.gmra.mxu3 %vm1312_vm0, %v13095_v39 }
 0x38b   : > { %v3219_v51 = vpop.f32.mrf.mxu2 }
 0x38c   : > { %v7579_v52 = vmax.f32 %v3219_v51, 0.0  ;;  %v3868_v53 = vpop.f32.mrf.mxu3  ;;  %v1923_v54 = vpop.f32.mrf.mxu0 }
 0x38d   : > { %v7580_v55 = vmax.f32 %v3868_v53, 0.0  ;;  %v7585_v56 = vmax.f32 %v1923_v54, 0.0  ;;  %v2572_v57 = vpop.f32.mrf.mxu1 }
 0x38e   : > { %v9540_v58 = vadd.f32 %v9539_v46, %v7579_v52  ;;  %v7586_v59 = vmax.f32 %v2572_v57, 0.0 }
 0x38f   : > { %v9795_v60 = vadd.f32 %v9794_v48, %v7580_v55  ;;  %v9031_v61 = vadd.f32 %v9030_v49, %v7585_v56 }
 0x390   : > { %v9286_v62 = vadd.f32 %v9285_v50, %v7586_v59  ;;  %v13098_v50 = vld [vmem:[%s13583_s29 + $0x1b0] sm:$0xff] }
 0x393   : > { %v3221_v63 = vpop.f32.mrf.mxu2 }
 0x394   : > { %v7587_v1 = vmax.f32 %v3221_v63, 0.0  ;;  %v3870_v2 = vpop.f32.mrf.mxu3  ;;  %v1926_v3 = vpop.f32.mrf.mxu0 }
 0x395   : > { %v7588_v4 = vmax.f32 %v3870_v2, 0.0  ;;  %v7593_v5 = vmax.f32 %v1926_v3, 0.0  ;;  %v2575_v6 = vpop.f32.mrf.mxu1 }
 0x396   : > { %v9541_v7 = vadd.f32 %v9540_v58, %v7587_v1  ;;  %v7594_v8 = vmax.f32 %v2575_v6, 0.0 }
 0x397   : > { %v9796_v9 = vadd.f32 %v9795_v60, %v7588_v4  ;;  %v9032_v10 = vadd.f32 %v9031_v61, %v7593_v5  ;;  %12068 = vmatmul.msk.bf16.gmra.mxu0 %vm1312_vm0, %v13096_v0  ;;  %12196 = vmatmul.msk.bf16.gmra.mxu1 %vm1312_vm0, %v13096_v0 }
 0x398   : > { %v9287_v11 = vadd.f32 %v9286_v62, %v7594_v8  ;;  %12324 = vmatmul.msk.bf16.gmra.mxu2 %vm1312_vm0, %v13096_v0 }
 0x399   : > { %12452 = vmatmul.msk.bf16.gmra.mxu3 %vm1312_vm0, %v13096_v0 }
 0x39b   : > { %v3224_v12 = vpop.f32.mrf.mxu2 }
 0x39c   : > { %v7595_v13 = vmax.f32 %v3224_v12, 0.0  ;;  %v3873_v14 = vpop.f32.mrf.mxu3  ;;  %v1928_v15 = vpop.f32.mrf.mxu0 }
 0x39d   : > { %v7596_v16 = vmax.f32 %v3873_v14, 0.0  ;;  %v7601_v17 = vmax.f32 %v1928_v15, 0.0  ;;  %v2577_v18 = vpop.f32.mrf.mxu1 }
 0x39e   : > { %v9542_v19 = vadd.f32 %v9541_v7, %v7595_v13  ;;  %v7602_v20 = vmax.f32 %v2577_v18, 0.0 }
 0x39f   : > { %v9797_v21 = vadd.f32 %v9796_v9, %v7596_v16  ;;  %v9033_v22 = vadd.f32 %v9032_v10, %v7601_v17 }
 0x3a0   : > { %v9288_v23 = vadd.f32 %v9287_v11, %v7602_v20  ;;  %v13099_v11 = vld [vmem:[%s13583_s29 + $0x1b8] sm:$0xff] }
 0x3a3   : > { %v3226_v24 = vpop.f32.mrf.mxu2 }
 0x3a4   : > { %v7603_v26 = vmax.f32 %v3226_v24, 0.0  ;;  %v3875_v27 = vpop.f32.mrf.mxu3  ;;  %v1931_v28 = vpop.f32.mrf.mxu0 }
 0x3a5   : > { %v7604_v29 = vmax.f32 %v3875_v27, 0.0  ;;  %v7609_v30 = vmax.f32 %v1931_v28, 0.0  ;;  %v2580_v31 = vpop.f32.mrf.mxu1 }
 0x3a6   : > { %v9543_v32 = vadd.f32 %v9542_v19, %v7603_v26  ;;  %v7610_v33 = vmax.f32 %v2580_v31, 0.0 }
 0x3a7   : > { %v9798_v34 = vadd.f32 %v9797_v21, %v7604_v29  ;;  %v9034_v35 = vadd.f32 %v9033_v22, %v7609_v30  ;;  %12069 = vmatmul.msk.bf16.gmra.mxu0 %vm1312_vm0, %v13097_v25  ;;  %12197 = vmatmul.msk.bf16.gmra.mxu1 %vm1312_vm0, %v13097_v25 }
 0x3a8   : > { %v9289_v36 = vadd.f32 %v9288_v23, %v7610_v33  ;;  %12325 = vmatmul.msk.bf16.gmra.mxu2 %vm1312_vm0, %v13097_v25 }
 0x3a9   : > { %12453 = vmatmul.msk.bf16.gmra.mxu3 %vm1312_vm0, %v13097_v25 }
 0x3ab   : > { %v3229_v37 = vpop.f32.mrf.mxu2 }
 0x3ac   : > { %v7611_v38 = vmax.f32 %v3229_v37, 0.0  ;;  %v3878_v39 = vpop.f32.mrf.mxu3  ;;  %v1933_v40 = vpop.f32.mrf.mxu0 }
 0x3ad   : > { %v7612_v41 = vmax.f32 %v3878_v39, 0.0  ;;  %v7617_v42 = vmax.f32 %v1933_v40, 0.0  ;;  %v2582_v43 = vpop.f32.mrf.mxu1 }
 0x3ae   : > { %v9544_v44 = vadd.f32 %v9543_v32, %v7611_v38  ;;  %v7618_v45 = vmax.f32 %v2582_v43, 0.0 }
 0x3af   : > { %v9799_v46 = vadd.f32 %v9798_v34, %v7612_v41  ;;  %v9035_v47 = vadd.f32 %v9034_v35, %v7617_v42 }
 0x3b0   : > { %v9290_v48 = vadd.f32 %v9289_v36, %v7618_v45  ;;  %v13100_v36 = vld [vmem:[%s13583_s29 + $0x1c0] sm:$0xff] }
 0x3b3   : > { %v3231_v49 = vpop.f32.mrf.mxu2 }
 0x3b4   : > { %v7619_v51 = vmax.f32 %v3231_v49, 0.0  ;;  %v3880_v52 = vpop.f32.mrf.mxu3  ;;  %v1936_v53 = vpop.f32.mrf.mxu0 }
 0x3b5   : > { %v7620_v54 = vmax.f32 %v3880_v52, 0.0  ;;  %v7625_v55 = vmax.f32 %v1936_v53, 0.0  ;;  %v2585_v56 = vpop.f32.mrf.mxu1 }
 0x3b6   : > { %v9545_v57 = vadd.f32 %v9544_v44, %v7619_v51  ;;  %v7626_v58 = vmax.f32 %v2585_v56, 0.0 }
 0x3b7   : > { %v9800_v59 = vadd.f32 %v9799_v46, %v7620_v54  ;;  %v9036_v60 = vadd.f32 %v9035_v47, %v7625_v55  ;;  %12070 = vmatmul.msk.bf16.gmra.mxu0 %vm1312_vm0, %v13098_v50  ;;  %12198 = vmatmul.msk.bf16.gmra.mxu1 %vm1312_vm0, %v13098_v50 }
 0x3b8   : > { %v9291_v61 = vadd.f32 %v9290_v48, %v7626_v58  ;;  %12326 = vmatmul.msk.bf16.gmra.mxu2 %vm1312_vm0, %v13098_v50 }
 0x3b9   : > { %12454 = vmatmul.msk.bf16.gmra.mxu3 %vm1312_vm0, %v13098_v50 }
 0x3bb   : > { %v3234_v62 = vpop.f32.mrf.mxu2 }
 0x3bc   : > { %v7627_v63 = vmax.f32 %v3234_v62, 0.0  ;;  %v3883_v0 = vpop.f32.mrf.mxu3  ;;  %v1938_v1 = vpop.f32.mrf.mxu0 }
 0x3bd   : > { %v7628_v2 = vmax.f32 %v3883_v0, 0.0  ;;  %v7633_v3 = vmax.f32 %v1938_v1, 0.0  ;;  %v2587_v4 = vpop.f32.mrf.mxu1 }
 0x3be   : > { %v9546_v5 = vadd.f32 %v9545_v57, %v7627_v63  ;;  %v7634_v6 = vmax.f32 %v2587_v4, 0.0 }
 0x3bf   : > { %v9801_v7 = vadd.f32 %v9800_v59, %v7628_v2  ;;  %v9037_v8 = vadd.f32 %v9036_v60, %v7633_v3 }
 0x3c0   : > { %v9292_v9 = vadd.f32 %v9291_v61, %v7634_v6  ;;  %v13101_v61 = vld [vmem:[%s13583_s29 + $0x1c8] sm:$0xff] }
 0x3c3   : > { %v3236_v10 = vpop.f32.mrf.mxu2 }
 0x3c4   : > { %v7635_v12 = vmax.f32 %v3236_v10, 0.0  ;;  %v3885_v13 = vpop.f32.mrf.mxu3  ;;  %v1941_v14 = vpop.f32.mrf.mxu0 }
 0x3c5   : > { %v7636_v15 = vmax.f32 %v3885_v13, 0.0  ;;  %v7641_v16 = vmax.f32 %v1941_v14, 0.0  ;;  %v2590_v17 = vpop.f32.mrf.mxu1 }
 0x3c6   : > { %v9547_v18 = vadd.f32 %v9546_v5, %v7635_v12  ;;  %v7642_v19 = vmax.f32 %v2590_v17, 0.0 }
 0x3c7   : > { %v9802_v20 = vadd.f32 %v9801_v7, %v7636_v15  ;;  %v9038_v21 = vadd.f32 %v9037_v8, %v7641_v16  ;;  %12071 = vmatmul.msk.bf16.gmra.mxu0 %vm1312_vm0, %v13099_v11  ;;  %12199 = vmatmul.msk.bf16.gmra.mxu1 %vm1312_vm0, %v13099_v11 }
 0x3c8   : > { %v9293_v22 = vadd.f32 %v9292_v9, %v7642_v19  ;;  %12327 = vmatmul.msk.bf16.gmra.mxu2 %vm1312_vm0, %v13099_v11 }
 0x3c9   : > { %12455 = vmatmul.msk.bf16.gmra.mxu3 %vm1312_vm0, %v13099_v11 }
 0x3cb   : > { %v3239_v23 = vpop.f32.mrf.mxu2 }
 0x3cc   : > { %v7643_v24 = vmax.f32 %v3239_v23, 0.0  ;;  %v3888_v25 = vpop.f32.mrf.mxu3  ;;  %v1943_v26 = vpop.f32.mrf.mxu0 }
 0x3cd   : > { %v7644_v27 = vmax.f32 %v3888_v25, 0.0  ;;  %v7649_v28 = vmax.f32 %v1943_v26, 0.0  ;;  %v2592_v29 = vpop.f32.mrf.mxu1 }
 0x3ce   : > { %v9548_v30 = vadd.f32 %v9547_v18, %v7643_v24  ;;  %v7650_v31 = vmax.f32 %v2592_v29, 0.0 }
 0x3cf   : > { %v9803_v32 = vadd.f32 %v9802_v20, %v7644_v27  ;;  %v9039_v33 = vadd.f32 %v9038_v21, %v7649_v28 }
 0x3d0   : > { %v9294_v34 = vadd.f32 %v9293_v22, %v7650_v31  ;;  %v13102_v22 = vld [vmem:[%s13583_s29 + $0x1d0] sm:$0xff] }
 0x3d3   : > { %v3241_v35 = vpop.f32.mrf.mxu2 }
 0x3d4   : > { %v7651_v37 = vmax.f32 %v3241_v35, 0.0  ;;  %v3890_v38 = vpop.f32.mrf.mxu3  ;;  %v1946_v39 = vpop.f32.mrf.mxu0 }
 0x3d5   : > { %v7652_v40 = vmax.f32 %v3890_v38, 0.0  ;;  %v7657_v41 = vmax.f32 %v1946_v39, 0.0  ;;  %v2595_v42 = vpop.f32.mrf.mxu1 }
 0x3d6   : > { %v9549_v43 = vadd.f32 %v9548_v30, %v7651_v37  ;;  %v7658_v44 = vmax.f32 %v2595_v42, 0.0 }
 0x3d7   : > { %v9804_v45 = vadd.f32 %v9803_v32, %v7652_v40  ;;  %v9040_v46 = vadd.f32 %v9039_v33, %v7657_v41  ;;  %12072 = vmatmul.msk.bf16.gmra.mxu0 %vm1312_vm0, %v13100_v36  ;;  %12200 = vmatmul.msk.bf16.gmra.mxu1 %vm1312_vm0, %v13100_v36 }
 0x3d8   : > { %v9295_v47 = vadd.f32 %v9294_v34, %v7658_v44  ;;  %12328 = vmatmul.msk.bf16.gmra.mxu2 %vm1312_vm0, %v13100_v36 }
 0x3d9   : > { %12456 = vmatmul.msk.bf16.gmra.mxu3 %vm1312_vm0, %v13100_v36 }
 0x3db   : > { %v3244_v48 = vpop.f32.mrf.mxu2 }
 0x3dc   : > { %v7659_v49 = vmax.f32 %v3244_v48, 0.0  ;;  %v3893_v50 = vpop.f32.mrf.mxu3  ;;  %v1948_v51 = vpop.f32.mrf.mxu0 }
 0x3dd   : > { %v7660_v52 = vmax.f32 %v3893_v50, 0.0  ;;  %v7665_v53 = vmax.f32 %v1948_v51, 0.0  ;;  %v2597_v54 = vpop.f32.mrf.mxu1 }
 0x3de   : > { %v9550_v55 = vadd.f32 %v9549_v43, %v7659_v49  ;;  %v7666_v56 = vmax.f32 %v2597_v54, 0.0 }
 0x3df   : > { %v9805_v57 = vadd.f32 %v9804_v45, %v7660_v52  ;;  %v9041_v58 = vadd.f32 %v9040_v46, %v7665_v53 }
 0x3e0   : > { %v9296_v59 = vadd.f32 %v9295_v47, %v7666_v56  ;;  %v13103_v47 = vld [vmem:[%s13583_s29 + $0x1d8] sm:$0xff] }
 0x3e3   : > { %v3246_v60 = vpop.f32.mrf.mxu2 }
 0x3e4   : > { %v7667_v62 = vmax.f32 %v3246_v60, 0.0  ;;  %v3895_v63 = vpop.f32.mrf.mxu3  ;;  %v1951_v0 = vpop.f32.mrf.mxu0 }
 0x3e5   : > { %v7668_v1 = vmax.f32 %v3895_v63, 0.0  ;;  %v7673_v2 = vmax.f32 %v1951_v0, 0.0  ;;  %v2600_v3 = vpop.f32.mrf.mxu1 }
 0x3e6   : > { %v9551_v4 = vadd.f32 %v9550_v55, %v7667_v62  ;;  %v7674_v5 = vmax.f32 %v2600_v3, 0.0 }
 0x3e7   : > { %v9806_v6 = vadd.f32 %v9805_v57, %v7668_v1  ;;  %v9042_v7 = vadd.f32 %v9041_v58, %v7673_v2  ;;  %12073 = vmatmul.msk.bf16.gmra.mxu0 %vm1312_vm0, %v13101_v61  ;;  %12201 = vmatmul.msk.bf16.gmra.mxu1 %vm1312_vm0, %v13101_v61 }
 0x3e8   : > { %v9297_v8 = vadd.f32 %v9296_v59, %v7674_v5  ;;  %12329 = vmatmul.msk.bf16.gmra.mxu2 %vm1312_vm0, %v13101_v61 }
 0x3e9   : > { %12457 = vmatmul.msk.bf16.gmra.mxu3 %vm1312_vm0, %v13101_v61 }
 0x3eb   : > { %v3249_v9 = vpop.f32.mrf.mxu2 }
 0x3ec   : > { %v7675_v10 = vmax.f32 %v3249_v9, 0.0  ;;  %v3898_v11 = vpop.f32.mrf.mxu3  ;;  %v1953_v12 = vpop.f32.mrf.mxu0 }
 0x3ed   : > { %v7676_v13 = vmax.f32 %v3898_v11, 0.0  ;;  %v7681_v14 = vmax.f32 %v1953_v12, 0.0  ;;  %v2602_v15 = vpop.f32.mrf.mxu1 }
 0x3ee   : > { %v9552_v16 = vadd.f32 %v9551_v4, %v7675_v10  ;;  %v7682_v17 = vmax.f32 %v2602_v15, 0.0 }
 0x3ef   : > { %v9807_v18 = vadd.f32 %v9806_v6, %v7676_v13  ;;  %v9043_v19 = vadd.f32 %v9042_v7, %v7681_v14 }
 0x3f0   : > { %v9298_v20 = vadd.f32 %v9297_v8, %v7682_v17  ;;  %v13104_v8 = vld [vmem:[%s13583_s29 + $0x1e0] sm:$0xff] }
 0x3f3   : > { %v3251_v21 = vpop.f32.mrf.mxu2 }
 0x3f4   : > { %v7683_v23 = vmax.f32 %v3251_v21, 0.0  ;;  %v3900_v24 = vpop.f32.mrf.mxu3  ;;  %v1956_v25 = vpop.f32.mrf.mxu0 }
 0x3f5   : > { %v7684_v26 = vmax.f32 %v3900_v24, 0.0  ;;  %v7689_v27 = vmax.f32 %v1956_v25, 0.0  ;;  %v2605_v28 = vpop.f32.mrf.mxu1 }
 0x3f6   : > { %v9553_v29 = vadd.f32 %v9552_v16, %v7683_v23  ;;  %v7690_v30 = vmax.f32 %v2605_v28, 0.0 }
 0x3f7   : > { %v9808_v31 = vadd.f32 %v9807_v18, %v7684_v26  ;;  %v9044_v32 = vadd.f32 %v9043_v19, %v7689_v27  ;;  %12074 = vmatmul.msk.bf16.gmra.mxu0 %vm1312_vm0, %v13102_v22  ;;  %12202 = vmatmul.msk.bf16.gmra.mxu1 %vm1312_vm0, %v13102_v22 }
 0x3f8   : > { %v9299_v33 = vadd.f32 %v9298_v20, %v7690_v30  ;;  %12330 = vmatmul.msk.bf16.gmra.mxu2 %vm1312_vm0, %v13102_v22 }
 0x3f9   : > { %12458 = vmatmul.msk.bf16.gmra.mxu3 %vm1312_vm0, %v13102_v22 }
 0x3fb   : > { %v3254_v34 = vpop.f32.mrf.mxu2 }
 0x3fc   : > { %v7691_v35 = vmax.f32 %v3254_v34, 0.0  ;;  %v3903_v36 = vpop.f32.mrf.mxu3  ;;  %v1958_v37 = vpop.f32.mrf.mxu0 }
 0x3fd   : > { %v7692_v38 = vmax.f32 %v3903_v36, 0.0  ;;  %v7697_v39 = vmax.f32 %v1958_v37, 0.0  ;;  %v2607_v40 = vpop.f32.mrf.mxu1 }
 0x3fe   : > { %v9554_v41 = vadd.f32 %v9553_v29, %v7691_v35  ;;  %v7698_v42 = vmax.f32 %v2607_v40, 0.0 }
 0x3ff   : > { %v9809_v43 = vadd.f32 %v9808_v31, %v7692_v38  ;;  %v9045_v44 = vadd.f32 %v9044_v32, %v7697_v39 }
 0x400   : > { %v9300_v45 = vadd.f32 %v9299_v33, %v7698_v42  ;;  %v13105_v33 = vld [vmem:[%s13583_s29 + $0x1e8] sm:$0xff] }
 0x403   : > { %v3256_v46 = vpop.f32.mrf.mxu2 }
 0x404   : > { %v7699_v48 = vmax.f32 %v3256_v46, 0.0  ;;  %v3905_v49 = vpop.f32.mrf.mxu3  ;;  %v1961_v50 = vpop.f32.mrf.mxu0 }
 0x405   : > { %v7700_v51 = vmax.f32 %v3905_v49, 0.0  ;;  %v7705_v52 = vmax.f32 %v1961_v50, 0.0  ;;  %v2610_v53 = vpop.f32.mrf.mxu1 }
 0x406   : > { %v9555_v54 = vadd.f32 %v9554_v41, %v7699_v48  ;;  %v7706_v55 = vmax.f32 %v2610_v53, 0.0 }
 0x407   : > { %v9810_v56 = vadd.f32 %v9809_v43, %v7700_v51  ;;  %v9046_v57 = vadd.f32 %v9045_v44, %v7705_v52  ;;  %12075 = vmatmul.msk.bf16.gmra.mxu0 %vm1312_vm0, %v13103_v47  ;;  %12203 = vmatmul.msk.bf16.gmra.mxu1 %vm1312_vm0, %v13103_v47 }
 0x408   : > { %v9301_v58 = vadd.f32 %v9300_v45, %v7706_v55  ;;  %12331 = vmatmul.msk.bf16.gmra.mxu2 %vm1312_vm0, %v13103_v47 }
 0x409   : > { %12459 = vmatmul.msk.bf16.gmra.mxu3 %vm1312_vm0, %v13103_v47 }
 0x40b   : > { %v3259_v59 = vpop.f32.mrf.mxu2 }
 0x40c   : > { %v7707_v60 = vmax.f32 %v3259_v59, 0.0  ;;  %v3908_v61 = vpop.f32.mrf.mxu3  ;;  %v1963_v62 = vpop.f32.mrf.mxu0 }
 0x40d   : > { %v7708_v63 = vmax.f32 %v3908_v61, 0.0  ;;  %v7713_v0 = vmax.f32 %v1963_v62, 0.0  ;;  %v2612_v1 = vpop.f32.mrf.mxu1 }
 0x40e   : > { %v9556_v2 = vadd.f32 %v9555_v54, %v7707_v60  ;;  %v7714_v3 = vmax.f32 %v2612_v1, 0.0 }
 0x40f   : > { %v9811_v4 = vadd.f32 %v9810_v56, %v7708_v63  ;;  %v9047_v5 = vadd.f32 %v9046_v57, %v7713_v0 }
 0x410   : > { %v9302_v6 = vadd.f32 %v9301_v58, %v7714_v3  ;;  %v13106_v58 = vld [vmem:[%s13583_s29 + $0x1f0] sm:$0xff] }
 0x413   : > { %v3261_v7 = vpop.f32.mrf.mxu2 }
 0x414   : > { %v7715_v9 = vmax.f32 %v3261_v7, 0.0  ;;  %v3910_v10 = vpop.f32.mrf.mxu3  ;;  %v1966_v11 = vpop.f32.mrf.mxu0  ;;  %v13179_v7 = vld [vmem:[%s13596_s24 + $0x34] sm:$0xf0] }
 0x415   : > { %v7716_v12 = vmax.f32 %v3910_v10, 0.0  ;;  %v7721_v13 = vmax.f32 %v1966_v11, 0.0  ;;  %v2615_v14 = vpop.f32.mrf.mxu1  ;;  %v11980_v10 = vld [vmem:[%s13596_s24 + $0x38] sm:$0xf0] }
 0x416   : > { %v9557_v15 = vadd.f32 %v9556_v2, %v7715_v9  ;;  %v7722_v16 = vmax.f32 %v2615_v14, 0.0 }
 0x417   : > { %v9812_v17 = vadd.f32 %v9811_v4, %v7716_v12  ;;  %v9048_v18 = vadd.f32 %v9047_v5, %v7721_v13  ;;  %12076 = vmatmul.msk.bf16.gmra.mxu0 %vm1312_vm0, %v13104_v8  ;;  %12204 = vmatmul.msk.bf16.gmra.mxu1 %vm1312_vm0, %v13104_v8 }
 0x418   : > { %v9303_v19 = vadd.f32 %v9302_v6, %v7722_v16  ;;  %12332 = vmatmul.msk.bf16.gmra.mxu2 %vm1312_vm0, %v13104_v8  ;;  %v11978_v6 = vld [vmem:[%s13596_s24 + $0x18] sm:$0xf] }
 0x419   : > { %12460 = vmatmul.msk.bf16.gmra.mxu3 %vm1312_vm0, %v13104_v8  ;;  %v13175_v8 = vld [vmem:[%s13596_s24 + $0x1c] sm:$0xf]  ;;  %v11979_v9 = vor.u32 %v13179_v7, %v11978_v6 }
 0x41a   : > { %v11983_v12 = vor.u32 %v13175_v8, %v11980_v10 }
 0x41b   : > { %v3264_v20 = vpop.f32.mrf.mxu2  ;;  %5598 = vmatpush.bf16.msrb.mxu2 %v11979_v9 }
 0x41c   : > { %v7723_v21 = vmax.f32 %v3264_v20, 0.0  ;;  %v3913_v22 = vpop.f32.mrf.mxu3  ;;  %v1968_v23 = vpop.f32.mrf.mxu0  ;;  %6247 = vmatpush.bf16.msrb.mxu3 %v11983_v12 }
 0x41d   : > { %v7724_v24 = vmax.f32 %v3913_v22, 0.0  ;;  %v7729_v25 = vmax.f32 %v1968_v23, 0.0  ;;  %v2617_v26 = vpop.f32.mrf.mxu1 }
 0x41e   : > { %v9558_v27 = vadd.f32 %v9557_v15, %v7723_v21  ;;  %v7730_v28 = vmax.f32 %v2617_v26, 0.0  ;;  %v13174_v26 = vld [vmem:[%s13596_s24 + $0x14] sm:$0xf] }
 0x41f   : > { %v9813_v29 = vadd.f32 %v9812_v17, %v7724_v24  ;;  %v9049_v30 = vadd.f32 %v9048_v18, %v7729_v25  ;;  %v11970_v24 = vld [vmem:[%s13596_s24 + $0x10] sm:$0xf] }
 0x420   : > { %v9304_v31 = vadd.f32 %v9303_v19, %v7730_v28  ;;  %v13178_v25 = vld [vmem:[%s13596_s24 + $0x2c] sm:$0xf0]  ;;  %v11972_v28 = vld [vmem:[%s13596_s24 + $0x30] sm:$0xf0] }
 0x423   : > { %v3266_v32 = vpop.f32.mrf.mxu2 }
 0x424   : > { %v7731_v34 = vmax.f32 %v3266_v32, 0.0  ;;  %v3915_v35 = vpop.f32.mrf.mxu3  ;;  %v1971_v36 = vpop.f32.mrf.mxu0 }
 0x425   : > { %v7732_v37 = vmax.f32 %v3915_v35, 0.0  ;;  %v7737_v38 = vmax.f32 %v1971_v36, 0.0  ;;  %v2620_v39 = vpop.f32.mrf.mxu1 }
 0x426   : > { %v9559_v40 = vadd.f32 %v9558_v27, %v7731_v34  ;;  %v7738_v41 = vmax.f32 %v2620_v39, 0.0  ;;  %v11971_v27 = vor.u32 %v13178_v25, %v11970_v24 }
 0x427   : > { %v9814_v42 = vadd.f32 %v9813_v29, %v7732_v37  ;;  %v9050_v43 = vadd.f32 %v9049_v30, %v7737_v38  ;;  %12077 = vmatmul.msk.bf16.gmra.mxu0 %vm1312_vm0, %v13105_v33  ;;  %12205 = vmatmul.msk.bf16.gmra.mxu1 %vm1312_vm0, %v13105_v33  ;;  %v11975_v29 = vor.u32 %v13174_v26, %v11972_v28 }
 0x428   : > { %v9305_v44 = vadd.f32 %v9304_v31, %v7738_v41  ;;  %12333 = vmatmul.msk.bf16.gmra.mxu2 %vm1312_vm0, %v13105_v33  ;;  %v13107_v31 = vld [vmem:[%s13583_s29 + $0x1f8] sm:$0xff]  ;;  %4300 = vmatpush.bf16.msrb.mxu0 %v11971_v27 }
 0x429   : > { %12461 = vmatmul.msk.bf16.gmra.mxu3 %vm1312_vm0, %v13105_v33  ;;  %4949 = vmatpush.bf16.msrb.mxu1 %v11975_v29 }
 0x42b   : > { %v3269_v45 = vpop.f32.mrf.mxu2 }
 0x42c   : > { %v7739_v46 = vmax.f32 %v3269_v45, 0.0  ;;  %v3918_v47 = vpop.f32.mrf.mxu3  ;;  %v1973_v48 = vpop.f32.mrf.mxu0 }
 0x42d   : > { %v7740_v49 = vmax.f32 %v3918_v47, 0.0  ;;  %v7745_v50 = vmax.f32 %v1973_v48, 0.0  ;;  %v2622_v51 = vpop.f32.mrf.mxu1 }
 0x42e   : > { %v9560_v52 = vadd.f32 %v9559_v40, %v7739_v46  ;;  %v7746_v53 = vmax.f32 %v2622_v51, 0.0 }
 0x42f   : > { %v9815_v54 = vadd.f32 %v9814_v42, %v7740_v49  ;;  %v9051_v55 = vadd.f32 %v9050_v43, %v7745_v50 }
 0x430   : > { %v9306_v56 = vadd.f32 %v9305_v44, %v7746_v53 }
 0x433   : > { %v3271_v57 = vpop.f32.mrf.mxu2 }
 0x434   : > { %v7747_v59 = vmax.f32 %v3271_v57, 0.0  ;;  %v3920_v60 = vpop.f32.mrf.mxu3  ;;  %v1976_v61 = vpop.f32.mrf.mxu0 }
 0x435   : > { %v7748_v62 = vmax.f32 %v3920_v60, 0.0  ;;  %v7753_v63 = vmax.f32 %v1976_v61, 0.0  ;;  %v2625_v0 = vpop.f32.mrf.mxu1 }
 0x436   : > { %v9561_v1 = vadd.f32 %v9560_v52, %v7747_v59  ;;  %v7754_v2 = vmax.f32 %v2625_v0, 0.0 }
 0x437   : > { %v9816_v3 = vadd.f32 %v9815_v54, %v7748_v62  ;;  %v9052_v4 = vadd.f32 %v9051_v55, %v7753_v63  ;;  %12078 = vmatmul.msk.bf16.gmra.mxu0 %vm1312_vm0, %v13106_v58  ;;  %12206 = vmatmul.msk.bf16.gmra.mxu1 %vm1312_vm0, %v13106_v58 }
 0x438   : > { %v9307_v5 = vadd.f32 %v9306_v56, %v7754_v2  ;;  %12334 = vmatmul.msk.bf16.gmra.mxu2 %vm1312_vm0, %v13106_v58  ;;  %v13108_v56 = vld [vmem:[%s13583_s29 + $0x200] sm:$0xff] }
 0x439   : > { %12462 = vmatmul.msk.bf16.gmra.mxu3 %vm1312_vm0, %v13106_v58 }
 0x43b   : > { %v3274_v11 = vpop.f32.mrf.mxu2 }
 0x43c   : > { %v7755_v13 = vmax.f32 %v3274_v11, 0.0  ;;  %v3923_v14 = vpop.f32.mrf.mxu3  ;;  %v1978_v15 = vpop.f32.mrf.mxu0 }
 0x43d   : > { %v7756_v16 = vmax.f32 %v3923_v14, 0.0  ;;  %v7761_v17 = vmax.f32 %v1978_v15, 0.0  ;;  %v2627_v18 = vpop.f32.mrf.mxu1 }
 0x43e   : > { %v9562_v19 = vadd.f32 %v9561_v1, %v7755_v13  ;;  %v7762_v20 = vmax.f32 %v2627_v18, 0.0 }
 0x43f   : > { %v9817_v21 = vadd.f32 %v9816_v3, %v7756_v16  ;;  %v9053_v22 = vadd.f32 %v9052_v4, %v7761_v17  ;;  %v13109_v17 = vld [vmem:[%s13583_s29 + $0x208] sm:$0xff] }
 0x440   : > { %v9308_v23 = vadd.f32 %v9307_v5, %v7762_v20 }
 0x443   : > { %v3276_v30 = vpop.f32.mrf.mxu2 }
 0x444   : > { %v7763_v32 = vmax.f32 %v3276_v30, 0.0  ;;  %v3925_v33 = vpop.f32.mrf.mxu3  ;;  %v1981_v34 = vpop.f32.mrf.mxu0 }
 0x445   : > { %v7764_v35 = vmax.f32 %v3925_v33, 0.0  ;;  %v7769_v36 = vmax.f32 %v1981_v34, 0.0  ;;  %v2630_v37 = vpop.f32.mrf.mxu1 }
 0x446   : > { %v9563_v38 = vadd.f32 %v9562_v19, %v7763_v32  ;;  %v7770_v39 = vmax.f32 %v2630_v37, 0.0 }
 0x447   : > { %v9818_v40 = vadd.f32 %v9817_v21, %v7764_v35  ;;  %v9054_v41 = vadd.f32 %v9053_v22, %v7769_v36  ;;  %12079 = vmatmul.msk.bf16.gmra.mxu0 %vm1312_vm0, %v13107_v31  ;;  %12207 = vmatmul.msk.bf16.gmra.mxu1 %vm1312_vm0, %v13107_v31 }
 0x448   : > { %v9309_v42 = vadd.f32 %v9308_v23, %v7770_v39  ;;  %12335 = vmatmul.msk.bf16.gmra.mxu2 %vm1312_vm0, %v13107_v31 }
 0x449   : > { %12463 = vmatmul.msk.bf16.gmra.mxu3 %vm1312_vm0, %v13107_v31 }
 0x44b   : > { %v3279_v43 = vpop.f32.mrf.mxu2 }
 0x44c   : > { %v7771_v44 = vmax.f32 %v3279_v43, 0.0  ;;  %v3928_v45 = vpop.f32.mrf.mxu3  ;;  %v1983_v46 = vpop.f32.mrf.mxu0 }
 0x44d   : > { %v7772_v47 = vmax.f32 %v3928_v45, 0.0  ;;  %v7777_v48 = vmax.f32 %v1983_v46, 0.0  ;;  %v2632_v49 = vpop.f32.mrf.mxu1 }
 0x44e   : > { %v9564_v50 = vadd.f32 %v9563_v38, %v7771_v44  ;;  %v7778_v51 = vmax.f32 %v2632_v49, 0.0 }
 0x44f   : > { %v9819_v52 = vadd.f32 %v9818_v40, %v7772_v47  ;;  %v9055_v53 = vadd.f32 %v9054_v41, %v7777_v48 }
 0x450   : > { %v9310_v54 = vadd.f32 %v9309_v42, %v7778_v51  ;;  %v13110_v42 = vld [vmem:[%s13583_s29 + $0x210] sm:$0xff] }
 0x453   : > { %v3281_v55 = vpop.f32.mrf.mxu2 }
 0x454   : > { %v7779_v57 = vmax.f32 %v3281_v55, 0.0  ;;  %v3930_v58 = vpop.f32.mrf.mxu3  ;;  %v1986_v59 = vpop.f32.mrf.mxu0 }
 0x455   : > { %v7780_v60 = vmax.f32 %v3930_v58, 0.0  ;;  %v7785_v61 = vmax.f32 %v1986_v59, 0.0  ;;  %v2635_v62 = vpop.f32.mrf.mxu1 }
 0x456   : > { %v9565_v63 = vadd.f32 %v9564_v50, %v7779_v57  ;;  %v7786_v0 = vmax.f32 %v2635_v62, 0.0 }
 0x457   : > { %v9820_v1 = vadd.f32 %v9819_v52, %v7780_v60  ;;  %v9056_v2 = vadd.f32 %v9055_v53, %v7785_v61  ;;  %12080 = vmatmul.msk.bf16.gmra.mxu0 %vm1312_vm0, %v13108_v56  ;;  %12208 = vmatmul.msk.bf16.gmra.mxu1 %vm1312_vm0, %v13108_v56 }
 0x458   : > { %v9311_v3 = vadd.f32 %v9310_v54, %v7786_v0  ;;  %12336 = vmatmul.msk.bf16.gmra.mxu2 %vm1312_vm0, %v13108_v56 }
 0x459   : > { %12464 = vmatmul.msk.bf16.gmra.mxu3 %vm1312_vm0, %v13108_v56 }
 0x45b   : > { %v3284_v4 = vpop.f32.mrf.mxu2 }
 0x45c   : > { %v7787_v5 = vmax.f32 %v3284_v4, 0.0  ;;  %v3933_v6 = vpop.f32.mrf.mxu3  ;;  %v1988_v7 = vpop.f32.mrf.mxu0 }
 0x45d   : > { %v7788_v8 = vmax.f32 %v3933_v6, 0.0  ;;  %v7793_v9 = vmax.f32 %v1988_v7, 0.0  ;;  %v2637_v10 = vpop.f32.mrf.mxu1 }
 0x45e   : > { %v9566_v11 = vadd.f32 %v9565_v63, %v7787_v5  ;;  %v7794_v12 = vmax.f32 %v2637_v10, 0.0 }
 0x45f   : > { %v9821_v13 = vadd.f32 %v9820_v1, %v7788_v8  ;;  %v9057_v14 = vadd.f32 %v9056_v2, %v7793_v9 }
 0x460   : > { %v9312_v15 = vadd.f32 %v9311_v3, %v7794_v12  ;;  %v13111_v3 = vld [vmem:[%s13583_s29 + $0x218] sm:$0xff] }
 0x463   : > { %v3286_v16 = vpop.f32.mrf.mxu2 }
 0x464   : > { %v7795_v18 = vmax.f32 %v3286_v16, 0.0  ;;  %v3935_v19 = vpop.f32.mrf.mxu3  ;;  %v1991_v20 = vpop.f32.mrf.mxu0 }
 0x465   : > { %v7796_v21 = vmax.f32 %v3935_v19, 0.0  ;;  %v7801_v22 = vmax.f32 %v1991_v20, 0.0  ;;  %v2640_v23 = vpop.f32.mrf.mxu1 }
 0x466   : > { %v9567_v24 = vadd.f32 %v9566_v11, %v7795_v18  ;;  %v7802_v25 = vmax.f32 %v2640_v23, 0.0 }
 0x467   : > { %v9822_v26 = vadd.f32 %v9821_v13, %v7796_v21  ;;  %v9058_v27 = vadd.f32 %v9057_v14, %v7801_v22  ;;  %12081 = vmatmul.msk.bf16.gmra.mxu0 %vm1312_vm0, %v13109_v17  ;;  %12209 = vmatmul.msk.bf16.gmra.mxu1 %vm1312_vm0, %v13109_v17 }
 0x468   : > { %v9313_v28 = vadd.f32 %v9312_v15, %v7802_v25  ;;  %12337 = vmatmul.msk.bf16.gmra.mxu2 %vm1312_vm0, %v13109_v17 }
 0x469   : > { %12465 = vmatmul.msk.bf16.gmra.mxu3 %vm1312_vm0, %v13109_v17 }
 0x46b   : > { %v3289_v29 = vpop.f32.mrf.mxu2 }
 0x46c   : > { %v7803_v30 = vmax.f32 %v3289_v29, 0.0  ;;  %v3938_v31 = vpop.f32.mrf.mxu3  ;;  %v1993_v32 = vpop.f32.mrf.mxu0 }
 0x46d   : > { %v7804_v33 = vmax.f32 %v3938_v31, 0.0  ;;  %v7809_v34 = vmax.f32 %v1993_v32, 0.0  ;;  %v2642_v35 = vpop.f32.mrf.mxu1 }
 0x46e   : > { %v9568_v36 = vadd.f32 %v9567_v24, %v7803_v30  ;;  %v7810_v37 = vmax.f32 %v2642_v35, 0.0 }
 0x46f   : > { %v9823_v38 = vadd.f32 %v9822_v26, %v7804_v33  ;;  %v9059_v39 = vadd.f32 %v9058_v27, %v7809_v34 }
 0x470   : > { %v9314_v40 = vadd.f32 %v9313_v28, %v7810_v37  ;;  %v13112_v28 = vld [vmem:[%s13583_s29 + $0x220] sm:$0xff] }
 0x473   : > { %v3291_v41 = vpop.f32.mrf.mxu2 }
 0x474   : > { %v7811_v43 = vmax.f32 %v3291_v41, 0.0  ;;  %v3940_v44 = vpop.f32.mrf.mxu3  ;;  %v1996_v45 = vpop.f32.mrf.mxu0 }
 0x475   : > { %v7812_v46 = vmax.f32 %v3940_v44, 0.0  ;;  %v7817_v47 = vmax.f32 %v1996_v45, 0.0  ;;  %v2645_v48 = vpop.f32.mrf.mxu1 }
 0x476   : > { %v9569_v49 = vadd.f32 %v9568_v36, %v7811_v43  ;;  %v7818_v50 = vmax.f32 %v2645_v48, 0.0 }
 0x477   : > { %v9824_v51 = vadd.f32 %v9823_v38, %v7812_v46  ;;  %v9060_v52 = vadd.f32 %v9059_v39, %v7817_v47  ;;  %12082 = vmatmul.msk.bf16.gmra.mxu0 %vm1312_vm0, %v13110_v42  ;;  %12210 = vmatmul.msk.bf16.gmra.mxu1 %vm1312_vm0, %v13110_v42 }
 0x478   : > { %v9315_v53 = vadd.f32 %v9314_v40, %v7818_v50  ;;  %12338 = vmatmul.msk.bf16.gmra.mxu2 %vm1312_vm0, %v13110_v42 }
 0x479   : > { %12466 = vmatmul.msk.bf16.gmra.mxu3 %vm1312_vm0, %v13110_v42 }
 0x47b   : > { %v3294_v54 = vpop.f32.mrf.mxu2 }
 0x47c   : > { %v7819_v55 = vmax.f32 %v3294_v54, 0.0  ;;  %v3943_v56 = vpop.f32.mrf.mxu3  ;;  %v1998_v57 = vpop.f32.mrf.mxu0 }
 0x47d   : > { %v7820_v58 = vmax.f32 %v3943_v56, 0.0  ;;  %v7825_v59 = vmax.f32 %v1998_v57, 0.0  ;;  %v2647_v60 = vpop.f32.mrf.mxu1 }
 0x47e   : > { %v9570_v61 = vadd.f32 %v9569_v49, %v7819_v55  ;;  %v7826_v62 = vmax.f32 %v2647_v60, 0.0 }
 0x47f   : > { %v9825_v63 = vadd.f32 %v9824_v51, %v7820_v58  ;;  %v9061_v0 = vadd.f32 %v9060_v52, %v7825_v59 }
 0x480   : > { %v9316_v1 = vadd.f32 %v9315_v53, %v7826_v62  ;;  %v13113_v53 = vld [vmem:[%s13583_s29 + $0x228] sm:$0xff] }
 0x483   : > { %v3296_v2 = vpop.f32.mrf.mxu2 }
 0x484   : > { %v7827_v4 = vmax.f32 %v3296_v2, 0.0  ;;  %v3945_v5 = vpop.f32.mrf.mxu3  ;;  %v2001_v6 = vpop.f32.mrf.mxu0 }
 0x485   : > { %v7828_v7 = vmax.f32 %v3945_v5, 0.0  ;;  %v7833_v8 = vmax.f32 %v2001_v6, 0.0  ;;  %v2650_v9 = vpop.f32.mrf.mxu1 }
 0x486   : > { %v9571_v10 = vadd.f32 %v9570_v61, %v7827_v4  ;;  %v7834_v11 = vmax.f32 %v2650_v9, 0.0 }
 0x487   : > { %v9826_v12 = vadd.f32 %v9825_v63, %v7828_v7  ;;  %v9062_v13 = vadd.f32 %v9061_v0, %v7833_v8  ;;  %12083 = vmatmul.msk.bf16.gmra.mxu0 %vm1312_vm0, %v13111_v3  ;;  %12211 = vmatmul.msk.bf16.gmra.mxu1 %vm1312_vm0, %v13111_v3 }
 0x488   : > { %v9317_v14 = vadd.f32 %v9316_v1, %v7834_v11  ;;  %12339 = vmatmul.msk.bf16.gmra.mxu2 %vm1312_vm0, %v13111_v3 }
 0x489   : > { %12467 = vmatmul.msk.bf16.gmra.mxu3 %vm1312_vm0, %v13111_v3 }
 0x48b   : > { %v3299_v15 = vpop.f32.mrf.mxu2 }
 0x48c   : > { %v7835_v16 = vmax.f32 %v3299_v15, 0.0  ;;  %v3948_v17 = vpop.f32.mrf.mxu3  ;;  %v2003_v18 = vpop.f32.mrf.mxu0 }
 0x48d   : > { %v7836_v19 = vmax.f32 %v3948_v17, 0.0  ;;  %v7841_v20 = vmax.f32 %v2003_v18, 0.0  ;;  %v2652_v21 = vpop.f32.mrf.mxu1 }
 0x48e   : > { %v9572_v22 = vadd.f32 %v9571_v10, %v7835_v16  ;;  %v7842_v23 = vmax.f32 %v2652_v21, 0.0 }
 0x48f   : > { %v9827_v24 = vadd.f32 %v9826_v12, %v7836_v19  ;;  %v9063_v25 = vadd.f32 %v9062_v13, %v7841_v20 }
 0x490   : > { %v9318_v26 = vadd.f32 %v9317_v14, %v7842_v23  ;;  %v13114_v14 = vld [vmem:[%s13583_s29 + $0x230] sm:$0xff] }
 0x493   : > { %v3301_v27 = vpop.f32.mrf.mxu2 }
 0x494   : > { %v7843_v29 = vmax.f32 %v3301_v27, 0.0  ;;  %v3950_v30 = vpop.f32.mrf.mxu3  ;;  %v2006_v31 = vpop.f32.mrf.mxu0 }
 0x495   : > { %v7844_v32 = vmax.f32 %v3950_v30, 0.0  ;;  %v7849_v33 = vmax.f32 %v2006_v31, 0.0  ;;  %v2655_v34 = vpop.f32.mrf.mxu1 }
 0x496   : > { %v9573_v35 = vadd.f32 %v9572_v22, %v7843_v29  ;;  %v7850_v36 = vmax.f32 %v2655_v34, 0.0 }
 0x497   : > { %v9828_v37 = vadd.f32 %v9827_v24, %v7844_v32  ;;  %v9064_v38 = vadd.f32 %v9063_v25, %v7849_v33  ;;  %12084 = vmatmul.msk.bf16.gmra.mxu0 %vm1312_vm0, %v13112_v28  ;;  %12212 = vmatmul.msk.bf16.gmra.mxu1 %vm1312_vm0, %v13112_v28 }
 0x498   : > { %v9319_v39 = vadd.f32 %v9318_v26, %v7850_v36  ;;  %12340 = vmatmul.msk.bf16.gmra.mxu2 %vm1312_vm0, %v13112_v28 }
 0x499   : > { %12468 = vmatmul.msk.bf16.gmra.mxu3 %vm1312_vm0, %v13112_v28 }
 0x49b   : > { %v3304_v40 = vpop.f32.mrf.mxu2 }
 0x49c   : > { %v7851_v41 = vmax.f32 %v3304_v40, 0.0  ;;  %v3953_v42 = vpop.f32.mrf.mxu3  ;;  %v2008_v43 = vpop.f32.mrf.mxu0 }
 0x49d   : > { %v7852_v44 = vmax.f32 %v3953_v42, 0.0  ;;  %v7857_v45 = vmax.f32 %v2008_v43, 0.0  ;;  %v2657_v46 = vpop.f32.mrf.mxu1 }
 0x49e   : > { %v9574_v47 = vadd.f32 %v9573_v35, %v7851_v41  ;;  %v7858_v48 = vmax.f32 %v2657_v46, 0.0 }
 0x49f   : > { %v9829_v49 = vadd.f32 %v9828_v37, %v7852_v44  ;;  %v9065_v50 = vadd.f32 %v9064_v38, %v7857_v45 }
 0x4a0   : > { %v9320_v51 = vadd.f32 %v9319_v39, %v7858_v48  ;;  %v13115_v39 = vld [vmem:[%s13583_s29 + $0x238] sm:$0xff] }
 0x4a3   : > { %v3306_v52 = vpop.f32.mrf.mxu2 }
 0x4a4   : > { %v7859_v54 = vmax.f32 %v3306_v52, 0.0  ;;  %v3955_v55 = vpop.f32.mrf.mxu3  ;;  %v2011_v56 = vpop.f32.mrf.mxu0 }
 0x4a5   : > { %v7860_v57 = vmax.f32 %v3955_v55, 0.0  ;;  %v7865_v58 = vmax.f32 %v2011_v56, 0.0  ;;  %v2660_v59 = vpop.f32.mrf.mxu1 }
 0x4a6   : > { %v9575_v60 = vadd.f32 %v9574_v47, %v7859_v54  ;;  %v7866_v61 = vmax.f32 %v2660_v59, 0.0 }
 0x4a7   : > { %v9830_v62 = vadd.f32 %v9829_v49, %v7860_v57  ;;  %v9066_v63 = vadd.f32 %v9065_v50, %v7865_v58  ;;  %12085 = vmatmul.msk.bf16.gmra.mxu0 %vm1312_vm0, %v13113_v53  ;;  %12213 = vmatmul.msk.bf16.gmra.mxu1 %vm1312_vm0, %v13113_v53 }
 0x4a8   : > { %v9321_v0 = vadd.f32 %v9320_v51, %v7866_v61  ;;  %12341 = vmatmul.msk.bf16.gmra.mxu2 %vm1312_vm0, %v13113_v53 }
 0x4a9   : > { %12469 = vmatmul.msk.bf16.gmra.mxu3 %vm1312_vm0, %v13113_v53 }
 0x4ab   : > { %v3309_v1 = vpop.f32.mrf.mxu2 }
 0x4ac   : > { %v7867_v2 = vmax.f32 %v3309_v1, 0.0  ;;  %v3958_v3 = vpop.f32.mrf.mxu3  ;;  %v2013_v4 = vpop.f32.mrf.mxu0 }
 0x4ad   : > { %v7868_v5 = vmax.f32 %v3958_v3, 0.0  ;;  %v7873_v6 = vmax.f32 %v2013_v4, 0.0  ;;  %v2662_v7 = vpop.f32.mrf.mxu1 }
 0x4ae   : > { %v9576_v8 = vadd.f32 %v9575_v60, %v7867_v2  ;;  %v7874_v9 = vmax.f32 %v2662_v7, 0.0 }
 0x4af   : > { %v9831_v10 = vadd.f32 %v9830_v62, %v7868_v5  ;;  %v9067_v11 = vadd.f32 %v9066_v63, %v7873_v6 }
 0x4b0   : > { %v9322_v12 = vadd.f32 %v9321_v0, %v7874_v9  ;;  %v13116_v0 = vld [vmem:[%s13583_s29 + $0x240] sm:$0xff] }
 0x4b3   : > { %v3311_v13 = vpop.f32.mrf.mxu2 }
 0x4b4   : > { %v7875_v15 = vmax.f32 %v3311_v13, 0.0  ;;  %v3960_v16 = vpop.f32.mrf.mxu3  ;;  %v2016_v17 = vpop.f32.mrf.mxu0 }
 0x4b5   : > { %v7876_v18 = vmax.f32 %v3960_v16, 0.0  ;;  %v7881_v19 = vmax.f32 %v2016_v17, 0.0  ;;  %v2665_v20 = vpop.f32.mrf.mxu1 }
 0x4b6   : > { %v9577_v21 = vadd.f32 %v9576_v8, %v7875_v15  ;;  %v7882_v22 = vmax.f32 %v2665_v20, 0.0 }
 0x4b7   : > { %v9832_v23 = vadd.f32 %v9831_v10, %v7876_v18  ;;  %v9068_v24 = vadd.f32 %v9067_v11, %v7881_v19  ;;  %12086 = vmatmul.msk.bf16.gmra.mxu0 %vm1312_vm0, %v13114_v14  ;;  %12214 = vmatmul.msk.bf16.gmra.mxu1 %vm1312_vm0, %v13114_v14 }
 0x4b8   : > { %v9323_v25 = vadd.f32 %v9322_v12, %v7882_v22  ;;  %12342 = vmatmul.msk.bf16.gmra.mxu2 %vm1312_vm0, %v13114_v14 }
 0x4b9   : > { %12470 = vmatmul.msk.bf16.gmra.mxu3 %vm1312_vm0, %v13114_v14 }
 0x4bb   : > { %v3314_v26 = vpop.f32.mrf.mxu2 }
 0x4bc   : > { %v7883_v27 = vmax.f32 %v3314_v26, 0.0  ;;  %v3963_v28 = vpop.f32.mrf.mxu3  ;;  %v2018_v29 = vpop.f32.mrf.mxu0 }
 0x4bd   : > { %v7884_v30 = vmax.f32 %v3963_v28, 0.0  ;;  %v7889_v31 = vmax.f32 %v2018_v29, 0.0  ;;  %v2667_v32 = vpop.f32.mrf.mxu1 }
 0x4be   : > { %v9578_v33 = vadd.f32 %v9577_v21, %v7883_v27  ;;  %v7890_v34 = vmax.f32 %v2667_v32, 0.0 }
 0x4bf   : > { %v9833_v35 = vadd.f32 %v9832_v23, %v7884_v30  ;;  %v9069_v36 = vadd.f32 %v9068_v24, %v7889_v31 }
 0x4c0   : > { %v9324_v37 = vadd.f32 %v9323_v25, %v7890_v34  ;;  %v13117_v25 = vld [vmem:[%s13583_s29 + $0x248] sm:$0xff] }
 0x4c3   : > { %v3316_v38 = vpop.f32.mrf.mxu2 }
 0x4c4   : > { %v7891_v40 = vmax.f32 %v3316_v38, 0.0  ;;  %v3965_v41 = vpop.f32.mrf.mxu3  ;;  %v2021_v42 = vpop.f32.mrf.mxu0 }
 0x4c5   : > { %v7892_v43 = vmax.f32 %v3965_v41, 0.0  ;;  %v7897_v44 = vmax.f32 %v2021_v42, 0.0  ;;  %v2670_v45 = vpop.f32.mrf.mxu1 }
 0x4c6   : > { %v9579_v46 = vadd.f32 %v9578_v33, %v7891_v40  ;;  %v7898_v47 = vmax.f32 %v2670_v45, 0.0 }
 0x4c7   : > { %v9834_v48 = vadd.f32 %v9833_v35, %v7892_v43  ;;  %v9070_v49 = vadd.f32 %v9069_v36, %v7897_v44  ;;  %12087 = vmatmul.msk.bf16.gmra.mxu0 %vm1312_vm0, %v13115_v39  ;;  %12215 = vmatmul.msk.bf16.gmra.mxu1 %vm1312_vm0, %v13115_v39 }
 0x4c8   : > { %v9325_v50 = vadd.f32 %v9324_v37, %v7898_v47  ;;  %12343 = vmatmul.msk.bf16.gmra.mxu2 %vm1312_vm0, %v13115_v39 }
 0x4c9   : > { %12471 = vmatmul.msk.bf16.gmra.mxu3 %vm1312_vm0, %v13115_v39 }
 0x4cb   : > { %v3319_v51 = vpop.f32.mrf.mxu2 }
 0x4cc   : > { %v7899_v52 = vmax.f32 %v3319_v51, 0.0  ;;  %v3968_v53 = vpop.f32.mrf.mxu3  ;;  %v2023_v54 = vpop.f32.mrf.mxu0 }
 0x4cd   : > { %v7900_v55 = vmax.f32 %v3968_v53, 0.0  ;;  %v7905_v56 = vmax.f32 %v2023_v54, 0.0  ;;  %v2672_v57 = vpop.f32.mrf.mxu1 }
 0x4ce   : > { %v9580_v58 = vadd.f32 %v9579_v46, %v7899_v52  ;;  %v7906_v59 = vmax.f32 %v2672_v57, 0.0 }
 0x4cf   : > { %v9835_v60 = vadd.f32 %v9834_v48, %v7900_v55  ;;  %v9071_v61 = vadd.f32 %v9070_v49, %v7905_v56 }
 0x4d0   : > { %v9326_v62 = vadd.f32 %v9325_v50, %v7906_v59  ;;  %v13118_v50 = vld [vmem:[%s13583_s29 + $0x250] sm:$0xff] }
 0x4d3   : > { %v3321_v63 = vpop.f32.mrf.mxu2 }
 0x4d4   : > { %v7907_v1 = vmax.f32 %v3321_v63, 0.0  ;;  %v3970_v2 = vpop.f32.mrf.mxu3  ;;  %v2026_v3 = vpop.f32.mrf.mxu0 }
 0x4d5   : > { %v7908_v4 = vmax.f32 %v3970_v2, 0.0  ;;  %v7913_v5 = vmax.f32 %v2026_v3, 0.0  ;;  %v2675_v6 = vpop.f32.mrf.mxu1 }
 0x4d6   : > { %v9581_v7 = vadd.f32 %v9580_v58, %v7907_v1  ;;  %v7914_v8 = vmax.f32 %v2675_v6, 0.0 }
 0x4d7   : > { %v9836_v9 = vadd.f32 %v9835_v60, %v7908_v4  ;;  %v9072_v10 = vadd.f32 %v9071_v61, %v7913_v5  ;;  %12088 = vmatmul.msk.bf16.gmra.mxu0 %vm1312_vm0, %v13116_v0  ;;  %12216 = vmatmul.msk.bf16.gmra.mxu1 %vm1312_vm0, %v13116_v0 }
 0x4d8   : > { %v9327_v11 = vadd.f32 %v9326_v62, %v7914_v8  ;;  %12344 = vmatmul.msk.bf16.gmra.mxu2 %vm1312_vm0, %v13116_v0 }
 0x4d9   : > { %12472 = vmatmul.msk.bf16.gmra.mxu3 %vm1312_vm0, %v13116_v0 }
 0x4db   : > { %v3324_v12 = vpop.f32.mrf.mxu2 }
 0x4dc   : > { %v7915_v13 = vmax.f32 %v3324_v12, 0.0  ;;  %v3973_v14 = vpop.f32.mrf.mxu3  ;;  %v2028_v15 = vpop.f32.mrf.mxu0 }
 0x4dd   : > { %v7916_v16 = vmax.f32 %v3973_v14, 0.0  ;;  %v7921_v17 = vmax.f32 %v2028_v15, 0.0  ;;  %v2677_v18 = vpop.f32.mrf.mxu1 }
 0x4de   : > { %v9582_v19 = vadd.f32 %v9581_v7, %v7915_v13  ;;  %v7922_v20 = vmax.f32 %v2677_v18, 0.0 }
 0x4df   : > { %v9837_v21 = vadd.f32 %v9836_v9, %v7916_v16  ;;  %v9073_v22 = vadd.f32 %v9072_v10, %v7921_v17 }
 0x4e0   : > { %v9328_v23 = vadd.f32 %v9327_v11, %v7922_v20  ;;  %v13119_v11 = vld [vmem:[%s13583_s29 + $0x258] sm:$0xff] }
 0x4e3   : > { %v3326_v24 = vpop.f32.mrf.mxu2 }
 0x4e4   : > { %v7923_v26 = vmax.f32 %v3326_v24, 0.0  ;;  %v3975_v27 = vpop.f32.mrf.mxu3  ;;  %v2031_v28 = vpop.f32.mrf.mxu0 }
 0x4e5   : > { %v7924_v29 = vmax.f32 %v3975_v27, 0.0  ;;  %v7929_v30 = vmax.f32 %v2031_v28, 0.0  ;;  %v2680_v31 = vpop.f32.mrf.mxu1 }
 0x4e6   : > { %v9583_v32 = vadd.f32 %v9582_v19, %v7923_v26  ;;  %v7930_v33 = vmax.f32 %v2680_v31, 0.0 }
 0x4e7   : > { %v9838_v34 = vadd.f32 %v9837_v21, %v7924_v29  ;;  %v9074_v35 = vadd.f32 %v9073_v22, %v7929_v30  ;;  %12089 = vmatmul.msk.bf16.gmra.mxu0 %vm1312_vm0, %v13117_v25  ;;  %12217 = vmatmul.msk.bf16.gmra.mxu1 %vm1312_vm0, %v13117_v25 }
 0x4e8   : > { %v9329_v36 = vadd.f32 %v9328_v23, %v7930_v33  ;;  %12345 = vmatmul.msk.bf16.gmra.mxu2 %vm1312_vm0, %v13117_v25 }
 0x4e9   : > { %12473 = vmatmul.msk.bf16.gmra.mxu3 %vm1312_vm0, %v13117_v25 }
 0x4eb   : > { %v3329_v37 = vpop.f32.mrf.mxu2 }
 0x4ec   : > { %v7931_v38 = vmax.f32 %v3329_v37, 0.0  ;;  %v3978_v39 = vpop.f32.mrf.mxu3  ;;  %v2033_v40 = vpop.f32.mrf.mxu0 }
 0x4ed   : > { %v7932_v41 = vmax.f32 %v3978_v39, 0.0  ;;  %v7937_v42 = vmax.f32 %v2033_v40, 0.0  ;;  %v2682_v43 = vpop.f32.mrf.mxu1 }
 0x4ee   : > { %v9584_v44 = vadd.f32 %v9583_v32, %v7931_v38  ;;  %v7938_v45 = vmax.f32 %v2682_v43, 0.0 }
 0x4ef   : > { %v9839_v46 = vadd.f32 %v9838_v34, %v7932_v41  ;;  %v9075_v47 = vadd.f32 %v9074_v35, %v7937_v42 }
 0x4f0   : > { %v9330_v48 = vadd.f32 %v9329_v36, %v7938_v45  ;;  %v13120_v36 = vld [vmem:[%s13583_s29 + $0x260] sm:$0xff] }
 0x4f3   : > { %v3331_v49 = vpop.f32.mrf.mxu2 }
 0x4f4   : > { %v7939_v51 = vmax.f32 %v3331_v49, 0.0  ;;  %v3980_v52 = vpop.f32.mrf.mxu3  ;;  %v2036_v53 = vpop.f32.mrf.mxu0 }
 0x4f5   : > { %v7940_v54 = vmax.f32 %v3980_v52, 0.0  ;;  %v7945_v55 = vmax.f32 %v2036_v53, 0.0  ;;  %v2685_v56 = vpop.f32.mrf.mxu1 }
 0x4f6   : > { %v9585_v57 = vadd.f32 %v9584_v44, %v7939_v51  ;;  %v7946_v58 = vmax.f32 %v2685_v56, 0.0 }
 0x4f7   : > { %v9840_v59 = vadd.f32 %v9839_v46, %v7940_v54  ;;  %v9076_v60 = vadd.f32 %v9075_v47, %v7945_v55  ;;  %12090 = vmatmul.msk.bf16.gmra.mxu0 %vm1312_vm0, %v13118_v50  ;;  %12218 = vmatmul.msk.bf16.gmra.mxu1 %vm1312_vm0, %v13118_v50 }
 0x4f8   : > { %v9331_v61 = vadd.f32 %v9330_v48, %v7946_v58  ;;  %12346 = vmatmul.msk.bf16.gmra.mxu2 %vm1312_vm0, %v13118_v50 }
 0x4f9   : > { %12474 = vmatmul.msk.bf16.gmra.mxu3 %vm1312_vm0, %v13118_v50 }
 0x4fb   : > { %v3334_v62 = vpop.f32.mrf.mxu2 }
 0x4fc   : > { %v7947_v63 = vmax.f32 %v3334_v62, 0.0  ;;  %v3983_v0 = vpop.f32.mrf.mxu3  ;;  %v2038_v1 = vpop.f32.mrf.mxu0 }
 0x4fd   : > { %v7948_v2 = vmax.f32 %v3983_v0, 0.0  ;;  %v7953_v3 = vmax.f32 %v2038_v1, 0.0  ;;  %v2687_v4 = vpop.f32.mrf.mxu1 }
 0x4fe   : > { %v9586_v5 = vadd.f32 %v9585_v57, %v7947_v63  ;;  %v7954_v6 = vmax.f32 %v2687_v4, 0.0 }
 0x4ff   : > { %v9841_v7 = vadd.f32 %v9840_v59, %v7948_v2  ;;  %v9077_v8 = vadd.f32 %v9076_v60, %v7953_v3 }
 0x500   : > { %v9332_v9 = vadd.f32 %v9331_v61, %v7954_v6  ;;  %v13121_v61 = vld [vmem:[%s13583_s29 + $0x268] sm:$0xff] }
 0x503   : > { %v3336_v10 = vpop.f32.mrf.mxu2 }
 0x504   : > { %v7955_v12 = vmax.f32 %v3336_v10, 0.0  ;;  %v3985_v13 = vpop.f32.mrf.mxu3  ;;  %v2041_v14 = vpop.f32.mrf.mxu0 }
 0x505   : > { %v7956_v15 = vmax.f32 %v3985_v13, 0.0  ;;  %v7961_v16 = vmax.f32 %v2041_v14, 0.0  ;;  %v2690_v17 = vpop.f32.mrf.mxu1 }
 0x506   : > { %v9587_v18 = vadd.f32 %v9586_v5, %v7955_v12  ;;  %v7962_v19 = vmax.f32 %v2690_v17, 0.0 }
 0x507   : > { %v9842_v20 = vadd.f32 %v9841_v7, %v7956_v15  ;;  %v9078_v21 = vadd.f32 %v9077_v8, %v7961_v16  ;;  %12091 = vmatmul.msk.bf16.gmra.mxu0 %vm1312_vm0, %v13119_v11  ;;  %12219 = vmatmul.msk.bf16.gmra.mxu1 %vm1312_vm0, %v13119_v11 }
 0x508   : > { %v9333_v22 = vadd.f32 %v9332_v9, %v7962_v19  ;;  %12347 = vmatmul.msk.bf16.gmra.mxu2 %vm1312_vm0, %v13119_v11 }
 0x509   : > { %12475 = vmatmul.msk.bf16.gmra.mxu3 %vm1312_vm0, %v13119_v11 }
 0x50b   : > { %v3339_v23 = vpop.f32.mrf.mxu2 }
 0x50c   : > { %v7963_v24 = vmax.f32 %v3339_v23, 0.0  ;;  %v3988_v25 = vpop.f32.mrf.mxu3  ;;  %v2043_v26 = vpop.f32.mrf.mxu0 }
 0x50d   : > { %v7964_v27 = vmax.f32 %v3988_v25, 0.0  ;;  %v7969_v28 = vmax.f32 %v2043_v26, 0.0  ;;  %v2692_v29 = vpop.f32.mrf.mxu1 }
 0x50e   : > { %v9588_v30 = vadd.f32 %v9587_v18, %v7963_v24  ;;  %v7970_v31 = vmax.f32 %v2692_v29, 0.0 }
 0x50f   : > { %v9843_v32 = vadd.f32 %v9842_v20, %v7964_v27  ;;  %v9079_v33 = vadd.f32 %v9078_v21, %v7969_v28 }
 0x510   : > { %v9334_v34 = vadd.f32 %v9333_v22, %v7970_v31  ;;  %v13122_v22 = vld [vmem:[%s13583_s29 + $0x270] sm:$0xff] }
 0x513   : > { %v3341_v35 = vpop.f32.mrf.mxu2 }
 0x514   : > { %v7971_v37 = vmax.f32 %v3341_v35, 0.0  ;;  %v3990_v38 = vpop.f32.mrf.mxu3  ;;  %v2046_v39 = vpop.f32.mrf.mxu0 }
 0x515   : > { %v7972_v40 = vmax.f32 %v3990_v38, 0.0  ;;  %v7977_v41 = vmax.f32 %v2046_v39, 0.0  ;;  %v2695_v42 = vpop.f32.mrf.mxu1 }
 0x516   : > { %v9589_v43 = vadd.f32 %v9588_v30, %v7971_v37  ;;  %v7978_v44 = vmax.f32 %v2695_v42, 0.0 }
 0x517   : > { %v9844_v45 = vadd.f32 %v9843_v32, %v7972_v40  ;;  %v9080_v46 = vadd.f32 %v9079_v33, %v7977_v41  ;;  %12092 = vmatmul.msk.bf16.gmra.mxu0 %vm1312_vm0, %v13120_v36  ;;  %12220 = vmatmul.msk.bf16.gmra.mxu1 %vm1312_vm0, %v13120_v36 }
 0x518   : > { %v9335_v47 = vadd.f32 %v9334_v34, %v7978_v44  ;;  %12348 = vmatmul.msk.bf16.gmra.mxu2 %vm1312_vm0, %v13120_v36 }
 0x519   : > { %12476 = vmatmul.msk.bf16.gmra.mxu3 %vm1312_vm0, %v13120_v36 }
 0x51b   : > { %v3344_v48 = vpop.f32.mrf.mxu2 }
 0x51c   : > { %v7979_v49 = vmax.f32 %v3344_v48, 0.0  ;;  %v3993_v50 = vpop.f32.mrf.mxu3  ;;  %v2048_v51 = vpop.f32.mrf.mxu0 }
 0x51d   : > { %v7980_v52 = vmax.f32 %v3993_v50, 0.0  ;;  %v7985_v53 = vmax.f32 %v2048_v51, 0.0  ;;  %v2697_v54 = vpop.f32.mrf.mxu1 }
 0x51e   : > { %v9590_v55 = vadd.f32 %v9589_v43, %v7979_v49  ;;  %v7986_v56 = vmax.f32 %v2697_v54, 0.0 }
 0x51f   : > { %v9845_v57 = vadd.f32 %v9844_v45, %v7980_v52  ;;  %v9081_v58 = vadd.f32 %v9080_v46, %v7985_v53 }
 0x520   : > { %v9336_v59 = vadd.f32 %v9335_v47, %v7986_v56  ;;  %v13123_v47 = vld [vmem:[%s13583_s29 + $0x278] sm:$0xff] }
 0x523   : > { %v3346_v60 = vpop.f32.mrf.mxu2 }
 0x524   : > { %v7987_v62 = vmax.f32 %v3346_v60, 0.0  ;;  %v3995_v63 = vpop.f32.mrf.mxu3  ;;  %v2051_v0 = vpop.f32.mrf.mxu0 }
 0x525   : > { %v7988_v1 = vmax.f32 %v3995_v63, 0.0  ;;  %v7993_v2 = vmax.f32 %v2051_v0, 0.0  ;;  %v2700_v3 = vpop.f32.mrf.mxu1 }
 0x526   : > { %v9591_v4 = vadd.f32 %v9590_v55, %v7987_v62  ;;  %v7994_v5 = vmax.f32 %v2700_v3, 0.0 }
 0x527   : > { %v9846_v6 = vadd.f32 %v9845_v57, %v7988_v1  ;;  %v9082_v7 = vadd.f32 %v9081_v58, %v7993_v2  ;;  %12093 = vmatmul.msk.bf16.gmra.mxu0 %vm1312_vm0, %v13121_v61  ;;  %12221 = vmatmul.msk.bf16.gmra.mxu1 %vm1312_vm0, %v13121_v61 }
 0x528   : > { %v9337_v8 = vadd.f32 %v9336_v59, %v7994_v5  ;;  %12349 = vmatmul.msk.bf16.gmra.mxu2 %vm1312_vm0, %v13121_v61 }
 0x529   : > { %12477 = vmatmul.msk.bf16.gmra.mxu3 %vm1312_vm0, %v13121_v61 }
 0x52b   : > { %v3349_v9 = vpop.f32.mrf.mxu2 }
 0x52c   : > { %v7995_v10 = vmax.f32 %v3349_v9, 0.0  ;;  %v3998_v11 = vpop.f32.mrf.mxu3  ;;  %v2053_v12 = vpop.f32.mrf.mxu0 }
 0x52d   : > { %v7996_v13 = vmax.f32 %v3998_v11, 0.0  ;;  %v8001_v14 = vmax.f32 %v2053_v12, 0.0  ;;  %v2702_v15 = vpop.f32.mrf.mxu1 }
 0x52e   : > { %v9592_v16 = vadd.f32 %v9591_v4, %v7995_v10  ;;  %v8002_v17 = vmax.f32 %v2702_v15, 0.0 }
 0x52f   : > { %v9847_v18 = vadd.f32 %v9846_v6, %v7996_v13  ;;  %v9083_v19 = vadd.f32 %v9082_v7, %v8001_v14 }
 0x530   : > { %v9338_v20 = vadd.f32 %v9337_v8, %v8002_v17  ;;  %v13124_v8 = vld [vmem:[%s13583_s29 + $0x280] sm:$0xff] }
 0x533   : > { %v3351_v21 = vpop.f32.mrf.mxu2 }
 0x534   : > { %v8003_v23 = vmax.f32 %v3351_v21, 0.0  ;;  %v4000_v24 = vpop.f32.mrf.mxu3  ;;  %v2056_v25 = vpop.f32.mrf.mxu0 }
 0x535   : > { %v8004_v26 = vmax.f32 %v4000_v24, 0.0  ;;  %v8009_v27 = vmax.f32 %v2056_v25, 0.0  ;;  %v2705_v28 = vpop.f32.mrf.mxu1 }
 0x536   : > { %v9593_v29 = vadd.f32 %v9592_v16, %v8003_v23  ;;  %v8010_v30 = vmax.f32 %v2705_v28, 0.0 }
 0x537   : > { %v9848_v31 = vadd.f32 %v9847_v18, %v8004_v26  ;;  %v9084_v32 = vadd.f32 %v9083_v19, %v8009_v27  ;;  %12094 = vmatmul.msk.bf16.gmra.mxu0 %vm1312_vm0, %v13122_v22  ;;  %12222 = vmatmul.msk.bf16.gmra.mxu1 %vm1312_vm0, %v13122_v22 }
 0x538   : > { %v9339_v33 = vadd.f32 %v9338_v20, %v8010_v30  ;;  %12350 = vmatmul.msk.bf16.gmra.mxu2 %vm1312_vm0, %v13122_v22 }
 0x539   : > { %12478 = vmatmul.msk.bf16.gmra.mxu3 %vm1312_vm0, %v13122_v22 }
 0x53b   : > { %v3354_v34 = vpop.f32.mrf.mxu2 }
 0x53c   : > { %v8011_v35 = vmax.f32 %v3354_v34, 0.0  ;;  %v4003_v36 = vpop.f32.mrf.mxu3  ;;  %v2058_v37 = vpop.f32.mrf.mxu0 }
 0x53d   : > { %v8012_v38 = vmax.f32 %v4003_v36, 0.0  ;;  %v8017_v39 = vmax.f32 %v2058_v37, 0.0  ;;  %v2707_v40 = vpop.f32.mrf.mxu1 }
 0x53e   : > { %v9594_v41 = vadd.f32 %v9593_v29, %v8011_v35  ;;  %v8018_v42 = vmax.f32 %v2707_v40, 0.0 }
 0x53f   : > { %v9849_v43 = vadd.f32 %v9848_v31, %v8012_v38  ;;  %v9085_v44 = vadd.f32 %v9084_v32, %v8017_v39 }
 0x540   : > { %v9340_v45 = vadd.f32 %v9339_v33, %v8018_v42  ;;  %v13125_v33 = vld [vmem:[%s13583_s29 + $0x288] sm:$0xff] }
 0x543   : > { %v3356_v46 = vpop.f32.mrf.mxu2 }
 0x544   : > { %v8019_v48 = vmax.f32 %v3356_v46, 0.0  ;;  %v4005_v49 = vpop.f32.mrf.mxu3  ;;  %v2061_v50 = vpop.f32.mrf.mxu0 }
 0x545   : > { %v8020_v51 = vmax.f32 %v4005_v49, 0.0  ;;  %v8025_v52 = vmax.f32 %v2061_v50, 0.0  ;;  %v2710_v53 = vpop.f32.mrf.mxu1 }
 0x546   : > { %v9595_v54 = vadd.f32 %v9594_v41, %v8019_v48  ;;  %v8026_v55 = vmax.f32 %v2710_v53, 0.0 }
 0x547   : > { %v9850_v56 = vadd.f32 %v9849_v43, %v8020_v51  ;;  %v9086_v57 = vadd.f32 %v9085_v44, %v8025_v52  ;;  %12095 = vmatmul.msk.bf16.gmra.mxu0 %vm1312_vm0, %v13123_v47  ;;  %12223 = vmatmul.msk.bf16.gmra.mxu1 %vm1312_vm0, %v13123_v47 }
 0x548   : > { %v9341_v58 = vadd.f32 %v9340_v45, %v8026_v55  ;;  %12351 = vmatmul.msk.bf16.gmra.mxu2 %vm1312_vm0, %v13123_v47 }
 0x549   : > { %12479 = vmatmul.msk.bf16.gmra.mxu3 %vm1312_vm0, %v13123_v47 }
 0x54b   : > { %v3359_v59 = vpop.f32.mrf.mxu2 }
 0x54c   : > { %v8027_v60 = vmax.f32 %v3359_v59, 0.0  ;;  %v4008_v61 = vpop.f32.mrf.mxu3  ;;  %v2063_v62 = vpop.f32.mrf.mxu0 }
 0x54d   : > { %v8028_v63 = vmax.f32 %v4008_v61, 0.0  ;;  %v8033_v0 = vmax.f32 %v2063_v62, 0.0  ;;  %v2712_v1 = vpop.f32.mrf.mxu1 }
 0x54e   : > { %v9596_v2 = vadd.f32 %v9595_v54, %v8027_v60  ;;  %v8034_v3 = vmax.f32 %v2712_v1, 0.0 }
 0x54f   : > { %v9851_v4 = vadd.f32 %v9850_v56, %v8028_v63  ;;  %v9087_v5 = vadd.f32 %v9086_v57, %v8033_v0 }
 0x550   : > { %v9342_v6 = vadd.f32 %v9341_v58, %v8034_v3  ;;  %v13126_v58 = vld [vmem:[%s13583_s29 + $0x290] sm:$0xff] }
 0x553   : > { %v3361_v7 = vpop.f32.mrf.mxu2 }
 0x554   : > { %v8035_v9 = vmax.f32 %v3361_v7, 0.0  ;;  %v4010_v10 = vpop.f32.mrf.mxu3  ;;  %v2066_v11 = vpop.f32.mrf.mxu0 }
 0x555   : > { %v8036_v12 = vmax.f32 %v4010_v10, 0.0  ;;  %v8041_v13 = vmax.f32 %v2066_v11, 0.0  ;;  %v2715_v14 = vpop.f32.mrf.mxu1 }
 0x556   : > { %v9597_v15 = vadd.f32 %v9596_v2, %v8035_v9  ;;  %v8042_v16 = vmax.f32 %v2715_v14, 0.0 }
 0x557   : > { %v9852_v17 = vadd.f32 %v9851_v4, %v8036_v12  ;;  %v9088_v18 = vadd.f32 %v9087_v5, %v8041_v13  ;;  %12096 = vmatmul.msk.bf16.gmra.mxu0 %vm1312_vm0, %v13124_v8  ;;  %12224 = vmatmul.msk.bf16.gmra.mxu1 %vm1312_vm0, %v13124_v8 }
 0x558   : > { %v9343_v19 = vadd.f32 %v9342_v6, %v8042_v16  ;;  %12352 = vmatmul.msk.bf16.gmra.mxu2 %vm1312_vm0, %v13124_v8 }
 0x559   : > { %12480 = vmatmul.msk.bf16.gmra.mxu3 %vm1312_vm0, %v13124_v8 }
 0x55b   : > { %v3364_v20 = vpop.f32.mrf.mxu2 }
 0x55c   : > { %v8043_v21 = vmax.f32 %v3364_v20, 0.0  ;;  %v4013_v22 = vpop.f32.mrf.mxu3  ;;  %v2068_v23 = vpop.f32.mrf.mxu0 }
 0x55d   : > { %v8044_v24 = vmax.f32 %v4013_v22, 0.0  ;;  %v8049_v25 = vmax.f32 %v2068_v23, 0.0  ;;  %v2717_v26 = vpop.f32.mrf.mxu1 }
 0x55e   : > { %v9598_v27 = vadd.f32 %v9597_v15, %v8043_v21  ;;  %v8050_v28 = vmax.f32 %v2717_v26, 0.0 }
 0x55f   : > { %v9853_v29 = vadd.f32 %v9852_v17, %v8044_v24  ;;  %v9089_v30 = vadd.f32 %v9088_v18, %v8049_v25 }
 0x560   : > { %v9344_v31 = vadd.f32 %v9343_v19, %v8050_v28  ;;  %v13127_v19 = vld [vmem:[%s13583_s29 + $0x298] sm:$0xff] }
 0x563   : > { %v3366_v32 = vpop.f32.mrf.mxu2 }
 0x564   : > { %v8051_v34 = vmax.f32 %v3366_v32, 0.0  ;;  %v4015_v35 = vpop.f32.mrf.mxu3  ;;  %v2071_v36 = vpop.f32.mrf.mxu0 }
 0x565   : > { %v8052_v37 = vmax.f32 %v4015_v35, 0.0  ;;  %v8057_v38 = vmax.f32 %v2071_v36, 0.0  ;;  %v2720_v39 = vpop.f32.mrf.mxu1 }
 0x566   : > { %v9599_v40 = vadd.f32 %v9598_v27, %v8051_v34  ;;  %v8058_v41 = vmax.f32 %v2720_v39, 0.0 }
 0x567   : > { %v9854_v42 = vadd.f32 %v9853_v29, %v8052_v37  ;;  %v9090_v43 = vadd.f32 %v9089_v30, %v8057_v38  ;;  %12097 = vmatmul.msk.bf16.gmra.mxu0 %vm1312_vm0, %v13125_v33  ;;  %12225 = vmatmul.msk.bf16.gmra.mxu1 %vm1312_vm0, %v13125_v33 }
 0x568   : > { %v9345_v44 = vadd.f32 %v9344_v31, %v8058_v41  ;;  %12353 = vmatmul.msk.bf16.gmra.mxu2 %vm1312_vm0, %v13125_v33 }
 0x569   : > { %12481 = vmatmul.msk.bf16.gmra.mxu3 %vm1312_vm0, %v13125_v33 }
 0x56b   : > { %v3369_v45 = vpop.f32.mrf.mxu2 }
 0x56c   : > { %v8059_v46 = vmax.f32 %v3369_v45, 0.0  ;;  %v4018_v47 = vpop.f32.mrf.mxu3  ;;  %v2073_v48 = vpop.f32.mrf.mxu0 }
 0x56d   : > { %v8060_v49 = vmax.f32 %v4018_v47, 0.0  ;;  %v8065_v50 = vmax.f32 %v2073_v48, 0.0  ;;  %v2722_v51 = vpop.f32.mrf.mxu1 }
 0x56e   : > { %v9600_v52 = vadd.f32 %v9599_v40, %v8059_v46  ;;  %v8066_v53 = vmax.f32 %v2722_v51, 0.0 }
 0x56f   : > { %v9855_v54 = vadd.f32 %v9854_v42, %v8060_v49  ;;  %v9091_v55 = vadd.f32 %v9090_v43, %v8065_v50 }
 0x570   : > { %v9346_v56 = vadd.f32 %v9345_v44, %v8066_v53  ;;  %v13128_v44 = vld [vmem:[%s13583_s29 + $0x2a0] sm:$0xff] }
 0x573   : > { %v3371_v57 = vpop.f32.mrf.mxu2 }
 0x574   : > { %v8067_v59 = vmax.f32 %v3371_v57, 0.0  ;;  %v4020_v60 = vpop.f32.mrf.mxu3  ;;  %v2076_v61 = vpop.f32.mrf.mxu0 }
 0x575   : > { %v8068_v62 = vmax.f32 %v4020_v60, 0.0  ;;  %v8073_v63 = vmax.f32 %v2076_v61, 0.0  ;;  %v2725_v0 = vpop.f32.mrf.mxu1 }
 0x576   : > { %v9601_v1 = vadd.f32 %v9600_v52, %v8067_v59  ;;  %v8074_v2 = vmax.f32 %v2725_v0, 0.0 }
 0x577   : > { %v9856_v3 = vadd.f32 %v9855_v54, %v8068_v62  ;;  %v9092_v4 = vadd.f32 %v9091_v55, %v8073_v63  ;;  %12098 = vmatmul.msk.bf16.gmra.mxu0 %vm1312_vm0, %v13126_v58  ;;  %12226 = vmatmul.msk.bf16.gmra.mxu1 %vm1312_vm0, %v13126_v58 }
 0x578   : > { %v9347_v5 = vadd.f32 %v9346_v56, %v8074_v2  ;;  %12354 = vmatmul.msk.bf16.gmra.mxu2 %vm1312_vm0, %v13126_v58 }
 0x579   : > { %12482 = vmatmul.msk.bf16.gmra.mxu3 %vm1312_vm0, %v13126_v58 }
 0x57b   : > { %v3374_v6 = vpop.f32.mrf.mxu2 }
 0x57c   : > { %v8075_v7 = vmax.f32 %v3374_v6, 0.0  ;;  %v4023_v8 = vpop.f32.mrf.mxu3  ;;  %v2078_v9 = vpop.f32.mrf.mxu0 }
 0x57d   : > { %v8076_v10 = vmax.f32 %v4023_v8, 0.0  ;;  %v8081_v11 = vmax.f32 %v2078_v9, 0.0  ;;  %v2727_v12 = vpop.f32.mrf.mxu1 }
 0x57e   : > { %v9602_v13 = vadd.f32 %v9601_v1, %v8075_v7  ;;  %v8082_v14 = vmax.f32 %v2727_v12, 0.0 }
 0x57f   : > { %v9857_v15 = vadd.f32 %v9856_v3, %v8076_v10  ;;  %v9093_v16 = vadd.f32 %v9092_v4, %v8081_v11 }
 0x580   : > { %v9348_v17 = vadd.f32 %v9347_v5, %v8082_v14  ;;  %v13129_v5 = vld [vmem:[%s13583_s29 + $0x2a8] sm:$0xff] }
 0x583   : > { %v3376_v18 = vpop.f32.mrf.mxu2 }
 0x584   : > { %v8083_v20 = vmax.f32 %v3376_v18, 0.0  ;;  %v4025_v21 = vpop.f32.mrf.mxu3  ;;  %v2081_v22 = vpop.f32.mrf.mxu0 }
 0x585   : > { %v8084_v23 = vmax.f32 %v4025_v21, 0.0  ;;  %v8089_v24 = vmax.f32 %v2081_v22, 0.0  ;;  %v2730_v25 = vpop.f32.mrf.mxu1 }
 0x586   : > { %v9603_v26 = vadd.f32 %v9602_v13, %v8083_v20  ;;  %v8090_v27 = vmax.f32 %v2730_v25, 0.0 }
 0x587   : > { %v9858_v28 = vadd.f32 %v9857_v15, %v8084_v23  ;;  %v9094_v29 = vadd.f32 %v9093_v16, %v8089_v24  ;;  %12099 = vmatmul.msk.bf16.gmra.mxu0 %vm1312_vm0, %v13127_v19  ;;  %12227 = vmatmul.msk.bf16.gmra.mxu1 %vm1312_vm0, %v13127_v19 }
 0x588   : > { %v9349_v30 = vadd.f32 %v9348_v17, %v8090_v27  ;;  %12355 = vmatmul.msk.bf16.gmra.mxu2 %vm1312_vm0, %v13127_v19 }
 0x589   : > { %12483 = vmatmul.msk.bf16.gmra.mxu3 %vm1312_vm0, %v13127_v19 }
 0x58b   : > { %v3379_v31 = vpop.f32.mrf.mxu2 }
 0x58c   : > { %v8091_v32 = vmax.f32 %v3379_v31, 0.0  ;;  %v4028_v33 = vpop.f32.mrf.mxu3  ;;  %v2083_v34 = vpop.f32.mrf.mxu0 }
 0x58d   : > { %v8092_v35 = vmax.f32 %v4028_v33, 0.0  ;;  %v8097_v36 = vmax.f32 %v2083_v34, 0.0  ;;  %v2732_v37 = vpop.f32.mrf.mxu1 }
 0x58e   : > { %v9604_v38 = vadd.f32 %v9603_v26, %v8091_v32  ;;  %v8098_v39 = vmax.f32 %v2732_v37, 0.0 }
 0x58f   : > { %v9859_v40 = vadd.f32 %v9858_v28, %v8092_v35  ;;  %v9095_v41 = vadd.f32 %v9094_v29, %v8097_v36 }
 0x590   : > { %v9350_v42 = vadd.f32 %v9349_v30, %v8098_v39  ;;  %v13130_v30 = vld [vmem:[%s13583_s29 + $0x2b0] sm:$0xff] }
 0x593   : > { %v3381_v43 = vpop.f32.mrf.mxu2 }
 0x594   : > { %v8099_v45 = vmax.f32 %v3381_v43, 0.0  ;;  %v4030_v46 = vpop.f32.mrf.mxu3  ;;  %v2086_v47 = vpop.f32.mrf.mxu0 }
 0x595   : > { %v8100_v48 = vmax.f32 %v4030_v46, 0.0  ;;  %v8105_v49 = vmax.f32 %v2086_v47, 0.0  ;;  %v2735_v50 = vpop.f32.mrf.mxu1 }
 0x596   : > { %v9605_v51 = vadd.f32 %v9604_v38, %v8099_v45  ;;  %v8106_v52 = vmax.f32 %v2735_v50, 0.0 }
 0x597   : > { %v9860_v53 = vadd.f32 %v9859_v40, %v8100_v48  ;;  %v9096_v54 = vadd.f32 %v9095_v41, %v8105_v49  ;;  %12100 = vmatmul.msk.bf16.gmra.mxu0 %vm1312_vm0, %v13128_v44  ;;  %12228 = vmatmul.msk.bf16.gmra.mxu1 %vm1312_vm0, %v13128_v44 }
 0x598   : > { %v9351_v55 = vadd.f32 %v9350_v42, %v8106_v52  ;;  %12356 = vmatmul.msk.bf16.gmra.mxu2 %vm1312_vm0, %v13128_v44 }
 0x599   : > { %12484 = vmatmul.msk.bf16.gmra.mxu3 %vm1312_vm0, %v13128_v44 }
 0x59b   : > { %v3384_v56 = vpop.f32.mrf.mxu2 }
 0x59c   : > { %v8107_v57 = vmax.f32 %v3384_v56, 0.0  ;;  %v4033_v58 = vpop.f32.mrf.mxu3  ;;  %v2088_v59 = vpop.f32.mrf.mxu0 }
 0x59d   : > { %v8108_v60 = vmax.f32 %v4033_v58, 0.0  ;;  %v8113_v61 = vmax.f32 %v2088_v59, 0.0  ;;  %v2737_v62 = vpop.f32.mrf.mxu1 }
 0x59e   : > { %v9606_v63 = vadd.f32 %v9605_v51, %v8107_v57  ;;  %v8114_v0 = vmax.f32 %v2737_v62, 0.0 }
 0x59f   : > { %v9861_v1 = vadd.f32 %v9860_v53, %v8108_v60  ;;  %v9097_v2 = vadd.f32 %v9096_v54, %v8113_v61 }
 0x5a0   : > { %v9352_v3 = vadd.f32 %v9351_v55, %v8114_v0  ;;  %v13131_v55 = vld [vmem:[%s13583_s29 + $0x2b8] sm:$0xff] }
 0x5a3   : > { %v3386_v4 = vpop.f32.mrf.mxu2 }
 0x5a4   : > { %v8115_v6 = vmax.f32 %v3386_v4, 0.0  ;;  %v4035_v7 = vpop.f32.mrf.mxu3  ;;  %v2091_v8 = vpop.f32.mrf.mxu0 }
 0x5a5   : > { %v8116_v9 = vmax.f32 %v4035_v7, 0.0  ;;  %v8121_v10 = vmax.f32 %v2091_v8, 0.0  ;;  %v2740_v11 = vpop.f32.mrf.mxu1 }
 0x5a6   : > { %v9607_v12 = vadd.f32 %v9606_v63, %v8115_v6  ;;  %v8122_v13 = vmax.f32 %v2740_v11, 0.0 }
 0x5a7   : > { %v9862_v14 = vadd.f32 %v9861_v1, %v8116_v9  ;;  %v9098_v15 = vadd.f32 %v9097_v2, %v8121_v10  ;;  %12101 = vmatmul.msk.bf16.gmra.mxu0 %vm1312_vm0, %v13129_v5  ;;  %12229 = vmatmul.msk.bf16.gmra.mxu1 %vm1312_vm0, %v13129_v5 }
 0x5a8   : > { %v9353_v16 = vadd.f32 %v9352_v3, %v8122_v13  ;;  %12357 = vmatmul.msk.bf16.gmra.mxu2 %vm1312_vm0, %v13129_v5 }
 0x5a9   : > { %12485 = vmatmul.msk.bf16.gmra.mxu3 %vm1312_vm0, %v13129_v5 }
 0x5ab   : > { %v3389_v17 = vpop.f32.mrf.mxu2 }
 0x5ac   : > { %v8123_v18 = vmax.f32 %v3389_v17, 0.0  ;;  %v4038_v19 = vpop.f32.mrf.mxu3  ;;  %v2093_v20 = vpop.f32.mrf.mxu0 }
 0x5ad   : > { %v8124_v21 = vmax.f32 %v4038_v19, 0.0  ;;  %v8129_v22 = vmax.f32 %v2093_v20, 0.0  ;;  %v2742_v23 = vpop.f32.mrf.mxu1 }
 0x5ae   : > { %v9608_v24 = vadd.f32 %v9607_v12, %v8123_v18  ;;  %v8130_v25 = vmax.f32 %v2742_v23, 0.0 }
 0x5af   : > { %v9863_v26 = vadd.f32 %v9862_v14, %v8124_v21  ;;  %v9099_v27 = vadd.f32 %v9098_v15, %v8129_v22 }
 0x5b0   : > { %v9354_v28 = vadd.f32 %v9353_v16, %v8130_v25  ;;  %v13132_v16 = vld [vmem:[%s13583_s29 + $0x2c0] sm:$0xff] }
 0x5b3   : > { %v3391_v29 = vpop.f32.mrf.mxu2 }
 0x5b4   : > { %v8131_v31 = vmax.f32 %v3391_v29, 0.0  ;;  %v4040_v32 = vpop.f32.mrf.mxu3  ;;  %v2096_v33 = vpop.f32.mrf.mxu0 }
 0x5b5   : > { %v8132_v34 = vmax.f32 %v4040_v32, 0.0  ;;  %v8137_v35 = vmax.f32 %v2096_v33, 0.0  ;;  %v2745_v36 = vpop.f32.mrf.mxu1 }
 0x5b6   : > { %v9609_v37 = vadd.f32 %v9608_v24, %v8131_v31  ;;  %v8138_v38 = vmax.f32 %v2745_v36, 0.0 }
 0x5b7   : > { %v9864_v39 = vadd.f32 %v9863_v26, %v8132_v34  ;;  %v9100_v40 = vadd.f32 %v9099_v27, %v8137_v35  ;;  %12102 = vmatmul.msk.bf16.gmra.mxu0 %vm1312_vm0, %v13130_v30  ;;  %12230 = vmatmul.msk.bf16.gmra.mxu1 %vm1312_vm0, %v13130_v30 }
 0x5b8   : > { %v9355_v41 = vadd.f32 %v9354_v28, %v8138_v38  ;;  %12358 = vmatmul.msk.bf16.gmra.mxu2 %vm1312_vm0, %v13130_v30 }
 0x5b9   : > { %12486 = vmatmul.msk.bf16.gmra.mxu3 %vm1312_vm0, %v13130_v30 }
 0x5bb   : > { %v3394_v42 = vpop.f32.mrf.mxu2 }
 0x5bc   : > { %v8139_v43 = vmax.f32 %v3394_v42, 0.0  ;;  %v4043_v44 = vpop.f32.mrf.mxu3  ;;  %v2098_v45 = vpop.f32.mrf.mxu0 }
 0x5bd   : > { %v8140_v46 = vmax.f32 %v4043_v44, 0.0  ;;  %v8145_v47 = vmax.f32 %v2098_v45, 0.0  ;;  %v2747_v48 = vpop.f32.mrf.mxu1 }
 0x5be   : > { %v9610_v49 = vadd.f32 %v9609_v37, %v8139_v43  ;;  %v8146_v50 = vmax.f32 %v2747_v48, 0.0 }
 0x5bf   : > { %v9865_v51 = vadd.f32 %v9864_v39, %v8140_v46  ;;  %v9101_v52 = vadd.f32 %v9100_v40, %v8145_v47 }
 0x5c0   : > { %v9356_v53 = vadd.f32 %v9355_v41, %v8146_v50  ;;  %v13133_v41 = vld [vmem:[%s13583_s29 + $0x2c8] sm:$0xff] }
 0x5c3   : > { %v3396_v54 = vpop.f32.mrf.mxu2 }
 0x5c4   : > { %v8147_v56 = vmax.f32 %v3396_v54, 0.0  ;;  %v4045_v57 = vpop.f32.mrf.mxu3  ;;  %v2101_v58 = vpop.f32.mrf.mxu0 }
 0x5c5   : > { %v8148_v59 = vmax.f32 %v4045_v57, 0.0  ;;  %v8153_v60 = vmax.f32 %v2101_v58, 0.0  ;;  %v2750_v61 = vpop.f32.mrf.mxu1 }
 0x5c6   : > { %v9611_v62 = vadd.f32 %v9610_v49, %v8147_v56  ;;  %v8154_v63 = vmax.f32 %v2750_v61, 0.0 }
 0x5c7   : > { %v9866_v0 = vadd.f32 %v9865_v51, %v8148_v59  ;;  %v9102_v1 = vadd.f32 %v9101_v52, %v8153_v60  ;;  %12103 = vmatmul.msk.bf16.gmra.mxu0 %vm1312_vm0, %v13131_v55  ;;  %12231 = vmatmul.msk.bf16.gmra.mxu1 %vm1312_vm0, %v13131_v55 }
 0x5c8   : > { %v9357_v2 = vadd.f32 %v9356_v53, %v8154_v63  ;;  %12359 = vmatmul.msk.bf16.gmra.mxu2 %vm1312_vm0, %v13131_v55 }
 0x5c9   : > { %12487 = vmatmul.msk.bf16.gmra.mxu3 %vm1312_vm0, %v13131_v55 }
 0x5cb   : > { %v3399_v3 = vpop.f32.mrf.mxu2 }
 0x5cc   : > { %v8155_v4 = vmax.f32 %v3399_v3, 0.0  ;;  %v4048_v5 = vpop.f32.mrf.mxu3  ;;  %v2103_v6 = vpop.f32.mrf.mxu0 }
 0x5cd   : > { %v8156_v7 = vmax.f32 %v4048_v5, 0.0  ;;  %v8161_v8 = vmax.f32 %v2103_v6, 0.0  ;;  %v2752_v9 = vpop.f32.mrf.mxu1 }
 0x5ce   : > { %v9612_v10 = vadd.f32 %v9611_v62, %v8155_v4  ;;  %v8162_v11 = vmax.f32 %v2752_v9, 0.0 }
 0x5cf   : > { %v9867_v12 = vadd.f32 %v9866_v0, %v8156_v7  ;;  %v9103_v13 = vadd.f32 %v9102_v1, %v8161_v8 }
 0x5d0   : > { %v9358_v14 = vadd.f32 %v9357_v2, %v8162_v11  ;;  %v13134_v2 = vld [vmem:[%s13583_s29 + $0x2d0] sm:$0xff] }
 0x5d3   : > { %v3401_v15 = vpop.f32.mrf.mxu2 }
 0x5d4   : > { %v8163_v17 = vmax.f32 %v3401_v15, 0.0  ;;  %v4050_v18 = vpop.f32.mrf.mxu3  ;;  %v2106_v19 = vpop.f32.mrf.mxu0 }
 0x5d5   : > { %v8164_v20 = vmax.f32 %v4050_v18, 0.0  ;;  %v8169_v21 = vmax.f32 %v2106_v19, 0.0  ;;  %v2755_v22 = vpop.f32.mrf.mxu1 }
 0x5d6   : > { %v9613_v23 = vadd.f32 %v9612_v10, %v8163_v17  ;;  %v8170_v24 = vmax.f32 %v2755_v22, 0.0 }
 0x5d7   : > { %v9868_v25 = vadd.f32 %v9867_v12, %v8164_v20  ;;  %v9104_v26 = vadd.f32 %v9103_v13, %v8169_v21  ;;  %12104 = vmatmul.msk.bf16.gmra.mxu0 %vm1312_vm0, %v13132_v16  ;;  %12232 = vmatmul.msk.bf16.gmra.mxu1 %vm1312_vm0, %v13132_v16 }
 0x5d8   : > { %v9359_v27 = vadd.f32 %v9358_v14, %v8170_v24  ;;  %12360 = vmatmul.msk.bf16.gmra.mxu2 %vm1312_vm0, %v13132_v16 }
 0x5d9   : > { %12488 = vmatmul.msk.bf16.gmra.mxu3 %vm1312_vm0, %v13132_v16 }
 0x5db   : > { %v3404_v28 = vpop.f32.mrf.mxu2 }
 0x5dc   : > { %v8171_v29 = vmax.f32 %v3404_v28, 0.0  ;;  %v4053_v30 = vpop.f32.mrf.mxu3  ;;  %v2108_v31 = vpop.f32.mrf.mxu0 }
 0x5dd   : > { %v8172_v32 = vmax.f32 %v4053_v30, 0.0  ;;  %v8177_v33 = vmax.f32 %v2108_v31, 0.0  ;;  %v2757_v34 = vpop.f32.mrf.mxu1 }
 0x5de   : > { %v9614_v35 = vadd.f32 %v9613_v23, %v8171_v29  ;;  %v8178_v36 = vmax.f32 %v2757_v34, 0.0 }
 0x5df   : > { %v9869_v37 = vadd.f32 %v9868_v25, %v8172_v32  ;;  %v9105_v38 = vadd.f32 %v9104_v26, %v8177_v33 }
 0x5e0   : > { %v9360_v39 = vadd.f32 %v9359_v27, %v8178_v36  ;;  %v13135_v27 = vld [vmem:[%s13583_s29 + $0x2d8] sm:$0xff] }
 0x5e3   : > { %v3406_v40 = vpop.f32.mrf.mxu2 }
 0x5e4   : > { %v8179_v42 = vmax.f32 %v3406_v40, 0.0  ;;  %v4055_v43 = vpop.f32.mrf.mxu3  ;;  %v2111_v44 = vpop.f32.mrf.mxu0 }
 0x5e5   : > { %v8180_v45 = vmax.f32 %v4055_v43, 0.0  ;;  %v8185_v46 = vmax.f32 %v2111_v44, 0.0  ;;  %v2760_v47 = vpop.f32.mrf.mxu1 }
 0x5e6   : > { %v9615_v48 = vadd.f32 %v9614_v35, %v8179_v42  ;;  %v8186_v49 = vmax.f32 %v2760_v47, 0.0 }
 0x5e7   : > { %v9870_v50 = vadd.f32 %v9869_v37, %v8180_v45  ;;  %v9106_v51 = vadd.f32 %v9105_v38, %v8185_v46  ;;  %12105 = vmatmul.msk.bf16.gmra.mxu0 %vm1312_vm0, %v13133_v41  ;;  %12233 = vmatmul.msk.bf16.gmra.mxu1 %vm1312_vm0, %v13133_v41 }
 0x5e8   : > { %v9361_v52 = vadd.f32 %v9360_v39, %v8186_v49  ;;  %12361 = vmatmul.msk.bf16.gmra.mxu2 %vm1312_vm0, %v13133_v41 }
 0x5e9   : > { %12489 = vmatmul.msk.bf16.gmra.mxu3 %vm1312_vm0, %v13133_v41 }
 0x5eb   : > { %v3409_v53 = vpop.f32.mrf.mxu2 }
 0x5ec   : > { %v8187_v54 = vmax.f32 %v3409_v53, 0.0  ;;  %v4058_v55 = vpop.f32.mrf.mxu3  ;;  %v2113_v56 = vpop.f32.mrf.mxu0 }
 0x5ed   : > { %v8188_v57 = vmax.f32 %v4058_v55, 0.0  ;;  %v8193_v58 = vmax.f32 %v2113_v56, 0.0  ;;  %v2762_v59 = vpop.f32.mrf.mxu1 }
 0x5ee   : > { %v9616_v60 = vadd.f32 %v9615_v48, %v8187_v54  ;;  %v8194_v61 = vmax.f32 %v2762_v59, 0.0 }
 0x5ef   : > { %v9871_v62 = vadd.f32 %v9870_v50, %v8188_v57  ;;  %v9107_v63 = vadd.f32 %v9106_v51, %v8193_v58 }
 0x5f0   : > { %v9362_v0 = vadd.f32 %v9361_v52, %v8194_v61  ;;  %v13136_v52 = vld [vmem:[%s13583_s29 + $0x2e0] sm:$0xff] }
 0x5f3   : > { %v3411_v1 = vpop.f32.mrf.mxu2 }
 0x5f4   : > { %v8195_v3 = vmax.f32 %v3411_v1, 0.0  ;;  %v4060_v4 = vpop.f32.mrf.mxu3  ;;  %v2116_v5 = vpop.f32.mrf.mxu0 }
 0x5f5   : > { %v8196_v6 = vmax.f32 %v4060_v4, 0.0  ;;  %v8201_v7 = vmax.f32 %v2116_v5, 0.0  ;;  %v2765_v8 = vpop.f32.mrf.mxu1 }
 0x5f6   : > { %v9617_v9 = vadd.f32 %v9616_v60, %v8195_v3  ;;  %v8202_v10 = vmax.f32 %v2765_v8, 0.0 }
 0x5f7   : > { %v9872_v11 = vadd.f32 %v9871_v62, %v8196_v6  ;;  %v9108_v12 = vadd.f32 %v9107_v63, %v8201_v7  ;;  %12106 = vmatmul.msk.bf16.gmra.mxu0 %vm1312_vm0, %v13134_v2  ;;  %12234 = vmatmul.msk.bf16.gmra.mxu1 %vm1312_vm0, %v13134_v2 }
 0x5f8   : > { %v9363_v13 = vadd.f32 %v9362_v0, %v8202_v10  ;;  %12362 = vmatmul.msk.bf16.gmra.mxu2 %vm1312_vm0, %v13134_v2 }
 0x5f9   : > { %12490 = vmatmul.msk.bf16.gmra.mxu3 %vm1312_vm0, %v13134_v2 }
 0x5fb   : > { %v3414_v14 = vpop.f32.mrf.mxu2 }
 0x5fc   : > { %v8203_v15 = vmax.f32 %v3414_v14, 0.0  ;;  %v4063_v16 = vpop.f32.mrf.mxu3  ;;  %v2118_v17 = vpop.f32.mrf.mxu0 }
 0x5fd   : > { %v8204_v18 = vmax.f32 %v4063_v16, 0.0  ;;  %v8209_v19 = vmax.f32 %v2118_v17, 0.0  ;;  %v2767_v20 = vpop.f32.mrf.mxu1 }
 0x5fe   : > { %v9618_v21 = vadd.f32 %v9617_v9, %v8203_v15  ;;  %v8210_v22 = vmax.f32 %v2767_v20, 0.0 }
 0x5ff   : > { %v9873_v23 = vadd.f32 %v9872_v11, %v8204_v18  ;;  %v9109_v24 = vadd.f32 %v9108_v12, %v8209_v19 }
 0x600   : > { %v9364_v25 = vadd.f32 %v9363_v13, %v8210_v22  ;;  %v13137_v13 = vld [vmem:[%s13583_s29 + $0x2e8] sm:$0xff] }
 0x603   : > { %v3416_v26 = vpop.f32.mrf.mxu2 }
 0x604   : > { %v8211_v28 = vmax.f32 %v3416_v26, 0.0  ;;  %v4065_v29 = vpop.f32.mrf.mxu3  ;;  %v2121_v30 = vpop.f32.mrf.mxu0 }
 0x605   : > { %v8212_v31 = vmax.f32 %v4065_v29, 0.0  ;;  %v8217_v32 = vmax.f32 %v2121_v30, 0.0  ;;  %v2770_v33 = vpop.f32.mrf.mxu1 }
 0x606   : > { %v9619_v34 = vadd.f32 %v9618_v21, %v8211_v28  ;;  %v8218_v35 = vmax.f32 %v2770_v33, 0.0 }
 0x607   : > { %v9874_v36 = vadd.f32 %v9873_v23, %v8212_v31  ;;  %v9110_v37 = vadd.f32 %v9109_v24, %v8217_v32  ;;  %12107 = vmatmul.msk.bf16.gmra.mxu0 %vm1312_vm0, %v13135_v27  ;;  %12235 = vmatmul.msk.bf16.gmra.mxu1 %vm1312_vm0, %v13135_v27 }
 0x608   : > { %v9365_v38 = vadd.f32 %v9364_v25, %v8218_v35  ;;  %12363 = vmatmul.msk.bf16.gmra.mxu2 %vm1312_vm0, %v13135_v27 }
 0x609   : > { %12491 = vmatmul.msk.bf16.gmra.mxu3 %vm1312_vm0, %v13135_v27 }
 0x60b   : > { %v3419_v39 = vpop.f32.mrf.mxu2 }
 0x60c   : > { %v8219_v40 = vmax.f32 %v3419_v39, 0.0  ;;  %v4068_v41 = vpop.f32.mrf.mxu3  ;;  %v2123_v42 = vpop.f32.mrf.mxu0 }
 0x60d   : > { %v8220_v43 = vmax.f32 %v4068_v41, 0.0  ;;  %v8225_v44 = vmax.f32 %v2123_v42, 0.0  ;;  %v2772_v45 = vpop.f32.mrf.mxu1 }
 0x60e   : > { %v9620_v46 = vadd.f32 %v9619_v34, %v8219_v40  ;;  %v8226_v47 = vmax.f32 %v2772_v45, 0.0 }
 0x60f   : > { %v9875_v48 = vadd.f32 %v9874_v36, %v8220_v43  ;;  %v9111_v49 = vadd.f32 %v9110_v37, %v8225_v44 }
 0x610   : > { %v9366_v50 = vadd.f32 %v9365_v38, %v8226_v47  ;;  %v13138_v38 = vld [vmem:[%s13583_s29 + $0x2f0] sm:$0xff] }
 0x613   : > { %v3421_v51 = vpop.f32.mrf.mxu2 }
 0x614   : > { %v8227_v53 = vmax.f32 %v3421_v51, 0.0  ;;  %v4070_v54 = vpop.f32.mrf.mxu3  ;;  %v2126_v55 = vpop.f32.mrf.mxu0 }
 0x615   : > { %v8228_v56 = vmax.f32 %v4070_v54, 0.0  ;;  %v8233_v57 = vmax.f32 %v2126_v55, 0.0  ;;  %v2775_v58 = vpop.f32.mrf.mxu1 }
 0x616   : > { %v9621_v59 = vadd.f32 %v9620_v46, %v8227_v53  ;;  %v8234_v60 = vmax.f32 %v2775_v58, 0.0 }
 0x617   : > { %v9876_v61 = vadd.f32 %v9875_v48, %v8228_v56  ;;  %v9112_v62 = vadd.f32 %v9111_v49, %v8233_v57  ;;  %12108 = vmatmul.msk.bf16.gmra.mxu0 %vm1312_vm0, %v13136_v52  ;;  %12236 = vmatmul.msk.bf16.gmra.mxu1 %vm1312_vm0, %v13136_v52 }
 0x618   : > { %v9367_v63 = vadd.f32 %v9366_v50, %v8234_v60  ;;  %12364 = vmatmul.msk.bf16.gmra.mxu2 %vm1312_vm0, %v13136_v52 }
 0x619   : > { %12492 = vmatmul.msk.bf16.gmra.mxu3 %vm1312_vm0, %v13136_v52 }
 0x61b   : > { %v3424_v0 = vpop.f32.mrf.mxu2 }
 0x61c   : > { %v8235_v1 = vmax.f32 %v3424_v0, 0.0  ;;  %v4073_v2 = vpop.f32.mrf.mxu3  ;;  %v2128_v3 = vpop.f32.mrf.mxu0 }
 0x61d   : > { %v8236_v4 = vmax.f32 %v4073_v2, 0.0  ;;  %v8241_v5 = vmax.f32 %v2128_v3, 0.0  ;;  %v2777_v6 = vpop.f32.mrf.mxu1 }
 0x61e   : > { %v9622_v7 = vadd.f32 %v9621_v59, %v8235_v1  ;;  %v8242_v8 = vmax.f32 %v2777_v6, 0.0 }
 0x61f   : > { %v9877_v9 = vadd.f32 %v9876_v61, %v8236_v4  ;;  %v9113_v10 = vadd.f32 %v9112_v62, %v8241_v5 }
 0x620   : > { %v9368_v11 = vadd.f32 %v9367_v63, %v8242_v8  ;;  %v13139_v63 = vld [vmem:[%s13583_s29 + $0x2f8] sm:$0xff] }
 0x623   : > { %v3426_v12 = vpop.f32.mrf.mxu2 }
 0x624   : > { %v8243_v14 = vmax.f32 %v3426_v12, 0.0  ;;  %v4075_v15 = vpop.f32.mrf.mxu3  ;;  %v2131_v16 = vpop.f32.mrf.mxu0 }
 0x625   : > { %v8244_v17 = vmax.f32 %v4075_v15, 0.0  ;;  %v8249_v18 = vmax.f32 %v2131_v16, 0.0  ;;  %v2780_v19 = vpop.f32.mrf.mxu1 }
 0x626   : > { %v9623_v20 = vadd.f32 %v9622_v7, %v8243_v14  ;;  %v8250_v21 = vmax.f32 %v2780_v19, 0.0 }
 0x627   : > { %v9878_v22 = vadd.f32 %v9877_v9, %v8244_v17  ;;  %v9114_v23 = vadd.f32 %v9113_v10, %v8249_v18  ;;  %12109 = vmatmul.msk.bf16.gmra.mxu0 %vm1312_vm0, %v13137_v13  ;;  %12237 = vmatmul.msk.bf16.gmra.mxu1 %vm1312_vm0, %v13137_v13 }
 0x628   : > { %v9369_v24 = vadd.f32 %v9368_v11, %v8250_v21  ;;  %12365 = vmatmul.msk.bf16.gmra.mxu2 %vm1312_vm0, %v13137_v13 }
 0x629   : > { %12493 = vmatmul.msk.bf16.gmra.mxu3 %vm1312_vm0, %v13137_v13 }
 0x62b   : > { %v3429_v25 = vpop.f32.mrf.mxu2 }
 0x62c   : > { %v8251_v26 = vmax.f32 %v3429_v25, 0.0  ;;  %v4078_v27 = vpop.f32.mrf.mxu3  ;;  %v2133_v28 = vpop.f32.mrf.mxu0 }
 0x62d   : > { %v8252_v29 = vmax.f32 %v4078_v27, 0.0  ;;  %v8257_v30 = vmax.f32 %v2133_v28, 0.0  ;;  %v2782_v31 = vpop.f32.mrf.mxu1 }
 0x62e   : > { %v9624_v32 = vadd.f32 %v9623_v20, %v8251_v26  ;;  %v8258_v33 = vmax.f32 %v2782_v31, 0.0 }
 0x62f   : > { %v9879_v34 = vadd.f32 %v9878_v22, %v8252_v29  ;;  %v9115_v35 = vadd.f32 %v9114_v23, %v8257_v30 }
 0x630   : > { %v9370_v36 = vadd.f32 %v9369_v24, %v8258_v33  ;;  %v13140_v24 = vld [vmem:[%s13583_s29 + $0x300] sm:$0xff] }
 0x633   : > { %v3431_v37 = vpop.f32.mrf.mxu2 }
 0x634   : > { %v8259_v39 = vmax.f32 %v3431_v37, 0.0  ;;  %v4080_v40 = vpop.f32.mrf.mxu3  ;;  %v2136_v41 = vpop.f32.mrf.mxu0 }
 0x635   : > { %v8260_v42 = vmax.f32 %v4080_v40, 0.0  ;;  %v8265_v43 = vmax.f32 %v2136_v41, 0.0  ;;  %v2785_v44 = vpop.f32.mrf.mxu1 }
 0x636   : > { %v9625_v45 = vadd.f32 %v9624_v32, %v8259_v39  ;;  %v8266_v46 = vmax.f32 %v2785_v44, 0.0 }
 0x637   : > { %v9880_v47 = vadd.f32 %v9879_v34, %v8260_v42  ;;  %v9116_v48 = vadd.f32 %v9115_v35, %v8265_v43  ;;  %12110 = vmatmul.msk.bf16.gmra.mxu0 %vm1312_vm0, %v13138_v38  ;;  %12238 = vmatmul.msk.bf16.gmra.mxu1 %vm1312_vm0, %v13138_v38 }
 0x638   : > { %v9371_v49 = vadd.f32 %v9370_v36, %v8266_v46  ;;  %12366 = vmatmul.msk.bf16.gmra.mxu2 %vm1312_vm0, %v13138_v38 }
 0x639   : > { %12494 = vmatmul.msk.bf16.gmra.mxu3 %vm1312_vm0, %v13138_v38 }
 0x63b   : > { %v3434_v50 = vpop.f32.mrf.mxu2 }
 0x63c   : > { %v8267_v51 = vmax.f32 %v3434_v50, 0.0  ;;  %v4083_v52 = vpop.f32.mrf.mxu3  ;;  %v2138_v53 = vpop.f32.mrf.mxu0 }
 0x63d   : > { %v8268_v54 = vmax.f32 %v4083_v52, 0.0  ;;  %v8273_v55 = vmax.f32 %v2138_v53, 0.0  ;;  %v2787_v56 = vpop.f32.mrf.mxu1 }
 0x63e   : > { %v9626_v57 = vadd.f32 %v9625_v45, %v8267_v51  ;;  %v8274_v58 = vmax.f32 %v2787_v56, 0.0 }
 0x63f   : > { %v9881_v59 = vadd.f32 %v9880_v47, %v8268_v54  ;;  %v9117_v60 = vadd.f32 %v9116_v48, %v8273_v55 }
 0x640   : > { %v9372_v61 = vadd.f32 %v9371_v49, %v8274_v58  ;;  %v13141_v49 = vld [vmem:[%s13583_s29 + $0x308] sm:$0xff] }
 0x643   : > { %v3436_v62 = vpop.f32.mrf.mxu2 }
 0x644   : > { %v8275_v0 = vmax.f32 %v3436_v62, 0.0  ;;  %v4085_v1 = vpop.f32.mrf.mxu3  ;;  %v2141_v2 = vpop.f32.mrf.mxu0 }
 0x645   : > { %v8276_v3 = vmax.f32 %v4085_v1, 0.0  ;;  %v8281_v4 = vmax.f32 %v2141_v2, 0.0  ;;  %v2790_v5 = vpop.f32.mrf.mxu1 }
 0x646   : > { %v9627_v6 = vadd.f32 %v9626_v57, %v8275_v0  ;;  %v8282_v7 = vmax.f32 %v2790_v5, 0.0 }
 0x647   : > { %v9882_v8 = vadd.f32 %v9881_v59, %v8276_v3  ;;  %v9118_v9 = vadd.f32 %v9117_v60, %v8281_v4  ;;  %12111 = vmatmul.msk.bf16.gmra.mxu0 %vm1312_vm0, %v13139_v63  ;;  %12239 = vmatmul.msk.bf16.gmra.mxu1 %vm1312_vm0, %v13139_v63 }
 0x648   : > { %v9373_v10 = vadd.f32 %v9372_v61, %v8282_v7  ;;  %12367 = vmatmul.msk.bf16.gmra.mxu2 %vm1312_vm0, %v13139_v63 }
 0x649   : > { %12495 = vmatmul.msk.bf16.gmra.mxu3 %vm1312_vm0, %v13139_v63 }
 0x64b   : > { %v3439_v11 = vpop.f32.mrf.mxu2 }
 0x64c   : > { %v8283_v12 = vmax.f32 %v3439_v11, 0.0  ;;  %v4088_v13 = vpop.f32.mrf.mxu3  ;;  %v2143_v14 = vpop.f32.mrf.mxu0 }
 0x64d   : > { %v8284_v15 = vmax.f32 %v4088_v13, 0.0  ;;  %v8289_v16 = vmax.f32 %v2143_v14, 0.0  ;;  %v2792_v17 = vpop.f32.mrf.mxu1 }
 0x64e   : > { %v9628_v18 = vadd.f32 %v9627_v6, %v8283_v12  ;;  %v8290_v19 = vmax.f32 %v2792_v17, 0.0 }
 0x64f   : > { %v9883_v20 = vadd.f32 %v9882_v8, %v8284_v15  ;;  %v9119_v21 = vadd.f32 %v9118_v9, %v8289_v16 }
 0x650   : > { %v9374_v22 = vadd.f32 %v9373_v10, %v8290_v19  ;;  %v13142_v10 = vld [vmem:[%s13583_s29 + $0x310] sm:$0xff] }
 0x653   : > { %v3441_v23 = vpop.f32.mrf.mxu2 }
 0x654   : > { %v8291_v25 = vmax.f32 %v3441_v23, 0.0  ;;  %v4090_v26 = vpop.f32.mrf.mxu3  ;;  %v2146_v27 = vpop.f32.mrf.mxu0 }
 0x655   : > { %v8292_v28 = vmax.f32 %v4090_v26, 0.0  ;;  %v8297_v29 = vmax.f32 %v2146_v27, 0.0  ;;  %v2795_v30 = vpop.f32.mrf.mxu1 }
 0x656   : > { %v9629_v31 = vadd.f32 %v9628_v18, %v8291_v25  ;;  %v8298_v32 = vmax.f32 %v2795_v30, 0.0 }
 0x657   : > { %v9884_v33 = vadd.f32 %v9883_v20, %v8292_v28  ;;  %v9120_v34 = vadd.f32 %v9119_v21, %v8297_v29  ;;  %12112 = vmatmul.msk.bf16.gmra.mxu0 %vm1312_vm0, %v13140_v24  ;;  %12240 = vmatmul.msk.bf16.gmra.mxu1 %vm1312_vm0, %v13140_v24 }
 0x658   : > { %v9375_v35 = vadd.f32 %v9374_v22, %v8298_v32  ;;  %12368 = vmatmul.msk.bf16.gmra.mxu2 %vm1312_vm0, %v13140_v24 }
 0x659   : > { %12496 = vmatmul.msk.bf16.gmra.mxu3 %vm1312_vm0, %v13140_v24 }
 0x65b   : > { %v3444_v36 = vpop.f32.mrf.mxu2 }
 0x65c   : > { %v8299_v37 = vmax.f32 %v3444_v36, 0.0  ;;  %v4093_v38 = vpop.f32.mrf.mxu3  ;;  %v2148_v39 = vpop.f32.mrf.mxu0 }
 0x65d   : > { %v8300_v40 = vmax.f32 %v4093_v38, 0.0  ;;  %v8305_v41 = vmax.f32 %v2148_v39, 0.0  ;;  %v2797_v42 = vpop.f32.mrf.mxu1 }
 0x65e   : > { %v9630_v43 = vadd.f32 %v9629_v31, %v8299_v37  ;;  %v8306_v44 = vmax.f32 %v2797_v42, 0.0 }
 0x65f   : > { %v9885_v45 = vadd.f32 %v9884_v33, %v8300_v40  ;;  %v9121_v46 = vadd.f32 %v9120_v34, %v8305_v41 }
 0x660   : > { %v9376_v47 = vadd.f32 %v9375_v35, %v8306_v44  ;;  %v13143_v35 = vld [vmem:[%s13583_s29 + $0x318] sm:$0xff] }
 0x663   : > { %v3446_v48 = vpop.f32.mrf.mxu2 }
 0x664   : > { %v8307_v50 = vmax.f32 %v3446_v48, 0.0  ;;  %v4095_v51 = vpop.f32.mrf.mxu3  ;;  %v2151_v52 = vpop.f32.mrf.mxu0 }
 0x665   : > { %v8308_v53 = vmax.f32 %v4095_v51, 0.0  ;;  %v8313_v54 = vmax.f32 %v2151_v52, 0.0  ;;  %v2800_v55 = vpop.f32.mrf.mxu1 }
 0x666   : > { %v9631_v56 = vadd.f32 %v9630_v43, %v8307_v50  ;;  %v8314_v57 = vmax.f32 %v2800_v55, 0.0 }
 0x667   : > { %v9886_v58 = vadd.f32 %v9885_v45, %v8308_v53  ;;  %v9122_v59 = vadd.f32 %v9121_v46, %v8313_v54  ;;  %12113 = vmatmul.msk.bf16.gmra.mxu0 %vm1312_vm0, %v13141_v49  ;;  %12241 = vmatmul.msk.bf16.gmra.mxu1 %vm1312_vm0, %v13141_v49 }
 0x668   : > { %v9377_v60 = vadd.f32 %v9376_v47, %v8314_v57  ;;  %12369 = vmatmul.msk.bf16.gmra.mxu2 %vm1312_vm0, %v13141_v49 }
 0x669   : > { %12497 = vmatmul.msk.bf16.gmra.mxu3 %vm1312_vm0, %v13141_v49 }
 0x66b   : > { %v3449_v61 = vpop.f32.mrf.mxu2 }
 0x66c   : > { %v8315_v62 = vmax.f32 %v3449_v61, 0.0  ;;  %v4098_v63 = vpop.f32.mrf.mxu3  ;;  %v2153_v0 = vpop.f32.mrf.mxu0 }
 0x66d   : > { %v8316_v1 = vmax.f32 %v4098_v63, 0.0  ;;  %v8321_v2 = vmax.f32 %v2153_v0, 0.0  ;;  %v2802_v3 = vpop.f32.mrf.mxu1 }
 0x66e   : > { %v9632_v4 = vadd.f32 %v9631_v56, %v8315_v62  ;;  %v8322_v5 = vmax.f32 %v2802_v3, 0.0 }
 0x66f   : > { %v9887_v6 = vadd.f32 %v9886_v58, %v8316_v1  ;;  %v9123_v7 = vadd.f32 %v9122_v59, %v8321_v2 }
 0x670   : > { %v9378_v8 = vadd.f32 %v9377_v60, %v8322_v5  ;;  %v13144_v60 = vld [vmem:[%s13583_s29 + $0x320] sm:$0xff] }
 0x673   : > { %v3451_v9 = vpop.f32.mrf.mxu2 }
 0x674   : > { %v8323_v11 = vmax.f32 %v3451_v9, 0.0  ;;  %v4100_v12 = vpop.f32.mrf.mxu3  ;;  %v2156_v13 = vpop.f32.mrf.mxu0 }
 0x675   : > { %v8324_v14 = vmax.f32 %v4100_v12, 0.0  ;;  %v8329_v15 = vmax.f32 %v2156_v13, 0.0  ;;  %v2805_v16 = vpop.f32.mrf.mxu1 }
 0x676   : > { %v9633_v17 = vadd.f32 %v9632_v4, %v8323_v11  ;;  %v8330_v18 = vmax.f32 %v2805_v16, 0.0 }
 0x677   : > { %v9888_v19 = vadd.f32 %v9887_v6, %v8324_v14  ;;  %v9124_v20 = vadd.f32 %v9123_v7, %v8329_v15  ;;  %12114 = vmatmul.msk.bf16.gmra.mxu0 %vm1312_vm0, %v13142_v10  ;;  %12242 = vmatmul.msk.bf16.gmra.mxu1 %vm1312_vm0, %v13142_v10 }
 0x678   : > { %v9379_v21 = vadd.f32 %v9378_v8, %v8330_v18  ;;  %12370 = vmatmul.msk.bf16.gmra.mxu2 %vm1312_vm0, %v13142_v10 }
 0x679   : > { %12498 = vmatmul.msk.bf16.gmra.mxu3 %vm1312_vm0, %v13142_v10 }
 0x67b   : > { %v3454_v22 = vpop.f32.mrf.mxu2 }
 0x67c   : > { %v8331_v23 = vmax.f32 %v3454_v22, 0.0  ;;  %v4103_v24 = vpop.f32.mrf.mxu3  ;;  %v2158_v25 = vpop.f32.mrf.mxu0 }
 0x67d   : > { %v8332_v26 = vmax.f32 %v4103_v24, 0.0  ;;  %v8337_v27 = vmax.f32 %v2158_v25, 0.0  ;;  %v2807_v28 = vpop.f32.mrf.mxu1 }
 0x67e   : > { %v9634_v29 = vadd.f32 %v9633_v17, %v8331_v23  ;;  %v8338_v30 = vmax.f32 %v2807_v28, 0.0 }
 0x67f   : > { %v9889_v31 = vadd.f32 %v9888_v19, %v8332_v26  ;;  %v9125_v32 = vadd.f32 %v9124_v20, %v8337_v27 }
 0x680   : > { %v9380_v33 = vadd.f32 %v9379_v21, %v8338_v30  ;;  %v13145_v21 = vld [vmem:[%s13583_s29 + $0x328] sm:$0xff] }
 0x683   : > { %v3456_v34 = vpop.f32.mrf.mxu2 }
 0x684   : > { %v8339_v36 = vmax.f32 %v3456_v34, 0.0  ;;  %v4105_v37 = vpop.f32.mrf.mxu3  ;;  %v2161_v38 = vpop.f32.mrf.mxu0 }
 0x685   : > { %v8340_v39 = vmax.f32 %v4105_v37, 0.0  ;;  %v8345_v40 = vmax.f32 %v2161_v38, 0.0  ;;  %v2810_v41 = vpop.f32.mrf.mxu1 }
 0x686   : > { %v9635_v42 = vadd.f32 %v9634_v29, %v8339_v36  ;;  %v8346_v43 = vmax.f32 %v2810_v41, 0.0 }
 0x687   : > { %v9890_v44 = vadd.f32 %v9889_v31, %v8340_v39  ;;  %v9126_v45 = vadd.f32 %v9125_v32, %v8345_v40  ;;  %12115 = vmatmul.msk.bf16.gmra.mxu0 %vm1312_vm0, %v13143_v35  ;;  %12243 = vmatmul.msk.bf16.gmra.mxu1 %vm1312_vm0, %v13143_v35 }
 0x688   : > { %v9381_v46 = vadd.f32 %v9380_v33, %v8346_v43  ;;  %12371 = vmatmul.msk.bf16.gmra.mxu2 %vm1312_vm0, %v13143_v35 }
 0x689   : > { %12499 = vmatmul.msk.bf16.gmra.mxu3 %vm1312_vm0, %v13143_v35 }
 0x68b   : > { %v3459_v47 = vpop.f32.mrf.mxu2 }
 0x68c   : > { %v8347_v48 = vmax.f32 %v3459_v47, 0.0  ;;  %v4108_v49 = vpop.f32.mrf.mxu3  ;;  %v2163_v50 = vpop.f32.mrf.mxu0 }
 0x68d   : > { %v8348_v51 = vmax.f32 %v4108_v49, 0.0  ;;  %v8353_v52 = vmax.f32 %v2163_v50, 0.0  ;;  %v2812_v53 = vpop.f32.mrf.mxu1 }
 0x68e   : > { %v9636_v54 = vadd.f32 %v9635_v42, %v8347_v48  ;;  %v8354_v55 = vmax.f32 %v2812_v53, 0.0 }
 0x68f   : > { %v9891_v56 = vadd.f32 %v9890_v44, %v8348_v51  ;;  %v9127_v57 = vadd.f32 %v9126_v45, %v8353_v52 }
 0x690   : > { %v9382_v58 = vadd.f32 %v9381_v46, %v8354_v55  ;;  %v13146_v46 = vld [vmem:[%s13583_s29 + $0x330] sm:$0xff] }
 0x693   : > { %v3461_v59 = vpop.f32.mrf.mxu2 }
 0x694   : > { %v8355_v61 = vmax.f32 %v3461_v59, 0.0  ;;  %v4110_v62 = vpop.f32.mrf.mxu3  ;;  %v2166_v63 = vpop.f32.mrf.mxu0 }
 0x695   : > { %v8356_v0 = vmax.f32 %v4110_v62, 0.0  ;;  %v8361_v1 = vmax.f32 %v2166_v63, 0.0  ;;  %v2815_v2 = vpop.f32.mrf.mxu1 }
 0x696   : > { %v9637_v3 = vadd.f32 %v9636_v54, %v8355_v61  ;;  %v8362_v4 = vmax.f32 %v2815_v2, 0.0 }
 0x697   : > { %v9892_v5 = vadd.f32 %v9891_v56, %v8356_v0  ;;  %v9128_v6 = vadd.f32 %v9127_v57, %v8361_v1  ;;  %12116 = vmatmul.msk.bf16.gmra.mxu0 %vm1312_vm0, %v13144_v60  ;;  %12244 = vmatmul.msk.bf16.gmra.mxu1 %vm1312_vm0, %v13144_v60 }
 0x698   : > { %v9383_v7 = vadd.f32 %v9382_v58, %v8362_v4  ;;  %12372 = vmatmul.msk.bf16.gmra.mxu2 %vm1312_vm0, %v13144_v60 }
 0x699   : > { %12500 = vmatmul.msk.bf16.gmra.mxu3 %vm1312_vm0, %v13144_v60 }
 0x69b   : > { %v3464_v8 = vpop.f32.mrf.mxu2 }
 0x69c   : > { %v8363_v9 = vmax.f32 %v3464_v8, 0.0  ;;  %v4113_v10 = vpop.f32.mrf.mxu3  ;;  %v2168_v11 = vpop.f32.mrf.mxu0 }
 0x69d   : > { %v8364_v12 = vmax.f32 %v4113_v10, 0.0  ;;  %v8369_v13 = vmax.f32 %v2168_v11, 0.0  ;;  %v2817_v14 = vpop.f32.mrf.mxu1 }
 0x69e   : > { %v9638_v15 = vadd.f32 %v9637_v3, %v8363_v9  ;;  %v8370_v16 = vmax.f32 %v2817_v14, 0.0 }
 0x69f   : > { %v9893_v17 = vadd.f32 %v9892_v5, %v8364_v12  ;;  %v9129_v18 = vadd.f32 %v9128_v6, %v8369_v13 }
 0x6a0   : > { %v9384_v19 = vadd.f32 %v9383_v7, %v8370_v16  ;;  %v13147_v7 = vld [vmem:[%s13583_s29 + $0x338] sm:$0xff] }
 0x6a3   : > { %v3466_v20 = vpop.f32.mrf.mxu2 }
 0x6a4   : > { %v8371_v22 = vmax.f32 %v3466_v20, 0.0  ;;  %v4115_v23 = vpop.f32.mrf.mxu3  ;;  %v2171_v24 = vpop.f32.mrf.mxu0 }
 0x6a5   : > { %v8372_v25 = vmax.f32 %v4115_v23, 0.0  ;;  %v8377_v26 = vmax.f32 %v2171_v24, 0.0  ;;  %v2820_v27 = vpop.f32.mrf.mxu1 }
 0x6a6   : > { %v9639_v28 = vadd.f32 %v9638_v15, %v8371_v22  ;;  %v8378_v29 = vmax.f32 %v2820_v27, 0.0 }
 0x6a7   : > { %v9894_v30 = vadd.f32 %v9893_v17, %v8372_v25  ;;  %v9130_v31 = vadd.f32 %v9129_v18, %v8377_v26  ;;  %12117 = vmatmul.msk.bf16.gmra.mxu0 %vm1312_vm0, %v13145_v21  ;;  %12245 = vmatmul.msk.bf16.gmra.mxu1 %vm1312_vm0, %v13145_v21 }
 0x6a8   : > { %v9385_v32 = vadd.f32 %v9384_v19, %v8378_v29  ;;  %12373 = vmatmul.msk.bf16.gmra.mxu2 %vm1312_vm0, %v13145_v21 }
 0x6a9   : > { %12501 = vmatmul.msk.bf16.gmra.mxu3 %vm1312_vm0, %v13145_v21 }
 0x6ab   : > { %v3469_v33 = vpop.f32.mrf.mxu2 }
 0x6ac   : > { %v8379_v34 = vmax.f32 %v3469_v33, 0.0  ;;  %v4118_v35 = vpop.f32.mrf.mxu3  ;;  %v2173_v36 = vpop.f32.mrf.mxu0 }
 0x6ad   : > { %v8380_v37 = vmax.f32 %v4118_v35, 0.0  ;;  %v8385_v38 = vmax.f32 %v2173_v36, 0.0  ;;  %v2822_v39 = vpop.f32.mrf.mxu1 }
 0x6ae   : > { %v9640_v40 = vadd.f32 %v9639_v28, %v8379_v34  ;;  %v8386_v41 = vmax.f32 %v2822_v39, 0.0 }
 0x6af   : > { %v9895_v42 = vadd.f32 %v9894_v30, %v8380_v37  ;;  %v9131_v43 = vadd.f32 %v9130_v31, %v8385_v38 }
 0x6b0   : > { %v9386_v44 = vadd.f32 %v9385_v32, %v8386_v41  ;;  %v13148_v32 = vld [vmem:[%s13583_s29 + $0x340] sm:$0xff] }
 0x6b3   : > { %v3471_v45 = vpop.f32.mrf.mxu2 }
 0x6b4   : > { %v8387_v47 = vmax.f32 %v3471_v45, 0.0  ;;  %v4120_v48 = vpop.f32.mrf.mxu3  ;;  %v2176_v49 = vpop.f32.mrf.mxu0 }
 0x6b5   : > { %v8388_v50 = vmax.f32 %v4120_v48, 0.0  ;;  %v8393_v51 = vmax.f32 %v2176_v49, 0.0  ;;  %v2825_v52 = vpop.f32.mrf.mxu1 }
 0x6b6   : > { %v9641_v53 = vadd.f32 %v9640_v40, %v8387_v47  ;;  %v8394_v54 = vmax.f32 %v2825_v52, 0.0 }
 0x6b7   : > { %v9896_v55 = vadd.f32 %v9895_v42, %v8388_v50  ;;  %v9132_v56 = vadd.f32 %v9131_v43, %v8393_v51  ;;  %12118 = vmatmul.msk.bf16.gmra.mxu0 %vm1312_vm0, %v13146_v46  ;;  %12246 = vmatmul.msk.bf16.gmra.mxu1 %vm1312_vm0, %v13146_v46 }
 0x6b8   : > { %v9387_v57 = vadd.f32 %v9386_v44, %v8394_v54  ;;  %12374 = vmatmul.msk.bf16.gmra.mxu2 %vm1312_vm0, %v13146_v46 }
 0x6b9   : > { %12502 = vmatmul.msk.bf16.gmra.mxu3 %vm1312_vm0, %v13146_v46 }
 0x6bb   : > { %v3474_v58 = vpop.f32.mrf.mxu2 }
 0x6bc   : > { %v8395_v59 = vmax.f32 %v3474_v58, 0.0  ;;  %v4123_v60 = vpop.f32.mrf.mxu3  ;;  %v2178_v61 = vpop.f32.mrf.mxu0 }
 0x6bd   : > { %v8396_v62 = vmax.f32 %v4123_v60, 0.0  ;;  %v8401_v63 = vmax.f32 %v2178_v61, 0.0  ;;  %v2827_v0 = vpop.f32.mrf.mxu1 }
 0x6be   : > { %v9642_v1 = vadd.f32 %v9641_v53, %v8395_v59  ;;  %v8402_v2 = vmax.f32 %v2827_v0, 0.0 }
 0x6bf   : > { %v9897_v3 = vadd.f32 %v9896_v55, %v8396_v62  ;;  %v9133_v4 = vadd.f32 %v9132_v56, %v8401_v63 }
 0x6c0   : > { %v9388_v5 = vadd.f32 %v9387_v57, %v8402_v2  ;;  %v13149_v57 = vld [vmem:[%s13583_s29 + $0x348] sm:$0xff] }
 0x6c3   : > { %v3476_v6 = vpop.f32.mrf.mxu2 }
 0x6c4   : > { %v8403_v8 = vmax.f32 %v3476_v6, 0.0  ;;  %v4125_v9 = vpop.f32.mrf.mxu3  ;;  %v2181_v10 = vpop.f32.mrf.mxu0 }
 0x6c5   : > { %v8404_v11 = vmax.f32 %v4125_v9, 0.0  ;;  %v8409_v12 = vmax.f32 %v2181_v10, 0.0  ;;  %v2830_v13 = vpop.f32.mrf.mxu1 }
 0x6c6   : > { %v9643_v14 = vadd.f32 %v9642_v1, %v8403_v8  ;;  %v8410_v15 = vmax.f32 %v2830_v13, 0.0 }
 0x6c7   : > { %v9898_v16 = vadd.f32 %v9897_v3, %v8404_v11  ;;  %v9134_v17 = vadd.f32 %v9133_v4, %v8409_v12  ;;  %12119 = vmatmul.msk.bf16.gmra.mxu0 %vm1312_vm0, %v13147_v7  ;;  %12247 = vmatmul.msk.bf16.gmra.mxu1 %vm1312_vm0, %v13147_v7 }
 0x6c8   : > { %v9389_v18 = vadd.f32 %v9388_v5, %v8410_v15  ;;  %12375 = vmatmul.msk.bf16.gmra.mxu2 %vm1312_vm0, %v13147_v7 }
 0x6c9   : > { %12503 = vmatmul.msk.bf16.gmra.mxu3 %vm1312_vm0, %v13147_v7 }
 0x6cb   : > { %v3479_v19 = vpop.f32.mrf.mxu2 }
 0x6cc   : > { %v8411_v20 = vmax.f32 %v3479_v19, 0.0  ;;  %v4128_v21 = vpop.f32.mrf.mxu3  ;;  %v2183_v22 = vpop.f32.mrf.mxu0 }
 0x6cd   : > { %v8412_v23 = vmax.f32 %v4128_v21, 0.0  ;;  %v8417_v24 = vmax.f32 %v2183_v22, 0.0  ;;  %v2832_v25 = vpop.f32.mrf.mxu1 }
 0x6ce   : > { %v9644_v26 = vadd.f32 %v9643_v14, %v8411_v20  ;;  %v8418_v27 = vmax.f32 %v2832_v25, 0.0 }
 0x6cf   : > { %v9899_v28 = vadd.f32 %v9898_v16, %v8412_v23  ;;  %v9135_v29 = vadd.f32 %v9134_v17, %v8417_v24 }
 0x6d0   : > { %v9390_v30 = vadd.f32 %v9389_v18, %v8418_v27  ;;  %v13150_v18 = vld [vmem:[%s13583_s29 + $0x350] sm:$0xff] }
 0x6d3   : > { %v3481_v31 = vpop.f32.mrf.mxu2 }
 0x6d4   : > { %v8419_v33 = vmax.f32 %v3481_v31, 0.0  ;;  %v4130_v34 = vpop.f32.mrf.mxu3  ;;  %v2186_v35 = vpop.f32.mrf.mxu0 }
 0x6d5   : > { %v8420_v36 = vmax.f32 %v4130_v34, 0.0  ;;  %v8425_v37 = vmax.f32 %v2186_v35, 0.0  ;;  %v2835_v38 = vpop.f32.mrf.mxu1 }
 0x6d6   : > { %v9645_v39 = vadd.f32 %v9644_v26, %v8419_v33  ;;  %v8426_v40 = vmax.f32 %v2835_v38, 0.0 }
 0x6d7   : > { %v9900_v41 = vadd.f32 %v9899_v28, %v8420_v36  ;;  %v9136_v42 = vadd.f32 %v9135_v29, %v8425_v37  ;;  %12120 = vmatmul.msk.bf16.gmra.mxu0 %vm1312_vm0, %v13148_v32  ;;  %12248 = vmatmul.msk.bf16.gmra.mxu1 %vm1312_vm0, %v13148_v32 }
 0x6d8   : > { %v9391_v43 = vadd.f32 %v9390_v30, %v8426_v40  ;;  %12376 = vmatmul.msk.bf16.gmra.mxu2 %vm1312_vm0, %v13148_v32 }
 0x6d9   : > { %12504 = vmatmul.msk.bf16.gmra.mxu3 %vm1312_vm0, %v13148_v32 }
 0x6db   : > { %v3484_v44 = vpop.f32.mrf.mxu2 }
 0x6dc   : > { %v8427_v45 = vmax.f32 %v3484_v44, 0.0  ;;  %v4133_v46 = vpop.f32.mrf.mxu3  ;;  %v2188_v47 = vpop.f32.mrf.mxu0 }
 0x6dd   : > { %v8428_v48 = vmax.f32 %v4133_v46, 0.0  ;;  %v8433_v49 = vmax.f32 %v2188_v47, 0.0  ;;  %v2837_v50 = vpop.f32.mrf.mxu1 }
 0x6de   : > { %v9646_v51 = vadd.f32 %v9645_v39, %v8427_v45  ;;  %v8434_v52 = vmax.f32 %v2837_v50, 0.0 }
 0x6df   : > { %v9901_v53 = vadd.f32 %v9900_v41, %v8428_v48  ;;  %v9137_v54 = vadd.f32 %v9136_v42, %v8433_v49 }
 0x6e0   : > { %v9392_v55 = vadd.f32 %v9391_v43, %v8434_v52  ;;  %v13151_v43 = vld [vmem:[%s13583_s29 + $0x358] sm:$0xff] }
 0x6e3   : > { %v3486_v56 = vpop.f32.mrf.mxu2 }
 0x6e4   : > { %v8435_v58 = vmax.f32 %v3486_v56, 0.0  ;;  %v4135_v59 = vpop.f32.mrf.mxu3  ;;  %v2191_v60 = vpop.f32.mrf.mxu0 }
 0x6e5   : > { %v8436_v61 = vmax.f32 %v4135_v59, 0.0  ;;  %v8441_v62 = vmax.f32 %v2191_v60, 0.0  ;;  %v2840_v63 = vpop.f32.mrf.mxu1 }
 0x6e6   : > { %v9647_v0 = vadd.f32 %v9646_v51, %v8435_v58  ;;  %v8442_v1 = vmax.f32 %v2840_v63, 0.0 }
 0x6e7   : > { %v9902_v2 = vadd.f32 %v9901_v53, %v8436_v61  ;;  %v9138_v3 = vadd.f32 %v9137_v54, %v8441_v62  ;;  %12121 = vmatmul.msk.bf16.gmra.mxu0 %vm1312_vm0, %v13149_v57  ;;  %12249 = vmatmul.msk.bf16.gmra.mxu1 %vm1312_vm0, %v13149_v57 }
 0x6e8   : > { %v9393_v4 = vadd.f32 %v9392_v55, %v8442_v1  ;;  %12377 = vmatmul.msk.bf16.gmra.mxu2 %vm1312_vm0, %v13149_v57 }
 0x6e9   : > { %12505 = vmatmul.msk.bf16.gmra.mxu3 %vm1312_vm0, %v13149_v57 }
 0x6eb   : > { %v3489_v5 = vpop.f32.mrf.mxu2 }
 0x6ec   : > { %v8443_v6 = vmax.f32 %v3489_v5, 0.0  ;;  %v4138_v7 = vpop.f32.mrf.mxu3  ;;  %v2193_v8 = vpop.f32.mrf.mxu0 }
 0x6ed   : > { %v8444_v9 = vmax.f32 %v4138_v7, 0.0  ;;  %v8449_v10 = vmax.f32 %v2193_v8, 0.0  ;;  %v2842_v11 = vpop.f32.mrf.mxu1 }
 0x6ee   : > { %v9648_v12 = vadd.f32 %v9647_v0, %v8443_v6  ;;  %v8450_v13 = vmax.f32 %v2842_v11, 0.0 }
 0x6ef   : > { %v9903_v14 = vadd.f32 %v9902_v2, %v8444_v9  ;;  %v9139_v15 = vadd.f32 %v9138_v3, %v8449_v10 }
 0x6f0   : > { %v9394_v16 = vadd.f32 %v9393_v4, %v8450_v13  ;;  %v13152_v4 = vld [vmem:[%s13583_s29 + $0x360] sm:$0xff] }
 0x6f3   : > { %v3491_v17 = vpop.f32.mrf.mxu2 }
 0x6f4   : > { %v8451_v19 = vmax.f32 %v3491_v17, 0.0  ;;  %v4140_v20 = vpop.f32.mrf.mxu3  ;;  %v2196_v21 = vpop.f32.mrf.mxu0 }
 0x6f5   : > { %v8452_v22 = vmax.f32 %v4140_v20, 0.0  ;;  %v8457_v23 = vmax.f32 %v2196_v21, 0.0  ;;  %v2845_v24 = vpop.f32.mrf.mxu1 }
 0x6f6   : > { %v9649_v25 = vadd.f32 %v9648_v12, %v8451_v19  ;;  %v8458_v26 = vmax.f32 %v2845_v24, 0.0 }
 0x6f7   : > { %v9904_v27 = vadd.f32 %v9903_v14, %v8452_v22  ;;  %v9140_v28 = vadd.f32 %v9139_v15, %v8457_v23  ;;  %12122 = vmatmul.msk.bf16.gmra.mxu0 %vm1312_vm0, %v13150_v18  ;;  %12250 = vmatmul.msk.bf16.gmra.mxu1 %vm1312_vm0, %v13150_v18 }
 0x6f8   : > { %v9395_v29 = vadd.f32 %v9394_v16, %v8458_v26  ;;  %12378 = vmatmul.msk.bf16.gmra.mxu2 %vm1312_vm0, %v13150_v18 }
 0x6f9   : > { %12506 = vmatmul.msk.bf16.gmra.mxu3 %vm1312_vm0, %v13150_v18 }
 0x6fb   : > { %v3494_v30 = vpop.f32.mrf.mxu2 }
 0x6fc   : > { %v8459_v31 = vmax.f32 %v3494_v30, 0.0  ;;  %v4143_v32 = vpop.f32.mrf.mxu3  ;;  %v2198_v33 = vpop.f32.mrf.mxu0 }
 0x6fd   : > { %v8460_v34 = vmax.f32 %v4143_v32, 0.0  ;;  %v8465_v35 = vmax.f32 %v2198_v33, 0.0  ;;  %v2847_v36 = vpop.f32.mrf.mxu1 }
 0x6fe   : > { %v9650_v37 = vadd.f32 %v9649_v25, %v8459_v31  ;;  %v8466_v38 = vmax.f32 %v2847_v36, 0.0 }
 0x6ff   : > { %v9905_v39 = vadd.f32 %v9904_v27, %v8460_v34  ;;  %v9141_v40 = vadd.f32 %v9140_v28, %v8465_v35 }
 0x700   : > { %v9396_v41 = vadd.f32 %v9395_v29, %v8466_v38  ;;  %v13153_v29 = vld [vmem:[%s13583_s29 + $0x368] sm:$0xff] }
 0x703   : > { %v3496_v42 = vpop.f32.mrf.mxu2 }
 0x704   : > { %v8467_v44 = vmax.f32 %v3496_v42, 0.0  ;;  %v4145_v45 = vpop.f32.mrf.mxu3  ;;  %v2201_v46 = vpop.f32.mrf.mxu0 }
 0x705   : > { %v8468_v47 = vmax.f32 %v4145_v45, 0.0  ;;  %v8473_v48 = vmax.f32 %v2201_v46, 0.0  ;;  %v2850_v49 = vpop.f32.mrf.mxu1 }
 0x706   : > { %v9651_v50 = vadd.f32 %v9650_v37, %v8467_v44  ;;  %v8474_v51 = vmax.f32 %v2850_v49, 0.0 }
 0x707   : > { %v9906_v52 = vadd.f32 %v9905_v39, %v8468_v47  ;;  %v9142_v53 = vadd.f32 %v9141_v40, %v8473_v48  ;;  %12123 = vmatmul.msk.bf16.gmra.mxu0 %vm1312_vm0, %v13151_v43  ;;  %12251 = vmatmul.msk.bf16.gmra.mxu1 %vm1312_vm0, %v13151_v43 }
 0x708   : > { %v9397_v54 = vadd.f32 %v9396_v41, %v8474_v51  ;;  %12379 = vmatmul.msk.bf16.gmra.mxu2 %vm1312_vm0, %v13151_v43 }
 0x709   : > { %12507 = vmatmul.msk.bf16.gmra.mxu3 %vm1312_vm0, %v13151_v43 }
 0x70b   : > { %v3499_v55 = vpop.f32.mrf.mxu2 }
 0x70c   : > { %v8475_v56 = vmax.f32 %v3499_v55, 0.0  ;;  %v4148_v57 = vpop.f32.mrf.mxu3  ;;  %v2203_v58 = vpop.f32.mrf.mxu0 }
 0x70d   : > { %v8476_v59 = vmax.f32 %v4148_v57, 0.0  ;;  %v8481_v60 = vmax.f32 %v2203_v58, 0.0  ;;  %v2852_v61 = vpop.f32.mrf.mxu1 }
 0x70e   : > { %v9652_v62 = vadd.f32 %v9651_v50, %v8475_v56  ;;  %v8482_v63 = vmax.f32 %v2852_v61, 0.0 }
 0x70f   : > { %v9907_v0 = vadd.f32 %v9906_v52, %v8476_v59  ;;  %v9143_v1 = vadd.f32 %v9142_v53, %v8481_v60 }
 0x710   : > { %v9398_v2 = vadd.f32 %v9397_v54, %v8482_v63  ;;  %v13154_v54 = vld [vmem:[%s13583_s29 + $0x370] sm:$0xff] }
 0x713   : > { %v3501_v3 = vpop.f32.mrf.mxu2 }
 0x714   : > { %v8483_v5 = vmax.f32 %v3501_v3, 0.0  ;;  %v4150_v6 = vpop.f32.mrf.mxu3  ;;  %v2206_v7 = vpop.f32.mrf.mxu0 }
 0x715   : > { %v8484_v8 = vmax.f32 %v4150_v6, 0.0  ;;  %v8489_v9 = vmax.f32 %v2206_v7, 0.0  ;;  %v2855_v10 = vpop.f32.mrf.mxu1 }
 0x716   : > { %v9653_v11 = vadd.f32 %v9652_v62, %v8483_v5  ;;  %v8490_v12 = vmax.f32 %v2855_v10, 0.0 }
 0x717   : > { %v9908_v13 = vadd.f32 %v9907_v0, %v8484_v8  ;;  %v9144_v14 = vadd.f32 %v9143_v1, %v8489_v9  ;;  %12124 = vmatmul.msk.bf16.gmra.mxu0 %vm1312_vm0, %v13152_v4  ;;  %12252 = vmatmul.msk.bf16.gmra.mxu1 %vm1312_vm0, %v13152_v4 }
 0x718   : > { %v9399_v15 = vadd.f32 %v9398_v2, %v8490_v12  ;;  %12380 = vmatmul.msk.bf16.gmra.mxu2 %vm1312_vm0, %v13152_v4 }
 0x719   : > { %12508 = vmatmul.msk.bf16.gmra.mxu3 %vm1312_vm0, %v13152_v4 }
 0x71b   : > { %v3504_v16 = vpop.f32.mrf.mxu2 }
 0x71c   : > { %v8491_v17 = vmax.f32 %v3504_v16, 0.0  ;;  %v4153_v18 = vpop.f32.mrf.mxu3  ;;  %v2208_v19 = vpop.f32.mrf.mxu0 }
 0x71d   : > { %v8492_v20 = vmax.f32 %v4153_v18, 0.0  ;;  %v8497_v21 = vmax.f32 %v2208_v19, 0.0  ;;  %v2857_v22 = vpop.f32.mrf.mxu1 }
 0x71e   : > { %v9654_v23 = vadd.f32 %v9653_v11, %v8491_v17  ;;  %v8498_v24 = vmax.f32 %v2857_v22, 0.0 }
 0x71f   : > { %v9909_v25 = vadd.f32 %v9908_v13, %v8492_v20  ;;  %v9145_v26 = vadd.f32 %v9144_v14, %v8497_v21 }
 0x720   : > { %v9400_v27 = vadd.f32 %v9399_v15, %v8498_v24  ;;  %v13155_v15 = vld [vmem:[%s13583_s29 + $0x378] sm:$0xff] }
 0x723   : > { %v3506_v28 = vpop.f32.mrf.mxu2 }
 0x724   : > { %v8499_v30 = vmax.f32 %v3506_v28, 0.0  ;;  %v4155_v31 = vpop.f32.mrf.mxu3  ;;  %v2211_v32 = vpop.f32.mrf.mxu0 }
 0x725   : > { %v8500_v33 = vmax.f32 %v4155_v31, 0.0  ;;  %v8505_v34 = vmax.f32 %v2211_v32, 0.0  ;;  %v2860_v35 = vpop.f32.mrf.mxu1 }
 0x726   : > { %v9655_v36 = vadd.f32 %v9654_v23, %v8499_v30  ;;  %v8506_v37 = vmax.f32 %v2860_v35, 0.0 }
 0x727   : > { %v9910_v38 = vadd.f32 %v9909_v25, %v8500_v33  ;;  %v9146_v39 = vadd.f32 %v9145_v26, %v8505_v34  ;;  %12125 = vmatmul.msk.bf16.gmra.mxu0 %vm1312_vm0, %v13153_v29  ;;  %12253 = vmatmul.msk.bf16.gmra.mxu1 %vm1312_vm0, %v13153_v29 }
 0x728   : > { %v9401_v40 = vadd.f32 %v9400_v27, %v8506_v37  ;;  %12381 = vmatmul.msk.bf16.gmra.mxu2 %vm1312_vm0, %v13153_v29 }
 0x729   : > { %12509 = vmatmul.msk.bf16.gmra.mxu3 %vm1312_vm0, %v13153_v29 }
 0x72b   : > { %v3509_v41 = vpop.f32.mrf.mxu2 }
 0x72c   : > { %v8507_v42 = vmax.f32 %v3509_v41, 0.0  ;;  %v4158_v43 = vpop.f32.mrf.mxu3  ;;  %v2213_v44 = vpop.f32.mrf.mxu0 }
 0x72d   : > { %v8508_v45 = vmax.f32 %v4158_v43, 0.0  ;;  %v8513_v46 = vmax.f32 %v2213_v44, 0.0  ;;  %v2862_v47 = vpop.f32.mrf.mxu1 }
 0x72e   : > { %v9656_v48 = vadd.f32 %v9655_v36, %v8507_v42  ;;  %v8514_v49 = vmax.f32 %v2862_v47, 0.0 }
 0x72f   : > { %v9911_v50 = vadd.f32 %v9910_v38, %v8508_v45  ;;  %v9147_v51 = vadd.f32 %v9146_v39, %v8513_v46 }
 0x730   : > { %v9402_v52 = vadd.f32 %v9401_v40, %v8514_v49  ;;  %v13156_v40 = vld [vmem:[%s13583_s29 + $0x380] sm:$0xff] }
 0x733   : > { %v3511_v53 = vpop.f32.mrf.mxu2 }
 0x734   : > { %v8515_v55 = vmax.f32 %v3511_v53, 0.0  ;;  %v4160_v56 = vpop.f32.mrf.mxu3  ;;  %v2216_v57 = vpop.f32.mrf.mxu0 }
 0x735   : > { %v8516_v58 = vmax.f32 %v4160_v56, 0.0  ;;  %v8521_v59 = vmax.f32 %v2216_v57, 0.0  ;;  %v2865_v60 = vpop.f32.mrf.mxu1 }
 0x736   : > { %v9657_v61 = vadd.f32 %v9656_v48, %v8515_v55  ;;  %v8522_v62 = vmax.f32 %v2865_v60, 0.0 }
 0x737   : > { %v9912_v63 = vadd.f32 %v9911_v50, %v8516_v58  ;;  %v9148_v0 = vadd.f32 %v9147_v51, %v8521_v59  ;;  %12126 = vmatmul.msk.bf16.gmra.mxu0 %vm1312_vm0, %v13154_v54  ;;  %12254 = vmatmul.msk.bf16.gmra.mxu1 %vm1312_vm0, %v13154_v54 }
 0x738   : > { %v9403_v1 = vadd.f32 %v9402_v52, %v8522_v62  ;;  %12382 = vmatmul.msk.bf16.gmra.mxu2 %vm1312_vm0, %v13154_v54 }
 0x739   : > { %12510 = vmatmul.msk.bf16.gmra.mxu3 %vm1312_vm0, %v13154_v54 }
 0x73b   : > { %v3514_v2 = vpop.f32.mrf.mxu2 }
 0x73c   : > { %v8523_v3 = vmax.f32 %v3514_v2, 0.0  ;;  %v4163_v4 = vpop.f32.mrf.mxu3  ;;  %v2218_v5 = vpop.f32.mrf.mxu0 }
 0x73d   : > { %v8524_v6 = vmax.f32 %v4163_v4, 0.0  ;;  %v8529_v7 = vmax.f32 %v2218_v5, 0.0  ;;  %v2867_v8 = vpop.f32.mrf.mxu1 }
 0x73e   : > { %v9658_v9 = vadd.f32 %v9657_v61, %v8523_v3  ;;  %v8530_v10 = vmax.f32 %v2867_v8, 0.0 }
 0x73f   : > { %v9913_v11 = vadd.f32 %v9912_v63, %v8524_v6  ;;  %v9149_v12 = vadd.f32 %v9148_v0, %v8529_v7 }
 0x740   : > { %v9404_v13 = vadd.f32 %v9403_v1, %v8530_v10  ;;  %v13157_v1 = vld [vmem:[%s13583_s29 + $0x388] sm:$0xff] }
 0x743   : > { %v3516_v14 = vpop.f32.mrf.mxu2 }
 0x744   : > { %v8531_v16 = vmax.f32 %v3516_v14, 0.0  ;;  %v4165_v17 = vpop.f32.mrf.mxu3  ;;  %v2221_v18 = vpop.f32.mrf.mxu0 }
 0x745   : > { %v8532_v19 = vmax.f32 %v4165_v17, 0.0  ;;  %v8537_v20 = vmax.f32 %v2221_v18, 0.0  ;;  %v2870_v21 = vpop.f32.mrf.mxu1 }
 0x746   : > { %v9659_v22 = vadd.f32 %v9658_v9, %v8531_v16  ;;  %v8538_v23 = vmax.f32 %v2870_v21, 0.0 }
 0x747   : > { %v9914_v24 = vadd.f32 %v9913_v11, %v8532_v19  ;;  %v9150_v25 = vadd.f32 %v9149_v12, %v8537_v20  ;;  %12127 = vmatmul.msk.bf16.gmra.mxu0 %vm1312_vm0, %v13155_v15  ;;  %12255 = vmatmul.msk.bf16.gmra.mxu1 %vm1312_vm0, %v13155_v15 }
 0x748   : > { %v9405_v26 = vadd.f32 %v9404_v13, %v8538_v23  ;;  %12383 = vmatmul.msk.bf16.gmra.mxu2 %vm1312_vm0, %v13155_v15 }
 0x749   : > { %12511 = vmatmul.msk.bf16.gmra.mxu3 %vm1312_vm0, %v13155_v15 }
 0x74b   : > { %v3519_v27 = vpop.f32.mrf.mxu2 }
 0x74c   : > { %v8539_v28 = vmax.f32 %v3519_v27, 0.0  ;;  %v4168_v29 = vpop.f32.mrf.mxu3  ;;  %v2223_v30 = vpop.f32.mrf.mxu0 }
 0x74d   : > { %v8540_v31 = vmax.f32 %v4168_v29, 0.0  ;;  %v8545_v32 = vmax.f32 %v2223_v30, 0.0  ;;  %v2872_v33 = vpop.f32.mrf.mxu1 }
 0x74e   : > { %v9660_v34 = vadd.f32 %v9659_v22, %v8539_v28  ;;  %v8546_v35 = vmax.f32 %v2872_v33, 0.0 }
 0x74f   : > { %v9915_v36 = vadd.f32 %v9914_v24, %v8540_v31  ;;  %v9151_v37 = vadd.f32 %v9150_v25, %v8545_v32 }
 0x750   : > { %v9406_v38 = vadd.f32 %v9405_v26, %v8546_v35  ;;  %v13158_v26 = vld [vmem:[%s13583_s29 + $0x390] sm:$0xff] }
 0x753   : > { %v3521_v39 = vpop.f32.mrf.mxu2 }
 0x754   : > { %v8547_v41 = vmax.f32 %v3521_v39, 0.0  ;;  %v4170_v42 = vpop.f32.mrf.mxu3  ;;  %v2226_v43 = vpop.f32.mrf.mxu0 }
 0x755   : > { %v8548_v44 = vmax.f32 %v4170_v42, 0.0  ;;  %v8553_v45 = vmax.f32 %v2226_v43, 0.0  ;;  %v2875_v46 = vpop.f32.mrf.mxu1 }
 0x756   : > { %v9661_v47 = vadd.f32 %v9660_v34, %v8547_v41  ;;  %v8554_v48 = vmax.f32 %v2875_v46, 0.0 }
 0x757   : > { %v9916_v49 = vadd.f32 %v9915_v36, %v8548_v44  ;;  %v9152_v50 = vadd.f32 %v9151_v37, %v8553_v45  ;;  %12128 = vmatmul.msk.bf16.gmra.mxu0 %vm1312_vm0, %v13156_v40  ;;  %12256 = vmatmul.msk.bf16.gmra.mxu1 %vm1312_vm0, %v13156_v40 }
 0x758   : > { %v9407_v51 = vadd.f32 %v9406_v38, %v8554_v48  ;;  %12384 = vmatmul.msk.bf16.gmra.mxu2 %vm1312_vm0, %v13156_v40 }
 0x759   : > { %12512 = vmatmul.msk.bf16.gmra.mxu3 %vm1312_vm0, %v13156_v40 }
 0x75b   : > { %v3524_v52 = vpop.f32.mrf.mxu2 }
 0x75c   : > { %v8555_v53 = vmax.f32 %v3524_v52, 0.0  ;;  %v4173_v54 = vpop.f32.mrf.mxu3  ;;  %v2228_v55 = vpop.f32.mrf.mxu0 }
 0x75d   : > { %v8556_v56 = vmax.f32 %v4173_v54, 0.0  ;;  %v8561_v57 = vmax.f32 %v2228_v55, 0.0  ;;  %v2877_v58 = vpop.f32.mrf.mxu1 }
 0x75e   : > { %v9662_v59 = vadd.f32 %v9661_v47, %v8555_v53  ;;  %v8562_v60 = vmax.f32 %v2877_v58, 0.0 }
 0x75f   : > { %v9917_v61 = vadd.f32 %v9916_v49, %v8556_v56  ;;  %v9153_v62 = vadd.f32 %v9152_v50, %v8561_v57 }
 0x760   : > { %v9408_v63 = vadd.f32 %v9407_v51, %v8562_v60  ;;  %v13159_v51 = vld [vmem:[%s13583_s29 + $0x398] sm:$0xff] }
 0x763   : > { %v3526_v0 = vpop.f32.mrf.mxu2 }
 0x764   : > { %v8563_v2 = vmax.f32 %v3526_v0, 0.0  ;;  %v4175_v3 = vpop.f32.mrf.mxu3  ;;  %v2231_v4 = vpop.f32.mrf.mxu0 }
 0x765   : > { %v8564_v5 = vmax.f32 %v4175_v3, 0.0  ;;  %v8569_v6 = vmax.f32 %v2231_v4, 0.0  ;;  %v2880_v7 = vpop.f32.mrf.mxu1 }
 0x766   : > { %v9663_v8 = vadd.f32 %v9662_v59, %v8563_v2  ;;  %v8570_v9 = vmax.f32 %v2880_v7, 0.0 }
 0x767   : > { %v9918_v10 = vadd.f32 %v9917_v61, %v8564_v5  ;;  %v9154_v11 = vadd.f32 %v9153_v62, %v8569_v6  ;;  %12129 = vmatmul.msk.bf16.gmra.mxu0 %vm1312_vm0, %v13157_v1  ;;  %12257 = vmatmul.msk.bf16.gmra.mxu1 %vm1312_vm0, %v13157_v1 }
 0x768   : > { %v9409_v12 = vadd.f32 %v9408_v63, %v8570_v9  ;;  %12385 = vmatmul.msk.bf16.gmra.mxu2 %vm1312_vm0, %v13157_v1 }
 0x769   : > { %12513 = vmatmul.msk.bf16.gmra.mxu3 %vm1312_vm0, %v13157_v1 }
 0x76b   : > { %v3529_v13 = vpop.f32.mrf.mxu2 }
 0x76c   : > { %v8571_v14 = vmax.f32 %v3529_v13, 0.0  ;;  %v4178_v15 = vpop.f32.mrf.mxu3  ;;  %v2233_v16 = vpop.f32.mrf.mxu0 }
 0x76d   : > { %v8572_v17 = vmax.f32 %v4178_v15, 0.0  ;;  %v8577_v18 = vmax.f32 %v2233_v16, 0.0  ;;  %v2882_v19 = vpop.f32.mrf.mxu1 }
 0x76e   : > { %v9664_v20 = vadd.f32 %v9663_v8, %v8571_v14  ;;  %v8578_v21 = vmax.f32 %v2882_v19, 0.0 }
 0x76f   : > { %v9919_v22 = vadd.f32 %v9918_v10, %v8572_v17  ;;  %v9155_v23 = vadd.f32 %v9154_v11, %v8577_v18 }
 0x770   : > { %v9410_v24 = vadd.f32 %v9409_v12, %v8578_v21  ;;  %v13160_v12 = vld [vmem:[%s13583_s29 + $0x3a0] sm:$0xff] }
 0x773   : > { %v3531_v25 = vpop.f32.mrf.mxu2 }
 0x774   : > { %v8579_v27 = vmax.f32 %v3531_v25, 0.0  ;;  %v4180_v28 = vpop.f32.mrf.mxu3  ;;  %v2236_v29 = vpop.f32.mrf.mxu0 }
 0x775   : > { %v8580_v30 = vmax.f32 %v4180_v28, 0.0  ;;  %v8585_v31 = vmax.f32 %v2236_v29, 0.0  ;;  %v2885_v32 = vpop.f32.mrf.mxu1 }
 0x776   : > { %v9665_v33 = vadd.f32 %v9664_v20, %v8579_v27  ;;  %v8586_v34 = vmax.f32 %v2885_v32, 0.0 }
 0x777   : > { %v9920_v35 = vadd.f32 %v9919_v22, %v8580_v30  ;;  %v9156_v36 = vadd.f32 %v9155_v23, %v8585_v31  ;;  %12130 = vmatmul.msk.bf16.gmra.mxu0 %vm1312_vm0, %v13158_v26  ;;  %12258 = vmatmul.msk.bf16.gmra.mxu1 %vm1312_vm0, %v13158_v26 }
 0x778   : > { %v9411_v37 = vadd.f32 %v9410_v24, %v8586_v34  ;;  %12386 = vmatmul.msk.bf16.gmra.mxu2 %vm1312_vm0, %v13158_v26 }
 0x779   : > { %12514 = vmatmul.msk.bf16.gmra.mxu3 %vm1312_vm0, %v13158_v26 }
 0x77b   : > { %v3534_v38 = vpop.f32.mrf.mxu2 }
 0x77c   : > { %v8587_v39 = vmax.f32 %v3534_v38, 0.0  ;;  %v4183_v40 = vpop.f32.mrf.mxu3  ;;  %v2238_v41 = vpop.f32.mrf.mxu0 }
 0x77d   : > { %v8588_v42 = vmax.f32 %v4183_v40, 0.0  ;;  %v8593_v43 = vmax.f32 %v2238_v41, 0.0  ;;  %v2887_v44 = vpop.f32.mrf.mxu1 }
 0x77e   : > { %v9666_v45 = vadd.f32 %v9665_v33, %v8587_v39  ;;  %v8594_v46 = vmax.f32 %v2887_v44, 0.0 }
 0x77f   : > { %v9921_v47 = vadd.f32 %v9920_v35, %v8588_v42  ;;  %v9157_v48 = vadd.f32 %v9156_v36, %v8593_v43 }
 0x780   : > { %v9412_v49 = vadd.f32 %v9411_v37, %v8594_v46  ;;  %v13161_v37 = vld [vmem:[%s13583_s29 + $0x3a8] sm:$0xff] }
 0x783   : > { %v3536_v50 = vpop.f32.mrf.mxu2 }
 0x784   : > { %v8595_v52 = vmax.f32 %v3536_v50, 0.0  ;;  %v4185_v53 = vpop.f32.mrf.mxu3  ;;  %v2241_v54 = vpop.f32.mrf.mxu0 }
 0x785   : > { %v8596_v55 = vmax.f32 %v4185_v53, 0.0  ;;  %v8601_v56 = vmax.f32 %v2241_v54, 0.0  ;;  %v2890_v57 = vpop.f32.mrf.mxu1 }
 0x786   : > { %v9667_v58 = vadd.f32 %v9666_v45, %v8595_v52  ;;  %v8602_v59 = vmax.f32 %v2890_v57, 0.0 }
 0x787   : > { %v9922_v60 = vadd.f32 %v9921_v47, %v8596_v55  ;;  %v9158_v61 = vadd.f32 %v9157_v48, %v8601_v56  ;;  %12131 = vmatmul.msk.bf16.gmra.mxu0 %vm1312_vm0, %v13159_v51  ;;  %12259 = vmatmul.msk.bf16.gmra.mxu1 %vm1312_vm0, %v13159_v51 }
 0x788   : > { %v9413_v62 = vadd.f32 %v9412_v49, %v8602_v59  ;;  %12387 = vmatmul.msk.bf16.gmra.mxu2 %vm1312_vm0, %v13159_v51 }
 0x789   : > { %12515 = vmatmul.msk.bf16.gmra.mxu3 %vm1312_vm0, %v13159_v51 }
 0x78b   : > { %v3539_v63 = vpop.f32.mrf.mxu2 }
 0x78c   : > { %v8603_v0 = vmax.f32 %v3539_v63, 0.0  ;;  %v4188_v1 = vpop.f32.mrf.mxu3  ;;  %v2243_v2 = vpop.f32.mrf.mxu0 }
 0x78d   : > { %v8604_v3 = vmax.f32 %v4188_v1, 0.0  ;;  %v8609_v4 = vmax.f32 %v2243_v2, 0.0  ;;  %v2892_v5 = vpop.f32.mrf.mxu1 }
 0x78e   : > { %v9668_v6 = vadd.f32 %v9667_v58, %v8603_v0  ;;  %v8610_v7 = vmax.f32 %v2892_v5, 0.0 }
 0x78f   : > { %v9923_v8 = vadd.f32 %v9922_v60, %v8604_v3  ;;  %v9159_v9 = vadd.f32 %v9158_v61, %v8609_v4 }
 0x790   : > { %v9414_v10 = vadd.f32 %v9413_v62, %v8610_v7  ;;  %v13162_v62 = vld [vmem:[%s13583_s29 + $0x3b0] sm:$0xff] }
 0x793   : > { %v3541_v11 = vpop.f32.mrf.mxu2 }
 0x794   : > { %v8611_v13 = vmax.f32 %v3541_v11, 0.0  ;;  %v4190_v14 = vpop.f32.mrf.mxu3  ;;  %v2246_v15 = vpop.f32.mrf.mxu0 }
 0x795   : > { %v8612_v16 = vmax.f32 %v4190_v14, 0.0  ;;  %v8617_v17 = vmax.f32 %v2246_v15, 0.0  ;;  %v2895_v18 = vpop.f32.mrf.mxu1 }
 0x796   : > { %v9669_v19 = vadd.f32 %v9668_v6, %v8611_v13  ;;  %v8618_v20 = vmax.f32 %v2895_v18, 0.0 }
 0x797   : > { %v9924_v21 = vadd.f32 %v9923_v8, %v8612_v16  ;;  %v9160_v22 = vadd.f32 %v9159_v9, %v8617_v17  ;;  %12132 = vmatmul.msk.bf16.gmra.mxu0 %vm1312_vm0, %v13160_v12  ;;  %12260 = vmatmul.msk.bf16.gmra.mxu1 %vm1312_vm0, %v13160_v12 }
 0x798   : > { %v9415_v23 = vadd.f32 %v9414_v10, %v8618_v20  ;;  %12388 = vmatmul.msk.bf16.gmra.mxu2 %vm1312_vm0, %v13160_v12 }
 0x799   : > { %12516 = vmatmul.msk.bf16.gmra.mxu3 %vm1312_vm0, %v13160_v12 }
 0x79b   : > { %v3544_v24 = vpop.f32.mrf.mxu2 }
 0x79c   : > { %v8619_v25 = vmax.f32 %v3544_v24, 0.0  ;;  %v4193_v26 = vpop.f32.mrf.mxu3  ;;  %v2248_v27 = vpop.f32.mrf.mxu0 }
 0x79d   : > { %v8620_v28 = vmax.f32 %v4193_v26, 0.0  ;;  %v8625_v29 = vmax.f32 %v2248_v27, 0.0  ;;  %v2897_v30 = vpop.f32.mrf.mxu1 }
 0x79e   : > { %v9670_v31 = vadd.f32 %v9669_v19, %v8619_v25  ;;  %v8626_v32 = vmax.f32 %v2897_v30, 0.0 }
 0x79f   : > { %v9925_v33 = vadd.f32 %v9924_v21, %v8620_v28  ;;  %v9161_v34 = vadd.f32 %v9160_v22, %v8625_v29 }
 0x7a0   : > { %v9416_v35 = vadd.f32 %v9415_v23, %v8626_v32  ;;  %v13163_v23 = vld [vmem:[%s13583_s29 + $0x3b8] sm:$0xff] }
 0x7a3   : > { %v3546_v36 = vpop.f32.mrf.mxu2 }
 0x7a4   : > { %v8627_v38 = vmax.f32 %v3546_v36, 0.0  ;;  %v4195_v39 = vpop.f32.mrf.mxu3  ;;  %v2251_v40 = vpop.f32.mrf.mxu0 }
 0x7a5   : > { %v8628_v41 = vmax.f32 %v4195_v39, 0.0  ;;  %v8633_v42 = vmax.f32 %v2251_v40, 0.0  ;;  %v2900_v43 = vpop.f32.mrf.mxu1 }
 0x7a6   : > { %v9671_v44 = vadd.f32 %v9670_v31, %v8627_v38  ;;  %v8634_v45 = vmax.f32 %v2900_v43, 0.0 }
 0x7a7   : > { %v9926_v46 = vadd.f32 %v9925_v33, %v8628_v41  ;;  %v9162_v47 = vadd.f32 %v9161_v34, %v8633_v42  ;;  %12133 = vmatmul.msk.bf16.gmra.mxu0 %vm1312_vm0, %v13161_v37  ;;  %12261 = vmatmul.msk.bf16.gmra.mxu1 %vm1312_vm0, %v13161_v37 }
 0x7a8   : > { %v9417_v48 = vadd.f32 %v9416_v35, %v8634_v45  ;;  %12389 = vmatmul.msk.bf16.gmra.mxu2 %vm1312_vm0, %v13161_v37 }
 0x7a9   : > { %12517 = vmatmul.msk.bf16.gmra.mxu3 %vm1312_vm0, %v13161_v37 }
 0x7ab   : > { %v3549_v49 = vpop.f32.mrf.mxu2 }
 0x7ac   : > { %v8635_v50 = vmax.f32 %v3549_v49, 0.0  ;;  %v4198_v51 = vpop.f32.mrf.mxu3  ;;  %v2253_v52 = vpop.f32.mrf.mxu0 }
 0x7ad   : > { %v8636_v53 = vmax.f32 %v4198_v51, 0.0  ;;  %v8641_v54 = vmax.f32 %v2253_v52, 0.0  ;;  %v2902_v55 = vpop.f32.mrf.mxu1 }
 0x7ae   : > { %v9672_v56 = vadd.f32 %v9671_v44, %v8635_v50  ;;  %v8642_v57 = vmax.f32 %v2902_v55, 0.0 }
 0x7af   : > { %v9927_v58 = vadd.f32 %v9926_v46, %v8636_v53  ;;  %v9163_v59 = vadd.f32 %v9162_v47, %v8641_v54 }
 0x7b0   : > { %v9418_v60 = vadd.f32 %v9417_v48, %v8642_v57  ;;  %v13164_v48 = vld [vmem:[%s13583_s29 + $0x3c0] sm:$0xff] }
 0x7b3   : > { %v3551_v61 = vpop.f32.mrf.mxu2 }
 0x7b4   : > { %v8643_v63 = vmax.f32 %v3551_v61, 0.0  ;;  %v4200_v0 = vpop.f32.mrf.mxu3  ;;  %v2256_v1 = vpop.f32.mrf.mxu0 }
 0x7b5   : > { %v8644_v2 = vmax.f32 %v4200_v0, 0.0  ;;  %v8649_v3 = vmax.f32 %v2256_v1, 0.0  ;;  %v2905_v4 = vpop.f32.mrf.mxu1 }
 0x7b6   : > { %v9673_v5 = vadd.f32 %v9672_v56, %v8643_v63  ;;  %v8650_v6 = vmax.f32 %v2905_v4, 0.0 }
 0x7b7   : > { %v9928_v7 = vadd.f32 %v9927_v58, %v8644_v2  ;;  %v9164_v8 = vadd.f32 %v9163_v59, %v8649_v3  ;;  %12134 = vmatmul.msk.bf16.gmra.mxu0 %vm1312_vm0, %v13162_v62  ;;  %12262 = vmatmul.msk.bf16.gmra.mxu1 %vm1312_vm0, %v13162_v62 }
 0x7b8   : > { %v9419_v9 = vadd.f32 %v9418_v60, %v8650_v6  ;;  %12390 = vmatmul.msk.bf16.gmra.mxu2 %vm1312_vm0, %v13162_v62 }
 0x7b9   : > { %12518 = vmatmul.msk.bf16.gmra.mxu3 %vm1312_vm0, %v13162_v62 }
 0x7bb   : > { %v3554_v10 = vpop.f32.mrf.mxu2 }
 0x7bc   : > { %v8651_v11 = vmax.f32 %v3554_v10, 0.0  ;;  %v4203_v12 = vpop.f32.mrf.mxu3  ;;  %v2258_v13 = vpop.f32.mrf.mxu0 }
 0x7bd   : > { %v8652_v14 = vmax.f32 %v4203_v12, 0.0  ;;  %v8657_v15 = vmax.f32 %v2258_v13, 0.0  ;;  %v2907_v16 = vpop.f32.mrf.mxu1 }
 0x7be   : > { %v9674_v17 = vadd.f32 %v9673_v5, %v8651_v11  ;;  %v8658_v18 = vmax.f32 %v2907_v16, 0.0 }
 0x7bf   : > { %v9929_v19 = vadd.f32 %v9928_v7, %v8652_v14  ;;  %v9165_v20 = vadd.f32 %v9164_v8, %v8657_v15 }
 0x7c0   : > { %v9420_v21 = vadd.f32 %v9419_v9, %v8658_v18  ;;  %v13165_v9 = vld [vmem:[%s13583_s29 + $0x3c8] sm:$0xff] }
 0x7c3   : > { %v3556_v22 = vpop.f32.mrf.mxu2 }
 0x7c4   : > { %v8659_v24 = vmax.f32 %v3556_v22, 0.0  ;;  %v4205_v25 = vpop.f32.mrf.mxu3  ;;  %v2261_v26 = vpop.f32.mrf.mxu0 }
 0x7c5   : > { %v8660_v27 = vmax.f32 %v4205_v25, 0.0  ;;  %v8665_v28 = vmax.f32 %v2261_v26, 0.0  ;;  %v2910_v29 = vpop.f32.mrf.mxu1 }
 0x7c6   : > { %v9675_v30 = vadd.f32 %v9674_v17, %v8659_v24  ;;  %v8666_v31 = vmax.f32 %v2910_v29, 0.0 }
 0x7c7   : > { %v9930_v32 = vadd.f32 %v9929_v19, %v8660_v27  ;;  %v9166_v33 = vadd.f32 %v9165_v20, %v8665_v28  ;;  %12135 = vmatmul.msk.bf16.gmra.mxu0 %vm1312_vm0, %v13163_v23  ;;  %12263 = vmatmul.msk.bf16.gmra.mxu1 %vm1312_vm0, %v13163_v23 }
 0x7c8   : > { %v9421_v34 = vadd.f32 %v9420_v21, %v8666_v31  ;;  %12391 = vmatmul.msk.bf16.gmra.mxu2 %vm1312_vm0, %v13163_v23 }
 0x7c9   : > { %12519 = vmatmul.msk.bf16.gmra.mxu3 %vm1312_vm0, %v13163_v23 }
 0x7cb   : > { %v3559_v35 = vpop.f32.mrf.mxu2 }
 0x7cc   : > { %v8667_v36 = vmax.f32 %v3559_v35, 0.0  ;;  %v4208_v37 = vpop.f32.mrf.mxu3  ;;  %v2263_v38 = vpop.f32.mrf.mxu0 }
 0x7cd   : > { %v8668_v39 = vmax.f32 %v4208_v37, 0.0  ;;  %v8673_v40 = vmax.f32 %v2263_v38, 0.0  ;;  %v2912_v41 = vpop.f32.mrf.mxu1 }
 0x7ce   : > { %v9676_v42 = vadd.f32 %v9675_v30, %v8667_v36  ;;  %v8674_v43 = vmax.f32 %v2912_v41, 0.0 }
 0x7cf   : > { %v9931_v44 = vadd.f32 %v9930_v32, %v8668_v39  ;;  %v9167_v45 = vadd.f32 %v9166_v33, %v8673_v40 }
 0x7d0   : > { %v9422_v46 = vadd.f32 %v9421_v34, %v8674_v43  ;;  %v13166_v34 = vld [vmem:[%s13583_s29 + $0x3d0] sm:$0xff] }
 0x7d3   : > { %v3561_v47 = vpop.f32.mrf.mxu2 }
 0x7d4   : > { %v8675_v49 = vmax.f32 %v3561_v47, 0.0  ;;  %v4210_v50 = vpop.f32.mrf.mxu3  ;;  %v2266_v51 = vpop.f32.mrf.mxu0 }
 0x7d5   : > { %v8676_v52 = vmax.f32 %v4210_v50, 0.0  ;;  %v8681_v53 = vmax.f32 %v2266_v51, 0.0  ;;  %v2915_v54 = vpop.f32.mrf.mxu1 }
 0x7d6   : > { %v9677_v55 = vadd.f32 %v9676_v42, %v8675_v49  ;;  %v8682_v56 = vmax.f32 %v2915_v54, 0.0 }
 0x7d7   : > { %v9932_v57 = vadd.f32 %v9931_v44, %v8676_v52  ;;  %v9168_v58 = vadd.f32 %v9167_v45, %v8681_v53  ;;  %12136 = vmatmul.msk.bf16.gmra.mxu0 %vm1312_vm0, %v13164_v48  ;;  %12264 = vmatmul.msk.bf16.gmra.mxu1 %vm1312_vm0, %v13164_v48 }
 0x7d8   : > { %v9423_v59 = vadd.f32 %v9422_v46, %v8682_v56  ;;  %12392 = vmatmul.msk.bf16.gmra.mxu2 %vm1312_vm0, %v13164_v48 }
 0x7d9   : > { %12520 = vmatmul.msk.bf16.gmra.mxu3 %vm1312_vm0, %v13164_v48 }
 0x7db   : > { %v3564_v60 = vpop.f32.mrf.mxu2 }
 0x7dc   : > { %v8683_v61 = vmax.f32 %v3564_v60, 0.0  ;;  %v4213_v62 = vpop.f32.mrf.mxu3  ;;  %v2268_v63 = vpop.f32.mrf.mxu0 }
 0x7dd   : > { %v8684_v0 = vmax.f32 %v4213_v62, 0.0  ;;  %v8689_v1 = vmax.f32 %v2268_v63, 0.0  ;;  %v2917_v2 = vpop.f32.mrf.mxu1 }
 0x7de   : > { %v9678_v3 = vadd.f32 %v9677_v55, %v8683_v61  ;;  %v8690_v4 = vmax.f32 %v2917_v2, 0.0 }
 0x7df   : > { %v9933_v5 = vadd.f32 %v9932_v57, %v8684_v0  ;;  %v9169_v6 = vadd.f32 %v9168_v58, %v8689_v1 }
 0x7e0   : > { %v9424_v7 = vadd.f32 %v9423_v59, %v8690_v4  ;;  %v13167_v59 = vld [vmem:[%s13583_s29 + $0x3d8] sm:$0xff] }
 0x7e3   : > { %v3566_v8 = vpop.f32.mrf.mxu2 }
 0x7e4   : > { %v8691_v10 = vmax.f32 %v3566_v8, 0.0  ;;  %v4215_v11 = vpop.f32.mrf.mxu3  ;;  %v2271_v12 = vpop.f32.mrf.mxu0 }
 0x7e5   : > { %v8692_v13 = vmax.f32 %v4215_v11, 0.0  ;;  %v8697_v14 = vmax.f32 %v2271_v12, 0.0  ;;  %v2920_v15 = vpop.f32.mrf.mxu1 }
 0x7e6   : > { %v9679_v16 = vadd.f32 %v9678_v3, %v8691_v10  ;;  %v8698_v17 = vmax.f32 %v2920_v15, 0.0 }
 0x7e7   : > { %v9934_v18 = vadd.f32 %v9933_v5, %v8692_v13  ;;  %v9170_v19 = vadd.f32 %v9169_v6, %v8697_v14  ;;  %12137 = vmatmul.msk.bf16.gmra.mxu0 %vm1312_vm0, %v13165_v9  ;;  %12265 = vmatmul.msk.bf16.gmra.mxu1 %vm1312_vm0, %v13165_v9 }
 0x7e8   : > { %v9425_v20 = vadd.f32 %v9424_v7, %v8698_v17  ;;  %12393 = vmatmul.msk.bf16.gmra.mxu2 %vm1312_vm0, %v13165_v9 }
 0x7e9   : > { %12521 = vmatmul.msk.bf16.gmra.mxu3 %vm1312_vm0, %v13165_v9 }
 0x7eb   : > { %v3569_v21 = vpop.f32.mrf.mxu2 }
 0x7ec   : > { %v8699_v22 = vmax.f32 %v3569_v21, 0.0  ;;  %v4218_v23 = vpop.f32.mrf.mxu3  ;;  %v2273_v24 = vpop.f32.mrf.mxu0 }
 0x7ed   : > { %v8700_v25 = vmax.f32 %v4218_v23, 0.0  ;;  %v8705_v26 = vmax.f32 %v2273_v24, 0.0  ;;  %v2922_v27 = vpop.f32.mrf.mxu1 }
 0x7ee   : > { %v9680_v28 = vadd.f32 %v9679_v16, %v8699_v22  ;;  %v8706_v29 = vmax.f32 %v2922_v27, 0.0 }
 0x7ef   : > { %v9935_v30 = vadd.f32 %v9934_v18, %v8700_v25  ;;  %v9171_v31 = vadd.f32 %v9170_v19, %v8705_v26 }
 0x7f0   : > { %v9426_v32 = vadd.f32 %v9425_v20, %v8706_v29  ;;  %v13168_v20 = vld [vmem:[%s13583_s29 + $0x3e0] sm:$0xff] }
 0x7f3   : > { %v3571_v33 = vpop.f32.mrf.mxu2 }
 0x7f4   : > { %v8707_v35 = vmax.f32 %v3571_v33, 0.0  ;;  %v4220_v36 = vpop.f32.mrf.mxu3  ;;  %v2276_v37 = vpop.f32.mrf.mxu0 }
 0x7f5   : > { %v8708_v38 = vmax.f32 %v4220_v36, 0.0  ;;  %v8713_v39 = vmax.f32 %v2276_v37, 0.0  ;;  %v2925_v40 = vpop.f32.mrf.mxu1 }
 0x7f6   : > { %v9681_v41 = vadd.f32 %v9680_v28, %v8707_v35  ;;  %v8714_v42 = vmax.f32 %v2925_v40, 0.0 }
 0x7f7   : > { %v9936_v43 = vadd.f32 %v9935_v30, %v8708_v38  ;;  %v9172_v44 = vadd.f32 %v9171_v31, %v8713_v39  ;;  %12138 = vmatmul.msk.bf16.gmra.mxu0 %vm1312_vm0, %v13166_v34  ;;  %12266 = vmatmul.msk.bf16.gmra.mxu1 %vm1312_vm0, %v13166_v34 }
 0x7f8   : > { %v9427_v45 = vadd.f32 %v9426_v32, %v8714_v42  ;;  %12394 = vmatmul.msk.bf16.gmra.mxu2 %vm1312_vm0, %v13166_v34 }
 0x7f9   : > { %12522 = vmatmul.msk.bf16.gmra.mxu3 %vm1312_vm0, %v13166_v34 }
 0x7fb   : > { %v3574_v46 = vpop.f32.mrf.mxu2 }
 0x7fc   : > { %v8715_v47 = vmax.f32 %v3574_v46, 0.0  ;;  %v4223_v48 = vpop.f32.mrf.mxu3  ;;  %v2278_v49 = vpop.f32.mrf.mxu0 }
 0x7fd   : > { %v8716_v50 = vmax.f32 %v4223_v48, 0.0  ;;  %v8721_v51 = vmax.f32 %v2278_v49, 0.0  ;;  %v2927_v52 = vpop.f32.mrf.mxu1 }
 0x7fe   : > { %v9682_v53 = vadd.f32 %v9681_v41, %v8715_v47  ;;  %v8722_v54 = vmax.f32 %v2927_v52, 0.0 }
 0x7ff   : > { %v9937_v55 = vadd.f32 %v9936_v43, %v8716_v50  ;;  %v9173_v56 = vadd.f32 %v9172_v44, %v8721_v51 }
 0x800   : > { %v9428_v57 = vadd.f32 %v9427_v45, %v8722_v54  ;;  %v13169_v45 = vld [vmem:[%s13583_s29 + $0x3e8] sm:$0xff] }
 0x803   : > { %v3576_v58 = vpop.f32.mrf.mxu2 }
 0x804   : > { %v8723_v60 = vmax.f32 %v3576_v58, 0.0  ;;  %v4225_v61 = vpop.f32.mrf.mxu3  ;;  %v2281_v62 = vpop.f32.mrf.mxu0 }
 0x805   : > { %v8724_v63 = vmax.f32 %v4225_v61, 0.0  ;;  %v8729_v0 = vmax.f32 %v2281_v62, 0.0  ;;  %v2930_v1 = vpop.f32.mrf.mxu1 }
 0x806   : > { %v9683_v2 = vadd.f32 %v9682_v53, %v8723_v60  ;;  %v8730_v3 = vmax.f32 %v2930_v1, 0.0 }
 0x807   : > { %v9938_v4 = vadd.f32 %v9937_v55, %v8724_v63  ;;  %v9174_v5 = vadd.f32 %v9173_v56, %v8729_v0  ;;  %12139 = vmatmul.msk.bf16.gmra.mxu0 %vm1312_vm0, %v13167_v59  ;;  %12267 = vmatmul.msk.bf16.gmra.mxu1 %vm1312_vm0, %v13167_v59 }
 0x808   : > { %v9429_v6 = vadd.f32 %v9428_v57, %v8730_v3  ;;  %12395 = vmatmul.msk.bf16.gmra.mxu2 %vm1312_vm0, %v13167_v59 }
 0x809   : > { %12523 = vmatmul.msk.bf16.gmra.mxu3 %vm1312_vm0, %v13167_v59 }
 0x80b   : > { %v3579_v7 = vpop.f32.mrf.mxu2 }
 0x80c   : > { %v8731_v8 = vmax.f32 %v3579_v7, 0.0  ;;  %v4228_v9 = vpop.f32.mrf.mxu3  ;;  %v2283_v10 = vpop.f32.mrf.mxu0 }
 0x80d   : > { %v8732_v11 = vmax.f32 %v4228_v9, 0.0  ;;  %v8737_v12 = vmax.f32 %v2283_v10, 0.0  ;;  %v2932_v13 = vpop.f32.mrf.mxu1 }
 0x80e   : > { %v9684_v14 = vadd.f32 %v9683_v2, %v8731_v8  ;;  %v8738_v15 = vmax.f32 %v2932_v13, 0.0 }
 0x80f   : > { %v9939_v16 = vadd.f32 %v9938_v4, %v8732_v11  ;;  %v9175_v17 = vadd.f32 %v9174_v5, %v8737_v12 }
 0x810   : > { %v9430_v18 = vadd.f32 %v9429_v6, %v8738_v15  ;;  %v13170_v6 = vld [vmem:[%s13583_s29 + $0x3f0] sm:$0xff] }
 0x813   : > { %v3581_v19 = vpop.f32.mrf.mxu2 }
 0x814   : > { %v8739_v21 = vmax.f32 %v3581_v19, 0.0  ;;  %v4230_v22 = vpop.f32.mrf.mxu3  ;;  %v2286_v23 = vpop.f32.mrf.mxu0 }
 0x815   : > { %v8740_v24 = vmax.f32 %v4230_v22, 0.0  ;;  %v8745_v25 = vmax.f32 %v2286_v23, 0.0  ;;  %v2935_v26 = vpop.f32.mrf.mxu1 }
 0x816   : > { %v9685_v27 = vadd.f32 %v9684_v14, %v8739_v21  ;;  %v8746_v28 = vmax.f32 %v2935_v26, 0.0 }
 0x817   : > { %v9940_v29 = vadd.f32 %v9939_v16, %v8740_v24  ;;  %v9176_v30 = vadd.f32 %v9175_v17, %v8745_v25  ;;  %12140 = vmatmul.msk.bf16.gmra.mxu0 %vm1312_vm0, %v13168_v20  ;;  %12268 = vmatmul.msk.bf16.gmra.mxu1 %vm1312_vm0, %v13168_v20 }
 0x818   : > { %v9431_v31 = vadd.f32 %v9430_v18, %v8746_v28  ;;  %12396 = vmatmul.msk.bf16.gmra.mxu2 %vm1312_vm0, %v13168_v20 }
 0x819   : > { %12524 = vmatmul.msk.bf16.gmra.mxu3 %vm1312_vm0, %v13168_v20 }
 0x81b   : > { %v3584_v32 = vpop.f32.mrf.mxu2 }
 0x81c   : > { %v8747_v33 = vmax.f32 %v3584_v32, 0.0  ;;  %v4233_v34 = vpop.f32.mrf.mxu3  ;;  %v2288_v35 = vpop.f32.mrf.mxu0 }
 0x81d   : > { %v8748_v36 = vmax.f32 %v4233_v34, 0.0  ;;  %v8753_v37 = vmax.f32 %v2288_v35, 0.0  ;;  %v2937_v38 = vpop.f32.mrf.mxu1 }
 0x81e   : > { %v9686_v39 = vadd.f32 %v9685_v27, %v8747_v33  ;;  %v8754_v40 = vmax.f32 %v2937_v38, 0.0 }
 0x81f   : > { %v9941_v41 = vadd.f32 %v9940_v29, %v8748_v36  ;;  %v9177_v42 = vadd.f32 %v9176_v30, %v8753_v37 }
 0x820   : > { %v9432_v43 = vadd.f32 %v9431_v31, %v8754_v40  ;;  %v13171_v31 = vld [vmem:[%s13583_s29 + $0x3f8] sm:$0xff] }
 0x823   : > { %v3586_v44 = vpop.f32.mrf.mxu2 }
 0x824   : > { %v8755_v46 = vmax.f32 %v3586_v44, 0.0  ;;  %v4235_v47 = vpop.f32.mrf.mxu3  ;;  %v2291_v48 = vpop.f32.mrf.mxu0 }
 0x825   : > { %v8756_v49 = vmax.f32 %v4235_v47, 0.0  ;;  %v8761_v50 = vmax.f32 %v2291_v48, 0.0  ;;  %v2940_v51 = vpop.f32.mrf.mxu1 }
 0x826   : > { %v9687_v52 = vadd.f32 %v9686_v39, %v8755_v46  ;;  %v8762_v53 = vmax.f32 %v2940_v51, 0.0 }
 0x827   : > { %v9942_v54 = vadd.f32 %v9941_v41, %v8756_v49  ;;  %v9178_v55 = vadd.f32 %v9177_v42, %v8761_v50  ;;  %12141 = vmatmul.msk.bf16.gmra.mxu0 %vm1312_vm0, %v13169_v45  ;;  %12269 = vmatmul.msk.bf16.gmra.mxu1 %vm1312_vm0, %v13169_v45 }
 0x828   : > { %v9433_v56 = vadd.f32 %v9432_v43, %v8762_v53  ;;  %12397 = vmatmul.msk.bf16.gmra.mxu2 %vm1312_vm0, %v13169_v45 }
 0x829   : > { %12525 = vmatmul.msk.bf16.gmra.mxu3 %vm1312_vm0, %v13169_v45 }
 0x82b   : > { %v3589_v57 = vpop.f32.mrf.mxu2 }
 0x82c   : > { %v8763_v58 = vmax.f32 %v3589_v57, 0.0  ;;  %v4238_v59 = vpop.f32.mrf.mxu3  ;;  %v2293_v60 = vpop.f32.mrf.mxu0 }
 0x82d   : > { %v8764_v61 = vmax.f32 %v4238_v59, 0.0  ;;  %v8769_v62 = vmax.f32 %v2293_v60, 0.0  ;;  %v2942_v63 = vpop.f32.mrf.mxu1 }
 0x82e   : > { %v9688_v0 = vadd.f32 %v9687_v52, %v8763_v58  ;;  %v8770_v1 = vmax.f32 %v2942_v63, 0.0 }
 0x82f   : > { %v9943_v2 = vadd.f32 %v9942_v54, %v8764_v61  ;;  %v9179_v3 = vadd.f32 %v9178_v55, %v8769_v62 }
 0x830   : > { %v9434_v4 = vadd.f32 %v9433_v56, %v8770_v1 }
 0x833   : > { %v3591_v5 = vpop.f32.mrf.mxu2 }
 0x834   : > { %v8771_v7 = vmax.f32 %v3591_v5, 0.0  ;;  %v4240_v8 = vpop.f32.mrf.mxu3  ;;  %v2296_v9 = vpop.f32.mrf.mxu0 }
 0x835   : > { %v8772_v10 = vmax.f32 %v4240_v8, 0.0  ;;  %v8777_v11 = vmax.f32 %v2296_v9, 0.0  ;;  %v2945_v12 = vpop.f32.mrf.mxu1 }
 0x836   : > { %v9689_v13 = vadd.f32 %v9688_v0, %v8771_v7  ;;  %v8778_v14 = vmax.f32 %v2945_v12, 0.0 }
 0x837   : > { %v9944_v15 = vadd.f32 %v9943_v2, %v8772_v10  ;;  %v9180_v16 = vadd.f32 %v9179_v3, %v8777_v11  ;;  %12142 = vmatmul.msk.bf16.gmra.mxu0 %vm1312_vm0, %v13170_v6  ;;  %12270 = vmatmul.msk.bf16.gmra.mxu1 %vm1312_vm0, %v13170_v6  ;;  %v13262_v2 = vld [vmem:[%s13583_s29] sm:$0xff] }
 0x838   : > { %v9435_v17 = vadd.f32 %v9434_v4, %v8778_v14  ;;  %12398 = vmatmul.msk.bf16.gmra.mxu2 %vm1312_vm0, %v13170_v6 }
 0x839   : > { %12526 = vmatmul.msk.bf16.gmra.mxu3 %vm1312_vm0, %v13170_v6 }
 0x83b   : > { %v3594_v18 = vpop.f32.mrf.mxu2 }
 0x83c   : > { %v8779_v19 = vmax.f32 %v3594_v18, 0.0  ;;  %v4243_v20 = vpop.f32.mrf.mxu3  ;;  %v2298_v21 = vpop.f32.mrf.mxu0 }
 0x83d   : > { %v8780_v22 = vmax.f32 %v4243_v20, 0.0  ;;  %v8785_v23 = vmax.f32 %v2298_v21, 0.0  ;;  %v2947_v24 = vpop.f32.mrf.mxu1 }
 0x83e   : > { %v9690_v25 = vadd.f32 %v9689_v13, %v8779_v19  ;;  %v8786_v26 = vmax.f32 %v2947_v24, 0.0 }
 0x83f   : > { %v9945_v27 = vadd.f32 %v9944_v15, %v8780_v22  ;;  %v9181_v28 = vadd.f32 %v9180_v16, %v8785_v23 }
 0x840   : > { %v9436_v29 = vadd.f32 %v9435_v17, %v8786_v26 }
 0x843   : > { %v3596_v30 = vpop.f32.mrf.mxu2 }
 0x844   : > { %v8787_v32 = vmax.f32 %v3596_v30, 0.0  ;;  %v4245_v33 = vpop.f32.mrf.mxu3  ;;  %v2301_v34 = vpop.f32.mrf.mxu0 }
 0x845   : > { %v8788_v35 = vmax.f32 %v4245_v33, 0.0  ;;  %v8793_v36 = vmax.f32 %v2301_v34, 0.0  ;;  %v2950_v37 = vpop.f32.mrf.mxu1 }
 0x846   : > { %v9691_v38 = vadd.f32 %v9690_v25, %v8787_v32  ;;  %v8794_v39 = vmax.f32 %v2950_v37, 0.0 }
 0x847   : > { %v9946_v40 = vadd.f32 %v9945_v27, %v8788_v35  ;;  %v9182_v41 = vadd.f32 %v9181_v28, %v8793_v36  ;;  %12143 = vmatmul.msk.bf16.gmra.mxu0 %vm1312_vm0, %v13171_v31  ;;  %12271 = vmatmul.msk.bf16.gmra.mxu1 %vm1312_vm0, %v13171_v31  ;;  %v13263_v27 = vld [vmem:[%s13583_s29 + $0x8] sm:$0xff] }
 0x848   : > { %v9437_v42 = vadd.f32 %v9436_v29, %v8794_v39  ;;  %12399 = vmatmul.msk.bf16.gmra.mxu2 %vm1312_vm0, %v13171_v31 }
 0x849   : > { %12527 = vmatmul.msk.bf16.gmra.mxu3 %vm1312_vm0, %v13171_v31 }
 0x84b   : > { %v3599_v43 = vpop.f32.mrf.mxu2 }
 0x84c   : > { %v8795_v44 = vmax.f32 %v3599_v43, 0.0  ;;  %v4248_v45 = vpop.f32.mrf.mxu3  ;;  %v2303_v46 = vpop.f32.mrf.mxu0 }
 0x84d   : > { %v8796_v47 = vmax.f32 %v4248_v45, 0.0  ;;  %v8801_v48 = vmax.f32 %v2303_v46, 0.0  ;;  %v2952_v49 = vpop.f32.mrf.mxu1 }
 0x84e   : > { %v9692_v50 = vadd.f32 %v9691_v38, %v8795_v44  ;;  %v8802_v51 = vmax.f32 %v2952_v49, 0.0 }
 0x84f   : > { %v9947_v52 = vadd.f32 %v9946_v40, %v8796_v47  ;;  %v9183_v53 = vadd.f32 %v9182_v41, %v8801_v48 }
 0x850   : > { %v9438_v54 = vadd.f32 %v9437_v42, %v8802_v51 }
 0x853   : > { %v3601_v55 = vpop.f32.mrf.mxu2 }
 0x854   : > { %v8803_v56 = vmax.f32 %v3601_v55, 0.0  ;;  %v4250_v57 = vpop.f32.mrf.mxu3  ;;  %v2306_v58 = vpop.f32.mrf.mxu0 }
 0x855   : > { %v8804_v59 = vmax.f32 %v4250_v57, 0.0  ;;  %v8809_v60 = vmax.f32 %v2306_v58, 0.0  ;;  %v2955_v61 = vpop.f32.mrf.mxu1 }
 0x856   : > { %v9693_v62 = vadd.f32 %v9692_v50, %v8803_v56  ;;  %v8810_v63 = vmax.f32 %v2955_v61, 0.0 }
 0x857   : > { %v9948_v0 = vadd.f32 %v9947_v52, %v8804_v59  ;;  %v9184_v1 = vadd.f32 %v9183_v53, %v8809_v60  ;;  %12528 = vmatmul.msk.bf16.vlgmr.msrb.gmra.mxu0 %vm1312_vm0, %v13262_v2  ;;  %12656 = vmatmul.msk.bf16.vlgmr.msrb.gmra.mxu1 %vm1312_vm0, %v13262_v2  ;;  %v13264_v52 = vld [vmem:[%s13583_s29 + $0x10] sm:$0xff] }
 0x858   : > { %v9439_v3 = vadd.f32 %v9438_v54, %v8810_v63  ;;  %12784 = vmatmul.msk.bf16.vlgmr.msrb.gmra.mxu2 %vm1312_vm0, %v13262_v2 }
 0x859   : > { %12912 = vmatmul.msk.bf16.vlgmr.msrb.gmra.mxu3 %vm1312_vm0, %v13262_v2  ;;  %v13265_v2 = vld [vmem:[%s13583_s29 + $0x18] sm:$0xff] }
 0x85b   : > { %v3604_v4 = vpop.f32.mrf.mxu2 }
 0x85c   : > { %v8811_v5 = vmax.f32 %v3604_v4, 0.0  ;;  %v4253_v6 = vpop.f32.mrf.mxu3  ;;  %v2308_v7 = vpop.f32.mrf.mxu0 }
 0x85d   : > { %v8812_v8 = vmax.f32 %v4253_v6, 0.0  ;;  %v8817_v9 = vmax.f32 %v2308_v7, 0.0  ;;  %v2957_v10 = vpop.f32.mrf.mxu1 }
 0x85e   : > { %v9694_v11 = vadd.f32 %v9693_v62, %v8811_v5  ;;  %v8818_v12 = vmax.f32 %v2957_v10, 0.0 }
 0x85f   : > { %v9949_v13 = vadd.f32 %v9948_v0, %v8812_v8  ;;  %v9185_v14 = vadd.f32 %v9184_v1, %v8817_v9 }
 0x860   : > { %v9440_v15 = vadd.f32 %v9439_v3, %v8818_v12 }
 0x863   : > { %v3606_v16 = vpop.f32.mrf.mxu2 }
 0x864   : > { %v8819_v17 = vmax.f32 %v3606_v16, 0.0  ;;  %v4255_v18 = vpop.f32.mrf.mxu3  ;;  %v2311_v19 = vpop.f32.mrf.mxu0 }
 0x865   : > { %v8820_v20 = vmax.f32 %v4255_v18, 0.0  ;;  %v8825_v21 = vmax.f32 %v2311_v19, 0.0  ;;  %v2960_v22 = vpop.f32.mrf.mxu1 }
 0x866   : > { %v9695_v23 = vadd.f32 %v9694_v11, %v8819_v17  ;;  %v8826_v24 = vmax.f32 %v2960_v22, 0.0  ;;  %v13266_v11 = vld [vmem:[%s13583_s29 + $0x20] sm:$0xff] }
 0x867   : > { %v9950_v25 = vadd.f32 %v9949_v13, %v8820_v20  ;;  %v9186_v26 = vadd.f32 %v9185_v14, %v8825_v21  ;;  %12529 = vmatmul.msk.bf16.gmra.mxu0 %vm1312_vm0, %v13263_v27  ;;  %12657 = vmatmul.msk.bf16.gmra.mxu1 %vm1312_vm0, %v13263_v27  ;;  %v13267_v20 = vld [vmem:[%s13583_s29 + $0x28] sm:$0xff] }
 0x868   : > { %v9441_v28 = vadd.f32 %v9440_v15, %v8826_v24  ;;  %12785 = vmatmul.msk.bf16.gmra.mxu2 %vm1312_vm0, %v13263_v27 }
 0x869   : > { %12913 = vmatmul.msk.bf16.gmra.mxu3 %vm1312_vm0, %v13263_v27 }
 0x86b   : > { %v3609_v29 = vpop.f32.mrf.mxu2 }
 0x86c   : > { %v8827_v30 = vmax.f32 %v3609_v29, 0.0  ;;  %v4258_v31 = vpop.f32.mrf.mxu3  ;;  %v2313_v32 = vpop.f32.mrf.mxu0 }
 0x86d   : > { %v8828_v33 = vmax.f32 %v4258_v31, 0.0  ;;  %v8833_v34 = vmax.f32 %v2313_v32, 0.0  ;;  %v2962_v35 = vpop.f32.mrf.mxu1 }
 0x86e   : > { %v9696_v36 = vadd.f32 %v9695_v23, %v8827_v30  ;;  %v8834_v37 = vmax.f32 %v2962_v35, 0.0  ;;  %v13268_v30 = vld [vmem:[%s13583_s29 + $0x30] sm:$0xff] }
 0x86f   : > { %v9951_v38 = vadd.f32 %v9950_v25, %v8828_v33  ;;  %v9187_v39 = vadd.f32 %v9186_v26, %v8833_v34 }
 0x870   : > { %v9442_v40 = vadd.f32 %v9441_v28, %v8834_v37 }
 0x873   : > { %v3611_v41 = vpop.f32.mrf.mxu2 }
 0x874   : > { %v8835_v42 = vmax.f32 %v3611_v41, 0.0  ;;  %v4260_v43 = vpop.f32.mrf.mxu3  ;;  %v2316_v44 = vpop.f32.mrf.mxu0 }
 0x875   : > { %v8836_v45 = vmax.f32 %v4260_v43, 0.0  ;;  %v8841_v46 = vmax.f32 %v2316_v44, 0.0  ;;  %v2965_v47 = vpop.f32.mrf.mxu1 }
 0x876   : > { %v9697_v48 = vadd.f32 %v9696_v36, %v8835_v42  ;;  %v8842_v49 = vmax.f32 %v2965_v47, 0.0 }
 0x877   : > { %v9952_v50 = vadd.f32 %v9951_v38, %v8836_v45  ;;  %v14281_v51 = vadd.f32 %v9187_v39, %v8841_v46  ;;  %12530 = vmatmul.msk.bf16.gmra.mxu0 %vm1312_vm0, %v13264_v52  ;;  %12658 = vmatmul.msk.bf16.gmra.mxu1 %vm1312_vm0, %v13264_v52 }
 0x878   : > { %v14285_v53 = vadd.f32 %v9442_v40, %v8842_v49  ;;  %12786 = vmatmul.msk.bf16.gmra.mxu2 %vm1312_vm0, %v13264_v52 }
 0x879   : > { %12914 = vmatmul.msk.bf16.gmra.mxu3 %vm1312_vm0, %v13264_v52 }
 0x87b   : > { %v3614_v54 = vpop.f32.mrf.mxu2 }
 0x87c   : > { %v8843_v55 = vmax.f32 %v3614_v54, 0.0  ;;  %v4263_v56 = vpop.f32.mrf.mxu3  ;;  %v2318_v57 = vpop.f32.mrf.mxu0 }
 0x87d   : > { %v8844_v58 = vmax.f32 %v4263_v56, 0.0  ;;  %v2967_v59 = vpop.f32.mrf.mxu1  ;;  %v8849_v29 = vmax.f32 %v2318_v57, 0.0 }
 0x87e   : > { %v14290_v60 = vadd.f32 %v9697_v48, %v8843_v55  ;;  %v8850_v31 = vmax.f32 %v2967_v59, 0.0 }
 0x87f   : > { %v14292_v61 = vadd.f32 %v9952_v50, %v8844_v58  ;;  %v9189_v34 = vadd.f32 %v14281_v51, %v8849_v29  ;;  %v13269_v29 = vld [vmem:[%s13583_s29 + $0x38] sm:$0xff] }
 0x880   : > { %v9444_v37 = vadd.f32 %v14285_v53, %v8850_v31 }
 0x883   : > { %v14294_v62 = vpop.f32.mrf.mxu2 }
 0x884   : > { %v14296_v63 = vpop.f32.mrf.mxu3  ;;  %v2321_v0 = vpop.f32.mrf.mxu0  ;;  %v8851_v44 = vmax.f32 %v14294_v62, 0.0 }
 0x885   : > { %v2970_v1 = vpop.f32.mrf.mxu1  ;;  %v8857_v32 = vmax.f32 %v2321_v0, 0.0  ;;  %v8852_v47 = vmax.f32 %v14296_v63, 0.0 }
 0x886   : > { %v8858_v33 = vmax.f32 %v2970_v1, 0.0  ;;  %v9699_v56 = vadd.f32 %v14290_v60, %v8851_v44 }
 0x887   : > { %12531 = vmatmul.msk.bf16.gmra.mxu0 %vm1312_vm0, %v13265_v2  ;;  %12659 = vmatmul.msk.bf16.gmra.mxu1 %vm1312_vm0, %v13265_v2  ;;  %v9190_v41 = vadd.f32 %v9189_v34, %v8857_v32  ;;  %v9954_v62 = vadd.f32 %v14292_v61, %v8852_v47 }
 0x888   : > { %12787 = vmatmul.msk.bf16.gmra.mxu2 %vm1312_vm0, %v13265_v2  ;;  %v9445_v45 = vadd.f32 %v9444_v37, %v8858_v33 }
 0x889   : > { %12915 = vmatmul.msk.bf16.gmra.mxu3 %vm1312_vm0, %v13265_v2 }
 0x88b   : > { %v14303_v3 = vpop.f32.mrf.mxu2 }
 0x88c   : > { %v14305_v4 = vpop.f32.mrf.mxu3  ;;  %v2323_v5 = vpop.f32.mrf.mxu0  ;;  %v8859_v50 = vmax.f32 %v14303_v3, 0.0 }
 0x88d   : > { %v2972_v6 = vpop.f32.mrf.mxu1  ;;  %v8865_v35 = vmax.f32 %v2323_v5, 0.0  ;;  %v8860_v53 = vmax.f32 %v14305_v4, 0.0 }
 0x88e   : > { %v8866_v38 = vmax.f32 %v2972_v6, 0.0  ;;  %v9700_v3 = vadd.f32 %v9699_v56, %v8859_v50 }
 0x88f   : > { %v9191_v48 = vadd.f32 %v9190_v41, %v8865_v35 }
 0x890   : > { %v9446_v51 = vadd.f32 %v9445_v45, %v8866_v38 }
 0x893   : > { %v14307_v7 = vpop.f32.mrf.mxu2 }
 0x894   : > { %v14309_v8 = vpop.f32.mrf.mxu3  ;;  %v2326_v9 = vpop.f32.mrf.mxu0  ;;  %v8867_v57 = vmax.f32 %v14307_v7, 0.0 }
 0x895   : > { %v2975_v10 = vpop.f32.mrf.mxu1  ;;  %v8873_v42 = vmax.f32 %v2326_v9, 0.0  ;;  %v8868_v63 = vmax.f32 %v14309_v8, 0.0  ;;  %v9955_v9 = vadd.f32 %v9954_v62, %v8860_v53  ;;  %v8937_v53 = vld [vmem:[#allocation2 + $0x30] sm:$0xff] }
 0x896   : > { %v8874_v46 = vmax.f32 %v2975_v10, 0.0 }
 0x897   : > { %12532 = vmatmul.msk.bf16.gmra.mxu0 %vm1312_vm0, %v13266_v11  ;;  %12660 = vmatmul.msk.bf16.gmra.mxu1 %vm1312_vm0, %v13266_v11  ;;  %v9192_v54 = vadd.f32 %v9191_v48, %v8873_v42 }
 0x898   : > { %12788 = vmatmul.msk.bf16.gmra.mxu2 %vm1312_vm0, %v13266_v11  ;;  %v9447_v58 = vadd.f32 %v9446_v51, %v8874_v46 }
 0x899   : > { %12916 = vmatmul.msk.bf16.gmra.mxu3 %vm1312_vm0, %v13266_v11 }
 0x89b   : > { %v14316_v12 = vpop.f32.mrf.mxu2 }
 0x89c   : > { %v14318_v13 = vpop.f32.mrf.mxu3  ;;  %v2328_v14 = vpop.f32.mrf.mxu0  ;;  %v8875_v4 = vmax.f32 %v14316_v12, 0.0 }
 0x89d   : > { %v2977_v15 = vpop.f32.mrf.mxu1  ;;  %v8881_v49 = vmax.f32 %v2328_v14, 0.0  ;;  %v8876_v61 = vmax.f32 %v14318_v13, 0.0  ;;  %v9701_v14 = vadd.f32 %v9700_v3, %v8867_v57 }
 0x89e   : > { %v8882_v52 = vmax.f32 %v2977_v15, 0.0 }
 0x89f   : > { %v9193_v0 = vadd.f32 %v9192_v54, %v8881_v49  ;;  %v9702_v13 = vadd.f32 %v9701_v14, %v8875_v4 }
 0x8a0   : > { %v9448_v5 = vadd.f32 %v9447_v58, %v8882_v52 }
 0x8a3   : > { %v14320_v16 = vpop.f32.mrf.mxu2 }
 0x8a4   : > { %v14322_v17 = vpop.f32.mrf.mxu3  ;;  %v14324_v18 = vpop.f32.mrf.mxu0  ;;  %v8883_v15 = vmax.f32 %v14320_v16, 0.0 }
 0x8a5   : > { %v14326_v19 = vpop.f32.mrf.mxu1  ;;  %v8889_v55 = vmax.f32 %v14324_v18, 0.0 }
 0x8a6   : > { %v8890_v59 = vmax.f32 %v14326_v19, 0.0  ;;  %v9956_v19 = vadd.f32 %v9955_v9, %v8868_v63  ;;  %v9703_v33 = vadd.f32 %v9702_v13, %v8883_v15  ;;  %v8939_v9 = vld [vmem:[#allocation2 + $0x18] sm:$0xff]  ;;  %v13270_v15 = vld [vmem:[%s13583_s29 + $0x40] sm:$0xff] }
 0x8a7   : > { %12533 = vmatmul.msk.bf16.gmra.mxu0 %vm1312_vm0, %v13267_v20  ;;  %12661 = vmatmul.msk.bf16.gmra.mxu1 %vm1312_vm0, %v13267_v20  ;;  %v9194_v10 = vadd.f32 %v9193_v0, %v8889_v55 }
 0x8a8   : > { %12789 = vmatmul.msk.bf16.gmra.mxu2 %vm1312_vm0, %v13267_v20  ;;  %v9449_v18 = vadd.f32 %v9448_v5, %v8890_v59  ;;  %v9957_v16 = vadd.f32 %v9956_v19, %v8876_v61 }
 0x8a9   : > { %12917 = vmatmul.msk.bf16.gmra.mxu3 %vm1312_vm0, %v13267_v20  ;;  %v8884_v20 = vmax.f32 %v14322_v17, 0.0 }
 0x8ab   : > { %v14333_v21 = vpop.f32.mrf.mxu2 }
 0x8ac   : > { %v14335_v22 = vpop.f32.mrf.mxu3  ;;  %v14337_v23 = vpop.f32.mrf.mxu0 }
 0x8ad   : > { %v14339_v24 = vpop.f32.mrf.mxu1  ;;  %v8897_v1 = vmax.f32 %v14337_v23, 0.0 }
 0x8ae   : > { %v8898_v60 = vmax.f32 %v14339_v24, 0.0 }
 0x8af   : > { %v9195_v23 = vadd.f32 %v9194_v10, %v8897_v1 }
 0x8b3   : > { %v14341_v25 = vpop.f32.mrf.mxu2 }
 0x8b4   : > { %v14343_v26 = vpop.f32.mrf.mxu3  ;;  %v14345_v27 = vpop.f32.mrf.mxu0  ;;  %v8899_v34 = vmax.f32 %v14341_v25, 0.0 }
 0x8b5   : > { %v14347_v28 = vpop.f32.mrf.mxu1  ;;  %v8905_v8 = vmax.f32 %v14345_v27, 0.0  ;;  %v9450_v27 = vadd.f32 %v9449_v18, %v8898_v60  ;;  %v8900_v38 = vmax.f32 %v14343_v26, 0.0 }
 0x8b6   : > { %v8906_v12 = vmax.f32 %v14347_v28, 0.0  ;;  %v8892_v28 = vmax.f32 %v14335_v22, 0.0 }
 0x8b7   : > { %12534 = vmatmul.msk.bf16.gmra.mxu0 %vm1312_vm0, %v13268_v30  ;;  %12662 = vmatmul.msk.bf16.gmra.mxu1 %vm1312_vm0, %v13268_v30  ;;  %v9196_v17 = vadd.f32 %v9195_v23, %v8905_v8 }
 0x8b8   : > { %12790 = vmatmul.msk.bf16.gmra.mxu2 %vm1312_vm0, %v13268_v30  ;;  %v9451_v35 = vadd.f32 %v9450_v27, %v8906_v12 }
 0x8b9   : > { %12918 = vmatmul.msk.bf16.gmra.mxu3 %vm1312_vm0, %v13268_v30  ;;  %v8891_v30 = vmax.f32 %v14333_v21, 0.0  ;;  %v9958_v21 = vadd.f32 %v9957_v16, %v8884_v20 }
 0x8bb   : > { %v14355_v36 = vpop.f32.mrf.mxu2  ;;  %v9704_v42 = vadd.f32 %v9703_v33, %v8891_v30  ;;  %v9959_v46 = vadd.f32 %v9958_v21, %v8892_v28 }
 0x8bc   : > { %v14358_v39 = vpop.f32.mrf.mxu3  ;;  %v14360_v40 = vpop.f32.mrf.mxu0 }
 0x8bd   : > { %v14362_v43 = vpop.f32.mrf.mxu1  ;;  %v8913_v24 = vmax.f32 %v14360_v40, 0.0  ;;  %v8908_v47 = vmax.f32 %v14358_v39, 0.0  ;;  %v9705_v25 = vadd.f32 %v9704_v42, %v8899_v34  ;;  %v9960_v54 = vadd.f32 %v9959_v46, %v8900_v38 }
 0x8be   : > { %v8914_v31 = vmax.f32 %v14362_v43, 0.0  ;;  %v8907_v43 = vmax.f32 %v14355_v36, 0.0  ;;  %v8938_v36 = vld [vmem:[#allocation2] sm:$0xff] }
 0x8bf   : > { %v9197_v40 = vadd.f32 %v9196_v17, %v8913_v24  ;;  %v9961_v62 = vadd.f32 %v9960_v54, %v8908_v47 }
 0x8c0   : > { %v9452_v44 = vadd.f32 %v9451_v35, %v8914_v31  ;;  %v9706_v57 = vadd.f32 %v9705_v25, %v8907_v43 }
 0x8c3   : > { %v14375_v2 = vpop.f32.mrf.mxu2 }
 0x8c4   : > { %v14379_v6 = vpop.f32.mrf.mxu3  ;;  %v2341_v7 = vpop.f32.mrf.mxu0  ;;  %v8915_v51 = vmax.f32 %v14375_v2, 0.0 }
 0x8c5   : > { %v2990_v11 = vpop.f32.mrf.mxu1  ;;  %v8921_v32 = vmax.f32 %v2341_v7, 0.0  ;;  %v8916_v55 = vmax.f32 %v14379_v6, 0.0 }
 0x8c6   : > { %v8922_v37 = vmax.f32 %v2990_v11, 0.0  ;;  %v9707_v0 = vadd.f32 %v9706_v57, %v8915_v51  ;;  %v8940_v11 = vld [vmem:[#allocation2 + $0x10] sm:$0xff] }
 0x8c7   : > { %12535 = vmatmul.msk.bf16.gmra.mxu0 %vm1312_vm0, %v13269_v29  ;;  %12663 = vmatmul.msk.bf16.gmra.mxu1 %vm1312_vm0, %v13269_v29  ;;  %v9198_v48 = vadd.f32 %v9197_v40, %v8921_v32  ;;  %v9962_v3 = vadd.f32 %v9961_v62, %v8916_v55 }
 0x8c8   : > { %12791 = vmatmul.msk.bf16.gmra.mxu2 %vm1312_vm0, %v13269_v29  ;;  %v9453_v52 = vadd.f32 %v9452_v44, %v8922_v37  ;;  %v13271_v44 = vld [vmem:[%s13583_s29 + $0x48] sm:$0xff] }
 0x8c9   : > { %12919 = vmatmul.msk.bf16.gmra.mxu3 %vm1312_vm0, %v13269_v29 }
 0x8cb   : > { %v3639_v41 = vpop.f32.mrf.mxu2 }
 0x8cc   : > { %v4288_v45 = vpop.f32.mrf.mxu3  ;;  %v2343_v22 = vpop.f32.mrf.mxu0  ;;  %v8923_v58 = vmax.f32 %v3639_v41, 0.0 }
 0x8cd   : > { %v8929_v49 = vmax.f32 %v2343_v22, 0.0  ;;  %v2992_v50 = vpop.f32.mrf.mxu1  ;;  %v8924_v63 = vmax.f32 %v4288_v45, 0.0 }
 0x8ce   : > { %v8930_v26 = vmax.f32 %v2992_v50, 0.0  ;;  %v9708_v4 = vadd.f32 %v9707_v0, %v8923_v58 }
 0x8cf   : > { %v9199_v56 = vadd.f32 %v9198_v48, %v8929_v49  ;;  %v9963_v6 = vadd.f32 %v9962_v3, %v8924_v63  ;;  %v13272_v3 = vld [vmem:[%s13583_s29 + $0x50] sm:$0xff] }
 0x8d0   : > { %v9454_v59 = vadd.f32 %v9453_v52, %v8930_v26 }
 0x8d1   : > { %v10985_v39 = vadd.f32 %v9199_v56, %v8937_v53 }
 0x8d2   : > { %v10986_v1 = vadd.f32 %v9454_v59, %v8938_v36 }
 0x8d3   : > { %10993 = vst [vmem:[#allocation2 + $0x30] sm:$0xff] %v10985_v39  ;;  %v3641_v2 = vpop.f32.mrf.mxu2 }
 0x8d4   : > { %10994 = vst [vmem:[#allocation2] sm:$0xff] %v10986_v1  ;;  %v8931_v5 = vmax.f32 %v3641_v2, 0.0  ;;  %v4290_v60 = vpop.f32.mrf.mxu3  ;;  %v4302_v7 = vpop.f32.mrf.mxu0 }
 0x8d5   : > { %v8932_v61 = vmax.f32 %v4290_v60, 0.0  ;;  %v4951_v10 = vpop.f32.mrf.mxu1  ;;  %v6893_v24 = vmax.f32 %v4302_v7, 0.0 }
 0x8d6   : > { %v9709_v8 = vadd.f32 %v9708_v4, %v8931_v5  ;;  %v6894_v30 = vmax.f32 %v4951_v10, 0.0 }
 0x8d7   : > { %v9964_v14 = vadd.f32 %v9963_v6, %v8932_v61  ;;  %12536 = vmatmul.msk.bf16.gmra.mxu0 %vm1312_vm0, %v13270_v15  ;;  %12664 = vmatmul.msk.bf16.gmra.mxu1 %vm1312_vm0, %v13270_v15 }
 0x8d8   : > { %v10987_v18 = vadd.f32 %v9709_v8, %v8939_v9  ;;  %12792 = vmatmul.msk.bf16.gmra.mxu2 %vm1312_vm0, %v13270_v15 }
 0x8d9   : > { %v10988_v12 = vadd.f32 %v9964_v14, %v8940_v11  ;;  %12920 = vmatmul.msk.bf16.gmra.mxu3 %vm1312_vm0, %v13270_v15 }
 0x8da   : > { %10995 = vst [vmem:[#allocation2 + $0x18] sm:$0xff] %v10987_v18 }
 0x8db   : > { %10996 = vst [vmem:[#allocation2 + $0x10] sm:$0xff] %v10988_v12  ;;  %v5600_v19 = vpop.f32.mrf.mxu2 }
 0x8dc   : > { %v6249_v20 = vpop.f32.mrf.mxu3  ;;  %v4304_v23 = vpop.f32.mrf.mxu0  ;;  %v6895_v17 = vmax.f32 %v5600_v19, 0.0 }
 0x8dd   : > { %v6901_v29 = vmax.f32 %v4304_v23, 0.0  ;;  %v4953_v13 = vpop.f32.mrf.mxu1  ;;  %v6896_v35 = vmax.f32 %v6249_v20, 0.0 }
 0x8de   : > { %v6902_v27 = vmax.f32 %v4953_v13, 0.0 }
 0x8df   : > { %v9965_v31 = vadd.f32 %v6901_v29, %v6893_v24 }
 0x8e0   : > { %v10220_v16 = vadd.f32 %v6902_v27, %v6894_v30 }
 0x8e3   : > { %v5602_v28 = vpop.f32.mrf.mxu2 }
 0x8e4   : > { %v6903_v32 = vmax.f32 %v5602_v28, 0.0  ;;  %v6251_v33 = vpop.f32.mrf.mxu3  ;;  %v4307_v34 = vpop.f32.mrf.mxu0 }
 0x8e5   : > { %v6904_v37 = vmax.f32 %v6251_v33, 0.0  ;;  %v6909_v21 = vmax.f32 %v4307_v34, 0.0  ;;  %v4956_v38 = vpop.f32.mrf.mxu1 }
 0x8e6   : > { %v10475_v40 = vadd.f32 %v6903_v32, %v6895_v17  ;;  %v6910_v41 = vmax.f32 %v4956_v38, 0.0 }
 0x8e7   : > { %v10730_v42 = vadd.f32 %v6904_v37, %v6896_v35  ;;  %v9966_v43 = vadd.f32 %v9965_v31, %v6909_v21  ;;  %12537 = vmatmul.msk.bf16.gmra.mxu0 %vm1312_vm0, %v13271_v44  ;;  %12665 = vmatmul.msk.bf16.gmra.mxu1 %vm1312_vm0, %v13271_v44 }
 0x8e8   : > { %v10221_v45 = vadd.f32 %v10220_v16, %v6910_v41  ;;  %12793 = vmatmul.msk.bf16.gmra.mxu2 %vm1312_vm0, %v13271_v44  ;;  %v13273_v16 = vld [vmem:[%s13583_s29 + $0x58] sm:$0xff] }
 0x8e9   : > { %12921 = vmatmul.msk.bf16.gmra.mxu3 %vm1312_vm0, %v13271_v44 }
 0x8eb   : > { %v5605_v22 = vpop.f32.mrf.mxu2 }
 0x8ec   : > { %v6911_v46 = vmax.f32 %v5605_v22, 0.0  ;;  %v6254_v47 = vpop.f32.mrf.mxu3  ;;  %v4309_v48 = vpop.f32.mrf.mxu0 }
 0x8ed   : > { %v6912_v49 = vmax.f32 %v6254_v47, 0.0  ;;  %v6917_v50 = vmax.f32 %v4309_v48, 0.0  ;;  %v4958_v25 = vpop.f32.mrf.mxu1 }
 0x8ee   : > { %v10476_v51 = vadd.f32 %v10475_v40, %v6911_v46  ;;  %v6918_v52 = vmax.f32 %v4958_v25, 0.0 }
 0x8ef   : > { %v10731_v53 = vadd.f32 %v10730_v42, %v6912_v49  ;;  %v9967_v26 = vadd.f32 %v9966_v43, %v6917_v50 }
 0x8f0   : > { %v10222_v54 = vadd.f32 %v10221_v45, %v6918_v52 }
 0x8f3   : > { %v5607_v55 = vpop.f32.mrf.mxu2 }
 0x8f4   : > { %v6919_v56 = vmax.f32 %v5607_v55, 0.0  ;;  %v6256_v36 = vpop.f32.mrf.mxu3  ;;  %v4312_v57 = vpop.f32.mrf.mxu0 }
 0x8f5   : > { %v6920_v58 = vmax.f32 %v6256_v36, 0.0  ;;  %v6925_v59 = vmax.f32 %v4312_v57, 0.0  ;;  %v4961_v62 = vpop.f32.mrf.mxu1 }
 0x8f6   : > { %v10477_v63 = vadd.f32 %v10476_v51, %v6919_v56  ;;  %v6926_v39 = vmax.f32 %v4961_v62, 0.0 }
 0x8f7   : > { %v10732_v0 = vadd.f32 %v10731_v53, %v6920_v58  ;;  %v9968_v1 = vadd.f32 %v9967_v26, %v6925_v59  ;;  %12538 = vmatmul.msk.bf16.gmra.mxu0 %vm1312_vm0, %v13272_v3  ;;  %12666 = vmatmul.msk.bf16.gmra.mxu1 %vm1312_vm0, %v13272_v3  ;;  %v13274_v53 = vld [vmem:[%s13583_s29 + $0x60] sm:$0xff] }
 0x8f8   : > { %v10223_v2 = vadd.f32 %v10222_v54, %v6926_v39  ;;  %12794 = vmatmul.msk.bf16.gmra.mxu2 %vm1312_vm0, %v13272_v3 }
 0x8f9   : > { %12922 = vmatmul.msk.bf16.gmra.mxu3 %vm1312_vm0, %v13272_v3 }
 0x8fb   : > { %v5610_v4 = vpop.f32.mrf.mxu2 }
 0x8fc   : > { %v6927_v5 = vmax.f32 %v5610_v4, 0.0  ;;  %v6259_v60 = vpop.f32.mrf.mxu3  ;;  %v4314_v7 = vpop.f32.mrf.mxu0 }
 0x8fd   : > { %v6928_v6 = vmax.f32 %v6259_v60, 0.0  ;;  %v6933_v9 = vmax.f32 %v4314_v7, 0.0  ;;  %v4963_v61 = vpop.f32.mrf.mxu1 }
 0x8fe   : > { %v10478_v10 = vadd.f32 %v10477_v63, %v6927_v5  ;;  %v6934_v8 = vmax.f32 %v4963_v61, 0.0 }
 0x8ff   : > { %v10733_v11 = vadd.f32 %v10732_v0, %v6928_v6  ;;  %v9969_v14 = vadd.f32 %v9968_v1, %v6933_v9 }
 0x900   : > { %v10224_v15 = vadd.f32 %v10223_v2, %v6934_v8 }
 0x903   : > { %v5612_v18 = vpop.f32.mrf.mxu2 }
 0x904   : > { %v6935_v12 = vmax.f32 %v5612_v18, 0.0  ;;  %v6261_v19 = vpop.f32.mrf.mxu3  ;;  %v4317_v20 = vpop.f32.mrf.mxu0 }
 0x905   : > { %v6936_v23 = vmax.f32 %v6261_v19, 0.0  ;;  %v6941_v24 = vmax.f32 %v4317_v20, 0.0  ;;  %v4966_v29 = vpop.f32.mrf.mxu1 }
 0x906   : > { %v10479_v13 = vadd.f32 %v10478_v10, %v6935_v12  ;;  %v6942_v30 = vmax.f32 %v4966_v29, 0.0 }
 0x907   : > { %v10734_v27 = vadd.f32 %v10733_v11, %v6936_v23  ;;  %v9970_v31 = vadd.f32 %v9969_v14, %v6941_v24  ;;  %12539 = vmatmul.msk.bf16.gmra.mxu0 %vm1312_vm0, %v13273_v16  ;;  %12667 = vmatmul.msk.bf16.gmra.mxu1 %vm1312_vm0, %v13273_v16  ;;  %v13275_v11 = vld [vmem:[%s13583_s29 + $0x68] sm:$0xff] }
 0x908   : > { %v10225_v28 = vadd.f32 %v10224_v15, %v6942_v30  ;;  %12795 = vmatmul.msk.bf16.gmra.mxu2 %vm1312_vm0, %v13273_v16 }
 0x909   : > { %12923 = vmatmul.msk.bf16.gmra.mxu3 %vm1312_vm0, %v13273_v16 }
 0x90b   : > { %v5615_v17 = vpop.f32.mrf.mxu2 }
 0x90c   : > { %v6943_v32 = vmax.f32 %v5615_v17, 0.0  ;;  %v6264_v33 = vpop.f32.mrf.mxu3  ;;  %v4319_v34 = vpop.f32.mrf.mxu0 }
 0x90d   : > { %v6944_v35 = vmax.f32 %v6264_v33, 0.0  ;;  %v6949_v37 = vmax.f32 %v4319_v34, 0.0  ;;  %v4968_v21 = vpop.f32.mrf.mxu1 }
 0x90e   : > { %v10480_v38 = vadd.f32 %v10479_v13, %v6943_v32  ;;  %v6950_v40 = vmax.f32 %v4968_v21, 0.0 }
 0x90f   : > { %v10735_v41 = vadd.f32 %v10734_v27, %v6944_v35  ;;  %v9971_v42 = vadd.f32 %v9970_v31, %v6949_v37 }
 0x910   : > { %v10226_v43 = vadd.f32 %v10225_v28, %v6950_v40 }
 0x913   : > { %v5617_v44 = vpop.f32.mrf.mxu2 }
 0x914   : > { %v6951_v45 = vmax.f32 %v5617_v44, 0.0  ;;  %v6266_v22 = vpop.f32.mrf.mxu3  ;;  %v4322_v46 = vpop.f32.mrf.mxu0 }
 0x915   : > { %v6952_v47 = vmax.f32 %v6266_v22, 0.0  ;;  %v6957_v48 = vmax.f32 %v4322_v46, 0.0  ;;  %v4971_v49 = vpop.f32.mrf.mxu1 }
 0x916   : > { %v10481_v50 = vadd.f32 %v10480_v38, %v6951_v45  ;;  %v6958_v25 = vmax.f32 %v4971_v49, 0.0 }
 0x917   : > { %v10736_v51 = vadd.f32 %v10735_v41, %v6952_v47  ;;  %v9972_v52 = vadd.f32 %v9971_v42, %v6957_v48  ;;  %12540 = vmatmul.msk.bf16.gmra.mxu0 %vm1312_vm0, %v13274_v53  ;;  %12668 = vmatmul.msk.bf16.gmra.mxu1 %vm1312_vm0, %v13274_v53  ;;  %v13276_v41 = vld [vmem:[%s13583_s29 + $0x70] sm:$0xff] }
 0x918   : > { %v10227_v26 = vadd.f32 %v10226_v43, %v6958_v25  ;;  %12796 = vmatmul.msk.bf16.gmra.mxu2 %vm1312_vm0, %v13274_v53 }
 0x919   : > { %12924 = vmatmul.msk.bf16.gmra.mxu3 %vm1312_vm0, %v13274_v53 }
 0x91b   : > { %v5620_v54 = vpop.f32.mrf.mxu2 }
 0x91c   : > { %v6959_v55 = vmax.f32 %v5620_v54, 0.0  ;;  %v6269_v56 = vpop.f32.mrf.mxu3  ;;  %v4324_v36 = vpop.f32.mrf.mxu0 }
 0x91d   : > { %v6960_v57 = vmax.f32 %v6269_v56, 0.0  ;;  %v6965_v58 = vmax.f32 %v4324_v36, 0.0  ;;  %v4973_v59 = vpop.f32.mrf.mxu1 }
 0x91e   : > { %v10482_v62 = vadd.f32 %v10481_v50, %v6959_v55  ;;  %v6966_v63 = vmax.f32 %v4973_v59, 0.0 }
 0x91f   : > { %v10737_v39 = vadd.f32 %v10736_v51, %v6960_v57  ;;  %v9973_v0 = vadd.f32 %v9972_v52, %v6965_v58 }
 0x920   : > { %v10228_v1 = vadd.f32 %v10227_v26, %v6966_v63 }
 0x923   : > { %v5622_v3 = vpop.f32.mrf.mxu2 }
 0x924   : > { %v6967_v2 = vmax.f32 %v5622_v3, 0.0  ;;  %v6271_v4 = vpop.f32.mrf.mxu3  ;;  %v4327_v5 = vpop.f32.mrf.mxu0 }
 0x925   : > { %v6968_v60 = vmax.f32 %v6271_v4, 0.0  ;;  %v6973_v7 = vmax.f32 %v4327_v5, 0.0  ;;  %v4976_v6 = vpop.f32.mrf.mxu1 }
 0x926   : > { %v10483_v9 = vadd.f32 %v10482_v62, %v6967_v2  ;;  %v6974_v61 = vmax.f32 %v4976_v6, 0.0 }
 0x927   : > { %v10738_v10 = vadd.f32 %v10737_v39, %v6968_v60  ;;  %v9974_v8 = vadd.f32 %v9973_v0, %v6973_v7  ;;  %12541 = vmatmul.msk.bf16.gmra.mxu0 %vm1312_vm0, %v13275_v11  ;;  %12669 = vmatmul.msk.bf16.gmra.mxu1 %vm1312_vm0, %v13275_v11  ;;  %v13277_v39 = vld [vmem:[%s13583_s29 + $0x78] sm:$0xff] }
 0x928   : > { %v10229_v14 = vadd.f32 %v10228_v1, %v6974_v61  ;;  %12797 = vmatmul.msk.bf16.gmra.mxu2 %vm1312_vm0, %v13275_v11 }
 0x929   : > { %12925 = vmatmul.msk.bf16.gmra.mxu3 %vm1312_vm0, %v13275_v11 }
 0x92b   : > { %v5625_v15 = vpop.f32.mrf.mxu2 }
 0x92c   : > { %v6975_v18 = vmax.f32 %v5625_v15, 0.0  ;;  %v6274_v12 = vpop.f32.mrf.mxu3  ;;  %v4329_v19 = vpop.f32.mrf.mxu0 }
 0x92d   : > { %v6976_v20 = vmax.f32 %v6274_v12, 0.0  ;;  %v6981_v23 = vmax.f32 %v4329_v19, 0.0  ;;  %v4978_v24 = vpop.f32.mrf.mxu1 }
 0x92e   : > { %v10484_v29 = vadd.f32 %v10483_v9, %v6975_v18  ;;  %v6982_v13 = vmax.f32 %v4978_v24, 0.0 }
 0x92f   : > { %v10739_v30 = vadd.f32 %v10738_v10, %v6976_v20  ;;  %v9975_v27 = vadd.f32 %v9974_v8, %v6981_v23 }
 0x930   : > { %v10230_v31 = vadd.f32 %v10229_v14, %v6982_v13 }
 0x933   : > { %v5627_v16 = vpop.f32.mrf.mxu2 }
 0x934   : > { %v6983_v28 = vmax.f32 %v5627_v16, 0.0  ;;  %v6276_v17 = vpop.f32.mrf.mxu3  ;;  %v4332_v32 = vpop.f32.mrf.mxu0 }
 0x935   : > { %v6984_v33 = vmax.f32 %v6276_v17, 0.0  ;;  %v6989_v34 = vmax.f32 %v4332_v32, 0.0  ;;  %v4981_v35 = vpop.f32.mrf.mxu1 }
 0x936   : > { %v10485_v37 = vadd.f32 %v10484_v29, %v6983_v28  ;;  %v6990_v21 = vmax.f32 %v4981_v35, 0.0 }
 0x937   : > { %v10740_v38 = vadd.f32 %v10739_v30, %v6984_v33  ;;  %v9976_v40 = vadd.f32 %v9975_v27, %v6989_v34  ;;  %12542 = vmatmul.msk.bf16.gmra.mxu0 %vm1312_vm0, %v13276_v41  ;;  %12670 = vmatmul.msk.bf16.gmra.mxu1 %vm1312_vm0, %v13276_v41  ;;  %v13278_v30 = vld [vmem:[%s13583_s29 + $0x80] sm:$0xff] }
 0x938   : > { %v10231_v42 = vadd.f32 %v10230_v31, %v6990_v21  ;;  %12798 = vmatmul.msk.bf16.gmra.mxu2 %vm1312_vm0, %v13276_v41 }
 0x939   : > { %12926 = vmatmul.msk.bf16.gmra.mxu3 %vm1312_vm0, %v13276_v41 }
 0x93b   : > { %v5630_v43 = vpop.f32.mrf.mxu2 }
 0x93c   : > { %v6991_v44 = vmax.f32 %v5630_v43, 0.0  ;;  %v6279_v45 = vpop.f32.mrf.mxu3  ;;  %v4334_v22 = vpop.f32.mrf.mxu0 }
 0x93d   : > { %v6992_v46 = vmax.f32 %v6279_v45, 0.0  ;;  %v6997_v47 = vmax.f32 %v4334_v22, 0.0  ;;  %v4983_v48 = vpop.f32.mrf.mxu1 }
 0x93e   : > { %v10486_v49 = vadd.f32 %v10485_v37, %v6991_v44  ;;  %v6998_v50 = vmax.f32 %v4983_v48, 0.0 }
 0x93f   : > { %v10741_v25 = vadd.f32 %v10740_v38, %v6992_v46  ;;  %v9977_v51 = vadd.f32 %v9976_v40, %v6997_v47 }
 0x940   : > { %v10232_v52 = vadd.f32 %v10231_v42, %v6998_v50 }
 0x943   : > { %v5632_v53 = vpop.f32.mrf.mxu2 }
 0x944   : > { %v6999_v26 = vmax.f32 %v5632_v53, 0.0  ;;  %v6281_v54 = vpop.f32.mrf.mxu3  ;;  %v4337_v55 = vpop.f32.mrf.mxu0 }
 0x945   : > { %v7000_v56 = vmax.f32 %v6281_v54, 0.0  ;;  %v7005_v36 = vmax.f32 %v4337_v55, 0.0  ;;  %v4986_v57 = vpop.f32.mrf.mxu1 }
 0x946   : > { %v10487_v58 = vadd.f32 %v10486_v49, %v6999_v26  ;;  %v7006_v59 = vmax.f32 %v4986_v57, 0.0 }
 0x947   : > { %v10742_v62 = vadd.f32 %v10741_v25, %v7000_v56  ;;  %v9978_v63 = vadd.f32 %v9977_v51, %v7005_v36  ;;  %12543 = vmatmul.msk.bf16.gmra.mxu0 %vm1312_vm0, %v13277_v39  ;;  %12671 = vmatmul.msk.bf16.gmra.mxu1 %vm1312_vm0, %v13277_v39  ;;  %v13279_v25 = vld [vmem:[%s13583_s29 + $0x88] sm:$0xff] }
 0x948   : > { %v10233_v0 = vadd.f32 %v10232_v52, %v7006_v59  ;;  %12799 = vmatmul.msk.bf16.gmra.mxu2 %vm1312_vm0, %v13277_v39 }
 0x949   : > { %12927 = vmatmul.msk.bf16.gmra.mxu3 %vm1312_vm0, %v13277_v39 }
 0x94b   : > { %v5635_v1 = vpop.f32.mrf.mxu2 }
 0x94c   : > { %v7007_v3 = vmax.f32 %v5635_v1, 0.0  ;;  %v6284_v2 = vpop.f32.mrf.mxu3  ;;  %v4339_v4 = vpop.f32.mrf.mxu0 }
 0x94d   : > { %v7008_v5 = vmax.f32 %v6284_v2, 0.0  ;;  %v7013_v60 = vmax.f32 %v4339_v4, 0.0  ;;  %v4988_v7 = vpop.f32.mrf.mxu1 }
 0x94e   : > { %v10488_v6 = vadd.f32 %v10487_v58, %v7007_v3  ;;  %v7014_v9 = vmax.f32 %v4988_v7, 0.0 }
 0x94f   : > { %v10743_v61 = vadd.f32 %v10742_v62, %v7008_v5  ;;  %v9979_v10 = vadd.f32 %v9978_v63, %v7013_v60 }
 0x950   : > { %v10234_v8 = vadd.f32 %v10233_v0, %v7014_v9 }
 0x953   : > { %v5637_v11 = vpop.f32.mrf.mxu2 }
 0x954   : > { %v7015_v14 = vmax.f32 %v5637_v11, 0.0  ;;  %v6286_v15 = vpop.f32.mrf.mxu3  ;;  %v4342_v18 = vpop.f32.mrf.mxu0 }
 0x955   : > { %v7016_v12 = vmax.f32 %v6286_v15, 0.0  ;;  %v7021_v19 = vmax.f32 %v4342_v18, 0.0  ;;  %v4991_v20 = vpop.f32.mrf.mxu1 }
 0x956   : > { %v10489_v23 = vadd.f32 %v10488_v6, %v7015_v14  ;;  %v7022_v24 = vmax.f32 %v4991_v20, 0.0 }
 0x957   : > { %v10744_v29 = vadd.f32 %v10743_v61, %v7016_v12  ;;  %v9980_v13 = vadd.f32 %v9979_v10, %v7021_v19  ;;  %12544 = vmatmul.msk.bf16.gmra.mxu0 %vm1312_vm0, %v13278_v30  ;;  %12672 = vmatmul.msk.bf16.gmra.mxu1 %vm1312_vm0, %v13278_v30  ;;  %v13280_v61 = vld [vmem:[%s13583_s29 + $0x90] sm:$0xff] }
 0x958   : > { %v10235_v27 = vadd.f32 %v10234_v8, %v7022_v24  ;;  %12800 = vmatmul.msk.bf16.gmra.mxu2 %vm1312_vm0, %v13278_v30 }
 0x959   : > { %12928 = vmatmul.msk.bf16.gmra.mxu3 %vm1312_vm0, %v13278_v30 }
 0x95b   : > { %v5640_v31 = vpop.f32.mrf.mxu2 }
 0x95c   : > { %v7023_v16 = vmax.f32 %v5640_v31, 0.0  ;;  %v6289_v28 = vpop.f32.mrf.mxu3  ;;  %v4344_v17 = vpop.f32.mrf.mxu0 }
 0x95d   : > { %v7024_v32 = vmax.f32 %v6289_v28, 0.0  ;;  %v7029_v33 = vmax.f32 %v4344_v17, 0.0  ;;  %v4993_v34 = vpop.f32.mrf.mxu1 }
 0x95e   : > { %v10490_v35 = vadd.f32 %v10489_v23, %v7023_v16  ;;  %v7030_v37 = vmax.f32 %v4993_v34, 0.0 }
 0x95f   : > { %v10745_v21 = vadd.f32 %v10744_v29, %v7024_v32  ;;  %v9981_v38 = vadd.f32 %v9980_v13, %v7029_v33 }
 0x960   : > { %v10236_v40 = vadd.f32 %v10235_v27, %v7030_v37 }
 0x963   : > { %v5642_v41 = vpop.f32.mrf.mxu2 }
 0x964   : > { %v7031_v42 = vmax.f32 %v5642_v41, 0.0  ;;  %v6291_v43 = vpop.f32.mrf.mxu3  ;;  %v4347_v44 = vpop.f32.mrf.mxu0 }
 0x965   : > { %v7032_v45 = vmax.f32 %v6291_v43, 0.0  ;;  %v7037_v22 = vmax.f32 %v4347_v44, 0.0  ;;  %v4996_v46 = vpop.f32.mrf.mxu1 }
 0x966   : > { %v10491_v47 = vadd.f32 %v10490_v35, %v7031_v42  ;;  %v7038_v48 = vmax.f32 %v4996_v46, 0.0 }
 0x967   : > { %v10746_v49 = vadd.f32 %v10745_v21, %v7032_v45  ;;  %v9982_v50 = vadd.f32 %v9981_v38, %v7037_v22  ;;  %12545 = vmatmul.msk.bf16.gmra.mxu0 %vm1312_vm0, %v13279_v25  ;;  %12673 = vmatmul.msk.bf16.gmra.mxu1 %vm1312_vm0, %v13279_v25  ;;  %v13281_v21 = vld [vmem:[%s13583_s29 + $0x98] sm:$0xff] }
 0x968   : > { %v10237_v51 = vadd.f32 %v10236_v40, %v7038_v48  ;;  %12801 = vmatmul.msk.bf16.gmra.mxu2 %vm1312_vm0, %v13279_v25 }
 0x969   : > { %12929 = vmatmul.msk.bf16.gmra.mxu3 %vm1312_vm0, %v13279_v25 }
 0x96b   : > { %v5645_v52 = vpop.f32.mrf.mxu2 }
 0x96c   : > { %v7039_v53 = vmax.f32 %v5645_v52, 0.0  ;;  %v6294_v26 = vpop.f32.mrf.mxu3  ;;  %v4349_v54 = vpop.f32.mrf.mxu0 }
 0x96d   : > { %v7040_v55 = vmax.f32 %v6294_v26, 0.0  ;;  %v7045_v56 = vmax.f32 %v4349_v54, 0.0  ;;  %v4998_v36 = vpop.f32.mrf.mxu1 }
 0x96e   : > { %v10492_v57 = vadd.f32 %v10491_v47, %v7039_v53  ;;  %v7046_v58 = vmax.f32 %v4998_v36, 0.0 }
 0x96f   : > { %v10747_v59 = vadd.f32 %v10746_v49, %v7040_v55  ;;  %v9983_v62 = vadd.f32 %v9982_v50, %v7045_v56 }
 0x970   : > { %v10238_v63 = vadd.f32 %v10237_v51, %v7046_v58 }
 0x973   : > { %v5647_v39 = vpop.f32.mrf.mxu2 }
 0x974   : > { %v7047_v0 = vmax.f32 %v5647_v39, 0.0  ;;  %v6296_v1 = vpop.f32.mrf.mxu3  ;;  %v4352_v3 = vpop.f32.mrf.mxu0 }
 0x975   : > { %v7048_v2 = vmax.f32 %v6296_v1, 0.0  ;;  %v7053_v4 = vmax.f32 %v4352_v3, 0.0  ;;  %v5001_v5 = vpop.f32.mrf.mxu1 }
 0x976   : > { %v10493_v60 = vadd.f32 %v10492_v57, %v7047_v0  ;;  %v7054_v7 = vmax.f32 %v5001_v5, 0.0 }
 0x977   : > { %v10748_v6 = vadd.f32 %v10747_v59, %v7048_v2  ;;  %v9984_v9 = vadd.f32 %v9983_v62, %v7053_v4  ;;  %12546 = vmatmul.msk.bf16.gmra.mxu0 %vm1312_vm0, %v13280_v61  ;;  %12674 = vmatmul.msk.bf16.gmra.mxu1 %vm1312_vm0, %v13280_v61  ;;  %v13282_v59 = vld [vmem:[%s13583_s29 + $0xa0] sm:$0xff] }
 0x978   : > { %v10239_v10 = vadd.f32 %v10238_v63, %v7054_v7  ;;  %12802 = vmatmul.msk.bf16.gmra.mxu2 %vm1312_vm0, %v13280_v61 }
 0x979   : > { %12930 = vmatmul.msk.bf16.gmra.mxu3 %vm1312_vm0, %v13280_v61 }
 0x97b   : > { %v5650_v8 = vpop.f32.mrf.mxu2 }
 0x97c   : > { %v7055_v11 = vmax.f32 %v5650_v8, 0.0  ;;  %v6299_v14 = vpop.f32.mrf.mxu3  ;;  %v4354_v15 = vpop.f32.mrf.mxu0 }
 0x97d   : > { %v7056_v18 = vmax.f32 %v6299_v14, 0.0  ;;  %v7061_v12 = vmax.f32 %v4354_v15, 0.0  ;;  %v5003_v19 = vpop.f32.mrf.mxu1 }
 0x97e   : > { %v10494_v20 = vadd.f32 %v10493_v60, %v7055_v11  ;;  %v7062_v23 = vmax.f32 %v5003_v19, 0.0 }
 0x97f   : > { %v10749_v24 = vadd.f32 %v10748_v6, %v7056_v18  ;;  %v9985_v29 = vadd.f32 %v9984_v9, %v7061_v12 }
 0x980   : > { %v10240_v13 = vadd.f32 %v10239_v10, %v7062_v23 }
 0x983   : > { %v5652_v30 = vpop.f32.mrf.mxu2 }
 0x984   : > { %v7063_v27 = vmax.f32 %v5652_v30, 0.0  ;;  %v6301_v31 = vpop.f32.mrf.mxu3  ;;  %v4357_v16 = vpop.f32.mrf.mxu0 }
 0x985   : > { %v7064_v28 = vmax.f32 %v6301_v31, 0.0  ;;  %v7069_v17 = vmax.f32 %v4357_v16, 0.0  ;;  %v5006_v32 = vpop.f32.mrf.mxu1 }
 0x986   : > { %v10495_v33 = vadd.f32 %v10494_v20, %v7063_v27  ;;  %v7070_v34 = vmax.f32 %v5006_v32, 0.0 }
 0x987   : > { %v10750_v35 = vadd.f32 %v10749_v24, %v7064_v28  ;;  %v9986_v37 = vadd.f32 %v9985_v29, %v7069_v17  ;;  %12547 = vmatmul.msk.bf16.gmra.mxu0 %vm1312_vm0, %v13281_v21  ;;  %12675 = vmatmul.msk.bf16.gmra.mxu1 %vm1312_vm0, %v13281_v21  ;;  %v13283_v24 = vld [vmem:[%s13583_s29 + $0xa8] sm:$0xff] }
 0x988   : > { %v10241_v38 = vadd.f32 %v10240_v13, %v7070_v34  ;;  %12803 = vmatmul.msk.bf16.gmra.mxu2 %vm1312_vm0, %v13281_v21 }
 0x989   : > { %12931 = vmatmul.msk.bf16.gmra.mxu3 %vm1312_vm0, %v13281_v21 }
 0x98b   : > { %v5655_v40 = vpop.f32.mrf.mxu2 }
 0x98c   : > { %v7071_v41 = vmax.f32 %v5655_v40, 0.0  ;;  %v6304_v42 = vpop.f32.mrf.mxu3  ;;  %v4359_v43 = vpop.f32.mrf.mxu0 }
 0x98d   : > { %v7072_v44 = vmax.f32 %v6304_v42, 0.0  ;;  %v7077_v45 = vmax.f32 %v4359_v43, 0.0  ;;  %v5008_v22 = vpop.f32.mrf.mxu1 }
 0x98e   : > { %v10496_v46 = vadd.f32 %v10495_v33, %v7071_v41  ;;  %v7078_v47 = vmax.f32 %v5008_v22, 0.0 }
 0x98f   : > { %v10751_v48 = vadd.f32 %v10750_v35, %v7072_v44  ;;  %v9987_v49 = vadd.f32 %v9986_v37, %v7077_v45 }
 0x990   : > { %v10242_v50 = vadd.f32 %v10241_v38, %v7078_v47 }
 0x993   : > { %v5657_v25 = vpop.f32.mrf.mxu2 }
 0x994   : > { %v7079_v51 = vmax.f32 %v5657_v25, 0.0  ;;  %v6306_v52 = vpop.f32.mrf.mxu3  ;;  %v4362_v53 = vpop.f32.mrf.mxu0 }
 0x995   : > { %v7080_v26 = vmax.f32 %v6306_v52, 0.0  ;;  %v7085_v54 = vmax.f32 %v4362_v53, 0.0  ;;  %v5011_v55 = vpop.f32.mrf.mxu1 }
 0x996   : > { %v10497_v56 = vadd.f32 %v10496_v46, %v7079_v51  ;;  %v7086_v36 = vmax.f32 %v5011_v55, 0.0 }
 0x997   : > { %v10752_v57 = vadd.f32 %v10751_v48, %v7080_v26  ;;  %v9988_v58 = vadd.f32 %v9987_v49, %v7085_v54  ;;  %12548 = vmatmul.msk.bf16.gmra.mxu0 %vm1312_vm0, %v13282_v59  ;;  %12676 = vmatmul.msk.bf16.gmra.mxu1 %vm1312_vm0, %v13282_v59  ;;  %v13284_v48 = vld [vmem:[%s13583_s29 + $0xb0] sm:$0xff] }
 0x998   : > { %v10243_v62 = vadd.f32 %v10242_v50, %v7086_v36  ;;  %12804 = vmatmul.msk.bf16.gmra.mxu2 %vm1312_vm0, %v13282_v59 }
 0x999   : > { %12932 = vmatmul.msk.bf16.gmra.mxu3 %vm1312_vm0, %v13282_v59 }
 0x99b   : > { %v5660_v63 = vpop.f32.mrf.mxu2 }
 0x99c   : > { %v7087_v39 = vmax.f32 %v5660_v63, 0.0  ;;  %v6309_v0 = vpop.f32.mrf.mxu3  ;;  %v4364_v1 = vpop.f32.mrf.mxu0 }
 0x99d   : > { %v7088_v3 = vmax.f32 %v6309_v0, 0.0  ;;  %v7093_v2 = vmax.f32 %v4364_v1, 0.0  ;;  %v5013_v4 = vpop.f32.mrf.mxu1 }
 0x99e   : > { %v10498_v5 = vadd.f32 %v10497_v56, %v7087_v39  ;;  %v7094_v60 = vmax.f32 %v5013_v4, 0.0 }
 0x99f   : > { %v10753_v7 = vadd.f32 %v10752_v57, %v7088_v3  ;;  %v9989_v6 = vadd.f32 %v9988_v58, %v7093_v2 }
 0x9a0   : > { %v10244_v9 = vadd.f32 %v10243_v62, %v7094_v60 }
 0x9a3   : > { %v5662_v61 = vpop.f32.mrf.mxu2 }
 0x9a4   : > { %v7095_v10 = vmax.f32 %v5662_v61, 0.0  ;;  %v6311_v8 = vpop.f32.mrf.mxu3  ;;  %v4367_v11 = vpop.f32.mrf.mxu0 }
 0x9a5   : > { %v7096_v14 = vmax.f32 %v6311_v8, 0.0  ;;  %v7101_v15 = vmax.f32 %v4367_v11, 0.0  ;;  %v5016_v18 = vpop.f32.mrf.mxu1 }
 0x9a6   : > { %v10499_v12 = vadd.f32 %v10498_v5, %v7095_v10  ;;  %v7102_v19 = vmax.f32 %v5016_v18, 0.0 }
 0x9a7   : > { %v10754_v20 = vadd.f32 %v10753_v7, %v7096_v14  ;;  %v9990_v23 = vadd.f32 %v9989_v6, %v7101_v15  ;;  %12549 = vmatmul.msk.bf16.gmra.mxu0 %vm1312_vm0, %v13283_v24  ;;  %12677 = vmatmul.msk.bf16.gmra.mxu1 %vm1312_vm0, %v13283_v24  ;;  %v13285_v7 = vld [vmem:[%s13583_s29 + $0xb8] sm:$0xff] }
 0x9a8   : > { %v10245_v29 = vadd.f32 %v10244_v9, %v7102_v19  ;;  %12805 = vmatmul.msk.bf16.gmra.mxu2 %vm1312_vm0, %v13283_v24 }
 0x9a9   : > { %12933 = vmatmul.msk.bf16.gmra.mxu3 %vm1312_vm0, %v13283_v24 }
 0x9ab   : > { %v5665_v13 = vpop.f32.mrf.mxu2 }
 0x9ac   : > { %v7103_v30 = vmax.f32 %v5665_v13, 0.0  ;;  %v6314_v27 = vpop.f32.mrf.mxu3  ;;  %v4369_v31 = vpop.f32.mrf.mxu0 }
 0x9ad   : > { %v7104_v16 = vmax.f32 %v6314_v27, 0.0  ;;  %v7109_v28 = vmax.f32 %v4369_v31, 0.0  ;;  %v5018_v17 = vpop.f32.mrf.mxu1 }
 0x9ae   : > { %v10500_v32 = vadd.f32 %v10499_v12, %v7103_v30  ;;  %v7110_v33 = vmax.f32 %v5018_v17, 0.0 }
 0x9af   : > { %v10755_v34 = vadd.f32 %v10754_v20, %v7104_v16  ;;  %v9991_v35 = vadd.f32 %v9990_v23, %v7109_v28 }
 0x9b0   : > { %v10246_v37 = vadd.f32 %v10245_v29, %v7110_v33 }
 0x9b3   : > { %v5667_v21 = vpop.f32.mrf.mxu2 }
 0x9b4   : > { %v7111_v38 = vmax.f32 %v5667_v21, 0.0  ;;  %v6316_v40 = vpop.f32.mrf.mxu3  ;;  %v4372_v41 = vpop.f32.mrf.mxu0 }
 0x9b5   : > { %v7112_v42 = vmax.f32 %v6316_v40, 0.0  ;;  %v7117_v43 = vmax.f32 %v4372_v41, 0.0  ;;  %v5021_v44 = vpop.f32.mrf.mxu1 }
 0x9b6   : > { %v10501_v45 = vadd.f32 %v10500_v32, %v7111_v38  ;;  %v7118_v22 = vmax.f32 %v5021_v44, 0.0 }
 0x9b7   : > { %v10756_v46 = vadd.f32 %v10755_v34, %v7112_v42  ;;  %v9992_v47 = vadd.f32 %v9991_v35, %v7117_v43  ;;  %12550 = vmatmul.msk.bf16.gmra.mxu0 %vm1312_vm0, %v13284_v48  ;;  %12678 = vmatmul.msk.bf16.gmra.mxu1 %vm1312_vm0, %v13284_v48  ;;  %v13286_v34 = vld [vmem:[%s13583_s29 + $0xc0] sm:$0xff] }
 0x9b8   : > { %v10247_v49 = vadd.f32 %v10246_v37, %v7118_v22  ;;  %12806 = vmatmul.msk.bf16.gmra.mxu2 %vm1312_vm0, %v13284_v48 }
 0x9b9   : > { %12934 = vmatmul.msk.bf16.gmra.mxu3 %vm1312_vm0, %v13284_v48 }
 0x9bb   : > { %v5670_v50 = vpop.f32.mrf.mxu2 }
 0x9bc   : > { %v7119_v25 = vmax.f32 %v5670_v50, 0.0  ;;  %v6319_v51 = vpop.f32.mrf.mxu3  ;;  %v4374_v52 = vpop.f32.mrf.mxu0 }
 0x9bd   : > { %v7120_v53 = vmax.f32 %v6319_v51, 0.0  ;;  %v7125_v26 = vmax.f32 %v4374_v52, 0.0  ;;  %v5023_v54 = vpop.f32.mrf.mxu1 }
 0x9be   : > { %v10502_v55 = vadd.f32 %v10501_v45, %v7119_v25  ;;  %v7126_v56 = vmax.f32 %v5023_v54, 0.0 }
 0x9bf   : > { %v10757_v36 = vadd.f32 %v10756_v46, %v7120_v53  ;;  %v9993_v57 = vadd.f32 %v9992_v47, %v7125_v26 }
 0x9c0   : > { %v10248_v58 = vadd.f32 %v10247_v49, %v7126_v56 }
 0x9c3   : > { %v5672_v59 = vpop.f32.mrf.mxu2 }
 0x9c4   : > { %v7127_v62 = vmax.f32 %v5672_v59, 0.0  ;;  %v6321_v63 = vpop.f32.mrf.mxu3  ;;  %v4377_v39 = vpop.f32.mrf.mxu0 }
 0x9c5   : > { %v7128_v0 = vmax.f32 %v6321_v63, 0.0  ;;  %v7133_v1 = vmax.f32 %v4377_v39, 0.0  ;;  %v5026_v3 = vpop.f32.mrf.mxu1 }
 0x9c6   : > { %v10503_v2 = vadd.f32 %v10502_v55, %v7127_v62  ;;  %v7134_v4 = vmax.f32 %v5026_v3, 0.0 }
 0x9c7   : > { %v10758_v5 = vadd.f32 %v10757_v36, %v7128_v0  ;;  %v9994_v60 = vadd.f32 %v9993_v57, %v7133_v1  ;;  %12551 = vmatmul.msk.bf16.gmra.mxu0 %vm1312_vm0, %v13285_v7  ;;  %12679 = vmatmul.msk.bf16.gmra.mxu1 %vm1312_vm0, %v13285_v7  ;;  %v13287_v36 = vld [vmem:[%s13583_s29 + $0xc8] sm:$0xff] }
 0x9c8   : > { %v10249_v6 = vadd.f32 %v10248_v58, %v7134_v4  ;;  %12807 = vmatmul.msk.bf16.gmra.mxu2 %vm1312_vm0, %v13285_v7 }
 0x9c9   : > { %12935 = vmatmul.msk.bf16.gmra.mxu3 %vm1312_vm0, %v13285_v7 }
 0x9cb   : > { %v5675_v9 = vpop.f32.mrf.mxu2 }
 0x9cc   : > { %v7135_v61 = vmax.f32 %v5675_v9, 0.0  ;;  %v6324_v10 = vpop.f32.mrf.mxu3  ;;  %v4379_v8 = vpop.f32.mrf.mxu0 }
 0x9cd   : > { %v7136_v11 = vmax.f32 %v6324_v10, 0.0  ;;  %v7141_v14 = vmax.f32 %v4379_v8, 0.0  ;;  %v5028_v15 = vpop.f32.mrf.mxu1 }
 0x9ce   : > { %v10504_v18 = vadd.f32 %v10503_v2, %v7135_v61  ;;  %v7142_v12 = vmax.f32 %v5028_v15, 0.0 }
 0x9cf   : > { %v10759_v19 = vadd.f32 %v10758_v5, %v7136_v11  ;;  %v9995_v20 = vadd.f32 %v9994_v60, %v7141_v14 }
 0x9d0   : > { %v10250_v23 = vadd.f32 %v10249_v6, %v7142_v12 }
 0x9d3   : > { %v5677_v24 = vpop.f32.mrf.mxu2 }
 0x9d4   : > { %v7143_v29 = vmax.f32 %v5677_v24, 0.0  ;;  %v6326_v13 = vpop.f32.mrf.mxu3  ;;  %v4382_v30 = vpop.f32.mrf.mxu0 }
 0x9d5   : > { %v7144_v27 = vmax.f32 %v6326_v13, 0.0  ;;  %v7149_v31 = vmax.f32 %v4382_v30, 0.0  ;;  %v5031_v16 = vpop.f32.mrf.mxu1 }
 0x9d6   : > { %v10505_v28 = vadd.f32 %v10504_v18, %v7143_v29  ;;  %v7150_v17 = vmax.f32 %v5031_v16, 0.0 }
 0x9d7   : > { %v10760_v32 = vadd.f32 %v10759_v19, %v7144_v27  ;;  %v9996_v33 = vadd.f32 %v9995_v20, %v7149_v31  ;;  %12552 = vmatmul.msk.bf16.gmra.mxu0 %vm1312_vm0, %v13286_v34  ;;  %12680 = vmatmul.msk.bf16.gmra.mxu1 %vm1312_vm0, %v13286_v34  ;;  %v13288_v19 = vld [vmem:[%s13583_s29 + $0xd0] sm:$0xff] }
 0x9d8   : > { %v10251_v35 = vadd.f32 %v10250_v23, %v7150_v17  ;;  %12808 = vmatmul.msk.bf16.gmra.mxu2 %vm1312_vm0, %v13286_v34 }
 0x9d9   : > { %12936 = vmatmul.msk.bf16.gmra.mxu3 %vm1312_vm0, %v13286_v34 }
 0x9db   : > { %v5680_v37 = vpop.f32.mrf.mxu2 }
 0x9dc   : > { %v7151_v21 = vmax.f32 %v5680_v37, 0.0  ;;  %v6329_v38 = vpop.f32.mrf.mxu3  ;;  %v4384_v40 = vpop.f32.mrf.mxu0 }
 0x9dd   : > { %v7152_v41 = vmax.f32 %v6329_v38, 0.0  ;;  %v7157_v42 = vmax.f32 %v4384_v40, 0.0  ;;  %v5033_v43 = vpop.f32.mrf.mxu1 }
 0x9de   : > { %v10506_v44 = vadd.f32 %v10505_v28, %v7151_v21  ;;  %v7158_v45 = vmax.f32 %v5033_v43, 0.0 }
 0x9df   : > { %v10761_v22 = vadd.f32 %v10760_v32, %v7152_v41  ;;  %v9997_v46 = vadd.f32 %v9996_v33, %v7157_v42 }
 0x9e0   : > { %v10252_v47 = vadd.f32 %v10251_v35, %v7158_v45 }
 0x9e3   : > { %v5682_v48 = vpop.f32.mrf.mxu2 }
 0x9e4   : > { %v7159_v49 = vmax.f32 %v5682_v48, 0.0  ;;  %v6331_v50 = vpop.f32.mrf.mxu3  ;;  %v4387_v25 = vpop.f32.mrf.mxu0 }
 0x9e5   : > { %v7160_v51 = vmax.f32 %v6331_v50, 0.0  ;;  %v7165_v52 = vmax.f32 %v4387_v25, 0.0  ;;  %v5036_v53 = vpop.f32.mrf.mxu1 }
 0x9e6   : > { %v10507_v26 = vadd.f32 %v10506_v44, %v7159_v49  ;;  %v7166_v54 = vmax.f32 %v5036_v53, 0.0 }
 0x9e7   : > { %v10762_v55 = vadd.f32 %v10761_v22, %v7160_v51  ;;  %v9998_v56 = vadd.f32 %v9997_v46, %v7165_v52  ;;  %12553 = vmatmul.msk.bf16.gmra.mxu0 %vm1312_vm0, %v13287_v36  ;;  %12681 = vmatmul.msk.bf16.gmra.mxu1 %vm1312_vm0, %v13287_v36  ;;  %v13289_v22 = vld [vmem:[%s13583_s29 + $0xd8] sm:$0xff] }
 0x9e8   : > { %v10253_v57 = vadd.f32 %v10252_v47, %v7166_v54  ;;  %12809 = vmatmul.msk.bf16.gmra.mxu2 %vm1312_vm0, %v13287_v36 }
 0x9e9   : > { %12937 = vmatmul.msk.bf16.gmra.mxu3 %vm1312_vm0, %v13287_v36 }
 0x9eb   : > { %v5685_v58 = vpop.f32.mrf.mxu2 }
 0x9ec   : > { %v7167_v59 = vmax.f32 %v5685_v58, 0.0  ;;  %v6334_v62 = vpop.f32.mrf.mxu3  ;;  %v4389_v63 = vpop.f32.mrf.mxu0 }
 0x9ed   : > { %v7168_v39 = vmax.f32 %v6334_v62, 0.0  ;;  %v7173_v0 = vmax.f32 %v4389_v63, 0.0  ;;  %v5038_v1 = vpop.f32.mrf.mxu1 }
 0x9ee   : > { %v10508_v3 = vadd.f32 %v10507_v26, %v7167_v59  ;;  %v7174_v2 = vmax.f32 %v5038_v1, 0.0 }
 0x9ef   : > { %v10763_v4 = vadd.f32 %v10762_v55, %v7168_v39  ;;  %v9999_v5 = vadd.f32 %v9998_v56, %v7173_v0 }
 0x9f0   : > { %v10254_v60 = vadd.f32 %v10253_v57, %v7174_v2 }
 0x9f3   : > { %v5687_v7 = vpop.f32.mrf.mxu2 }
 0x9f4   : > { %v7175_v6 = vmax.f32 %v5687_v7, 0.0  ;;  %v6336_v9 = vpop.f32.mrf.mxu3  ;;  %v4392_v61 = vpop.f32.mrf.mxu0 }
 0x9f5   : > { %v7176_v10 = vmax.f32 %v6336_v9, 0.0  ;;  %v7181_v8 = vmax.f32 %v4392_v61, 0.0  ;;  %v5041_v11 = vpop.f32.mrf.mxu1 }
 0x9f6   : > { %v10509_v14 = vadd.f32 %v10508_v3, %v7175_v6  ;;  %v7182_v15 = vmax.f32 %v5041_v11, 0.0 }
 0x9f7   : > { %v10764_v18 = vadd.f32 %v10763_v4, %v7176_v10  ;;  %v10000_v12 = vadd.f32 %v9999_v5, %v7181_v8  ;;  %12554 = vmatmul.msk.bf16.gmra.mxu0 %vm1312_vm0, %v13288_v19  ;;  %12682 = vmatmul.msk.bf16.gmra.mxu1 %vm1312_vm0, %v13288_v19  ;;  %v13290_v4 = vld [vmem:[%s13583_s29 + $0xe0] sm:$0xff] }
 0x9f8   : > { %v10255_v20 = vadd.f32 %v10254_v60, %v7182_v15  ;;  %12810 = vmatmul.msk.bf16.gmra.mxu2 %vm1312_vm0, %v13288_v19 }
 0x9f9   : > { %12938 = vmatmul.msk.bf16.gmra.mxu3 %vm1312_vm0, %v13288_v19 }
 0x9fb   : > { %v5690_v23 = vpop.f32.mrf.mxu2 }
 0x9fc   : > { %v7183_v24 = vmax.f32 %v5690_v23, 0.0  ;;  %v6339_v29 = vpop.f32.mrf.mxu3  ;;  %v4394_v13 = vpop.f32.mrf.mxu0 }
 0x9fd   : > { %v7184_v30 = vmax.f32 %v6339_v29, 0.0  ;;  %v7189_v27 = vmax.f32 %v4394_v13, 0.0  ;;  %v5043_v31 = vpop.f32.mrf.mxu1 }
 0x9fe   : > { %v10510_v16 = vadd.f32 %v10509_v14, %v7183_v24  ;;  %v7190_v28 = vmax.f32 %v5043_v31, 0.0 }
 0x9ff   : > { %v10765_v17 = vadd.f32 %v10764_v18, %v7184_v30  ;;  %v10001_v32 = vadd.f32 %v10000_v12, %v7189_v27 }
 0xa00   : > { %v10256_v33 = vadd.f32 %v10255_v20, %v7190_v28 }
 0xa03   : > { %v5692_v34 = vpop.f32.mrf.mxu2 }
 0xa04   : > { %v7191_v35 = vmax.f32 %v5692_v34, 0.0  ;;  %v6341_v37 = vpop.f32.mrf.mxu3  ;;  %v4397_v21 = vpop.f32.mrf.mxu0 }
 0xa05   : > { %v7192_v38 = vmax.f32 %v6341_v37, 0.0  ;;  %v7197_v40 = vmax.f32 %v4397_v21, 0.0  ;;  %v5046_v41 = vpop.f32.mrf.mxu1 }
 0xa06   : > { %v10511_v42 = vadd.f32 %v10510_v16, %v7191_v35  ;;  %v7198_v43 = vmax.f32 %v5046_v41, 0.0 }
 0xa07   : > { %v10766_v44 = vadd.f32 %v10765_v17, %v7192_v38  ;;  %v10002_v45 = vadd.f32 %v10001_v32, %v7197_v40  ;;  %12555 = vmatmul.msk.bf16.gmra.mxu0 %vm1312_vm0, %v13289_v22  ;;  %12683 = vmatmul.msk.bf16.gmra.mxu1 %vm1312_vm0, %v13289_v22  ;;  %v13291_v17 = vld [vmem:[%s13583_s29 + $0xe8] sm:$0xff] }
 0xa08   : > { %v10257_v46 = vadd.f32 %v10256_v33, %v7198_v43  ;;  %12811 = vmatmul.msk.bf16.gmra.mxu2 %vm1312_vm0, %v13289_v22 }
 0xa09   : > { %12939 = vmatmul.msk.bf16.gmra.mxu3 %vm1312_vm0, %v13289_v22 }
 0xa0b   : > { %v5695_v47 = vpop.f32.mrf.mxu2 }
 0xa0c   : > { %v7199_v48 = vmax.f32 %v5695_v47, 0.0  ;;  %v6344_v49 = vpop.f32.mrf.mxu3  ;;  %v4399_v50 = vpop.f32.mrf.mxu0 }
 0xa0d   : > { %v7200_v25 = vmax.f32 %v6344_v49, 0.0  ;;  %v7205_v51 = vmax.f32 %v4399_v50, 0.0  ;;  %v5048_v52 = vpop.f32.mrf.mxu1 }
 0xa0e   : > { %v10512_v53 = vadd.f32 %v10511_v42, %v7199_v48  ;;  %v7206_v26 = vmax.f32 %v5048_v52, 0.0 }
 0xa0f   : > { %v10767_v54 = vadd.f32 %v10766_v44, %v7200_v25  ;;  %v10003_v55 = vadd.f32 %v10002_v45, %v7205_v51 }
 0xa10   : > { %v10258_v56 = vadd.f32 %v10257_v46, %v7206_v26 }
 0xa13   : > { %v5697_v36 = vpop.f32.mrf.mxu2 }
 0xa14   : > { %v7207_v57 = vmax.f32 %v5697_v36, 0.0  ;;  %v6346_v58 = vpop.f32.mrf.mxu3  ;;  %v4402_v59 = vpop.f32.mrf.mxu0 }
 0xa15   : > { %v7208_v62 = vmax.f32 %v6346_v58, 0.0  ;;  %v7213_v63 = vmax.f32 %v4402_v59, 0.0  ;;  %v5051_v39 = vpop.f32.mrf.mxu1 }
 0xa16   : > { %v10513_v0 = vadd.f32 %v10512_v53, %v7207_v57  ;;  %v7214_v1 = vmax.f32 %v5051_v39, 0.0 }
 0xa17   : > { %v10768_v3 = vadd.f32 %v10767_v54, %v7208_v62  ;;  %v10004_v2 = vadd.f32 %v10003_v55, %v7213_v63  ;;  %12556 = vmatmul.msk.bf16.gmra.mxu0 %vm1312_vm0, %v13290_v4  ;;  %12684 = vmatmul.msk.bf16.gmra.mxu1 %vm1312_vm0, %v13290_v4  ;;  %v13292_v54 = vld [vmem:[%s13583_s29 + $0xf0] sm:$0xff] }
 0xa18   : > { %v10259_v5 = vadd.f32 %v10258_v56, %v7214_v1  ;;  %12812 = vmatmul.msk.bf16.gmra.mxu2 %vm1312_vm0, %v13290_v4 }
 0xa19   : > { %12940 = vmatmul.msk.bf16.gmra.mxu3 %vm1312_vm0, %v13290_v4 }
 0xa1b   : > { %v5700_v60 = vpop.f32.mrf.mxu2 }
 0xa1c   : > { %v7215_v7 = vmax.f32 %v5700_v60, 0.0  ;;  %v6349_v6 = vpop.f32.mrf.mxu3  ;;  %v4404_v9 = vpop.f32.mrf.mxu0 }
 0xa1d   : > { %v7216_v61 = vmax.f32 %v6349_v6, 0.0  ;;  %v7221_v10 = vmax.f32 %v4404_v9, 0.0  ;;  %v5053_v8 = vpop.f32.mrf.mxu1 }
 0xa1e   : > { %v10514_v11 = vadd.f32 %v10513_v0, %v7215_v7  ;;  %v7222_v14 = vmax.f32 %v5053_v8, 0.0 }
 0xa1f   : > { %v10769_v15 = vadd.f32 %v10768_v3, %v7216_v61  ;;  %v10005_v18 = vadd.f32 %v10004_v2, %v7221_v10 }
 0xa20   : > { %v10260_v12 = vadd.f32 %v10259_v5, %v7222_v14 }
 0xa23   : > { %v5702_v19 = vpop.f32.mrf.mxu2 }
 0xa24   : > { %v7223_v20 = vmax.f32 %v5702_v19, 0.0  ;;  %v6351_v23 = vpop.f32.mrf.mxu3  ;;  %v4407_v24 = vpop.f32.mrf.mxu0 }
 0xa25   : > { %v7224_v29 = vmax.f32 %v6351_v23, 0.0  ;;  %v7229_v13 = vmax.f32 %v4407_v24, 0.0  ;;  %v5056_v30 = vpop.f32.mrf.mxu1 }
 0xa26   : > { %v10515_v27 = vadd.f32 %v10514_v11, %v7223_v20  ;;  %v7230_v31 = vmax.f32 %v5056_v30, 0.0 }
 0xa27   : > { %v10770_v16 = vadd.f32 %v10769_v15, %v7224_v29  ;;  %v10006_v28 = vadd.f32 %v10005_v18, %v7229_v13  ;;  %12557 = vmatmul.msk.bf16.gmra.mxu0 %vm1312_vm0, %v13291_v17  ;;  %12685 = vmatmul.msk.bf16.gmra.mxu1 %vm1312_vm0, %v13291_v17  ;;  %v13293_v15 = vld [vmem:[%s13583_s29 + $0xf8] sm:$0xff] }
 0xa28   : > { %v10261_v32 = vadd.f32 %v10260_v12, %v7230_v31  ;;  %12813 = vmatmul.msk.bf16.gmra.mxu2 %vm1312_vm0, %v13291_v17 }
 0xa29   : > { %12941 = vmatmul.msk.bf16.gmra.mxu3 %vm1312_vm0, %v13291_v17 }
 0xa2b   : > { %v5705_v33 = vpop.f32.mrf.mxu2 }
 0xa2c   : > { %v7231_v34 = vmax.f32 %v5705_v33, 0.0  ;;  %v6354_v35 = vpop.f32.mrf.mxu3  ;;  %v4409_v37 = vpop.f32.mrf.mxu0 }
 0xa2d   : > { %v7232_v21 = vmax.f32 %v6354_v35, 0.0  ;;  %v7237_v38 = vmax.f32 %v4409_v37, 0.0  ;;  %v5058_v40 = vpop.f32.mrf.mxu1 }
 0xa2e   : > { %v10516_v41 = vadd.f32 %v10515_v27, %v7231_v34  ;;  %v7238_v42 = vmax.f32 %v5058_v40, 0.0 }
 0xa2f   : > { %v10771_v43 = vadd.f32 %v10770_v16, %v7232_v21  ;;  %v10007_v44 = vadd.f32 %v10006_v28, %v7237_v38 }
 0xa30   : > { %v10262_v45 = vadd.f32 %v10261_v32, %v7238_v42 }
 0xa33   : > { %v5707_v22 = vpop.f32.mrf.mxu2 }
 0xa34   : > { %v7239_v46 = vmax.f32 %v5707_v22, 0.0  ;;  %v6356_v47 = vpop.f32.mrf.mxu3  ;;  %v4412_v48 = vpop.f32.mrf.mxu0 }
 0xa35   : > { %v7240_v49 = vmax.f32 %v6356_v47, 0.0  ;;  %v7245_v50 = vmax.f32 %v4412_v48, 0.0  ;;  %v5061_v25 = vpop.f32.mrf.mxu1 }
 0xa36   : > { %v10517_v51 = vadd.f32 %v10516_v41, %v7239_v46  ;;  %v7246_v52 = vmax.f32 %v5061_v25, 0.0 }
 0xa37   : > { %v10772_v53 = vadd.f32 %v10771_v43, %v7240_v49  ;;  %v10008_v26 = vadd.f32 %v10007_v44, %v7245_v50  ;;  %12558 = vmatmul.msk.bf16.gmra.mxu0 %vm1312_vm0, %v13292_v54  ;;  %12686 = vmatmul.msk.bf16.gmra.mxu1 %vm1312_vm0, %v13292_v54  ;;  %v13294_v43 = vld [vmem:[%s13583_s29 + $0x100] sm:$0xff] }
 0xa38   : > { %v10263_v55 = vadd.f32 %v10262_v45, %v7246_v52  ;;  %12814 = vmatmul.msk.bf16.gmra.mxu2 %vm1312_vm0, %v13292_v54 }
 0xa39   : > { %12942 = vmatmul.msk.bf16.gmra.mxu3 %vm1312_vm0, %v13292_v54 }
 0xa3b   : > { %v5710_v56 = vpop.f32.mrf.mxu2 }
 0xa3c   : > { %v7247_v36 = vmax.f32 %v5710_v56, 0.0  ;;  %v6359_v57 = vpop.f32.mrf.mxu3  ;;  %v4414_v58 = vpop.f32.mrf.mxu0 }
 0xa3d   : > { %v7248_v59 = vmax.f32 %v6359_v57, 0.0  ;;  %v7253_v62 = vmax.f32 %v4414_v58, 0.0  ;;  %v5063_v63 = vpop.f32.mrf.mxu1 }
 0xa3e   : > { %v10518_v39 = vadd.f32 %v10517_v51, %v7247_v36  ;;  %v7254_v0 = vmax.f32 %v5063_v63, 0.0 }
 0xa3f   : > { %v10773_v1 = vadd.f32 %v10772_v53, %v7248_v59  ;;  %v10009_v3 = vadd.f32 %v10008_v26, %v7253_v62 }
 0xa40   : > { %v10264_v2 = vadd.f32 %v10263_v55, %v7254_v0 }
 0xa43   : > { %v5712_v4 = vpop.f32.mrf.mxu2 }
 0xa44   : > { %v7255_v5 = vmax.f32 %v5712_v4, 0.0  ;;  %v6361_v60 = vpop.f32.mrf.mxu3  ;;  %v4417_v7 = vpop.f32.mrf.mxu0 }
 0xa45   : > { %v7256_v6 = vmax.f32 %v6361_v60, 0.0  ;;  %v7261_v9 = vmax.f32 %v4417_v7, 0.0  ;;  %v5066_v61 = vpop.f32.mrf.mxu1 }
 0xa46   : > { %v10519_v10 = vadd.f32 %v10518_v39, %v7255_v5  ;;  %v7262_v8 = vmax.f32 %v5066_v61, 0.0 }
 0xa47   : > { %v10774_v11 = vadd.f32 %v10773_v1, %v7256_v6  ;;  %v10010_v14 = vadd.f32 %v10009_v3, %v7261_v9  ;;  %12559 = vmatmul.msk.bf16.gmra.mxu0 %vm1312_vm0, %v13293_v15  ;;  %12687 = vmatmul.msk.bf16.gmra.mxu1 %vm1312_vm0, %v13293_v15  ;;  %v13295_v1 = vld [vmem:[%s13583_s29 + $0x108] sm:$0xff] }
 0xa48   : > { %v10265_v18 = vadd.f32 %v10264_v2, %v7262_v8  ;;  %12815 = vmatmul.msk.bf16.gmra.mxu2 %vm1312_vm0, %v13293_v15 }
 0xa49   : > { %12943 = vmatmul.msk.bf16.gmra.mxu3 %vm1312_vm0, %v13293_v15 }
 0xa4b   : > { %v5715_v12 = vpop.f32.mrf.mxu2 }
 0xa4c   : > { %v7263_v19 = vmax.f32 %v5715_v12, 0.0  ;;  %v6364_v20 = vpop.f32.mrf.mxu3  ;;  %v4419_v23 = vpop.f32.mrf.mxu0 }
 0xa4d   : > { %v7264_v24 = vmax.f32 %v6364_v20, 0.0  ;;  %v7269_v29 = vmax.f32 %v4419_v23, 0.0  ;;  %v5068_v13 = vpop.f32.mrf.mxu1 }
 0xa4e   : > { %v10520_v30 = vadd.f32 %v10519_v10, %v7263_v19  ;;  %v7270_v27 = vmax.f32 %v5068_v13, 0.0 }
 0xa4f   : > { %v10775_v31 = vadd.f32 %v10774_v11, %v7264_v24  ;;  %v10011_v16 = vadd.f32 %v10010_v14, %v7269_v29 }
 0xa50   : > { %v10266_v28 = vadd.f32 %v10265_v18, %v7270_v27 }
 0xa53   : > { %v5717_v17 = vpop.f32.mrf.mxu2 }
 0xa54   : > { %v7271_v32 = vmax.f32 %v5717_v17, 0.0  ;;  %v6366_v33 = vpop.f32.mrf.mxu3  ;;  %v4422_v34 = vpop.f32.mrf.mxu0 }
 0xa55   : > { %v7272_v35 = vmax.f32 %v6366_v33, 0.0  ;;  %v7277_v37 = vmax.f32 %v4422_v34, 0.0  ;;  %v5071_v21 = vpop.f32.mrf.mxu1 }
 0xa56   : > { %v10521_v38 = vadd.f32 %v10520_v30, %v7271_v32  ;;  %v7278_v40 = vmax.f32 %v5071_v21, 0.0 }
 0xa57   : > { %v10776_v41 = vadd.f32 %v10775_v31, %v7272_v35  ;;  %v10012_v42 = vadd.f32 %v10011_v16, %v7277_v37  ;;  %12560 = vmatmul.msk.bf16.gmra.mxu0 %vm1312_vm0, %v13294_v43  ;;  %12688 = vmatmul.msk.bf16.gmra.mxu1 %vm1312_vm0, %v13294_v43  ;;  %v13296_v31 = vld [vmem:[%s13583_s29 + $0x110] sm:$0xff] }
 0xa58   : > { %v10267_v44 = vadd.f32 %v10266_v28, %v7278_v40  ;;  %12816 = vmatmul.msk.bf16.gmra.mxu2 %vm1312_vm0, %v13294_v43 }
 0xa59   : > { %12944 = vmatmul.msk.bf16.gmra.mxu3 %vm1312_vm0, %v13294_v43 }
 0xa5b   : > { %v5720_v45 = vpop.f32.mrf.mxu2 }
 0xa5c   : > { %v7279_v22 = vmax.f32 %v5720_v45, 0.0  ;;  %v6369_v46 = vpop.f32.mrf.mxu3  ;;  %v4424_v47 = vpop.f32.mrf.mxu0 }
 0xa5d   : > { %v7280_v48 = vmax.f32 %v6369_v46, 0.0  ;;  %v7285_v49 = vmax.f32 %v4424_v47, 0.0  ;;  %v5073_v50 = vpop.f32.mrf.mxu1 }
 0xa5e   : > { %v10522_v25 = vadd.f32 %v10521_v38, %v7279_v22  ;;  %v7286_v51 = vmax.f32 %v5073_v50, 0.0 }
 0xa5f   : > { %v10777_v52 = vadd.f32 %v10776_v41, %v7280_v48  ;;  %v10013_v53 = vadd.f32 %v10012_v42, %v7285_v49 }
 0xa60   : > { %v10268_v26 = vadd.f32 %v10267_v44, %v7286_v51 }
 0xa63   : > { %v5722_v54 = vpop.f32.mrf.mxu2 }
 0xa64   : > { %v7287_v55 = vmax.f32 %v5722_v54, 0.0  ;;  %v6371_v56 = vpop.f32.mrf.mxu3  ;;  %v4427_v36 = vpop.f32.mrf.mxu0 }
 0xa65   : > { %v7288_v57 = vmax.f32 %v6371_v56, 0.0  ;;  %v7293_v58 = vmax.f32 %v4427_v36, 0.0  ;;  %v5076_v59 = vpop.f32.mrf.mxu1 }
 0xa66   : > { %v10523_v62 = vadd.f32 %v10522_v25, %v7287_v55  ;;  %v7294_v63 = vmax.f32 %v5076_v59, 0.0 }
 0xa67   : > { %v10778_v39 = vadd.f32 %v10777_v52, %v7288_v57  ;;  %v10014_v0 = vadd.f32 %v10013_v53, %v7293_v58  ;;  %12561 = vmatmul.msk.bf16.gmra.mxu0 %vm1312_vm0, %v13295_v1  ;;  %12689 = vmatmul.msk.bf16.gmra.mxu1 %vm1312_vm0, %v13295_v1  ;;  %v13297_v52 = vld [vmem:[%s13583_s29 + $0x118] sm:$0xff] }
 0xa68   : > { %v10269_v3 = vadd.f32 %v10268_v26, %v7294_v63  ;;  %12817 = vmatmul.msk.bf16.gmra.mxu2 %vm1312_vm0, %v13295_v1 }
 0xa69   : > { %12945 = vmatmul.msk.bf16.gmra.mxu3 %vm1312_vm0, %v13295_v1 }
 0xa6b   : > { %v5725_v2 = vpop.f32.mrf.mxu2 }
 0xa6c   : > { %v7295_v4 = vmax.f32 %v5725_v2, 0.0  ;;  %v6374_v5 = vpop.f32.mrf.mxu3  ;;  %v4429_v60 = vpop.f32.mrf.mxu0 }
 0xa6d   : > { %v7296_v7 = vmax.f32 %v6374_v5, 0.0  ;;  %v7301_v6 = vmax.f32 %v4429_v60, 0.0  ;;  %v5078_v9 = vpop.f32.mrf.mxu1 }
 0xa6e   : > { %v10524_v61 = vadd.f32 %v10523_v62, %v7295_v4  ;;  %v7302_v10 = vmax.f32 %v5078_v9, 0.0 }
 0xa6f   : > { %v10779_v8 = vadd.f32 %v10778_v39, %v7296_v7  ;;  %v10015_v11 = vadd.f32 %v10014_v0, %v7301_v6 }
 0xa70   : > { %v10270_v14 = vadd.f32 %v10269_v3, %v7302_v10 }
 0xa73   : > { %v5727_v15 = vpop.f32.mrf.mxu2 }
 0xa74   : > { %v7303_v18 = vmax.f32 %v5727_v15, 0.0  ;;  %v6376_v12 = vpop.f32.mrf.mxu3  ;;  %v4432_v19 = vpop.f32.mrf.mxu0 }
 0xa75   : > { %v7304_v20 = vmax.f32 %v6376_v12, 0.0  ;;  %v7309_v23 = vmax.f32 %v4432_v19, 0.0  ;;  %v5081_v24 = vpop.f32.mrf.mxu1 }
 0xa76   : > { %v10525_v29 = vadd.f32 %v10524_v61, %v7303_v18  ;;  %v7310_v13 = vmax.f32 %v5081_v24, 0.0 }
 0xa77   : > { %v10780_v30 = vadd.f32 %v10779_v8, %v7304_v20  ;;  %v10016_v27 = vadd.f32 %v10015_v11, %v7309_v23  ;;  %12562 = vmatmul.msk.bf16.gmra.mxu0 %vm1312_vm0, %v13296_v31  ;;  %12690 = vmatmul.msk.bf16.gmra.mxu1 %vm1312_vm0, %v13296_v31  ;;  %v13298_v8 = vld [vmem:[%s13583_s29 + $0x120] sm:$0xff] }
 0xa78   : > { %v10271_v16 = vadd.f32 %v10270_v14, %v7310_v13  ;;  %12818 = vmatmul.msk.bf16.gmra.mxu2 %vm1312_vm0, %v13296_v31 }
 0xa79   : > { %12946 = vmatmul.msk.bf16.gmra.mxu3 %vm1312_vm0, %v13296_v31 }
 0xa7b   : > { %v5730_v28 = vpop.f32.mrf.mxu2 }
 0xa7c   : > { %v7311_v17 = vmax.f32 %v5730_v28, 0.0  ;;  %v6379_v32 = vpop.f32.mrf.mxu3  ;;  %v4434_v33 = vpop.f32.mrf.mxu0 }
 0xa7d   : > { %v7312_v34 = vmax.f32 %v6379_v32, 0.0  ;;  %v7317_v35 = vmax.f32 %v4434_v33, 0.0  ;;  %v5083_v37 = vpop.f32.mrf.mxu1 }
 0xa7e   : > { %v10526_v21 = vadd.f32 %v10525_v29, %v7311_v17  ;;  %v7318_v38 = vmax.f32 %v5083_v37, 0.0 }
 0xa7f   : > { %v10781_v40 = vadd.f32 %v10780_v30, %v7312_v34  ;;  %v10017_v41 = vadd.f32 %v10016_v27, %v7317_v35 }
 0xa80   : > { %v10272_v42 = vadd.f32 %v10271_v16, %v7318_v38 }
 0xa83   : > { %v5732_v43 = vpop.f32.mrf.mxu2 }
 0xa84   : > { %v7319_v44 = vmax.f32 %v5732_v43, 0.0  ;;  %v6381_v45 = vpop.f32.mrf.mxu3  ;;  %v4437_v22 = vpop.f32.mrf.mxu0 }
 0xa85   : > { %v7320_v46 = vmax.f32 %v6381_v45, 0.0  ;;  %v7325_v47 = vmax.f32 %v4437_v22, 0.0  ;;  %v5086_v48 = vpop.f32.mrf.mxu1 }
 0xa86   : > { %v10527_v49 = vadd.f32 %v10526_v21, %v7319_v44  ;;  %v7326_v50 = vmax.f32 %v5086_v48, 0.0 }
 0xa87   : > { %v10782_v25 = vadd.f32 %v10781_v40, %v7320_v46  ;;  %v10018_v51 = vadd.f32 %v10017_v41, %v7325_v47  ;;  %12563 = vmatmul.msk.bf16.gmra.mxu0 %vm1312_vm0, %v13297_v52  ;;  %12691 = vmatmul.msk.bf16.gmra.mxu1 %vm1312_vm0, %v13297_v52  ;;  %v13299_v40 = vld [vmem:[%s13583_s29 + $0x128] sm:$0xff] }
 0xa88   : > { %v10273_v53 = vadd.f32 %v10272_v42, %v7326_v50  ;;  %12819 = vmatmul.msk.bf16.gmra.mxu2 %vm1312_vm0, %v13297_v52 }
 0xa89   : > { %12947 = vmatmul.msk.bf16.gmra.mxu3 %vm1312_vm0, %v13297_v52 }
 0xa8b   : > { %v5735_v26 = vpop.f32.mrf.mxu2 }
 0xa8c   : > { %v7327_v54 = vmax.f32 %v5735_v26, 0.0  ;;  %v6384_v55 = vpop.f32.mrf.mxu3  ;;  %v4439_v56 = vpop.f32.mrf.mxu0 }
 0xa8d   : > { %v7328_v36 = vmax.f32 %v6384_v55, 0.0  ;;  %v7333_v57 = vmax.f32 %v4439_v56, 0.0  ;;  %v5088_v58 = vpop.f32.mrf.mxu1 }
 0xa8e   : > { %v10528_v59 = vadd.f32 %v10527_v49, %v7327_v54  ;;  %v7334_v62 = vmax.f32 %v5088_v58, 0.0 }
 0xa8f   : > { %v10783_v63 = vadd.f32 %v10782_v25, %v7328_v36  ;;  %v10019_v39 = vadd.f32 %v10018_v51, %v7333_v57 }
 0xa90   : > { %v10274_v0 = vadd.f32 %v10273_v53, %v7334_v62 }
 0xa93   : > { %v5737_v1 = vpop.f32.mrf.mxu2 }
 0xa94   : > { %v7335_v3 = vmax.f32 %v5737_v1, 0.0  ;;  %v6386_v2 = vpop.f32.mrf.mxu3  ;;  %v4442_v4 = vpop.f32.mrf.mxu0 }
 0xa95   : > { %v7336_v5 = vmax.f32 %v6386_v2, 0.0  ;;  %v7341_v60 = vmax.f32 %v4442_v4, 0.0  ;;  %v5091_v7 = vpop.f32.mrf.mxu1 }
 0xa96   : > { %v10529_v6 = vadd.f32 %v10528_v59, %v7335_v3  ;;  %v7342_v9 = vmax.f32 %v5091_v7, 0.0 }
 0xa97   : > { %v10784_v61 = vadd.f32 %v10783_v63, %v7336_v5  ;;  %v10020_v10 = vadd.f32 %v10019_v39, %v7341_v60  ;;  %12564 = vmatmul.msk.bf16.gmra.mxu0 %vm1312_vm0, %v13298_v8  ;;  %12692 = vmatmul.msk.bf16.gmra.mxu1 %vm1312_vm0, %v13298_v8  ;;  %v13300_v63 = vld [vmem:[%s13583_s29 + $0x130] sm:$0xff] }
 0xa98   : > { %v10275_v11 = vadd.f32 %v10274_v0, %v7342_v9  ;;  %12820 = vmatmul.msk.bf16.gmra.mxu2 %vm1312_vm0, %v13298_v8 }
 0xa99   : > { %12948 = vmatmul.msk.bf16.gmra.mxu3 %vm1312_vm0, %v13298_v8 }
 0xa9b   : > { %v5740_v14 = vpop.f32.mrf.mxu2 }
 0xa9c   : > { %v7343_v15 = vmax.f32 %v5740_v14, 0.0  ;;  %v6389_v18 = vpop.f32.mrf.mxu3  ;;  %v4444_v12 = vpop.f32.mrf.mxu0 }
 0xa9d   : > { %v7344_v19 = vmax.f32 %v6389_v18, 0.0  ;;  %v7349_v20 = vmax.f32 %v4444_v12, 0.0  ;;  %v5093_v23 = vpop.f32.mrf.mxu1 }
 0xa9e   : > { %v10530_v24 = vadd.f32 %v10529_v6, %v7343_v15  ;;  %v7350_v29 = vmax.f32 %v5093_v23, 0.0 }
 0xa9f   : > { %v10785_v13 = vadd.f32 %v10784_v61, %v7344_v19  ;;  %v10021_v30 = vadd.f32 %v10020_v10, %v7349_v20 }
 0xaa0   : > { %v10276_v27 = vadd.f32 %v10275_v11, %v7350_v29 }
 0xaa3   : > { %v5742_v31 = vpop.f32.mrf.mxu2 }
 0xaa4   : > { %v7351_v16 = vmax.f32 %v5742_v31, 0.0  ;;  %v6391_v28 = vpop.f32.mrf.mxu3  ;;  %v4447_v17 = vpop.f32.mrf.mxu0 }
 0xaa5   : > { %v7352_v32 = vmax.f32 %v6391_v28, 0.0  ;;  %v7357_v33 = vmax.f32 %v4447_v17, 0.0  ;;  %v5096_v34 = vpop.f32.mrf.mxu1 }
 0xaa6   : > { %v10531_v35 = vadd.f32 %v10530_v24, %v7351_v16  ;;  %v7358_v37 = vmax.f32 %v5096_v34, 0.0 }
 0xaa7   : > { %v10786_v21 = vadd.f32 %v10785_v13, %v7352_v32  ;;  %v10022_v38 = vadd.f32 %v10021_v30, %v7357_v33  ;;  %12565 = vmatmul.msk.bf16.gmra.mxu0 %vm1312_vm0, %v13299_v40  ;;  %12693 = vmatmul.msk.bf16.gmra.mxu1 %vm1312_vm0, %v13299_v40  ;;  %v13301_v13 = vld [vmem:[%s13583_s29 + $0x138] sm:$0xff] }
 0xaa8   : > { %v10277_v41 = vadd.f32 %v10276_v27, %v7358_v37  ;;  %12821 = vmatmul.msk.bf16.gmra.mxu2 %vm1312_vm0, %v13299_v40 }
 0xaa9   : > { %12949 = vmatmul.msk.bf16.gmra.mxu3 %vm1312_vm0, %v13299_v40 }
 0xaab   : > { %v5745_v42 = vpop.f32.mrf.mxu2 }
 0xaac   : > { %v7359_v43 = vmax.f32 %v5745_v42, 0.0  ;;  %v6394_v44 = vpop.f32.mrf.mxu3  ;;  %v4449_v45 = vpop.f32.mrf.mxu0 }
 0xaad   : > { %v7360_v22 = vmax.f32 %v6394_v44, 0.0  ;;  %v7365_v46 = vmax.f32 %v4449_v45, 0.0  ;;  %v5098_v47 = vpop.f32.mrf.mxu1 }
 0xaae   : > { %v10532_v48 = vadd.f32 %v10531_v35, %v7359_v43  ;;  %v7366_v49 = vmax.f32 %v5098_v47, 0.0 }
 0xaaf   : > { %v10787_v50 = vadd.f32 %v10786_v21, %v7360_v22  ;;  %v10023_v25 = vadd.f32 %v10022_v38, %v7365_v46 }
 0xab0   : > { %v10278_v51 = vadd.f32 %v10277_v41, %v7366_v49 }
 0xab3   : > { %v5747_v52 = vpop.f32.mrf.mxu2 }
 0xab4   : > { %v7367_v53 = vmax.f32 %v5747_v52, 0.0  ;;  %v6396_v26 = vpop.f32.mrf.mxu3  ;;  %v4452_v54 = vpop.f32.mrf.mxu0 }
 0xab5   : > { %v7368_v55 = vmax.f32 %v6396_v26, 0.0  ;;  %v7373_v56 = vmax.f32 %v4452_v54, 0.0  ;;  %v5101_v36 = vpop.f32.mrf.mxu1 }
 0xab6   : > { %v10533_v57 = vadd.f32 %v10532_v48, %v7367_v53  ;;  %v7374_v58 = vmax.f32 %v5101_v36, 0.0 }
 0xab7   : > { %v10788_v59 = vadd.f32 %v10787_v50, %v7368_v55  ;;  %v10024_v62 = vadd.f32 %v10023_v25, %v7373_v56  ;;  %12566 = vmatmul.msk.bf16.gmra.mxu0 %vm1312_vm0, %v13300_v63  ;;  %12694 = vmatmul.msk.bf16.gmra.mxu1 %vm1312_vm0, %v13300_v63  ;;  %v13302_v50 = vld [vmem:[%s13583_s29 + $0x140] sm:$0xff] }
 0xab8   : > { %v10279_v39 = vadd.f32 %v10278_v51, %v7374_v58  ;;  %12822 = vmatmul.msk.bf16.gmra.mxu2 %vm1312_vm0, %v13300_v63 }
 0xab9   : > { %12950 = vmatmul.msk.bf16.gmra.mxu3 %vm1312_vm0, %v13300_v63 }
 0xabb   : > { %v5750_v0 = vpop.f32.mrf.mxu2 }
 0xabc   : > { %v7375_v1 = vmax.f32 %v5750_v0, 0.0  ;;  %v6399_v3 = vpop.f32.mrf.mxu3  ;;  %v4454_v2 = vpop.f32.mrf.mxu0 }
 0xabd   : > { %v7376_v4 = vmax.f32 %v6399_v3, 0.0  ;;  %v7381_v5 = vmax.f32 %v4454_v2, 0.0  ;;  %v5103_v60 = vpop.f32.mrf.mxu1 }
 0xabe   : > { %v10534_v7 = vadd.f32 %v10533_v57, %v7375_v1  ;;  %v7382_v6 = vmax.f32 %v5103_v60, 0.0 }
 0xabf   : > { %v10789_v9 = vadd.f32 %v10788_v59, %v7376_v4  ;;  %v10025_v61 = vadd.f32 %v10024_v62, %v7381_v5 }
 0xac0   : > { %v10280_v10 = vadd.f32 %v10279_v39, %v7382_v6 }
 0xac3   : > { %v5752_v8 = vpop.f32.mrf.mxu2 }
 0xac4   : > { %v7383_v11 = vmax.f32 %v5752_v8, 0.0  ;;  %v6401_v14 = vpop.f32.mrf.mxu3  ;;  %v4457_v15 = vpop.f32.mrf.mxu0 }
 0xac5   : > { %v7384_v18 = vmax.f32 %v6401_v14, 0.0  ;;  %v7389_v12 = vmax.f32 %v4457_v15, 0.0  ;;  %v5106_v19 = vpop.f32.mrf.mxu1 }
 0xac6   : > { %v10535_v20 = vadd.f32 %v10534_v7, %v7383_v11  ;;  %v7390_v23 = vmax.f32 %v5106_v19, 0.0 }
 0xac7   : > { %v10790_v24 = vadd.f32 %v10789_v9, %v7384_v18  ;;  %v10026_v29 = vadd.f32 %v10025_v61, %v7389_v12  ;;  %12567 = vmatmul.msk.bf16.gmra.mxu0 %vm1312_vm0, %v13301_v13  ;;  %12695 = vmatmul.msk.bf16.gmra.mxu1 %vm1312_vm0, %v13301_v13  ;;  %v13303_v9 = vld [vmem:[%s13583_s29 + $0x148] sm:$0xff] }
 0xac8   : > { %v10281_v30 = vadd.f32 %v10280_v10, %v7390_v23  ;;  %12823 = vmatmul.msk.bf16.gmra.mxu2 %vm1312_vm0, %v13301_v13 }
 0xac9   : > { %12951 = vmatmul.msk.bf16.gmra.mxu3 %vm1312_vm0, %v13301_v13 }
 0xacb   : > { %v5755_v27 = vpop.f32.mrf.mxu2 }
 0xacc   : > { %v7391_v31 = vmax.f32 %v5755_v27, 0.0  ;;  %v6404_v16 = vpop.f32.mrf.mxu3  ;;  %v4459_v28 = vpop.f32.mrf.mxu0 }
 0xacd   : > { %v7392_v17 = vmax.f32 %v6404_v16, 0.0  ;;  %v7397_v32 = vmax.f32 %v4459_v28, 0.0  ;;  %v5108_v33 = vpop.f32.mrf.mxu1 }
 0xace   : > { %v10536_v34 = vadd.f32 %v10535_v20, %v7391_v31  ;;  %v7398_v35 = vmax.f32 %v5108_v33, 0.0 }
 0xacf   : > { %v10791_v37 = vadd.f32 %v10790_v24, %v7392_v17  ;;  %v10027_v21 = vadd.f32 %v10026_v29, %v7397_v32 }
 0xad0   : > { %v10282_v38 = vadd.f32 %v10281_v30, %v7398_v35 }
 0xad3   : > { %v5757_v40 = vpop.f32.mrf.mxu2 }
 0xad4   : > { %v7399_v41 = vmax.f32 %v5757_v40, 0.0  ;;  %v6406_v42 = vpop.f32.mrf.mxu3  ;;  %v4462_v43 = vpop.f32.mrf.mxu0 }
 0xad5   : > { %v7400_v44 = vmax.f32 %v6406_v42, 0.0  ;;  %v7405_v45 = vmax.f32 %v4462_v43, 0.0  ;;  %v5111_v22 = vpop.f32.mrf.mxu1 }
 0xad6   : > { %v10537_v46 = vadd.f32 %v10536_v34, %v7399_v41  ;;  %v7406_v47 = vmax.f32 %v5111_v22, 0.0 }
 0xad7   : > { %v10792_v48 = vadd.f32 %v10791_v37, %v7400_v44  ;;  %v10028_v49 = vadd.f32 %v10027_v21, %v7405_v45  ;;  %12568 = vmatmul.msk.bf16.gmra.mxu0 %vm1312_vm0, %v13302_v50  ;;  %12696 = vmatmul.msk.bf16.gmra.mxu1 %vm1312_vm0, %v13302_v50  ;;  %v13304_v37 = vld [vmem:[%s13583_s29 + $0x150] sm:$0xff] }
 0xad8   : > { %v10283_v25 = vadd.f32 %v10282_v38, %v7406_v47  ;;  %12824 = vmatmul.msk.bf16.gmra.mxu2 %vm1312_vm0, %v13302_v50 }
 0xad9   : > { %12952 = vmatmul.msk.bf16.gmra.mxu3 %vm1312_vm0, %v13302_v50 }
 0xadb   : > { %v5760_v51 = vpop.f32.mrf.mxu2 }
 0xadc   : > { %v7407_v52 = vmax.f32 %v5760_v51, 0.0  ;;  %v6409_v53 = vpop.f32.mrf.mxu3  ;;  %v4464_v26 = vpop.f32.mrf.mxu0 }
 0xadd   : > { %v7408_v54 = vmax.f32 %v6409_v53, 0.0  ;;  %v7413_v55 = vmax.f32 %v4464_v26, 0.0  ;;  %v5113_v56 = vpop.f32.mrf.mxu1 }
 0xade   : > { %v10538_v36 = vadd.f32 %v10537_v46, %v7407_v52  ;;  %v7414_v57 = vmax.f32 %v5113_v56, 0.0 }
 0xadf   : > { %v10793_v58 = vadd.f32 %v10792_v48, %v7408_v54  ;;  %v10029_v59 = vadd.f32 %v10028_v49, %v7413_v55 }
 0xae0   : > { %v10284_v62 = vadd.f32 %v10283_v25, %v7414_v57 }
 0xae3   : > { %v5762_v63 = vpop.f32.mrf.mxu2 }
 0xae4   : > { %v7415_v39 = vmax.f32 %v5762_v63, 0.0  ;;  %v6411_v0 = vpop.f32.mrf.mxu3  ;;  %v4467_v1 = vpop.f32.mrf.mxu0 }
 0xae5   : > { %v7416_v3 = vmax.f32 %v6411_v0, 0.0  ;;  %v7421_v2 = vmax.f32 %v4467_v1, 0.0  ;;  %v5116_v4 = vpop.f32.mrf.mxu1 }
 0xae6   : > { %v10539_v5 = vadd.f32 %v10538_v36, %v7415_v39  ;;  %v7422_v60 = vmax.f32 %v5116_v4, 0.0 }
 0xae7   : > { %v10794_v7 = vadd.f32 %v10793_v58, %v7416_v3  ;;  %v10030_v6 = vadd.f32 %v10029_v59, %v7421_v2  ;;  %12569 = vmatmul.msk.bf16.gmra.mxu0 %vm1312_vm0, %v13303_v9  ;;  %12697 = vmatmul.msk.bf16.gmra.mxu1 %vm1312_vm0, %v13303_v9  ;;  %v13305_v58 = vld [vmem:[%s13583_s29 + $0x158] sm:$0xff] }
 0xae8   : > { %v10285_v61 = vadd.f32 %v10284_v62, %v7422_v60  ;;  %12825 = vmatmul.msk.bf16.gmra.mxu2 %vm1312_vm0, %v13303_v9 }
 0xae9   : > { %12953 = vmatmul.msk.bf16.gmra.mxu3 %vm1312_vm0, %v13303_v9 }
 0xaeb   : > { %v5765_v10 = vpop.f32.mrf.mxu2 }
 0xaec   : > { %v7423_v8 = vmax.f32 %v5765_v10, 0.0  ;;  %v6414_v11 = vpop.f32.mrf.mxu3  ;;  %v4469_v14 = vpop.f32.mrf.mxu0 }
 0xaed   : > { %v7424_v15 = vmax.f32 %v6414_v11, 0.0  ;;  %v7429_v18 = vmax.f32 %v4469_v14, 0.0  ;;  %v5118_v12 = vpop.f32.mrf.mxu1 }
 0xaee   : > { %v10540_v19 = vadd.f32 %v10539_v5, %v7423_v8  ;;  %v7430_v20 = vmax.f32 %v5118_v12, 0.0 }
 0xaef   : > { %v10795_v23 = vadd.f32 %v10794_v7, %v7424_v15  ;;  %v10031_v24 = vadd.f32 %v10030_v6, %v7429_v18 }
 0xaf0   : > { %v10286_v29 = vadd.f32 %v10285_v61, %v7430_v20 }
 0xaf3   : > { %v5767_v13 = vpop.f32.mrf.mxu2 }
 0xaf4   : > { %v7431_v30 = vmax.f32 %v5767_v13, 0.0  ;;  %v6416_v27 = vpop.f32.mrf.mxu3  ;;  %v4472_v31 = vpop.f32.mrf.mxu0 }
 0xaf5   : > { %v7432_v16 = vmax.f32 %v6416_v27, 0.0  ;;  %v7437_v28 = vmax.f32 %v4472_v31, 0.0  ;;  %v5121_v17 = vpop.f32.mrf.mxu1 }
 0xaf6   : > { %v10541_v32 = vadd.f32 %v10540_v19, %v7431_v30  ;;  %v7438_v33 = vmax.f32 %v5121_v17, 0.0 }
 0xaf7   : > { %v10796_v34 = vadd.f32 %v10795_v23, %v7432_v16  ;;  %v10032_v35 = vadd.f32 %v10031_v24, %v7437_v28  ;;  %12570 = vmatmul.msk.bf16.gmra.mxu0 %vm1312_vm0, %v13304_v37  ;;  %12698 = vmatmul.msk.bf16.gmra.mxu1 %vm1312_vm0, %v13304_v37  ;;  %v13306_v23 = vld [vmem:[%s13583_s29 + $0x160] sm:$0xff] }
 0xaf8   : > { %v10287_v21 = vadd.f32 %v10286_v29, %v7438_v33  ;;  %12826 = vmatmul.msk.bf16.gmra.mxu2 %vm1312_vm0, %v13304_v37 }
 0xaf9   : > { %12954 = vmatmul.msk.bf16.gmra.mxu3 %vm1312_vm0, %v13304_v37 }
 0xafb   : > { %v5770_v38 = vpop.f32.mrf.mxu2 }
 0xafc   : > { %v7439_v40 = vmax.f32 %v5770_v38, 0.0  ;;  %v6419_v41 = vpop.f32.mrf.mxu3  ;;  %v4474_v42 = vpop.f32.mrf.mxu0 }
 0xafd   : > { %v7440_v43 = vmax.f32 %v6419_v41, 0.0  ;;  %v7445_v44 = vmax.f32 %v4474_v42, 0.0  ;;  %v5123_v45 = vpop.f32.mrf.mxu1 }
 0xafe   : > { %v10542_v22 = vadd.f32 %v10541_v32, %v7439_v40  ;;  %v7446_v46 = vmax.f32 %v5123_v45, 0.0 }
 0xaff   : > { %v10797_v47 = vadd.f32 %v10796_v34, %v7440_v43  ;;  %v10033_v48 = vadd.f32 %v10032_v35, %v7445_v44 }
 0xb00   : > { %v10288_v49 = vadd.f32 %v10287_v21, %v7446_v46 }
 0xb03   : > { %v5772_v50 = vpop.f32.mrf.mxu2 }
 0xb04   : > { %v7447_v25 = vmax.f32 %v5772_v50, 0.0  ;;  %v6421_v51 = vpop.f32.mrf.mxu3  ;;  %v4477_v52 = vpop.f32.mrf.mxu0 }
 0xb05   : > { %v7448_v53 = vmax.f32 %v6421_v51, 0.0  ;;  %v7453_v26 = vmax.f32 %v4477_v52, 0.0  ;;  %v5126_v54 = vpop.f32.mrf.mxu1 }
 0xb06   : > { %v10543_v55 = vadd.f32 %v10542_v22, %v7447_v25  ;;  %v7454_v56 = vmax.f32 %v5126_v54, 0.0 }
 0xb07   : > { %v10798_v36 = vadd.f32 %v10797_v47, %v7448_v53  ;;  %v10034_v57 = vadd.f32 %v10033_v48, %v7453_v26  ;;  %12571 = vmatmul.msk.bf16.gmra.mxu0 %vm1312_vm0, %v13305_v58  ;;  %12699 = vmatmul.msk.bf16.gmra.mxu1 %vm1312_vm0, %v13305_v58  ;;  %v13307_v47 = vld [vmem:[%s13583_s29 + $0x168] sm:$0xff] }
 0xb08   : > { %v10289_v59 = vadd.f32 %v10288_v49, %v7454_v56  ;;  %12827 = vmatmul.msk.bf16.gmra.mxu2 %vm1312_vm0, %v13305_v58 }
 0xb09   : > { %12955 = vmatmul.msk.bf16.gmra.mxu3 %vm1312_vm0, %v13305_v58 }
 0xb0b   : > { %v5775_v62 = vpop.f32.mrf.mxu2 }
 0xb0c   : > { %v7455_v63 = vmax.f32 %v5775_v62, 0.0  ;;  %v6424_v39 = vpop.f32.mrf.mxu3  ;;  %v4479_v0 = vpop.f32.mrf.mxu0 }
 0xb0d   : > { %v7456_v1 = vmax.f32 %v6424_v39, 0.0  ;;  %v7461_v3 = vmax.f32 %v4479_v0, 0.0  ;;  %v5128_v2 = vpop.f32.mrf.mxu1 }
 0xb0e   : > { %v10544_v4 = vadd.f32 %v10543_v55, %v7455_v63  ;;  %v7462_v5 = vmax.f32 %v5128_v2, 0.0 }
 0xb0f   : > { %v10799_v60 = vadd.f32 %v10798_v36, %v7456_v1  ;;  %v10035_v7 = vadd.f32 %v10034_v57, %v7461_v3 }
 0xb10   : > { %v10290_v6 = vadd.f32 %v10289_v59, %v7462_v5 }
 0xb13   : > { %v5777_v9 = vpop.f32.mrf.mxu2 }
 0xb14   : > { %v7463_v61 = vmax.f32 %v5777_v9, 0.0  ;;  %v6426_v10 = vpop.f32.mrf.mxu3  ;;  %v4482_v8 = vpop.f32.mrf.mxu0 }
 0xb15   : > { %v7464_v11 = vmax.f32 %v6426_v10, 0.0  ;;  %v7469_v14 = vmax.f32 %v4482_v8, 0.0  ;;  %v5131_v15 = vpop.f32.mrf.mxu1 }
 0xb16   : > { %v10545_v18 = vadd.f32 %v10544_v4, %v7463_v61  ;;  %v7470_v12 = vmax.f32 %v5131_v15, 0.0 }
 0xb17   : > { %v10800_v19 = vadd.f32 %v10799_v60, %v7464_v11  ;;  %v10036_v20 = vadd.f32 %v10035_v7, %v7469_v14  ;;  %12572 = vmatmul.msk.bf16.gmra.mxu0 %vm1312_vm0, %v13306_v23  ;;  %12700 = vmatmul.msk.bf16.gmra.mxu1 %vm1312_vm0, %v13306_v23  ;;  %v13308_v60 = vld [vmem:[%s13583_s29 + $0x170] sm:$0xff] }
 0xb18   : > { %v10291_v24 = vadd.f32 %v10290_v6, %v7470_v12  ;;  %12828 = vmatmul.msk.bf16.gmra.mxu2 %vm1312_vm0, %v13306_v23 }
 0xb19   : > { %12956 = vmatmul.msk.bf16.gmra.mxu3 %vm1312_vm0, %v13306_v23 }
 0xb1b   : > { %v5780_v29 = vpop.f32.mrf.mxu2 }
 0xb1c   : > { %v7471_v13 = vmax.f32 %v5780_v29, 0.0  ;;  %v6429_v30 = vpop.f32.mrf.mxu3  ;;  %v4484_v27 = vpop.f32.mrf.mxu0 }
 0xb1d   : > { %v7472_v31 = vmax.f32 %v6429_v30, 0.0  ;;  %v7477_v16 = vmax.f32 %v4484_v27, 0.0  ;;  %v5133_v28 = vpop.f32.mrf.mxu1 }
 0xb1e   : > { %v10546_v17 = vadd.f32 %v10545_v18, %v7471_v13  ;;  %v7478_v32 = vmax.f32 %v5133_v28, 0.0 }
 0xb1f   : > { %v10801_v33 = vadd.f32 %v10800_v19, %v7472_v31  ;;  %v10037_v34 = vadd.f32 %v10036_v20, %v7477_v16 }
 0xb20   : > { %v10292_v35 = vadd.f32 %v10291_v24, %v7478_v32 }
 0xb23   : > { %v5782_v37 = vpop.f32.mrf.mxu2 }
 0xb24   : > { %v7479_v21 = vmax.f32 %v5782_v37, 0.0  ;;  %v6431_v38 = vpop.f32.mrf.mxu3  ;;  %v4487_v40 = vpop.f32.mrf.mxu0 }
 0xb25   : > { %v7480_v41 = vmax.f32 %v6431_v38, 0.0  ;;  %v7485_v42 = vmax.f32 %v4487_v40, 0.0  ;;  %v5136_v43 = vpop.f32.mrf.mxu1 }
 0xb26   : > { %v10547_v44 = vadd.f32 %v10546_v17, %v7479_v21  ;;  %v7486_v45 = vmax.f32 %v5136_v43, 0.0 }
 0xb27   : > { %v10802_v22 = vadd.f32 %v10801_v33, %v7480_v41  ;;  %v10038_v46 = vadd.f32 %v10037_v34, %v7485_v42  ;;  %12573 = vmatmul.msk.bf16.gmra.mxu0 %vm1312_vm0, %v13307_v47  ;;  %12701 = vmatmul.msk.bf16.gmra.mxu1 %vm1312_vm0, %v13307_v47  ;;  %v13309_v33 = vld [vmem:[%s13583_s29 + $0x178] sm:$0xff] }
 0xb28   : > { %v10293_v48 = vadd.f32 %v10292_v35, %v7486_v45  ;;  %12829 = vmatmul.msk.bf16.gmra.mxu2 %vm1312_vm0, %v13307_v47 }
 0xb29   : > { %12957 = vmatmul.msk.bf16.gmra.mxu3 %vm1312_vm0, %v13307_v47 }
 0xb2b   : > { %v5785_v49 = vpop.f32.mrf.mxu2 }
 0xb2c   : > { %v7487_v50 = vmax.f32 %v5785_v49, 0.0  ;;  %v6434_v25 = vpop.f32.mrf.mxu3  ;;  %v4489_v51 = vpop.f32.mrf.mxu0 }
 0xb2d   : > { %v7488_v52 = vmax.f32 %v6434_v25, 0.0  ;;  %v7493_v53 = vmax.f32 %v4489_v51, 0.0  ;;  %v5138_v26 = vpop.f32.mrf.mxu1 }
 0xb2e   : > { %v10548_v54 = vadd.f32 %v10547_v44, %v7487_v50  ;;  %v7494_v55 = vmax.f32 %v5138_v26, 0.0 }
 0xb2f   : > { %v10803_v56 = vadd.f32 %v10802_v22, %v7488_v52  ;;  %v10039_v36 = vadd.f32 %v10038_v46, %v7493_v53 }
 0xb30   : > { %v10294_v57 = vadd.f32 %v10293_v48, %v7494_v55 }
 0xb33   : > { %v5787_v58 = vpop.f32.mrf.mxu2 }
 0xb34   : > { %v7495_v59 = vmax.f32 %v5787_v58, 0.0  ;;  %v6436_v62 = vpop.f32.mrf.mxu3  ;;  %v4492_v63 = vpop.f32.mrf.mxu0 }
 0xb35   : > { %v7496_v39 = vmax.f32 %v6436_v62, 0.0  ;;  %v7501_v0 = vmax.f32 %v4492_v63, 0.0  ;;  %v5141_v1 = vpop.f32.mrf.mxu1 }
 0xb36   : > { %v10549_v3 = vadd.f32 %v10548_v54, %v7495_v59  ;;  %v7502_v2 = vmax.f32 %v5141_v1, 0.0 }
 0xb37   : > { %v10804_v4 = vadd.f32 %v10803_v56, %v7496_v39  ;;  %v10040_v5 = vadd.f32 %v10039_v36, %v7501_v0  ;;  %12574 = vmatmul.msk.bf16.gmra.mxu0 %vm1312_vm0, %v13308_v60  ;;  %12702 = vmatmul.msk.bf16.gmra.mxu1 %vm1312_vm0, %v13308_v60  ;;  %v13310_v56 = vld [vmem:[%s13583_s29 + $0x180] sm:$0xff] }
 0xb38   : > { %v10295_v7 = vadd.f32 %v10294_v57, %v7502_v2  ;;  %12830 = vmatmul.msk.bf16.gmra.mxu2 %vm1312_vm0, %v13308_v60 }
 0xb39   : > { %12958 = vmatmul.msk.bf16.gmra.mxu3 %vm1312_vm0, %v13308_v60 }
 0xb3b   : > { %v5790_v6 = vpop.f32.mrf.mxu2 }
 0xb3c   : > { %v7503_v9 = vmax.f32 %v5790_v6, 0.0  ;;  %v6439_v61 = vpop.f32.mrf.mxu3  ;;  %v4494_v10 = vpop.f32.mrf.mxu0 }
 0xb3d   : > { %v7504_v8 = vmax.f32 %v6439_v61, 0.0  ;;  %v7509_v11 = vmax.f32 %v4494_v10, 0.0  ;;  %v5143_v14 = vpop.f32.mrf.mxu1 }
 0xb3e   : > { %v10550_v15 = vadd.f32 %v10549_v3, %v7503_v9  ;;  %v7510_v18 = vmax.f32 %v5143_v14, 0.0 }
 0xb3f   : > { %v10805_v12 = vadd.f32 %v10804_v4, %v7504_v8  ;;  %v10041_v19 = vadd.f32 %v10040_v5, %v7509_v11 }
 0xb40   : > { %v10296_v20 = vadd.f32 %v10295_v7, %v7510_v18 }
 0xb43   : > { %v5792_v23 = vpop.f32.mrf.mxu2 }
 0xb44   : > { %v7511_v24 = vmax.f32 %v5792_v23, 0.0  ;;  %v6441_v29 = vpop.f32.mrf.mxu3  ;;  %v4497_v13 = vpop.f32.mrf.mxu0 }
 0xb45   : > { %v7512_v30 = vmax.f32 %v6441_v29, 0.0  ;;  %v7517_v27 = vmax.f32 %v4497_v13, 0.0  ;;  %v5146_v31 = vpop.f32.mrf.mxu1 }
 0xb46   : > { %v10551_v16 = vadd.f32 %v10550_v15, %v7511_v24  ;;  %v7518_v28 = vmax.f32 %v5146_v31, 0.0 }
 0xb47   : > { %v10806_v17 = vadd.f32 %v10805_v12, %v7512_v30  ;;  %v10042_v32 = vadd.f32 %v10041_v19, %v7517_v27  ;;  %12575 = vmatmul.msk.bf16.gmra.mxu0 %vm1312_vm0, %v13309_v33  ;;  %12703 = vmatmul.msk.bf16.gmra.mxu1 %vm1312_vm0, %v13309_v33  ;;  %v13311_v12 = vld [vmem:[%s13583_s29 + $0x188] sm:$0xff] }
 0xb48   : > { %v10297_v34 = vadd.f32 %v10296_v20, %v7518_v28  ;;  %12831 = vmatmul.msk.bf16.gmra.mxu2 %vm1312_vm0, %v13309_v33 }
 0xb49   : > { %12959 = vmatmul.msk.bf16.gmra.mxu3 %vm1312_vm0, %v13309_v33 }
 0xb4b   : > { %v5795_v35 = vpop.f32.mrf.mxu2 }
 0xb4c   : > { %v7519_v37 = vmax.f32 %v5795_v35, 0.0  ;;  %v6444_v21 = vpop.f32.mrf.mxu3  ;;  %v4499_v38 = vpop.f32.mrf.mxu0 }
 0xb4d   : > { %v7520_v40 = vmax.f32 %v6444_v21, 0.0  ;;  %v7525_v41 = vmax.f32 %v4499_v38, 0.0  ;;  %v5148_v42 = vpop.f32.mrf.mxu1 }
 0xb4e   : > { %v10552_v43 = vadd.f32 %v10551_v16, %v7519_v37  ;;  %v7526_v44 = vmax.f32 %v5148_v42, 0.0 }
 0xb4f   : > { %v10807_v45 = vadd.f32 %v10806_v17, %v7520_v40  ;;  %v10043_v22 = vadd.f32 %v10042_v32, %v7525_v41 }
 0xb50   : > { %v10298_v46 = vadd.f32 %v10297_v34, %v7526_v44 }
 0xb53   : > { %v5797_v47 = vpop.f32.mrf.mxu2 }
 0xb54   : > { %v7527_v48 = vmax.f32 %v5797_v47, 0.0  ;;  %v6446_v49 = vpop.f32.mrf.mxu3  ;;  %v4502_v50 = vpop.f32.mrf.mxu0 }
 0xb55   : > { %v7528_v25 = vmax.f32 %v6446_v49, 0.0  ;;  %v7533_v51 = vmax.f32 %v4502_v50, 0.0  ;;  %v5151_v52 = vpop.f32.mrf.mxu1 }
 0xb56   : > { %v10553_v53 = vadd.f32 %v10552_v43, %v7527_v48  ;;  %v7534_v26 = vmax.f32 %v5151_v52, 0.0 }
 0xb57   : > { %v10808_v54 = vadd.f32 %v10807_v45, %v7528_v25  ;;  %v10044_v55 = vadd.f32 %v10043_v22, %v7533_v51  ;;  %12576 = vmatmul.msk.bf16.gmra.mxu0 %vm1312_vm0, %v13310_v56  ;;  %12704 = vmatmul.msk.bf16.gmra.mxu1 %vm1312_vm0, %v13310_v56  ;;  %v13312_v45 = vld [vmem:[%s13583_s29 + $0x190] sm:$0xff] }
 0xb58   : > { %v10299_v36 = vadd.f32 %v10298_v46, %v7534_v26  ;;  %12832 = vmatmul.msk.bf16.gmra.mxu2 %vm1312_vm0, %v13310_v56 }
 0xb59   : > { %12960 = vmatmul.msk.bf16.gmra.mxu3 %vm1312_vm0, %v13310_v56 }
 0xb5b   : > { %v5800_v57 = vpop.f32.mrf.mxu2 }
 0xb5c   : > { %v7535_v58 = vmax.f32 %v5800_v57, 0.0  ;;  %v6449_v59 = vpop.f32.mrf.mxu3  ;;  %v4504_v62 = vpop.f32.mrf.mxu0 }
 0xb5d   : > { %v7536_v63 = vmax.f32 %v6449_v59, 0.0  ;;  %v7541_v39 = vmax.f32 %v4504_v62, 0.0  ;;  %v5153_v0 = vpop.f32.mrf.mxu1 }
 0xb5e   : > { %v10554_v1 = vadd.f32 %v10553_v53, %v7535_v58  ;;  %v7542_v3 = vmax.f32 %v5153_v0, 0.0 }
 0xb5f   : > { %v10809_v2 = vadd.f32 %v10808_v54, %v7536_v63  ;;  %v10045_v4 = vadd.f32 %v10044_v55, %v7541_v39 }
 0xb60   : > { %v10300_v5 = vadd.f32 %v10299_v36, %v7542_v3 }
 0xb63   : > { %v5802_v60 = vpop.f32.mrf.mxu2 }
 0xb64   : > { %v7543_v7 = vmax.f32 %v5802_v60, 0.0  ;;  %v6451_v6 = vpop.f32.mrf.mxu3  ;;  %v4507_v9 = vpop.f32.mrf.mxu0 }
 0xb65   : > { %v7544_v61 = vmax.f32 %v6451_v6, 0.0  ;;  %v7549_v10 = vmax.f32 %v4507_v9, 0.0  ;;  %v5156_v8 = vpop.f32.mrf.mxu1 }
 0xb66   : > { %v10555_v11 = vadd.f32 %v10554_v1, %v7543_v7  ;;  %v7550_v14 = vmax.f32 %v5156_v8, 0.0 }
 0xb67   : > { %v10810_v15 = vadd.f32 %v10809_v2, %v7544_v61  ;;  %v10046_v18 = vadd.f32 %v10045_v4, %v7549_v10  ;;  %12577 = vmatmul.msk.bf16.gmra.mxu0 %vm1312_vm0, %v13311_v12  ;;  %12705 = vmatmul.msk.bf16.gmra.mxu1 %vm1312_vm0, %v13311_v12  ;;  %v13313_v2 = vld [vmem:[%s13583_s29 + $0x198] sm:$0xff] }
 0xb68   : > { %v10301_v19 = vadd.f32 %v10300_v5, %v7550_v14  ;;  %12833 = vmatmul.msk.bf16.gmra.mxu2 %vm1312_vm0, %v13311_v12 }
 0xb69   : > { %12961 = vmatmul.msk.bf16.gmra.mxu3 %vm1312_vm0, %v13311_v12 }
 0xb6b   : > { %v5805_v20 = vpop.f32.mrf.mxu2 }
 0xb6c   : > { %v7551_v23 = vmax.f32 %v5805_v20, 0.0  ;;  %v6454_v24 = vpop.f32.mrf.mxu3  ;;  %v4509_v29 = vpop.f32.mrf.mxu0 }
 0xb6d   : > { %v7552_v13 = vmax.f32 %v6454_v24, 0.0  ;;  %v7557_v30 = vmax.f32 %v4509_v29, 0.0  ;;  %v5158_v27 = vpop.f32.mrf.mxu1 }
 0xb6e   : > { %v10556_v31 = vadd.f32 %v10555_v11, %v7551_v23  ;;  %v7558_v16 = vmax.f32 %v5158_v27, 0.0 }
 0xb6f   : > { %v10811_v28 = vadd.f32 %v10810_v15, %v7552_v13  ;;  %v10047_v17 = vadd.f32 %v10046_v18, %v7557_v30 }
 0xb70   : > { %v10302_v32 = vadd.f32 %v10301_v19, %v7558_v16 }
 0xb73   : > { %v5807_v33 = vpop.f32.mrf.mxu2 }
 0xb74   : > { %v7559_v34 = vmax.f32 %v5807_v33, 0.0  ;;  %v6456_v35 = vpop.f32.mrf.mxu3  ;;  %v4512_v37 = vpop.f32.mrf.mxu0 }
 0xb75   : > { %v7560_v21 = vmax.f32 %v6456_v35, 0.0  ;;  %v7565_v38 = vmax.f32 %v4512_v37, 0.0  ;;  %v5161_v40 = vpop.f32.mrf.mxu1 }
 0xb76   : > { %v10557_v41 = vadd.f32 %v10556_v31, %v7559_v34  ;;  %v7566_v42 = vmax.f32 %v5161_v40, 0.0 }
 0xb77   : > { %v10812_v43 = vadd.f32 %v10811_v28, %v7560_v21  ;;  %v10048_v44 = vadd.f32 %v10047_v17, %v7565_v38  ;;  %12578 = vmatmul.msk.bf16.gmra.mxu0 %vm1312_vm0, %v13312_v45  ;;  %12706 = vmatmul.msk.bf16.gmra.mxu1 %vm1312_vm0, %v13312_v45  ;;  %v13314_v28 = vld [vmem:[%s13583_s29 + $0x1a0] sm:$0xff] }
 0xb78   : > { %v10303_v22 = vadd.f32 %v10302_v32, %v7566_v42  ;;  %12834 = vmatmul.msk.bf16.gmra.mxu2 %vm1312_vm0, %v13312_v45 }
 0xb79   : > { %12962 = vmatmul.msk.bf16.gmra.mxu3 %vm1312_vm0, %v13312_v45 }
 0xb7b   : > { %v5810_v46 = vpop.f32.mrf.mxu2 }
 0xb7c   : > { %v7567_v47 = vmax.f32 %v5810_v46, 0.0  ;;  %v6459_v48 = vpop.f32.mrf.mxu3  ;;  %v4514_v49 = vpop.f32.mrf.mxu0 }
 0xb7d   : > { %v7568_v50 = vmax.f32 %v6459_v48, 0.0  ;;  %v7573_v25 = vmax.f32 %v4514_v49, 0.0  ;;  %v5163_v51 = vpop.f32.mrf.mxu1 }
 0xb7e   : > { %v10558_v52 = vadd.f32 %v10557_v41, %v7567_v47  ;;  %v7574_v53 = vmax.f32 %v5163_v51, 0.0 }
 0xb7f   : > { %v10813_v26 = vadd.f32 %v10812_v43, %v7568_v50  ;;  %v10049_v54 = vadd.f32 %v10048_v44, %v7573_v25 }
 0xb80   : > { %v10304_v55 = vadd.f32 %v10303_v22, %v7574_v53 }
 0xb83   : > { %v5812_v56 = vpop.f32.mrf.mxu2 }
 0xb84   : > { %v7575_v36 = vmax.f32 %v5812_v56, 0.0  ;;  %v6461_v57 = vpop.f32.mrf.mxu3  ;;  %v4517_v58 = vpop.f32.mrf.mxu0 }
 0xb85   : > { %v7576_v59 = vmax.f32 %v6461_v57, 0.0  ;;  %v7581_v62 = vmax.f32 %v4517_v58, 0.0  ;;  %v5166_v63 = vpop.f32.mrf.mxu1 }
 0xb86   : > { %v10559_v39 = vadd.f32 %v10558_v52, %v7575_v36  ;;  %v7582_v0 = vmax.f32 %v5166_v63, 0.0 }
 0xb87   : > { %v10814_v1 = vadd.f32 %v10813_v26, %v7576_v59  ;;  %v10050_v3 = vadd.f32 %v10049_v54, %v7581_v62  ;;  %12579 = vmatmul.msk.bf16.gmra.mxu0 %vm1312_vm0, %v13313_v2  ;;  %12707 = vmatmul.msk.bf16.gmra.mxu1 %vm1312_vm0, %v13313_v2  ;;  %v13315_v26 = vld [vmem:[%s13583_s29 + $0x1a8] sm:$0xff] }
 0xb88   : > { %v10305_v4 = vadd.f32 %v10304_v55, %v7582_v0  ;;  %12835 = vmatmul.msk.bf16.gmra.mxu2 %vm1312_vm0, %v13313_v2 }
 0xb89   : > { %12963 = vmatmul.msk.bf16.gmra.mxu3 %vm1312_vm0, %v13313_v2 }
 0xb8b   : > { %v5815_v5 = vpop.f32.mrf.mxu2 }
 0xb8c   : > { %v7583_v60 = vmax.f32 %v5815_v5, 0.0  ;;  %v6464_v7 = vpop.f32.mrf.mxu3  ;;  %v4519_v6 = vpop.f32.mrf.mxu0 }
 0xb8d   : > { %v7584_v9 = vmax.f32 %v6464_v7, 0.0  ;;  %v7589_v61 = vmax.f32 %v4519_v6, 0.0  ;;  %v5168_v10 = vpop.f32.mrf.mxu1 }
 0xb8e   : > { %v10560_v8 = vadd.f32 %v10559_v39, %v7583_v60  ;;  %v7590_v11 = vmax.f32 %v5168_v10, 0.0 }
 0xb8f   : > { %v10815_v14 = vadd.f32 %v10814_v1, %v7584_v9  ;;  %v10051_v15 = vadd.f32 %v10050_v3, %v7589_v61 }
 0xb90   : > { %v10306_v18 = vadd.f32 %v10305_v4, %v7590_v11 }
 0xb93   : > { %v5817_v12 = vpop.f32.mrf.mxu2 }
 0xb94   : > { %v7591_v19 = vmax.f32 %v5817_v12, 0.0  ;;  %v6466_v20 = vpop.f32.mrf.mxu3  ;;  %v4522_v23 = vpop.f32.mrf.mxu0 }
 0xb95   : > { %v7592_v24 = vmax.f32 %v6466_v20, 0.0  ;;  %v7597_v29 = vmax.f32 %v4522_v23, 0.0  ;;  %v5171_v13 = vpop.f32.mrf.mxu1 }
 0xb96   : > { %v10561_v30 = vadd.f32 %v10560_v8, %v7591_v19  ;;  %v7598_v27 = vmax.f32 %v5171_v13, 0.0 }
 0xb97   : > { %v10816_v31 = vadd.f32 %v10815_v14, %v7592_v24  ;;  %v10052_v16 = vadd.f32 %v10051_v15, %v7597_v29  ;;  %12580 = vmatmul.msk.bf16.gmra.mxu0 %vm1312_vm0, %v13314_v28  ;;  %12708 = vmatmul.msk.bf16.gmra.mxu1 %vm1312_vm0, %v13314_v28  ;;  %v13316_v14 = vld [vmem:[%s13583_s29 + $0x1b0] sm:$0xff] }
 0xb98   : > { %v10307_v17 = vadd.f32 %v10306_v18, %v7598_v27  ;;  %12836 = vmatmul.msk.bf16.gmra.mxu2 %vm1312_vm0, %v13314_v28 }
 0xb99   : > { %12964 = vmatmul.msk.bf16.gmra.mxu3 %vm1312_vm0, %v13314_v28 }
 0xb9b   : > { %v5820_v32 = vpop.f32.mrf.mxu2 }
 0xb9c   : > { %v7599_v33 = vmax.f32 %v5820_v32, 0.0  ;;  %v6469_v34 = vpop.f32.mrf.mxu3  ;;  %v4524_v35 = vpop.f32.mrf.mxu0 }
 0xb9d   : > { %v7600_v37 = vmax.f32 %v6469_v34, 0.0  ;;  %v7605_v21 = vmax.f32 %v4524_v35, 0.0  ;;  %v5173_v38 = vpop.f32.mrf.mxu1 }
 0xb9e   : > { %v10562_v40 = vadd.f32 %v10561_v30, %v7599_v33  ;;  %v7606_v41 = vmax.f32 %v5173_v38, 0.0 }
 0xb9f   : > { %v10817_v42 = vadd.f32 %v10816_v31, %v7600_v37  ;;  %v10053_v43 = vadd.f32 %v10052_v16, %v7605_v21 }
 0xba0   : > { %v10308_v44 = vadd.f32 %v10307_v17, %v7606_v41 }
 0xba3   : > { %v5822_v45 = vpop.f32.mrf.mxu2 }
 0xba4   : > { %v7607_v22 = vmax.f32 %v5822_v45, 0.0  ;;  %v6471_v46 = vpop.f32.mrf.mxu3  ;;  %v4527_v47 = vpop.f32.mrf.mxu0 }
 0xba5   : > { %v7608_v48 = vmax.f32 %v6471_v46, 0.0  ;;  %v7613_v49 = vmax.f32 %v4527_v47, 0.0  ;;  %v5176_v50 = vpop.f32.mrf.mxu1 }
 0xba6   : > { %v10563_v25 = vadd.f32 %v10562_v40, %v7607_v22  ;;  %v7614_v51 = vmax.f32 %v5176_v50, 0.0 }
 0xba7   : > { %v10818_v52 = vadd.f32 %v10817_v42, %v7608_v48  ;;  %v10054_v53 = vadd.f32 %v10053_v43, %v7613_v49  ;;  %12581 = vmatmul.msk.bf16.gmra.mxu0 %vm1312_vm0, %v13315_v26  ;;  %12709 = vmatmul.msk.bf16.gmra.mxu1 %vm1312_vm0, %v13315_v26  ;;  %v13317_v42 = vld [vmem:[%s13583_s29 + $0x1b8] sm:$0xff] }
 0xba8   : > { %v10309_v54 = vadd.f32 %v10308_v44, %v7614_v51  ;;  %12837 = vmatmul.msk.bf16.gmra.mxu2 %vm1312_vm0, %v13315_v26 }
 0xba9   : > { %12965 = vmatmul.msk.bf16.gmra.mxu3 %vm1312_vm0, %v13315_v26 }
 0xbab   : > { %v5825_v55 = vpop.f32.mrf.mxu2 }
 0xbac   : > { %v7615_v56 = vmax.f32 %v5825_v55, 0.0  ;;  %v6474_v36 = vpop.f32.mrf.mxu3  ;;  %v4529_v57 = vpop.f32.mrf.mxu0 }
 0xbad   : > { %v7616_v58 = vmax.f32 %v6474_v36, 0.0  ;;  %v7621_v59 = vmax.f32 %v4529_v57, 0.0  ;;  %v5178_v62 = vpop.f32.mrf.mxu1 }
 0xbae   : > { %v10564_v63 = vadd.f32 %v10563_v25, %v7615_v56  ;;  %v7622_v39 = vmax.f32 %v5178_v62, 0.0 }
 0xbaf   : > { %v10819_v0 = vadd.f32 %v10818_v52, %v7616_v58  ;;  %v10055_v1 = vadd.f32 %v10054_v53, %v7621_v59 }
 0xbb0   : > { %v10310_v3 = vadd.f32 %v10309_v54, %v7622_v39 }
 0xbb3   : > { %v5827_v2 = vpop.f32.mrf.mxu2 }
 0xbb4   : > { %v7623_v4 = vmax.f32 %v5827_v2, 0.0  ;;  %v6476_v5 = vpop.f32.mrf.mxu3  ;;  %v4532_v60 = vpop.f32.mrf.mxu0 }
 0xbb5   : > { %v7624_v7 = vmax.f32 %v6476_v5, 0.0  ;;  %v7629_v6 = vmax.f32 %v4532_v60, 0.0  ;;  %v5181_v9 = vpop.f32.mrf.mxu1 }
 0xbb6   : > { %v10565_v61 = vadd.f32 %v10564_v63, %v7623_v4  ;;  %v7630_v10 = vmax.f32 %v5181_v9, 0.0 }
 0xbb7   : > { %v10820_v8 = vadd.f32 %v10819_v0, %v7624_v7  ;;  %v10056_v11 = vadd.f32 %v10055_v1, %v7629_v6  ;;  %12582 = vmatmul.msk.bf16.gmra.mxu0 %vm1312_vm0, %v13316_v14  ;;  %12710 = vmatmul.msk.bf16.gmra.mxu1 %vm1312_vm0, %v13316_v14  ;;  %v13318_v0 = vld [vmem:[%s13583_s29 + $0x1c0] sm:$0xff] }
 0xbb8   : > { %v10311_v15 = vadd.f32 %v10310_v3, %v7630_v10  ;;  %12838 = vmatmul.msk.bf16.gmra.mxu2 %vm1312_vm0, %v13316_v14 }
 0xbb9   : > { %12966 = vmatmul.msk.bf16.gmra.mxu3 %vm1312_vm0, %v13316_v14 }
 0xbbb   : > { %v5830_v18 = vpop.f32.mrf.mxu2 }
 0xbbc   : > { %v7631_v12 = vmax.f32 %v5830_v18, 0.0  ;;  %v6479_v19 = vpop.f32.mrf.mxu3  ;;  %v4534_v20 = vpop.f32.mrf.mxu0 }
 0xbbd   : > { %v7632_v23 = vmax.f32 %v6479_v19, 0.0  ;;  %v7637_v24 = vmax.f32 %v4534_v20, 0.0  ;;  %v5183_v29 = vpop.f32.mrf.mxu1 }
 0xbbe   : > { %v10566_v13 = vadd.f32 %v10565_v61, %v7631_v12  ;;  %v7638_v30 = vmax.f32 %v5183_v29, 0.0 }
 0xbbf   : > { %v10821_v27 = vadd.f32 %v10820_v8, %v7632_v23  ;;  %v10057_v31 = vadd.f32 %v10056_v11, %v7637_v24 }
 0xbc0   : > { %v10312_v16 = vadd.f32 %v10311_v15, %v7638_v30 }
 0xbc3   : > { %v5832_v28 = vpop.f32.mrf.mxu2 }
 0xbc4   : > { %v7639_v17 = vmax.f32 %v5832_v28, 0.0  ;;  %v6481_v32 = vpop.f32.mrf.mxu3  ;;  %v4537_v33 = vpop.f32.mrf.mxu0 }
 0xbc5   : > { %v7640_v34 = vmax.f32 %v6481_v32, 0.0  ;;  %v7645_v35 = vmax.f32 %v4537_v33, 0.0  ;;  %v5186_v37 = vpop.f32.mrf.mxu1 }
 0xbc6   : > { %v10567_v21 = vadd.f32 %v10566_v13, %v7639_v17  ;;  %v7646_v38 = vmax.f32 %v5186_v37, 0.0 }
 0xbc7   : > { %v10822_v40 = vadd.f32 %v10821_v27, %v7640_v34  ;;  %v10058_v41 = vadd.f32 %v10057_v31, %v7645_v35  ;;  %12583 = vmatmul.msk.bf16.gmra.mxu0 %vm1312_vm0, %v13317_v42  ;;  %12711 = vmatmul.msk.bf16.gmra.mxu1 %vm1312_vm0, %v13317_v42  ;;  %v13319_v27 = vld [vmem:[%s13583_s29 + $0x1c8] sm:$0xff] }
 0xbc8   : > { %v10313_v43 = vadd.f32 %v10312_v16, %v7646_v38  ;;  %12839 = vmatmul.msk.bf16.gmra.mxu2 %vm1312_vm0, %v13317_v42 }
 0xbc9   : > { %12967 = vmatmul.msk.bf16.gmra.mxu3 %vm1312_vm0, %v13317_v42 }
 0xbcb   : > { %v5835_v44 = vpop.f32.mrf.mxu2 }
 0xbcc   : > { %v7647_v45 = vmax.f32 %v5835_v44, 0.0  ;;  %v6484_v22 = vpop.f32.mrf.mxu3  ;;  %v4539_v46 = vpop.f32.mrf.mxu0 }
 0xbcd   : > { %v7648_v47 = vmax.f32 %v6484_v22, 0.0  ;;  %v7653_v48 = vmax.f32 %v4539_v46, 0.0  ;;  %v5188_v49 = vpop.f32.mrf.mxu1 }
 0xbce   : > { %v10568_v50 = vadd.f32 %v10567_v21, %v7647_v45  ;;  %v7654_v25 = vmax.f32 %v5188_v49, 0.0 }
 0xbcf   : > { %v10823_v51 = vadd.f32 %v10822_v40, %v7648_v47  ;;  %v10059_v52 = vadd.f32 %v10058_v41, %v7653_v48 }
 0xbd0   : > { %v10314_v53 = vadd.f32 %v10313_v43, %v7654_v25 }
 0xbd3   : > { %v5837_v26 = vpop.f32.mrf.mxu2 }
 0xbd4   : > { %v7655_v54 = vmax.f32 %v5837_v26, 0.0  ;;  %v6486_v55 = vpop.f32.mrf.mxu3  ;;  %v4542_v56 = vpop.f32.mrf.mxu0 }
 0xbd5   : > { %v7656_v36 = vmax.f32 %v6486_v55, 0.0  ;;  %v7661_v57 = vmax.f32 %v4542_v56, 0.0  ;;  %v5191_v58 = vpop.f32.mrf.mxu1 }
 0xbd6   : > { %v10569_v59 = vadd.f32 %v10568_v50, %v7655_v54  ;;  %v7662_v62 = vmax.f32 %v5191_v58, 0.0 }
 0xbd7   : > { %v10824_v63 = vadd.f32 %v10823_v51, %v7656_v36  ;;  %v10060_v39 = vadd.f32 %v10059_v52, %v7661_v57  ;;  %12584 = vmatmul.msk.bf16.gmra.mxu0 %vm1312_vm0, %v13318_v0  ;;  %12712 = vmatmul.msk.bf16.gmra.mxu1 %vm1312_vm0, %v13318_v0  ;;  %v13320_v51 = vld [vmem:[%s13583_s29 + $0x1d0] sm:$0xff] }
 0xbd8   : > { %v10315_v1 = vadd.f32 %v10314_v53, %v7662_v62  ;;  %12840 = vmatmul.msk.bf16.gmra.mxu2 %vm1312_vm0, %v13318_v0 }
 0xbd9   : > { %12968 = vmatmul.msk.bf16.gmra.mxu3 %vm1312_vm0, %v13318_v0 }
 0xbdb   : > { %v5840_v3 = vpop.f32.mrf.mxu2 }
 0xbdc   : > { %v7663_v2 = vmax.f32 %v5840_v3, 0.0  ;;  %v6489_v4 = vpop.f32.mrf.mxu3  ;;  %v4544_v5 = vpop.f32.mrf.mxu0 }
 0xbdd   : > { %v7664_v60 = vmax.f32 %v6489_v4, 0.0  ;;  %v7669_v7 = vmax.f32 %v4544_v5, 0.0  ;;  %v5193_v6 = vpop.f32.mrf.mxu1 }
 0xbde   : > { %v10570_v9 = vadd.f32 %v10569_v59, %v7663_v2  ;;  %v7670_v61 = vmax.f32 %v5193_v6, 0.0 }
 0xbdf   : > { %v10825_v10 = vadd.f32 %v10824_v63, %v7664_v60  ;;  %v10061_v8 = vadd.f32 %v10060_v39, %v7669_v7 }
 0xbe0   : > { %v10316_v11 = vadd.f32 %v10315_v1, %v7670_v61 }
 0xbe3   : > { %v5842_v14 = vpop.f32.mrf.mxu2 }
 0xbe4   : > { %v7671_v15 = vmax.f32 %v5842_v14, 0.0  ;;  %v6491_v18 = vpop.f32.mrf.mxu3  ;;  %v4547_v12 = vpop.f32.mrf.mxu0 }
 0xbe5   : > { %v7672_v19 = vmax.f32 %v6491_v18, 0.0  ;;  %v7677_v20 = vmax.f32 %v4547_v12, 0.0  ;;  %v5196_v23 = vpop.f32.mrf.mxu1 }
 0xbe6   : > { %v10571_v24 = vadd.f32 %v10570_v9, %v7671_v15  ;;  %v7678_v29 = vmax.f32 %v5196_v23, 0.0 }
 0xbe7   : > { %v10826_v13 = vadd.f32 %v10825_v10, %v7672_v19  ;;  %v10062_v30 = vadd.f32 %v10061_v8, %v7677_v20  ;;  %12585 = vmatmul.msk.bf16.gmra.mxu0 %vm1312_vm0, %v13319_v27  ;;  %12713 = vmatmul.msk.bf16.gmra.mxu1 %vm1312_vm0, %v13319_v27  ;;  %v13321_v10 = vld [vmem:[%s13583_s29 + $0x1d8] sm:$0xff] }
 0xbe8   : > { %v10317_v31 = vadd.f32 %v10316_v11, %v7678_v29  ;;  %12841 = vmatmul.msk.bf16.gmra.mxu2 %vm1312_vm0, %v13319_v27 }
 0xbe9   : > { %12969 = vmatmul.msk.bf16.gmra.mxu3 %vm1312_vm0, %v13319_v27 }
 0xbeb   : > { %v5845_v16 = vpop.f32.mrf.mxu2 }
 0xbec   : > { %v7679_v28 = vmax.f32 %v5845_v16, 0.0  ;;  %v6494_v17 = vpop.f32.mrf.mxu3  ;;  %v4549_v32 = vpop.f32.mrf.mxu0 }
 0xbed   : > { %v7680_v33 = vmax.f32 %v6494_v17, 0.0  ;;  %v7685_v34 = vmax.f32 %v4549_v32, 0.0  ;;  %v5198_v35 = vpop.f32.mrf.mxu1 }
 0xbee   : > { %v10572_v37 = vadd.f32 %v10571_v24, %v7679_v28  ;;  %v7686_v21 = vmax.f32 %v5198_v35, 0.0 }
 0xbef   : > { %v10827_v38 = vadd.f32 %v10826_v13, %v7680_v33  ;;  %v10063_v40 = vadd.f32 %v10062_v30, %v7685_v34 }
 0xbf0   : > { %v10318_v41 = vadd.f32 %v10317_v31, %v7686_v21 }
 0xbf3   : > { %v5847_v42 = vpop.f32.mrf.mxu2 }
 0xbf4   : > { %v7687_v43 = vmax.f32 %v5847_v42, 0.0  ;;  %v6496_v44 = vpop.f32.mrf.mxu3  ;;  %v4552_v45 = vpop.f32.mrf.mxu0 }
 0xbf5   : > { %v7688_v22 = vmax.f32 %v6496_v44, 0.0  ;;  %v7693_v46 = vmax.f32 %v4552_v45, 0.0  ;;  %v5201_v47 = vpop.f32.mrf.mxu1 }
 0xbf6   : > { %v10573_v48 = vadd.f32 %v10572_v37, %v7687_v43  ;;  %v7694_v49 = vmax.f32 %v5201_v47, 0.0 }
 0xbf7   : > { %v10828_v50 = vadd.f32 %v10827_v38, %v7688_v22  ;;  %v10064_v25 = vadd.f32 %v10063_v40, %v7693_v46  ;;  %12586 = vmatmul.msk.bf16.gmra.mxu0 %vm1312_vm0, %v13320_v51  ;;  %12714 = vmatmul.msk.bf16.gmra.mxu1 %vm1312_vm0, %v13320_v51  ;;  %v13322_v38 = vld [vmem:[%s13583_s29 + $0x1e0] sm:$0xff] }
 0xbf8   : > { %v10319_v52 = vadd.f32 %v10318_v41, %v7694_v49  ;;  %12842 = vmatmul.msk.bf16.gmra.mxu2 %vm1312_vm0, %v13320_v51 }
 0xbf9   : > { %12970 = vmatmul.msk.bf16.gmra.mxu3 %vm1312_vm0, %v13320_v51 }
 0xbfb   : > { %v5850_v53 = vpop.f32.mrf.mxu2 }
 0xbfc   : > { %v7695_v26 = vmax.f32 %v5850_v53, 0.0  ;;  %v6499_v54 = vpop.f32.mrf.mxu3  ;;  %v4554_v55 = vpop.f32.mrf.mxu0 }
 0xbfd   : > { %v7696_v56 = vmax.f32 %v6499_v54, 0.0  ;;  %v7701_v36 = vmax.f32 %v4554_v55, 0.0  ;;  %v5203_v57 = vpop.f32.mrf.mxu1 }
 0xbfe   : > { %v10574_v58 = vadd.f32 %v10573_v48, %v7695_v26  ;;  %v7702_v59 = vmax.f32 %v5203_v57, 0.0 }
 0xbff   : > { %v10829_v62 = vadd.f32 %v10828_v50, %v7696_v56  ;;  %v10065_v63 = vadd.f32 %v10064_v25, %v7701_v36 }
 0xc00   : > { %v10320_v39 = vadd.f32 %v10319_v52, %v7702_v59 }
 0xc03   : > { %v5852_v0 = vpop.f32.mrf.mxu2 }
 0xc04   : > { %v7703_v1 = vmax.f32 %v5852_v0, 0.0  ;;  %v6501_v3 = vpop.f32.mrf.mxu3  ;;  %v4557_v2 = vpop.f32.mrf.mxu0 }
 0xc05   : > { %v7704_v4 = vmax.f32 %v6501_v3, 0.0  ;;  %v7709_v5 = vmax.f32 %v4557_v2, 0.0  ;;  %v5206_v60 = vpop.f32.mrf.mxu1 }
 0xc06   : > { %v10575_v7 = vadd.f32 %v10574_v58, %v7703_v1  ;;  %v7710_v6 = vmax.f32 %v5206_v60, 0.0 }
 0xc07   : > { %v10830_v9 = vadd.f32 %v10829_v62, %v7704_v4  ;;  %v10066_v61 = vadd.f32 %v10065_v63, %v7709_v5  ;;  %12587 = vmatmul.msk.bf16.gmra.mxu0 %vm1312_vm0, %v13321_v10  ;;  %12715 = vmatmul.msk.bf16.gmra.mxu1 %vm1312_vm0, %v13321_v10  ;;  %v13323_v62 = vld [vmem:[%s13583_s29 + $0x1e8] sm:$0xff] }
 0xc08   : > { %v10321_v8 = vadd.f32 %v10320_v39, %v7710_v6  ;;  %12843 = vmatmul.msk.bf16.gmra.mxu2 %vm1312_vm0, %v13321_v10 }
 0xc09   : > { %12971 = vmatmul.msk.bf16.gmra.mxu3 %vm1312_vm0, %v13321_v10 }
 0xc0b   : > { %v5855_v11 = vpop.f32.mrf.mxu2 }
 0xc0c   : > { %v7711_v14 = vmax.f32 %v5855_v11, 0.0  ;;  %v6504_v15 = vpop.f32.mrf.mxu3  ;;  %v4559_v18 = vpop.f32.mrf.mxu0 }
 0xc0d   : > { %v7712_v12 = vmax.f32 %v6504_v15, 0.0  ;;  %v7717_v19 = vmax.f32 %v4559_v18, 0.0  ;;  %v5208_v20 = vpop.f32.mrf.mxu1 }
 0xc0e   : > { %v10576_v23 = vadd.f32 %v10575_v7, %v7711_v14  ;;  %v7718_v24 = vmax.f32 %v5208_v20, 0.0 }
 0xc0f   : > { %v10831_v29 = vadd.f32 %v10830_v9, %v7712_v12  ;;  %v10067_v13 = vadd.f32 %v10066_v61, %v7717_v19 }
 0xc10   : > { %v10322_v30 = vadd.f32 %v10321_v8, %v7718_v24 }
 0xc13   : > { %v5857_v27 = vpop.f32.mrf.mxu2 }
 0xc14   : > { %v7719_v31 = vmax.f32 %v5857_v27, 0.0  ;;  %v6506_v16 = vpop.f32.mrf.mxu3  ;;  %v4562_v28 = vpop.f32.mrf.mxu0 }
 0xc15   : > { %v7720_v17 = vmax.f32 %v6506_v16, 0.0  ;;  %v7725_v32 = vmax.f32 %v4562_v28, 0.0  ;;  %v5211_v33 = vpop.f32.mrf.mxu1 }
 0xc16   : > { %v10577_v34 = vadd.f32 %v10576_v23, %v7719_v31  ;;  %v7726_v35 = vmax.f32 %v5211_v33, 0.0 }
 0xc17   : > { %v10832_v37 = vadd.f32 %v10831_v29, %v7720_v17  ;;  %v10068_v21 = vadd.f32 %v10067_v13, %v7725_v32  ;;  %12588 = vmatmul.msk.bf16.gmra.mxu0 %vm1312_vm0, %v13322_v38  ;;  %12716 = vmatmul.msk.bf16.gmra.mxu1 %vm1312_vm0, %v13322_v38  ;;  %v13324_v29 = vld [vmem:[%s13583_s29 + $0x1f0] sm:$0xff] }
 0xc18   : > { %v10323_v40 = vadd.f32 %v10322_v30, %v7726_v35  ;;  %12844 = vmatmul.msk.bf16.gmra.mxu2 %vm1312_vm0, %v13322_v38 }
 0xc19   : > { %12972 = vmatmul.msk.bf16.gmra.mxu3 %vm1312_vm0, %v13322_v38 }
 0xc1b   : > { %v5860_v41 = vpop.f32.mrf.mxu2 }
 0xc1c   : > { %v7727_v42 = vmax.f32 %v5860_v41, 0.0  ;;  %v6509_v43 = vpop.f32.mrf.mxu3  ;;  %v4564_v44 = vpop.f32.mrf.mxu0 }
 0xc1d   : > { %v7728_v45 = vmax.f32 %v6509_v43, 0.0  ;;  %v7733_v22 = vmax.f32 %v4564_v44, 0.0  ;;  %v5213_v46 = vpop.f32.mrf.mxu1 }
 0xc1e   : > { %v10578_v47 = vadd.f32 %v10577_v34, %v7727_v42  ;;  %v7734_v48 = vmax.f32 %v5213_v46, 0.0 }
 0xc1f   : > { %v10833_v49 = vadd.f32 %v10832_v37, %v7728_v45  ;;  %v10069_v50 = vadd.f32 %v10068_v21, %v7733_v22 }
 0xc20   : > { %v10324_v25 = vadd.f32 %v10323_v40, %v7734_v48 }
 0xc23   : > { %v5862_v51 = vpop.f32.mrf.mxu2 }
 0xc24   : > { %v7735_v52 = vmax.f32 %v5862_v51, 0.0  ;;  %v6511_v53 = vpop.f32.mrf.mxu3  ;;  %v4567_v26 = vpop.f32.mrf.mxu0 }
 0xc25   : > { %v7736_v54 = vmax.f32 %v6511_v53, 0.0  ;;  %v7741_v55 = vmax.f32 %v4567_v26, 0.0  ;;  %v5216_v56 = vpop.f32.mrf.mxu1 }
 0xc26   : > { %v10579_v36 = vadd.f32 %v10578_v47, %v7735_v52  ;;  %v7742_v57 = vmax.f32 %v5216_v56, 0.0 }
 0xc27   : > { %v10834_v58 = vadd.f32 %v10833_v49, %v7736_v54  ;;  %v10070_v59 = vadd.f32 %v10069_v50, %v7741_v55  ;;  %12589 = vmatmul.msk.bf16.gmra.mxu0 %vm1312_vm0, %v13323_v62  ;;  %12717 = vmatmul.msk.bf16.gmra.mxu1 %vm1312_vm0, %v13323_v62  ;;  %v13325_v49 = vld [vmem:[%s13583_s29 + $0x1f8] sm:$0xff] }
 0xc28   : > { %v10325_v63 = vadd.f32 %v10324_v25, %v7742_v57  ;;  %12845 = vmatmul.msk.bf16.gmra.mxu2 %vm1312_vm0, %v13323_v62 }
 0xc29   : > { %12973 = vmatmul.msk.bf16.gmra.mxu3 %vm1312_vm0, %v13323_v62 }
 0xc2b   : > { %v5865_v39 = vpop.f32.mrf.mxu2 }
 0xc2c   : > { %v7743_v0 = vmax.f32 %v5865_v39, 0.0  ;;  %v6514_v1 = vpop.f32.mrf.mxu3  ;;  %v4569_v3 = vpop.f32.mrf.mxu0 }
 0xc2d   : > { %v7744_v2 = vmax.f32 %v6514_v1, 0.0  ;;  %v7749_v4 = vmax.f32 %v4569_v3, 0.0  ;;  %v5218_v5 = vpop.f32.mrf.mxu1 }
 0xc2e   : > { %v10580_v60 = vadd.f32 %v10579_v36, %v7743_v0  ;;  %v7750_v7 = vmax.f32 %v5218_v5, 0.0 }
 0xc2f   : > { %v10835_v6 = vadd.f32 %v10834_v58, %v7744_v2  ;;  %v10071_v9 = vadd.f32 %v10070_v59, %v7749_v4 }
 0xc30   : > { %v10326_v61 = vadd.f32 %v10325_v63, %v7750_v7 }
 0xc33   : > { %v5867_v10 = vpop.f32.mrf.mxu2 }
 0xc34   : > { %v7751_v8 = vmax.f32 %v5867_v10, 0.0  ;;  %v6516_v11 = vpop.f32.mrf.mxu3  ;;  %v4572_v14 = vpop.f32.mrf.mxu0 }
 0xc35   : > { %v7752_v15 = vmax.f32 %v6516_v11, 0.0  ;;  %v7757_v18 = vmax.f32 %v4572_v14, 0.0  ;;  %v5221_v12 = vpop.f32.mrf.mxu1 }
 0xc36   : > { %v10581_v19 = vadd.f32 %v10580_v60, %v7751_v8  ;;  %v7758_v20 = vmax.f32 %v5221_v12, 0.0 }
 0xc37   : > { %v10836_v23 = vadd.f32 %v10835_v6, %v7752_v15  ;;  %v10072_v24 = vadd.f32 %v10071_v9, %v7757_v18  ;;  %12590 = vmatmul.msk.bf16.gmra.mxu0 %vm1312_vm0, %v13324_v29  ;;  %12718 = vmatmul.msk.bf16.gmra.mxu1 %vm1312_vm0, %v13324_v29  ;;  %v13326_v6 = vld [vmem:[%s13583_s29 + $0x200] sm:$0xff] }
 0xc38   : > { %v10327_v13 = vadd.f32 %v10326_v61, %v7758_v20  ;;  %12846 = vmatmul.msk.bf16.gmra.mxu2 %vm1312_vm0, %v13324_v29 }
 0xc39   : > { %12974 = vmatmul.msk.bf16.gmra.mxu3 %vm1312_vm0, %v13324_v29 }
 0xc3b   : > { %v5870_v30 = vpop.f32.mrf.mxu2 }
 0xc3c   : > { %v7759_v27 = vmax.f32 %v5870_v30, 0.0  ;;  %v6519_v31 = vpop.f32.mrf.mxu3  ;;  %v4574_v16 = vpop.f32.mrf.mxu0 }
 0xc3d   : > { %v7760_v28 = vmax.f32 %v6519_v31, 0.0  ;;  %v7765_v17 = vmax.f32 %v4574_v16, 0.0  ;;  %v5223_v32 = vpop.f32.mrf.mxu1 }
 0xc3e   : > { %v10582_v33 = vadd.f32 %v10581_v19, %v7759_v27  ;;  %v7766_v34 = vmax.f32 %v5223_v32, 0.0 }
 0xc3f   : > { %v10837_v35 = vadd.f32 %v10836_v23, %v7760_v28  ;;  %v10073_v37 = vadd.f32 %v10072_v24, %v7765_v17 }
 0xc40   : > { %v10328_v21 = vadd.f32 %v10327_v13, %v7766_v34 }
 0xc43   : > { %v5872_v38 = vpop.f32.mrf.mxu2 }
 0xc44   : > { %v7767_v40 = vmax.f32 %v5872_v38, 0.0  ;;  %v6521_v41 = vpop.f32.mrf.mxu3  ;;  %v4577_v42 = vpop.f32.mrf.mxu0 }
 0xc45   : > { %v7768_v43 = vmax.f32 %v6521_v41, 0.0  ;;  %v7773_v44 = vmax.f32 %v4577_v42, 0.0  ;;  %v5226_v45 = vpop.f32.mrf.mxu1 }
 0xc46   : > { %v10583_v22 = vadd.f32 %v10582_v33, %v7767_v40  ;;  %v7774_v46 = vmax.f32 %v5226_v45, 0.0 }
 0xc47   : > { %v10838_v47 = vadd.f32 %v10837_v35, %v7768_v43  ;;  %v10074_v48 = vadd.f32 %v10073_v37, %v7773_v44  ;;  %12591 = vmatmul.msk.bf16.gmra.mxu0 %vm1312_vm0, %v13325_v49  ;;  %12719 = vmatmul.msk.bf16.gmra.mxu1 %vm1312_vm0, %v13325_v49  ;;  %v13327_v35 = vld [vmem:[%s13583_s29 + $0x208] sm:$0xff] }
 0xc48   : > { %v10329_v50 = vadd.f32 %v10328_v21, %v7774_v46  ;;  %12847 = vmatmul.msk.bf16.gmra.mxu2 %vm1312_vm0, %v13325_v49 }
 0xc49   : > { %12975 = vmatmul.msk.bf16.gmra.mxu3 %vm1312_vm0, %v13325_v49 }
 0xc4b   : > { %v5875_v25 = vpop.f32.mrf.mxu2 }
 0xc4c   : > { %v7775_v51 = vmax.f32 %v5875_v25, 0.0  ;;  %v6524_v52 = vpop.f32.mrf.mxu3  ;;  %v4579_v53 = vpop.f32.mrf.mxu0 }
 0xc4d   : > { %v7776_v26 = vmax.f32 %v6524_v52, 0.0  ;;  %v7781_v54 = vmax.f32 %v4579_v53, 0.0  ;;  %v5228_v55 = vpop.f32.mrf.mxu1 }
 0xc4e   : > { %v10584_v56 = vadd.f32 %v10583_v22, %v7775_v51  ;;  %v7782_v36 = vmax.f32 %v5228_v55, 0.0 }
 0xc4f   : > { %v10839_v57 = vadd.f32 %v10838_v47, %v7776_v26  ;;  %v10075_v58 = vadd.f32 %v10074_v48, %v7781_v54 }
 0xc50   : > { %v10330_v59 = vadd.f32 %v10329_v50, %v7782_v36 }
 0xc53   : > { %v5877_v62 = vpop.f32.mrf.mxu2 }
 0xc54   : > { %v7783_v63 = vmax.f32 %v5877_v62, 0.0  ;;  %v6526_v39 = vpop.f32.mrf.mxu3  ;;  %v4582_v0 = vpop.f32.mrf.mxu0 }
 0xc55   : > { %v7784_v1 = vmax.f32 %v6526_v39, 0.0  ;;  %v7789_v3 = vmax.f32 %v4582_v0, 0.0  ;;  %v5231_v2 = vpop.f32.mrf.mxu1 }
 0xc56   : > { %v10585_v4 = vadd.f32 %v10584_v56, %v7783_v63  ;;  %v7790_v5 = vmax.f32 %v5231_v2, 0.0 }
 0xc57   : > { %v10840_v60 = vadd.f32 %v10839_v57, %v7784_v1  ;;  %v10076_v7 = vadd.f32 %v10075_v58, %v7789_v3  ;;  %12592 = vmatmul.msk.bf16.gmra.mxu0 %vm1312_vm0, %v13326_v6  ;;  %12720 = vmatmul.msk.bf16.gmra.mxu1 %vm1312_vm0, %v13326_v6  ;;  %v13328_v57 = vld [vmem:[%s13583_s29 + $0x210] sm:$0xff] }
 0xc58   : > { %v10331_v9 = vadd.f32 %v10330_v59, %v7790_v5  ;;  %12848 = vmatmul.msk.bf16.gmra.mxu2 %vm1312_vm0, %v13326_v6 }
 0xc59   : > { %12976 = vmatmul.msk.bf16.gmra.mxu3 %vm1312_vm0, %v13326_v6 }
 0xc5b   : > { %v5880_v61 = vpop.f32.mrf.mxu2 }
 0xc5c   : > { %v7791_v10 = vmax.f32 %v5880_v61, 0.0  ;;  %v6529_v8 = vpop.f32.mrf.mxu3  ;;  %v4584_v11 = vpop.f32.mrf.mxu0 }
 0xc5d   : > { %v7792_v14 = vmax.f32 %v6529_v8, 0.0  ;;  %v7797_v15 = vmax.f32 %v4584_v11, 0.0  ;;  %v5233_v18 = vpop.f32.mrf.mxu1 }
 0xc5e   : > { %v10586_v12 = vadd.f32 %v10585_v4, %v7791_v10  ;;  %v7798_v19 = vmax.f32 %v5233_v18, 0.0 }
 0xc5f   : > { %v10841_v20 = vadd.f32 %v10840_v60, %v7792_v14  ;;  %v10077_v23 = vadd.f32 %v10076_v7, %v7797_v15 }
 0xc60   : > { %v10332_v24 = vadd.f32 %v10331_v9, %v7798_v19 }
 0xc63   : > { %v5882_v29 = vpop.f32.mrf.mxu2 }
 0xc64   : > { %v7799_v13 = vmax.f32 %v5882_v29, 0.0  ;;  %v6531_v30 = vpop.f32.mrf.mxu3  ;;  %v4587_v27 = vpop.f32.mrf.mxu0 }
 0xc65   : > { %v7800_v31 = vmax.f32 %v6531_v30, 0.0  ;;  %v7805_v16 = vmax.f32 %v4587_v27, 0.0  ;;  %v5236_v28 = vpop.f32.mrf.mxu1 }
 0xc66   : > { %v10587_v17 = vadd.f32 %v10586_v12, %v7799_v13  ;;  %v7806_v32 = vmax.f32 %v5236_v28, 0.0 }
 0xc67   : > { %v10842_v33 = vadd.f32 %v10841_v20, %v7800_v31  ;;  %v10078_v34 = vadd.f32 %v10077_v23, %v7805_v16  ;;  %12593 = vmatmul.msk.bf16.gmra.mxu0 %vm1312_vm0, %v13327_v35  ;;  %12721 = vmatmul.msk.bf16.gmra.mxu1 %vm1312_vm0, %v13327_v35  ;;  %v13329_v20 = vld [vmem:[%s13583_s29 + $0x218] sm:$0xff] }
 0xc68   : > { %v10333_v37 = vadd.f32 %v10332_v24, %v7806_v32  ;;  %12849 = vmatmul.msk.bf16.gmra.mxu2 %vm1312_vm0, %v13327_v35 }
 0xc69   : > { %12977 = vmatmul.msk.bf16.gmra.mxu3 %vm1312_vm0, %v13327_v35 }
 0xc6b   : > { %v5885_v21 = vpop.f32.mrf.mxu2 }
 0xc6c   : > { %v7807_v38 = vmax.f32 %v5885_v21, 0.0  ;;  %v6534_v40 = vpop.f32.mrf.mxu3  ;;  %v4589_v41 = vpop.f32.mrf.mxu0 }
 0xc6d   : > { %v7808_v42 = vmax.f32 %v6534_v40, 0.0  ;;  %v7813_v43 = vmax.f32 %v4589_v41, 0.0  ;;  %v5238_v44 = vpop.f32.mrf.mxu1 }
 0xc6e   : > { %v10588_v45 = vadd.f32 %v10587_v17, %v7807_v38  ;;  %v7814_v22 = vmax.f32 %v5238_v44, 0.0 }
 0xc6f   : > { %v10843_v46 = vadd.f32 %v10842_v33, %v7808_v42  ;;  %v10079_v47 = vadd.f32 %v10078_v34, %v7813_v43 }
 0xc70   : > { %v10334_v48 = vadd.f32 %v10333_v37, %v7814_v22 }
 0xc73   : > { %v5887_v49 = vpop.f32.mrf.mxu2 }
 0xc74   : > { %v7815_v50 = vmax.f32 %v5887_v49, 0.0  ;;  %v6536_v25 = vpop.f32.mrf.mxu3  ;;  %v4592_v51 = vpop.f32.mrf.mxu0 }
 0xc75   : > { %v7816_v52 = vmax.f32 %v6536_v25, 0.0  ;;  %v7821_v53 = vmax.f32 %v4592_v51, 0.0  ;;  %v5241_v26 = vpop.f32.mrf.mxu1 }
 0xc76   : > { %v10589_v54 = vadd.f32 %v10588_v45, %v7815_v50  ;;  %v7822_v55 = vmax.f32 %v5241_v26, 0.0 }
 0xc77   : > { %v10844_v56 = vadd.f32 %v10843_v46, %v7816_v52  ;;  %v10080_v36 = vadd.f32 %v10079_v47, %v7821_v53  ;;  %12594 = vmatmul.msk.bf16.gmra.mxu0 %vm1312_vm0, %v13328_v57  ;;  %12722 = vmatmul.msk.bf16.gmra.mxu1 %vm1312_vm0, %v13328_v57  ;;  %v13330_v46 = vld [vmem:[%s13583_s29 + $0x220] sm:$0xff] }
 0xc78   : > { %v10335_v58 = vadd.f32 %v10334_v48, %v7822_v55  ;;  %12850 = vmatmul.msk.bf16.gmra.mxu2 %vm1312_vm0, %v13328_v57 }
 0xc79   : > { %12978 = vmatmul.msk.bf16.gmra.mxu3 %vm1312_vm0, %v13328_v57 }
 0xc7b   : > { %v5890_v59 = vpop.f32.mrf.mxu2 }
 0xc7c   : > { %v7823_v62 = vmax.f32 %v5890_v59, 0.0  ;;  %v6539_v63 = vpop.f32.mrf.mxu3  ;;  %v4594_v39 = vpop.f32.mrf.mxu0 }
 0xc7d   : > { %v7824_v0 = vmax.f32 %v6539_v63, 0.0  ;;  %v7829_v1 = vmax.f32 %v4594_v39, 0.0  ;;  %v5243_v3 = vpop.f32.mrf.mxu1 }
 0xc7e   : > { %v10590_v2 = vadd.f32 %v10589_v54, %v7823_v62  ;;  %v7830_v4 = vmax.f32 %v5243_v3, 0.0 }
 0xc7f   : > { %v10845_v5 = vadd.f32 %v10844_v56, %v7824_v0  ;;  %v10081_v60 = vadd.f32 %v10080_v36, %v7829_v1 }
 0xc80   : > { %v10336_v7 = vadd.f32 %v10335_v58, %v7830_v4 }
 0xc83   : > { %v5892_v6 = vpop.f32.mrf.mxu2 }
 0xc84   : > { %v7831_v9 = vmax.f32 %v5892_v6, 0.0  ;;  %v6541_v61 = vpop.f32.mrf.mxu3  ;;  %v4597_v10 = vpop.f32.mrf.mxu0 }
 0xc85   : > { %v7832_v8 = vmax.f32 %v6541_v61, 0.0  ;;  %v7837_v11 = vmax.f32 %v4597_v10, 0.0  ;;  %v5246_v14 = vpop.f32.mrf.mxu1 }
 0xc86   : > { %v10591_v15 = vadd.f32 %v10590_v2, %v7831_v9  ;;  %v7838_v18 = vmax.f32 %v5246_v14, 0.0 }
 0xc87   : > { %v10846_v12 = vadd.f32 %v10845_v5, %v7832_v8  ;;  %v10082_v19 = vadd.f32 %v10081_v60, %v7837_v11  ;;  %12595 = vmatmul.msk.bf16.gmra.mxu0 %vm1312_vm0, %v13329_v20  ;;  %12723 = vmatmul.msk.bf16.gmra.mxu1 %vm1312_vm0, %v13329_v20  ;;  %v13331_v5 = vld [vmem:[%s13583_s29 + $0x228] sm:$0xff] }
 0xc88   : > { %v10337_v23 = vadd.f32 %v10336_v7, %v7838_v18  ;;  %12851 = vmatmul.msk.bf16.gmra.mxu2 %vm1312_vm0, %v13329_v20 }
 0xc89   : > { %12979 = vmatmul.msk.bf16.gmra.mxu3 %vm1312_vm0, %v13329_v20 }
 0xc8b   : > { %v5895_v24 = vpop.f32.mrf.mxu2 }
 0xc8c   : > { %v7839_v29 = vmax.f32 %v5895_v24, 0.0  ;;  %v6544_v13 = vpop.f32.mrf.mxu3  ;;  %v4599_v30 = vpop.f32.mrf.mxu0 }
 0xc8d   : > { %v7840_v27 = vmax.f32 %v6544_v13, 0.0  ;;  %v7845_v31 = vmax.f32 %v4599_v30, 0.0  ;;  %v5248_v16 = vpop.f32.mrf.mxu1 }
 0xc8e   : > { %v10592_v28 = vadd.f32 %v10591_v15, %v7839_v29  ;;  %v7846_v17 = vmax.f32 %v5248_v16, 0.0 }
 0xc8f   : > { %v10847_v32 = vadd.f32 %v10846_v12, %v7840_v27  ;;  %v10083_v33 = vadd.f32 %v10082_v19, %v7845_v31 }
 0xc90   : > { %v10338_v34 = vadd.f32 %v10337_v23, %v7846_v17 }
 0xc93   : > { %v5897_v35 = vpop.f32.mrf.mxu2 }
 0xc94   : > { %v7847_v37 = vmax.f32 %v5897_v35, 0.0  ;;  %v6546_v21 = vpop.f32.mrf.mxu3  ;;  %v4602_v38 = vpop.f32.mrf.mxu0 }
 0xc95   : > { %v7848_v40 = vmax.f32 %v6546_v21, 0.0  ;;  %v7853_v41 = vmax.f32 %v4602_v38, 0.0  ;;  %v5251_v42 = vpop.f32.mrf.mxu1 }
 0xc96   : > { %v10593_v43 = vadd.f32 %v10592_v28, %v7847_v37  ;;  %v7854_v44 = vmax.f32 %v5251_v42, 0.0 }
 0xc97   : > { %v10848_v45 = vadd.f32 %v10847_v32, %v7848_v40  ;;  %v10084_v22 = vadd.f32 %v10083_v33, %v7853_v41  ;;  %12596 = vmatmul.msk.bf16.gmra.mxu0 %vm1312_vm0, %v13330_v46  ;;  %12724 = vmatmul.msk.bf16.gmra.mxu1 %vm1312_vm0, %v13330_v46  ;;  %v13332_v32 = vld [vmem:[%s13583_s29 + $0x230] sm:$0xff] }
 0xc98   : > { %v10339_v47 = vadd.f32 %v10338_v34, %v7854_v44  ;;  %12852 = vmatmul.msk.bf16.gmra.mxu2 %vm1312_vm0, %v13330_v46 }
 0xc99   : > { %12980 = vmatmul.msk.bf16.gmra.mxu3 %vm1312_vm0, %v13330_v46 }
 0xc9b   : > { %v5900_v48 = vpop.f32.mrf.mxu2 }
 0xc9c   : > { %v7855_v49 = vmax.f32 %v5900_v48, 0.0  ;;  %v6549_v50 = vpop.f32.mrf.mxu3  ;;  %v4604_v25 = vpop.f32.mrf.mxu0 }
 0xc9d   : > { %v7856_v51 = vmax.f32 %v6549_v50, 0.0  ;;  %v7861_v52 = vmax.f32 %v4604_v25, 0.0  ;;  %v5253_v53 = vpop.f32.mrf.mxu1 }
 0xc9e   : > { %v10594_v26 = vadd.f32 %v10593_v43, %v7855_v49  ;;  %v7862_v54 = vmax.f32 %v5253_v53, 0.0 }
 0xc9f   : > { %v10849_v55 = vadd.f32 %v10848_v45, %v7856_v51  ;;  %v10085_v56 = vadd.f32 %v10084_v22, %v7861_v52 }
 0xca0   : > { %v10340_v36 = vadd.f32 %v10339_v47, %v7862_v54 }
 0xca3   : > { %v5902_v57 = vpop.f32.mrf.mxu2 }
 0xca4   : > { %v7863_v58 = vmax.f32 %v5902_v57, 0.0  ;;  %v6551_v59 = vpop.f32.mrf.mxu3  ;;  %v4607_v62 = vpop.f32.mrf.mxu0 }
 0xca5   : > { %v7864_v63 = vmax.f32 %v6551_v59, 0.0  ;;  %v7869_v39 = vmax.f32 %v4607_v62, 0.0  ;;  %v5256_v0 = vpop.f32.mrf.mxu1 }
 0xca6   : > { %v10595_v1 = vadd.f32 %v10594_v26, %v7863_v58  ;;  %v7870_v3 = vmax.f32 %v5256_v0, 0.0 }
 0xca7   : > { %v10850_v2 = vadd.f32 %v10849_v55, %v7864_v63  ;;  %v10086_v4 = vadd.f32 %v10085_v56, %v7869_v39  ;;  %12597 = vmatmul.msk.bf16.gmra.mxu0 %vm1312_vm0, %v13331_v5  ;;  %12725 = vmatmul.msk.bf16.gmra.mxu1 %vm1312_vm0, %v13331_v5  ;;  %v13333_v55 = vld [vmem:[%s13583_s29 + $0x238] sm:$0xff] }
 0xca8   : > { %v10341_v60 = vadd.f32 %v10340_v36, %v7870_v3  ;;  %12853 = vmatmul.msk.bf16.gmra.mxu2 %vm1312_vm0, %v13331_v5 }
 0xca9   : > { %12981 = vmatmul.msk.bf16.gmra.mxu3 %vm1312_vm0, %v13331_v5 }
 0xcab   : > { %v5905_v7 = vpop.f32.mrf.mxu2 }
 0xcac   : > { %v7871_v6 = vmax.f32 %v5905_v7, 0.0  ;;  %v6554_v9 = vpop.f32.mrf.mxu3  ;;  %v4609_v61 = vpop.f32.mrf.mxu0 }
 0xcad   : > { %v7872_v10 = vmax.f32 %v6554_v9, 0.0  ;;  %v7877_v8 = vmax.f32 %v4609_v61, 0.0  ;;  %v5258_v11 = vpop.f32.mrf.mxu1 }
 0xcae   : > { %v10596_v14 = vadd.f32 %v10595_v1, %v7871_v6  ;;  %v7878_v15 = vmax.f32 %v5258_v11, 0.0 }
 0xcaf   : > { %v10851_v18 = vadd.f32 %v10850_v2, %v7872_v10  ;;  %v10087_v12 = vadd.f32 %v10086_v4, %v7877_v8 }
 0xcb0   : > { %v10342_v19 = vadd.f32 %v10341_v60, %v7878_v15 }
 0xcb3   : > { %v5907_v20 = vpop.f32.mrf.mxu2 }
 0xcb4   : > { %v7879_v23 = vmax.f32 %v5907_v20, 0.0  ;;  %v6556_v24 = vpop.f32.mrf.mxu3  ;;  %v4612_v29 = vpop.f32.mrf.mxu0 }
 0xcb5   : > { %v7880_v13 = vmax.f32 %v6556_v24, 0.0  ;;  %v7885_v30 = vmax.f32 %v4612_v29, 0.0  ;;  %v5261_v27 = vpop.f32.mrf.mxu1 }
 0xcb6   : > { %v10597_v31 = vadd.f32 %v10596_v14, %v7879_v23  ;;  %v7886_v16 = vmax.f32 %v5261_v27, 0.0 }
 0xcb7   : > { %v10852_v28 = vadd.f32 %v10851_v18, %v7880_v13  ;;  %v10088_v17 = vadd.f32 %v10087_v12, %v7885_v30  ;;  %12598 = vmatmul.msk.bf16.gmra.mxu0 %vm1312_vm0, %v13332_v32  ;;  %12726 = vmatmul.msk.bf16.gmra.mxu1 %vm1312_vm0, %v13332_v32  ;;  %v13334_v18 = vld [vmem:[%s13583_s29 + $0x240] sm:$0xff] }
 0xcb8   : > { %v10343_v33 = vadd.f32 %v10342_v19, %v7886_v16  ;;  %12854 = vmatmul.msk.bf16.gmra.mxu2 %vm1312_vm0, %v13332_v32 }
 0xcb9   : > { %12982 = vmatmul.msk.bf16.gmra.mxu3 %vm1312_vm0, %v13332_v32 }
 0xcbb   : > { %v5910_v34 = vpop.f32.mrf.mxu2 }
 0xcbc   : > { %v7887_v35 = vmax.f32 %v5910_v34, 0.0  ;;  %v6559_v37 = vpop.f32.mrf.mxu3  ;;  %v4614_v21 = vpop.f32.mrf.mxu0 }
 0xcbd   : > { %v7888_v38 = vmax.f32 %v6559_v37, 0.0  ;;  %v7893_v40 = vmax.f32 %v4614_v21, 0.0  ;;  %v5263_v41 = vpop.f32.mrf.mxu1 }
 0xcbe   : > { %v10598_v42 = vadd.f32 %v10597_v31, %v7887_v35  ;;  %v7894_v43 = vmax.f32 %v5263_v41, 0.0 }
 0xcbf   : > { %v10853_v44 = vadd.f32 %v10852_v28, %v7888_v38  ;;  %v10089_v45 = vadd.f32 %v10088_v17, %v7893_v40 }
 0xcc0   : > { %v10344_v22 = vadd.f32 %v10343_v33, %v7894_v43 }
 0xcc3   : > { %v5912_v46 = vpop.f32.mrf.mxu2 }
 0xcc4   : > { %v7895_v47 = vmax.f32 %v5912_v46, 0.0  ;;  %v6561_v48 = vpop.f32.mrf.mxu3  ;;  %v4617_v49 = vpop.f32.mrf.mxu0 }
 0xcc5   : > { %v7896_v50 = vmax.f32 %v6561_v48, 0.0  ;;  %v7901_v25 = vmax.f32 %v4617_v49, 0.0  ;;  %v5266_v51 = vpop.f32.mrf.mxu1 }
 0xcc6   : > { %v10599_v52 = vadd.f32 %v10598_v42, %v7895_v47  ;;  %v7902_v53 = vmax.f32 %v5266_v51, 0.0 }
 0xcc7   : > { %v10854_v26 = vadd.f32 %v10853_v44, %v7896_v50  ;;  %v10090_v54 = vadd.f32 %v10089_v45, %v7901_v25  ;;  %12599 = vmatmul.msk.bf16.gmra.mxu0 %vm1312_vm0, %v13333_v55  ;;  %12727 = vmatmul.msk.bf16.gmra.mxu1 %vm1312_vm0, %v13333_v55  ;;  %v13335_v44 = vld [vmem:[%s13583_s29 + $0x248] sm:$0xff] }
 0xcc8   : > { %v10345_v56 = vadd.f32 %v10344_v22, %v7902_v53  ;;  %12855 = vmatmul.msk.bf16.gmra.mxu2 %vm1312_vm0, %v13333_v55 }
 0xcc9   : > { %12983 = vmatmul.msk.bf16.gmra.mxu3 %vm1312_vm0, %v13333_v55 }
 0xccb   : > { %v5915_v36 = vpop.f32.mrf.mxu2 }
 0xccc   : > { %v7903_v57 = vmax.f32 %v5915_v36, 0.0  ;;  %v6564_v58 = vpop.f32.mrf.mxu3  ;;  %v4619_v59 = vpop.f32.mrf.mxu0 }
 0xccd   : > { %v7904_v62 = vmax.f32 %v6564_v58, 0.0  ;;  %v7909_v63 = vmax.f32 %v4619_v59, 0.0  ;;  %v5268_v39 = vpop.f32.mrf.mxu1 }
 0xcce   : > { %v10600_v0 = vadd.f32 %v10599_v52, %v7903_v57  ;;  %v7910_v1 = vmax.f32 %v5268_v39, 0.0 }
 0xccf   : > { %v10855_v3 = vadd.f32 %v10854_v26, %v7904_v62  ;;  %v10091_v2 = vadd.f32 %v10090_v54, %v7909_v63 }
 0xcd0   : > { %v10346_v4 = vadd.f32 %v10345_v56, %v7910_v1 }
 0xcd3   : > { %v5917_v5 = vpop.f32.mrf.mxu2 }
 0xcd4   : > { %v7911_v60 = vmax.f32 %v5917_v5, 0.0  ;;  %v6566_v7 = vpop.f32.mrf.mxu3  ;;  %v4622_v6 = vpop.f32.mrf.mxu0 }
 0xcd5   : > { %v7912_v9 = vmax.f32 %v6566_v7, 0.0  ;;  %v7917_v61 = vmax.f32 %v4622_v6, 0.0  ;;  %v5271_v10 = vpop.f32.mrf.mxu1 }
 0xcd6   : > { %v10601_v8 = vadd.f32 %v10600_v0, %v7911_v60  ;;  %v7918_v11 = vmax.f32 %v5271_v10, 0.0 }
 0xcd7   : > { %v10856_v14 = vadd.f32 %v10855_v3, %v7912_v9  ;;  %v10092_v15 = vadd.f32 %v10091_v2, %v7917_v61  ;;  %12600 = vmatmul.msk.bf16.gmra.mxu0 %vm1312_vm0, %v13334_v18  ;;  %12728 = vmatmul.msk.bf16.gmra.mxu1 %vm1312_vm0, %v13334_v18  ;;  %v13336_v3 = vld [vmem:[%s13583_s29 + $0x250] sm:$0xff] }
 0xcd8   : > { %v10347_v12 = vadd.f32 %v10346_v4, %v7918_v11  ;;  %12856 = vmatmul.msk.bf16.gmra.mxu2 %vm1312_vm0, %v13334_v18 }
 0xcd9   : > { %12984 = vmatmul.msk.bf16.gmra.mxu3 %vm1312_vm0, %v13334_v18 }
 0xcdb   : > { %v5920_v19 = vpop.f32.mrf.mxu2 }
 0xcdc   : > { %v7919_v20 = vmax.f32 %v5920_v19, 0.0  ;;  %v6569_v23 = vpop.f32.mrf.mxu3  ;;  %v4624_v24 = vpop.f32.mrf.mxu0 }
 0xcdd   : > { %v7920_v29 = vmax.f32 %v6569_v23, 0.0  ;;  %v7925_v13 = vmax.f32 %v4624_v24, 0.0  ;;  %v5273_v30 = vpop.f32.mrf.mxu1 }
 0xcde   : > { %v10602_v27 = vadd.f32 %v10601_v8, %v7919_v20  ;;  %v7926_v31 = vmax.f32 %v5273_v30, 0.0 }
 0xcdf   : > { %v10857_v16 = vadd.f32 %v10856_v14, %v7920_v29  ;;  %v10093_v28 = vadd.f32 %v10092_v15, %v7925_v13 }
 0xce0   : > { %v10348_v17 = vadd.f32 %v10347_v12, %v7926_v31 }
 0xce3   : > { %v5922_v32 = vpop.f32.mrf.mxu2 }
 0xce4   : > { %v7927_v33 = vmax.f32 %v5922_v32, 0.0  ;;  %v6571_v34 = vpop.f32.mrf.mxu3  ;;  %v4627_v35 = vpop.f32.mrf.mxu0 }
 0xce5   : > { %v7928_v37 = vmax.f32 %v6571_v34, 0.0  ;;  %v7933_v21 = vmax.f32 %v4627_v35, 0.0  ;;  %v5276_v38 = vpop.f32.mrf.mxu1 }
 0xce6   : > { %v10603_v40 = vadd.f32 %v10602_v27, %v7927_v33  ;;  %v7934_v41 = vmax.f32 %v5276_v38, 0.0 }
 0xce7   : > { %v10858_v42 = vadd.f32 %v10857_v16, %v7928_v37  ;;  %v10094_v43 = vadd.f32 %v10093_v28, %v7933_v21  ;;  %12601 = vmatmul.msk.bf16.gmra.mxu0 %vm1312_vm0, %v13335_v44  ;;  %12729 = vmatmul.msk.bf16.gmra.mxu1 %vm1312_vm0, %v13335_v44  ;;  %v13337_v16 = vld [vmem:[%s13583_s29 + $0x258] sm:$0xff] }
 0xce8   : > { %v10349_v45 = vadd.f32 %v10348_v17, %v7934_v41  ;;  %12857 = vmatmul.msk.bf16.gmra.mxu2 %vm1312_vm0, %v13335_v44 }
 0xce9   : > { %12985 = vmatmul.msk.bf16.gmra.mxu3 %vm1312_vm0, %v13335_v44 }
 0xceb   : > { %v5925_v22 = vpop.f32.mrf.mxu2 }
 0xcec   : > { %v7935_v46 = vmax.f32 %v5925_v22, 0.0  ;;  %v6574_v47 = vpop.f32.mrf.mxu3  ;;  %v4629_v48 = vpop.f32.mrf.mxu0 }
 0xced   : > { %v7936_v49 = vmax.f32 %v6574_v47, 0.0  ;;  %v7941_v50 = vmax.f32 %v4629_v48, 0.0  ;;  %v5278_v25 = vpop.f32.mrf.mxu1 }
 0xcee   : > { %v10604_v51 = vadd.f32 %v10603_v40, %v7935_v46  ;;  %v7942_v52 = vmax.f32 %v5278_v25, 0.0 }
 0xcef   : > { %v10859_v53 = vadd.f32 %v10858_v42, %v7936_v49  ;;  %v10095_v26 = vadd.f32 %v10094_v43, %v7941_v50 }
 0xcf0   : > { %v10350_v54 = vadd.f32 %v10349_v45, %v7942_v52 }
 0xcf3   : > { %v5927_v55 = vpop.f32.mrf.mxu2 }
 0xcf4   : > { %v7943_v56 = vmax.f32 %v5927_v55, 0.0  ;;  %v6576_v36 = vpop.f32.mrf.mxu3  ;;  %v4632_v57 = vpop.f32.mrf.mxu0 }
 0xcf5   : > { %v7944_v58 = vmax.f32 %v6576_v36, 0.0  ;;  %v7949_v59 = vmax.f32 %v4632_v57, 0.0  ;;  %v5281_v62 = vpop.f32.mrf.mxu1 }
 0xcf6   : > { %v10605_v63 = vadd.f32 %v10604_v51, %v7943_v56  ;;  %v7950_v39 = vmax.f32 %v5281_v62, 0.0 }
 0xcf7   : > { %v10860_v0 = vadd.f32 %v10859_v53, %v7944_v58  ;;  %v10096_v1 = vadd.f32 %v10095_v26, %v7949_v59  ;;  %12602 = vmatmul.msk.bf16.gmra.mxu0 %vm1312_vm0, %v13336_v3  ;;  %12730 = vmatmul.msk.bf16.gmra.mxu1 %vm1312_vm0, %v13336_v3  ;;  %v13338_v53 = vld [vmem:[%s13583_s29 + $0x260] sm:$0xff] }
 0xcf8   : > { %v10351_v2 = vadd.f32 %v10350_v54, %v7950_v39  ;;  %12858 = vmatmul.msk.bf16.gmra.mxu2 %vm1312_vm0, %v13336_v3 }
 0xcf9   : > { %12986 = vmatmul.msk.bf16.gmra.mxu3 %vm1312_vm0, %v13336_v3 }
 0xcfb   : > { %v5930_v4 = vpop.f32.mrf.mxu2 }
 0xcfc   : > { %v7951_v5 = vmax.f32 %v5930_v4, 0.0  ;;  %v6579_v60 = vpop.f32.mrf.mxu3  ;;  %v4634_v7 = vpop.f32.mrf.mxu0 }
 0xcfd   : > { %v7952_v6 = vmax.f32 %v6579_v60, 0.0  ;;  %v7957_v9 = vmax.f32 %v4634_v7, 0.0  ;;  %v5283_v61 = vpop.f32.mrf.mxu1 }
 0xcfe   : > { %v10606_v10 = vadd.f32 %v10605_v63, %v7951_v5  ;;  %v7958_v8 = vmax.f32 %v5283_v61, 0.0 }
 0xcff   : > { %v10861_v11 = vadd.f32 %v10860_v0, %v7952_v6  ;;  %v10097_v14 = vadd.f32 %v10096_v1, %v7957_v9 }
 0xd00   : > { %v10352_v15 = vadd.f32 %v10351_v2, %v7958_v8 }
 0xd03   : > { %v5932_v18 = vpop.f32.mrf.mxu2 }
 0xd04   : > { %v7959_v12 = vmax.f32 %v5932_v18, 0.0  ;;  %v6581_v19 = vpop.f32.mrf.mxu3  ;;  %v4637_v20 = vpop.f32.mrf.mxu0 }
 0xd05   : > { %v7960_v23 = vmax.f32 %v6581_v19, 0.0  ;;  %v7965_v24 = vmax.f32 %v4637_v20, 0.0  ;;  %v5286_v29 = vpop.f32.mrf.mxu1 }
 0xd06   : > { %v10607_v13 = vadd.f32 %v10606_v10, %v7959_v12  ;;  %v7966_v30 = vmax.f32 %v5286_v29, 0.0 }
 0xd07   : > { %v10862_v27 = vadd.f32 %v10861_v11, %v7960_v23  ;;  %v10098_v31 = vadd.f32 %v10097_v14, %v7965_v24  ;;  %12603 = vmatmul.msk.bf16.gmra.mxu0 %vm1312_vm0, %v13337_v16  ;;  %12731 = vmatmul.msk.bf16.gmra.mxu1 %vm1312_vm0, %v13337_v16  ;;  %v13339_v11 = vld [vmem:[%s13583_s29 + $0x268] sm:$0xff] }
 0xd08   : > { %v10353_v28 = vadd.f32 %v10352_v15, %v7966_v30  ;;  %12859 = vmatmul.msk.bf16.gmra.mxu2 %vm1312_vm0, %v13337_v16 }
 0xd09   : > { %12987 = vmatmul.msk.bf16.gmra.mxu3 %vm1312_vm0, %v13337_v16 }
 0xd0b   : > { %v5935_v17 = vpop.f32.mrf.mxu2 }
 0xd0c   : > { %v7967_v32 = vmax.f32 %v5935_v17, 0.0  ;;  %v6584_v33 = vpop.f32.mrf.mxu3  ;;  %v4639_v34 = vpop.f32.mrf.mxu0 }
 0xd0d   : > { %v7968_v35 = vmax.f32 %v6584_v33, 0.0  ;;  %v7973_v37 = vmax.f32 %v4639_v34, 0.0  ;;  %v5288_v21 = vpop.f32.mrf.mxu1 }
 0xd0e   : > { %v10608_v38 = vadd.f32 %v10607_v13, %v7967_v32  ;;  %v7974_v40 = vmax.f32 %v5288_v21, 0.0 }
 0xd0f   : > { %v10863_v41 = vadd.f32 %v10862_v27, %v7968_v35  ;;  %v10099_v42 = vadd.f32 %v10098_v31, %v7973_v37 }
 0xd10   : > { %v10354_v43 = vadd.f32 %v10353_v28, %v7974_v40 }
 0xd13   : > { %v5937_v44 = vpop.f32.mrf.mxu2 }
 0xd14   : > { %v7975_v45 = vmax.f32 %v5937_v44, 0.0  ;;  %v6586_v22 = vpop.f32.mrf.mxu3  ;;  %v4642_v46 = vpop.f32.mrf.mxu0 }
 0xd15   : > { %v7976_v47 = vmax.f32 %v6586_v22, 0.0  ;;  %v7981_v48 = vmax.f32 %v4642_v46, 0.0  ;;  %v5291_v49 = vpop.f32.mrf.mxu1 }
 0xd16   : > { %v10609_v50 = vadd.f32 %v10608_v38, %v7975_v45  ;;  %v7982_v25 = vmax.f32 %v5291_v49, 0.0 }
 0xd17   : > { %v10864_v51 = vadd.f32 %v10863_v41, %v7976_v47  ;;  %v10100_v52 = vadd.f32 %v10099_v42, %v7981_v48  ;;  %12604 = vmatmul.msk.bf16.gmra.mxu0 %vm1312_vm0, %v13338_v53  ;;  %12732 = vmatmul.msk.bf16.gmra.mxu1 %vm1312_vm0, %v13338_v53  ;;  %v13340_v41 = vld [vmem:[%s13583_s29 + $0x270] sm:$0xff] }
 0xd18   : > { %v10355_v26 = vadd.f32 %v10354_v43, %v7982_v25  ;;  %12860 = vmatmul.msk.bf16.gmra.mxu2 %vm1312_vm0, %v13338_v53 }
 0xd19   : > { %12988 = vmatmul.msk.bf16.gmra.mxu3 %vm1312_vm0, %v13338_v53 }
 0xd1b   : > { %v5940_v54 = vpop.f32.mrf.mxu2 }
 0xd1c   : > { %v7983_v55 = vmax.f32 %v5940_v54, 0.0  ;;  %v6589_v56 = vpop.f32.mrf.mxu3  ;;  %v4644_v36 = vpop.f32.mrf.mxu0 }
 0xd1d   : > { %v7984_v57 = vmax.f32 %v6589_v56, 0.0  ;;  %v7989_v58 = vmax.f32 %v4644_v36, 0.0  ;;  %v5293_v59 = vpop.f32.mrf.mxu1 }
 0xd1e   : > { %v10610_v62 = vadd.f32 %v10609_v50, %v7983_v55  ;;  %v7990_v63 = vmax.f32 %v5293_v59, 0.0 }
 0xd1f   : > { %v10865_v39 = vadd.f32 %v10864_v51, %v7984_v57  ;;  %v10101_v0 = vadd.f32 %v10100_v52, %v7989_v58 }
 0xd20   : > { %v10356_v1 = vadd.f32 %v10355_v26, %v7990_v63 }
 0xd23   : > { %v5942_v3 = vpop.f32.mrf.mxu2 }
 0xd24   : > { %v7991_v2 = vmax.f32 %v5942_v3, 0.0  ;;  %v6591_v4 = vpop.f32.mrf.mxu3  ;;  %v4647_v5 = vpop.f32.mrf.mxu0 }
 0xd25   : > { %v7992_v60 = vmax.f32 %v6591_v4, 0.0  ;;  %v7997_v7 = vmax.f32 %v4647_v5, 0.0  ;;  %v5296_v6 = vpop.f32.mrf.mxu1 }
 0xd26   : > { %v10611_v9 = vadd.f32 %v10610_v62, %v7991_v2  ;;  %v7998_v61 = vmax.f32 %v5296_v6, 0.0 }
 0xd27   : > { %v10866_v10 = vadd.f32 %v10865_v39, %v7992_v60  ;;  %v10102_v8 = vadd.f32 %v10101_v0, %v7997_v7  ;;  %12605 = vmatmul.msk.bf16.gmra.mxu0 %vm1312_vm0, %v13339_v11  ;;  %12733 = vmatmul.msk.bf16.gmra.mxu1 %vm1312_vm0, %v13339_v11  ;;  %v13341_v39 = vld [vmem:[%s13583_s29 + $0x278] sm:$0xff] }
 0xd28   : > { %v10357_v14 = vadd.f32 %v10356_v1, %v7998_v61  ;;  %12861 = vmatmul.msk.bf16.gmra.mxu2 %vm1312_vm0, %v13339_v11 }
 0xd29   : > { %12989 = vmatmul.msk.bf16.gmra.mxu3 %vm1312_vm0, %v13339_v11 }
 0xd2b   : > { %v5945_v15 = vpop.f32.mrf.mxu2 }
 0xd2c   : > { %v7999_v18 = vmax.f32 %v5945_v15, 0.0  ;;  %v6594_v12 = vpop.f32.mrf.mxu3  ;;  %v4649_v19 = vpop.f32.mrf.mxu0 }
 0xd2d   : > { %v8000_v20 = vmax.f32 %v6594_v12, 0.0  ;;  %v8005_v23 = vmax.f32 %v4649_v19, 0.0  ;;  %v5298_v24 = vpop.f32.mrf.mxu1 }
 0xd2e   : > { %v10612_v29 = vadd.f32 %v10611_v9, %v7999_v18  ;;  %v8006_v13 = vmax.f32 %v5298_v24, 0.0 }
 0xd2f   : > { %v10867_v30 = vadd.f32 %v10866_v10, %v8000_v20  ;;  %v10103_v27 = vadd.f32 %v10102_v8, %v8005_v23 }
 0xd30   : > { %v10358_v31 = vadd.f32 %v10357_v14, %v8006_v13 }
 0xd33   : > { %v5947_v16 = vpop.f32.mrf.mxu2 }
 0xd34   : > { %v8007_v28 = vmax.f32 %v5947_v16, 0.0  ;;  %v6596_v17 = vpop.f32.mrf.mxu3  ;;  %v4652_v32 = vpop.f32.mrf.mxu0 }
 0xd35   : > { %v8008_v33 = vmax.f32 %v6596_v17, 0.0  ;;  %v8013_v34 = vmax.f32 %v4652_v32, 0.0  ;;  %v5301_v35 = vpop.f32.mrf.mxu1 }
 0xd36   : > { %v10613_v37 = vadd.f32 %v10612_v29, %v8007_v28  ;;  %v8014_v21 = vmax.f32 %v5301_v35, 0.0 }
 0xd37   : > { %v10868_v38 = vadd.f32 %v10867_v30, %v8008_v33  ;;  %v10104_v40 = vadd.f32 %v10103_v27, %v8013_v34  ;;  %12606 = vmatmul.msk.bf16.gmra.mxu0 %vm1312_vm0, %v13340_v41  ;;  %12734 = vmatmul.msk.bf16.gmra.mxu1 %vm1312_vm0, %v13340_v41  ;;  %v13342_v30 = vld [vmem:[%s13583_s29 + $0x280] sm:$0xff] }
 0xd38   : > { %v10359_v42 = vadd.f32 %v10358_v31, %v8014_v21  ;;  %12862 = vmatmul.msk.bf16.gmra.mxu2 %vm1312_vm0, %v13340_v41 }
 0xd39   : > { %12990 = vmatmul.msk.bf16.gmra.mxu3 %vm1312_vm0, %v13340_v41 }
 0xd3b   : > { %v5950_v43 = vpop.f32.mrf.mxu2 }
 0xd3c   : > { %v8015_v44 = vmax.f32 %v5950_v43, 0.0  ;;  %v6599_v45 = vpop.f32.mrf.mxu3  ;;  %v4654_v22 = vpop.f32.mrf.mxu0 }
 0xd3d   : > { %v8016_v46 = vmax.f32 %v6599_v45, 0.0  ;;  %v8021_v47 = vmax.f32 %v4654_v22, 0.0  ;;  %v5303_v48 = vpop.f32.mrf.mxu1 }
 0xd3e   : > { %v10614_v49 = vadd.f32 %v10613_v37, %v8015_v44  ;;  %v8022_v50 = vmax.f32 %v5303_v48, 0.0 }
 0xd3f   : > { %v10869_v25 = vadd.f32 %v10868_v38, %v8016_v46  ;;  %v10105_v51 = vadd.f32 %v10104_v40, %v8021_v47 }
 0xd40   : > { %v10360_v52 = vadd.f32 %v10359_v42, %v8022_v50 }
 0xd43   : > { %v5952_v53 = vpop.f32.mrf.mxu2 }
 0xd44   : > { %v8023_v26 = vmax.f32 %v5952_v53, 0.0  ;;  %v6601_v54 = vpop.f32.mrf.mxu3  ;;  %v4657_v55 = vpop.f32.mrf.mxu0 }
 0xd45   : > { %v8024_v56 = vmax.f32 %v6601_v54, 0.0  ;;  %v8029_v36 = vmax.f32 %v4657_v55, 0.0  ;;  %v5306_v57 = vpop.f32.mrf.mxu1 }
 0xd46   : > { %v10615_v58 = vadd.f32 %v10614_v49, %v8023_v26  ;;  %v8030_v59 = vmax.f32 %v5306_v57, 0.0 }
 0xd47   : > { %v10870_v62 = vadd.f32 %v10869_v25, %v8024_v56  ;;  %v10106_v63 = vadd.f32 %v10105_v51, %v8029_v36  ;;  %12607 = vmatmul.msk.bf16.gmra.mxu0 %vm1312_vm0, %v13341_v39  ;;  %12735 = vmatmul.msk.bf16.gmra.mxu1 %vm1312_vm0, %v13341_v39  ;;  %v13343_v25 = vld [vmem:[%s13583_s29 + $0x288] sm:$0xff] }
 0xd48   : > { %v10361_v0 = vadd.f32 %v10360_v52, %v8030_v59  ;;  %12863 = vmatmul.msk.bf16.gmra.mxu2 %vm1312_vm0, %v13341_v39 }
 0xd49   : > { %12991 = vmatmul.msk.bf16.gmra.mxu3 %vm1312_vm0, %v13341_v39 }
 0xd4b   : > { %v5955_v1 = vpop.f32.mrf.mxu2 }
 0xd4c   : > { %v8031_v3 = vmax.f32 %v5955_v1, 0.0  ;;  %v6604_v2 = vpop.f32.mrf.mxu3  ;;  %v4659_v4 = vpop.f32.mrf.mxu0 }
 0xd4d   : > { %v8032_v5 = vmax.f32 %v6604_v2, 0.0  ;;  %v8037_v60 = vmax.f32 %v4659_v4, 0.0  ;;  %v5308_v7 = vpop.f32.mrf.mxu1 }
 0xd4e   : > { %v10616_v6 = vadd.f32 %v10615_v58, %v8031_v3  ;;  %v8038_v9 = vmax.f32 %v5308_v7, 0.0 }
 0xd4f   : > { %v10871_v61 = vadd.f32 %v10870_v62, %v8032_v5  ;;  %v10107_v10 = vadd.f32 %v10106_v63, %v8037_v60 }
 0xd50   : > { %v10362_v8 = vadd.f32 %v10361_v0, %v8038_v9 }
 0xd53   : > { %v5957_v11 = vpop.f32.mrf.mxu2 }
 0xd54   : > { %v8039_v14 = vmax.f32 %v5957_v11, 0.0  ;;  %v6606_v15 = vpop.f32.mrf.mxu3  ;;  %v4662_v18 = vpop.f32.mrf.mxu0 }
 0xd55   : > { %v8040_v12 = vmax.f32 %v6606_v15, 0.0  ;;  %v8045_v19 = vmax.f32 %v4662_v18, 0.0  ;;  %v5311_v20 = vpop.f32.mrf.mxu1 }
 0xd56   : > { %v10617_v23 = vadd.f32 %v10616_v6, %v8039_v14  ;;  %v8046_v24 = vmax.f32 %v5311_v20, 0.0 }
 0xd57   : > { %v10872_v29 = vadd.f32 %v10871_v61, %v8040_v12  ;;  %v10108_v13 = vadd.f32 %v10107_v10, %v8045_v19  ;;  %12608 = vmatmul.msk.bf16.gmra.mxu0 %vm1312_vm0, %v13342_v30  ;;  %12736 = vmatmul.msk.bf16.gmra.mxu1 %vm1312_vm0, %v13342_v30  ;;  %v13344_v61 = vld [vmem:[%s13583_s29 + $0x290] sm:$0xff] }
 0xd58   : > { %v10363_v27 = vadd.f32 %v10362_v8, %v8046_v24  ;;  %12864 = vmatmul.msk.bf16.gmra.mxu2 %vm1312_vm0, %v13342_v30 }
 0xd59   : > { %12992 = vmatmul.msk.bf16.gmra.mxu3 %vm1312_vm0, %v13342_v30 }
 0xd5b   : > { %v5960_v31 = vpop.f32.mrf.mxu2 }
 0xd5c   : > { %v8047_v16 = vmax.f32 %v5960_v31, 0.0  ;;  %v6609_v28 = vpop.f32.mrf.mxu3  ;;  %v4664_v17 = vpop.f32.mrf.mxu0 }
 0xd5d   : > { %v8048_v32 = vmax.f32 %v6609_v28, 0.0  ;;  %v8053_v33 = vmax.f32 %v4664_v17, 0.0  ;;  %v5313_v34 = vpop.f32.mrf.mxu1 }
 0xd5e   : > { %v10618_v35 = vadd.f32 %v10617_v23, %v8047_v16  ;;  %v8054_v37 = vmax.f32 %v5313_v34, 0.0 }
 0xd5f   : > { %v10873_v21 = vadd.f32 %v10872_v29, %v8048_v32  ;;  %v10109_v38 = vadd.f32 %v10108_v13, %v8053_v33 }
 0xd60   : > { %v10364_v40 = vadd.f32 %v10363_v27, %v8054_v37 }
 0xd63   : > { %v5962_v41 = vpop.f32.mrf.mxu2 }
 0xd64   : > { %v8055_v42 = vmax.f32 %v5962_v41, 0.0  ;;  %v6611_v43 = vpop.f32.mrf.mxu3  ;;  %v4667_v44 = vpop.f32.mrf.mxu0 }
 0xd65   : > { %v8056_v45 = vmax.f32 %v6611_v43, 0.0  ;;  %v8061_v22 = vmax.f32 %v4667_v44, 0.0  ;;  %v5316_v46 = vpop.f32.mrf.mxu1 }
 0xd66   : > { %v10619_v47 = vadd.f32 %v10618_v35, %v8055_v42  ;;  %v8062_v48 = vmax.f32 %v5316_v46, 0.0 }
 0xd67   : > { %v10874_v49 = vadd.f32 %v10873_v21, %v8056_v45  ;;  %v10110_v50 = vadd.f32 %v10109_v38, %v8061_v22  ;;  %12609 = vmatmul.msk.bf16.gmra.mxu0 %vm1312_vm0, %v13343_v25  ;;  %12737 = vmatmul.msk.bf16.gmra.mxu1 %vm1312_vm0, %v13343_v25  ;;  %v13345_v21 = vld [vmem:[%s13583_s29 + $0x298] sm:$0xff] }
 0xd68   : > { %v10365_v51 = vadd.f32 %v10364_v40, %v8062_v48  ;;  %12865 = vmatmul.msk.bf16.gmra.mxu2 %vm1312_vm0, %v13343_v25 }
 0xd69   : > { %12993 = vmatmul.msk.bf16.gmra.mxu3 %vm1312_vm0, %v13343_v25 }
 0xd6b   : > { %v5965_v52 = vpop.f32.mrf.mxu2 }
 0xd6c   : > { %v8063_v53 = vmax.f32 %v5965_v52, 0.0  ;;  %v6614_v26 = vpop.f32.mrf.mxu3  ;;  %v4669_v54 = vpop.f32.mrf.mxu0 }
 0xd6d   : > { %v8064_v55 = vmax.f32 %v6614_v26, 0.0  ;;  %v8069_v56 = vmax.f32 %v4669_v54, 0.0  ;;  %v5318_v36 = vpop.f32.mrf.mxu1 }
 0xd6e   : > { %v10620_v57 = vadd.f32 %v10619_v47, %v8063_v53  ;;  %v8070_v58 = vmax.f32 %v5318_v36, 0.0 }
 0xd6f   : > { %v10875_v59 = vadd.f32 %v10874_v49, %v8064_v55  ;;  %v10111_v62 = vadd.f32 %v10110_v50, %v8069_v56 }
 0xd70   : > { %v10366_v63 = vadd.f32 %v10365_v51, %v8070_v58 }
 0xd73   : > { %v5967_v39 = vpop.f32.mrf.mxu2 }
 0xd74   : > { %v8071_v0 = vmax.f32 %v5967_v39, 0.0  ;;  %v6616_v1 = vpop.f32.mrf.mxu3  ;;  %v4672_v3 = vpop.f32.mrf.mxu0 }
 0xd75   : > { %v8072_v2 = vmax.f32 %v6616_v1, 0.0  ;;  %v8077_v4 = vmax.f32 %v4672_v3, 0.0  ;;  %v5321_v5 = vpop.f32.mrf.mxu1 }
 0xd76   : > { %v10621_v60 = vadd.f32 %v10620_v57, %v8071_v0  ;;  %v8078_v7 = vmax.f32 %v5321_v5, 0.0 }
 0xd77   : > { %v10876_v6 = vadd.f32 %v10875_v59, %v8072_v2  ;;  %v10112_v9 = vadd.f32 %v10111_v62, %v8077_v4  ;;  %12610 = vmatmul.msk.bf16.gmra.mxu0 %vm1312_vm0, %v13344_v61  ;;  %12738 = vmatmul.msk.bf16.gmra.mxu1 %vm1312_vm0, %v13344_v61  ;;  %v13346_v59 = vld [vmem:[%s13583_s29 + $0x2a0] sm:$0xff] }
 0xd78   : > { %v10367_v10 = vadd.f32 %v10366_v63, %v8078_v7  ;;  %12866 = vmatmul.msk.bf16.gmra.mxu2 %vm1312_vm0, %v13344_v61 }
 0xd79   : > { %12994 = vmatmul.msk.bf16.gmra.mxu3 %vm1312_vm0, %v13344_v61 }
 0xd7b   : > { %v5970_v8 = vpop.f32.mrf.mxu2 }
 0xd7c   : > { %v8079_v11 = vmax.f32 %v5970_v8, 0.0  ;;  %v6619_v14 = vpop.f32.mrf.mxu3  ;;  %v4674_v15 = vpop.f32.mrf.mxu0 }
 0xd7d   : > { %v8080_v18 = vmax.f32 %v6619_v14, 0.0  ;;  %v8085_v12 = vmax.f32 %v4674_v15, 0.0  ;;  %v5323_v19 = vpop.f32.mrf.mxu1 }
 0xd7e   : > { %v10622_v20 = vadd.f32 %v10621_v60, %v8079_v11  ;;  %v8086_v23 = vmax.f32 %v5323_v19, 0.0 }
 0xd7f   : > { %v10877_v24 = vadd.f32 %v10876_v6, %v8080_v18  ;;  %v10113_v29 = vadd.f32 %v10112_v9, %v8085_v12 }
 0xd80   : > { %v10368_v13 = vadd.f32 %v10367_v10, %v8086_v23 }
 0xd83   : > { %v5972_v30 = vpop.f32.mrf.mxu2 }
 0xd84   : > { %v8087_v27 = vmax.f32 %v5972_v30, 0.0  ;;  %v6621_v31 = vpop.f32.mrf.mxu3  ;;  %v4677_v16 = vpop.f32.mrf.mxu0 }
 0xd85   : > { %v8088_v28 = vmax.f32 %v6621_v31, 0.0  ;;  %v8093_v17 = vmax.f32 %v4677_v16, 0.0  ;;  %v5326_v32 = vpop.f32.mrf.mxu1 }
 0xd86   : > { %v10623_v33 = vadd.f32 %v10622_v20, %v8087_v27  ;;  %v8094_v34 = vmax.f32 %v5326_v32, 0.0 }
 0xd87   : > { %v10878_v35 = vadd.f32 %v10877_v24, %v8088_v28  ;;  %v10114_v37 = vadd.f32 %v10113_v29, %v8093_v17  ;;  %12611 = vmatmul.msk.bf16.gmra.mxu0 %vm1312_vm0, %v13345_v21  ;;  %12739 = vmatmul.msk.bf16.gmra.mxu1 %vm1312_vm0, %v13345_v21  ;;  %v13347_v24 = vld [vmem:[%s13583_s29 + $0x2a8] sm:$0xff] }
 0xd88   : > { %v10369_v38 = vadd.f32 %v10368_v13, %v8094_v34  ;;  %12867 = vmatmul.msk.bf16.gmra.mxu2 %vm1312_vm0, %v13345_v21 }
 0xd89   : > { %12995 = vmatmul.msk.bf16.gmra.mxu3 %vm1312_vm0, %v13345_v21 }
 0xd8b   : > { %v5975_v40 = vpop.f32.mrf.mxu2 }
 0xd8c   : > { %v8095_v41 = vmax.f32 %v5975_v40, 0.0  ;;  %v6624_v42 = vpop.f32.mrf.mxu3  ;;  %v4679_v43 = vpop.f32.mrf.mxu0 }
 0xd8d   : > { %v8096_v44 = vmax.f32 %v6624_v42, 0.0  ;;  %v8101_v45 = vmax.f32 %v4679_v43, 0.0  ;;  %v5328_v22 = vpop.f32.mrf.mxu1 }
 0xd8e   : > { %v10624_v46 = vadd.f32 %v10623_v33, %v8095_v41  ;;  %v8102_v47 = vmax.f32 %v5328_v22, 0.0 }
 0xd8f   : > { %v10879_v48 = vadd.f32 %v10878_v35, %v8096_v44  ;;  %v10115_v49 = vadd.f32 %v10114_v37, %v8101_v45 }
 0xd90   : > { %v10370_v50 = vadd.f32 %v10369_v38, %v8102_v47 }
 0xd93   : > { %v5977_v25 = vpop.f32.mrf.mxu2 }
 0xd94   : > { %v8103_v51 = vmax.f32 %v5977_v25, 0.0  ;;  %v6626_v52 = vpop.f32.mrf.mxu3  ;;  %v4682_v53 = vpop.f32.mrf.mxu0 }
 0xd95   : > { %v8104_v26 = vmax.f32 %v6626_v52, 0.0  ;;  %v8109_v54 = vmax.f32 %v4682_v53, 0.0  ;;  %v5331_v55 = vpop.f32.mrf.mxu1 }
 0xd96   : > { %v10625_v56 = vadd.f32 %v10624_v46, %v8103_v51  ;;  %v8110_v36 = vmax.f32 %v5331_v55, 0.0 }
 0xd97   : > { %v10880_v57 = vadd.f32 %v10879_v48, %v8104_v26  ;;  %v10116_v58 = vadd.f32 %v10115_v49, %v8109_v54  ;;  %12612 = vmatmul.msk.bf16.gmra.mxu0 %vm1312_vm0, %v13346_v59  ;;  %12740 = vmatmul.msk.bf16.gmra.mxu1 %vm1312_vm0, %v13346_v59  ;;  %v13348_v48 = vld [vmem:[%s13583_s29 + $0x2b0] sm:$0xff] }
 0xd98   : > { %v10371_v62 = vadd.f32 %v10370_v50, %v8110_v36  ;;  %12868 = vmatmul.msk.bf16.gmra.mxu2 %vm1312_vm0, %v13346_v59 }
 0xd99   : > { %12996 = vmatmul.msk.bf16.gmra.mxu3 %vm1312_vm0, %v13346_v59 }
 0xd9b   : > { %v5980_v63 = vpop.f32.mrf.mxu2 }
 0xd9c   : > { %v8111_v39 = vmax.f32 %v5980_v63, 0.0  ;;  %v6629_v0 = vpop.f32.mrf.mxu3  ;;  %v4684_v1 = vpop.f32.mrf.mxu0 }
 0xd9d   : > { %v8112_v3 = vmax.f32 %v6629_v0, 0.0  ;;  %v8117_v2 = vmax.f32 %v4684_v1, 0.0  ;;  %v5333_v4 = vpop.f32.mrf.mxu1 }
 0xd9e   : > { %v10626_v5 = vadd.f32 %v10625_v56, %v8111_v39  ;;  %v8118_v60 = vmax.f32 %v5333_v4, 0.0 }
 0xd9f   : > { %v10881_v7 = vadd.f32 %v10880_v57, %v8112_v3  ;;  %v10117_v6 = vadd.f32 %v10116_v58, %v8117_v2 }
 0xda0   : > { %v10372_v9 = vadd.f32 %v10371_v62, %v8118_v60 }
 0xda3   : > { %v5982_v61 = vpop.f32.mrf.mxu2 }
 0xda4   : > { %v8119_v10 = vmax.f32 %v5982_v61, 0.0  ;;  %v6631_v8 = vpop.f32.mrf.mxu3  ;;  %v4687_v11 = vpop.f32.mrf.mxu0 }
 0xda5   : > { %v8120_v14 = vmax.f32 %v6631_v8, 0.0  ;;  %v8125_v15 = vmax.f32 %v4687_v11, 0.0  ;;  %v5336_v18 = vpop.f32.mrf.mxu1 }
 0xda6   : > { %v10627_v12 = vadd.f32 %v10626_v5, %v8119_v10  ;;  %v8126_v19 = vmax.f32 %v5336_v18, 0.0 }
 0xda7   : > { %v10882_v20 = vadd.f32 %v10881_v7, %v8120_v14  ;;  %v10118_v23 = vadd.f32 %v10117_v6, %v8125_v15  ;;  %12613 = vmatmul.msk.bf16.gmra.mxu0 %vm1312_vm0, %v13347_v24  ;;  %12741 = vmatmul.msk.bf16.gmra.mxu1 %vm1312_vm0, %v13347_v24  ;;  %v13349_v7 = vld [vmem:[%s13583_s29 + $0x2b8] sm:$0xff] }
 0xda8   : > { %v10373_v29 = vadd.f32 %v10372_v9, %v8126_v19  ;;  %12869 = vmatmul.msk.bf16.gmra.mxu2 %vm1312_vm0, %v13347_v24 }
 0xda9   : > { %12997 = vmatmul.msk.bf16.gmra.mxu3 %vm1312_vm0, %v13347_v24 }
 0xdab   : > { %v5985_v13 = vpop.f32.mrf.mxu2 }
 0xdac   : > { %v8127_v30 = vmax.f32 %v5985_v13, 0.0  ;;  %v6634_v27 = vpop.f32.mrf.mxu3  ;;  %v4689_v31 = vpop.f32.mrf.mxu0 }
 0xdad   : > { %v8128_v16 = vmax.f32 %v6634_v27, 0.0  ;;  %v8133_v28 = vmax.f32 %v4689_v31, 0.0  ;;  %v5338_v17 = vpop.f32.mrf.mxu1 }
 0xdae   : > { %v10628_v32 = vadd.f32 %v10627_v12, %v8127_v30  ;;  %v8134_v33 = vmax.f32 %v5338_v17, 0.0 }
 0xdaf   : > { %v10883_v34 = vadd.f32 %v10882_v20, %v8128_v16  ;;  %v10119_v35 = vadd.f32 %v10118_v23, %v8133_v28 }
 0xdb0   : > { %v10374_v37 = vadd.f32 %v10373_v29, %v8134_v33 }
 0xdb3   : > { %v5987_v21 = vpop.f32.mrf.mxu2 }
 0xdb4   : > { %v8135_v38 = vmax.f32 %v5987_v21, 0.0  ;;  %v6636_v40 = vpop.f32.mrf.mxu3  ;;  %v4692_v41 = vpop.f32.mrf.mxu0 }
 0xdb5   : > { %v8136_v42 = vmax.f32 %v6636_v40, 0.0  ;;  %v8141_v43 = vmax.f32 %v4692_v41, 0.0  ;;  %v5341_v44 = vpop.f32.mrf.mxu1 }
 0xdb6   : > { %v10629_v45 = vadd.f32 %v10628_v32, %v8135_v38  ;;  %v8142_v22 = vmax.f32 %v5341_v44, 0.0 }
 0xdb7   : > { %v10884_v46 = vadd.f32 %v10883_v34, %v8136_v42  ;;  %v10120_v47 = vadd.f32 %v10119_v35, %v8141_v43  ;;  %12614 = vmatmul.msk.bf16.gmra.mxu0 %vm1312_vm0, %v13348_v48  ;;  %12742 = vmatmul.msk.bf16.gmra.mxu1 %vm1312_vm0, %v13348_v48  ;;  %v13350_v34 = vld [vmem:[%s13583_s29 + $0x2c0] sm:$0xff] }
 0xdb8   : > { %v10375_v49 = vadd.f32 %v10374_v37, %v8142_v22  ;;  %12870 = vmatmul.msk.bf16.gmra.mxu2 %vm1312_vm0, %v13348_v48 }
 0xdb9   : > { %12998 = vmatmul.msk.bf16.gmra.mxu3 %vm1312_vm0, %v13348_v48 }
 0xdbb   : > { %v5990_v50 = vpop.f32.mrf.mxu2 }
 0xdbc   : > { %v8143_v25 = vmax.f32 %v5990_v50, 0.0  ;;  %v6639_v51 = vpop.f32.mrf.mxu3  ;;  %v4694_v52 = vpop.f32.mrf.mxu0 }
 0xdbd   : > { %v8144_v53 = vmax.f32 %v6639_v51, 0.0  ;;  %v8149_v26 = vmax.f32 %v4694_v52, 0.0  ;;  %v5343_v54 = vpop.f32.mrf.mxu1 }
 0xdbe   : > { %v10630_v55 = vadd.f32 %v10629_v45, %v8143_v25  ;;  %v8150_v56 = vmax.f32 %v5343_v54, 0.0 }
 0xdbf   : > { %v10885_v36 = vadd.f32 %v10884_v46, %v8144_v53  ;;  %v10121_v57 = vadd.f32 %v10120_v47, %v8149_v26 }
 0xdc0   : > { %v10376_v58 = vadd.f32 %v10375_v49, %v8150_v56 }
 0xdc3   : > { %v5992_v59 = vpop.f32.mrf.mxu2 }
 0xdc4   : > { %v8151_v62 = vmax.f32 %v5992_v59, 0.0  ;;  %v6641_v63 = vpop.f32.mrf.mxu3  ;;  %v4697_v39 = vpop.f32.mrf.mxu0 }
 0xdc5   : > { %v8152_v0 = vmax.f32 %v6641_v63, 0.0  ;;  %v8157_v1 = vmax.f32 %v4697_v39, 0.0  ;;  %v5346_v3 = vpop.f32.mrf.mxu1 }
 0xdc6   : > { %v10631_v2 = vadd.f32 %v10630_v55, %v8151_v62  ;;  %v8158_v4 = vmax.f32 %v5346_v3, 0.0 }
 0xdc7   : > { %v10886_v5 = vadd.f32 %v10885_v36, %v8152_v0  ;;  %v10122_v60 = vadd.f32 %v10121_v57, %v8157_v1  ;;  %12615 = vmatmul.msk.bf16.gmra.mxu0 %vm1312_vm0, %v13349_v7  ;;  %12743 = vmatmul.msk.bf16.gmra.mxu1 %vm1312_vm0, %v13349_v7  ;;  %v13351_v36 = vld [vmem:[%s13583_s29 + $0x2c8] sm:$0xff] }
 0xdc8   : > { %v10377_v6 = vadd.f32 %v10376_v58, %v8158_v4  ;;  %12871 = vmatmul.msk.bf16.gmra.mxu2 %vm1312_vm0, %v13349_v7 }
 0xdc9   : > { %12999 = vmatmul.msk.bf16.gmra.mxu3 %vm1312_vm0, %v13349_v7 }
 0xdcb   : > { %v5995_v9 = vpop.f32.mrf.mxu2 }
 0xdcc   : > { %v8159_v61 = vmax.f32 %v5995_v9, 0.0  ;;  %v6644_v10 = vpop.f32.mrf.mxu3  ;;  %v4699_v8 = vpop.f32.mrf.mxu0 }
 0xdcd   : > { %v8160_v11 = vmax.f32 %v6644_v10, 0.0  ;;  %v8165_v14 = vmax.f32 %v4699_v8, 0.0  ;;  %v5348_v15 = vpop.f32.mrf.mxu1 }
 0xdce   : > { %v10632_v18 = vadd.f32 %v10631_v2, %v8159_v61  ;;  %v8166_v12 = vmax.f32 %v5348_v15, 0.0 }
 0xdcf   : > { %v10887_v19 = vadd.f32 %v10886_v5, %v8160_v11  ;;  %v10123_v20 = vadd.f32 %v10122_v60, %v8165_v14 }
 0xdd0   : > { %v10378_v23 = vadd.f32 %v10377_v6, %v8166_v12 }
 0xdd3   : > { %v5997_v24 = vpop.f32.mrf.mxu2 }
 0xdd4   : > { %v8167_v29 = vmax.f32 %v5997_v24, 0.0  ;;  %v6646_v13 = vpop.f32.mrf.mxu3  ;;  %v4702_v30 = vpop.f32.mrf.mxu0 }
 0xdd5   : > { %v8168_v27 = vmax.f32 %v6646_v13, 0.0  ;;  %v8173_v31 = vmax.f32 %v4702_v30, 0.0  ;;  %v5351_v16 = vpop.f32.mrf.mxu1 }
 0xdd6   : > { %v10633_v28 = vadd.f32 %v10632_v18, %v8167_v29  ;;  %v8174_v17 = vmax.f32 %v5351_v16, 0.0 }
 0xdd7   : > { %v10888_v32 = vadd.f32 %v10887_v19, %v8168_v27  ;;  %v10124_v33 = vadd.f32 %v10123_v20, %v8173_v31  ;;  %12616 = vmatmul.msk.bf16.gmra.mxu0 %vm1312_vm0, %v13350_v34  ;;  %12744 = vmatmul.msk.bf16.gmra.mxu1 %vm1312_vm0, %v13350_v34  ;;  %v13352_v19 = vld [vmem:[%s13583_s29 + $0x2d0] sm:$0xff] }
 0xdd8   : > { %v10379_v35 = vadd.f32 %v10378_v23, %v8174_v17  ;;  %12872 = vmatmul.msk.bf16.gmra.mxu2 %vm1312_vm0, %v13350_v34 }
 0xdd9   : > { %13000 = vmatmul.msk.bf16.gmra.mxu3 %vm1312_vm0, %v13350_v34 }
 0xddb   : > { %v6000_v37 = vpop.f32.mrf.mxu2 }
 0xddc   : > { %v8175_v21 = vmax.f32 %v6000_v37, 0.0  ;;  %v6649_v38 = vpop.f32.mrf.mxu3  ;;  %v4704_v40 = vpop.f32.mrf.mxu0 }
 0xddd   : > { %v8176_v41 = vmax.f32 %v6649_v38, 0.0  ;;  %v8181_v42 = vmax.f32 %v4704_v40, 0.0  ;;  %v5353_v43 = vpop.f32.mrf.mxu1 }
 0xdde   : > { %v10634_v44 = vadd.f32 %v10633_v28, %v8175_v21  ;;  %v8182_v45 = vmax.f32 %v5353_v43, 0.0 }
 0xddf   : > { %v10889_v22 = vadd.f32 %v10888_v32, %v8176_v41  ;;  %v10125_v46 = vadd.f32 %v10124_v33, %v8181_v42 }
 0xde0   : > { %v10380_v47 = vadd.f32 %v10379_v35, %v8182_v45 }
 0xde3   : > { %v6002_v48 = vpop.f32.mrf.mxu2 }
 0xde4   : > { %v8183_v49 = vmax.f32 %v6002_v48, 0.0  ;;  %v6651_v50 = vpop.f32.mrf.mxu3  ;;  %v4707_v25 = vpop.f32.mrf.mxu0 }
 0xde5   : > { %v8184_v51 = vmax.f32 %v6651_v50, 0.0  ;;  %v8189_v52 = vmax.f32 %v4707_v25, 0.0  ;;  %v5356_v53 = vpop.f32.mrf.mxu1 }
 0xde6   : > { %v10635_v26 = vadd.f32 %v10634_v44, %v8183_v49  ;;  %v8190_v54 = vmax.f32 %v5356_v53, 0.0 }
 0xde7   : > { %v10890_v55 = vadd.f32 %v10889_v22, %v8184_v51  ;;  %v10126_v56 = vadd.f32 %v10125_v46, %v8189_v52  ;;  %12617 = vmatmul.msk.bf16.gmra.mxu0 %vm1312_vm0, %v13351_v36  ;;  %12745 = vmatmul.msk.bf16.gmra.mxu1 %vm1312_vm0, %v13351_v36  ;;  %v13353_v22 = vld [vmem:[%s13583_s29 + $0x2d8] sm:$0xff] }
 0xde8   : > { %v10381_v57 = vadd.f32 %v10380_v47, %v8190_v54  ;;  %12873 = vmatmul.msk.bf16.gmra.mxu2 %vm1312_vm0, %v13351_v36 }
 0xde9   : > { %13001 = vmatmul.msk.bf16.gmra.mxu3 %vm1312_vm0, %v13351_v36 }
 0xdeb   : > { %v6005_v58 = vpop.f32.mrf.mxu2 }
 0xdec   : > { %v8191_v59 = vmax.f32 %v6005_v58, 0.0  ;;  %v6654_v62 = vpop.f32.mrf.mxu3  ;;  %v4709_v63 = vpop.f32.mrf.mxu0 }
 0xded   : > { %v8192_v39 = vmax.f32 %v6654_v62, 0.0  ;;  %v8197_v0 = vmax.f32 %v4709_v63, 0.0  ;;  %v5358_v1 = vpop.f32.mrf.mxu1 }
 0xdee   : > { %v10636_v3 = vadd.f32 %v10635_v26, %v8191_v59  ;;  %v8198_v2 = vmax.f32 %v5358_v1, 0.0 }
 0xdef   : > { %v10891_v4 = vadd.f32 %v10890_v55, %v8192_v39  ;;  %v10127_v5 = vadd.f32 %v10126_v56, %v8197_v0 }
 0xdf0   : > { %v10382_v60 = vadd.f32 %v10381_v57, %v8198_v2 }
 0xdf3   : > { %v6007_v7 = vpop.f32.mrf.mxu2 }
 0xdf4   : > { %v8199_v6 = vmax.f32 %v6007_v7, 0.0  ;;  %v6656_v9 = vpop.f32.mrf.mxu3  ;;  %v4712_v61 = vpop.f32.mrf.mxu0 }
 0xdf5   : > { %v8200_v10 = vmax.f32 %v6656_v9, 0.0  ;;  %v8205_v8 = vmax.f32 %v4712_v61, 0.0  ;;  %v5361_v11 = vpop.f32.mrf.mxu1 }
 0xdf6   : > { %v10637_v14 = vadd.f32 %v10636_v3, %v8199_v6  ;;  %v8206_v15 = vmax.f32 %v5361_v11, 0.0 }
 0xdf7   : > { %v10892_v18 = vadd.f32 %v10891_v4, %v8200_v10  ;;  %v10128_v12 = vadd.f32 %v10127_v5, %v8205_v8  ;;  %12618 = vmatmul.msk.bf16.gmra.mxu0 %vm1312_vm0, %v13352_v19  ;;  %12746 = vmatmul.msk.bf16.gmra.mxu1 %vm1312_vm0, %v13352_v19  ;;  %v13354_v4 = vld [vmem:[%s13583_s29 + $0x2e0] sm:$0xff] }
 0xdf8   : > { %v10383_v20 = vadd.f32 %v10382_v60, %v8206_v15  ;;  %12874 = vmatmul.msk.bf16.gmra.mxu2 %vm1312_vm0, %v13352_v19 }
 0xdf9   : > { %13002 = vmatmul.msk.bf16.gmra.mxu3 %vm1312_vm0, %v13352_v19 }
 0xdfb   : > { %v6010_v23 = vpop.f32.mrf.mxu2 }
 0xdfc   : > { %v8207_v24 = vmax.f32 %v6010_v23, 0.0  ;;  %v6659_v29 = vpop.f32.mrf.mxu3  ;;  %v4714_v13 = vpop.f32.mrf.mxu0 }
 0xdfd   : > { %v8208_v30 = vmax.f32 %v6659_v29, 0.0  ;;  %v8213_v27 = vmax.f32 %v4714_v13, 0.0  ;;  %v5363_v31 = vpop.f32.mrf.mxu1 }
 0xdfe   : > { %v10638_v16 = vadd.f32 %v10637_v14, %v8207_v24  ;;  %v8214_v28 = vmax.f32 %v5363_v31, 0.0 }
 0xdff   : > { %v10893_v17 = vadd.f32 %v10892_v18, %v8208_v30  ;;  %v10129_v32 = vadd.f32 %v10128_v12, %v8213_v27 }
 0xe00   : > { %v10384_v33 = vadd.f32 %v10383_v20, %v8214_v28 }
 0xe03   : > { %v6012_v34 = vpop.f32.mrf.mxu2 }
 0xe04   : > { %v8215_v35 = vmax.f32 %v6012_v34, 0.0  ;;  %v6661_v37 = vpop.f32.mrf.mxu3  ;;  %v4717_v21 = vpop.f32.mrf.mxu0 }
 0xe05   : > { %v8216_v38 = vmax.f32 %v6661_v37, 0.0  ;;  %v8221_v40 = vmax.f32 %v4717_v21, 0.0  ;;  %v5366_v41 = vpop.f32.mrf.mxu1 }
 0xe06   : > { %v10639_v42 = vadd.f32 %v10638_v16, %v8215_v35  ;;  %v8222_v43 = vmax.f32 %v5366_v41, 0.0 }
 0xe07   : > { %v10894_v44 = vadd.f32 %v10893_v17, %v8216_v38  ;;  %v10130_v45 = vadd.f32 %v10129_v32, %v8221_v40  ;;  %12619 = vmatmul.msk.bf16.gmra.mxu0 %vm1312_vm0, %v13353_v22  ;;  %12747 = vmatmul.msk.bf16.gmra.mxu1 %vm1312_vm0, %v13353_v22  ;;  %v13355_v17 = vld [vmem:[%s13583_s29 + $0x2e8] sm:$0xff] }
 0xe08   : > { %v10385_v46 = vadd.f32 %v10384_v33, %v8222_v43  ;;  %12875 = vmatmul.msk.bf16.gmra.mxu2 %vm1312_vm0, %v13353_v22 }
 0xe09   : > { %13003 = vmatmul.msk.bf16.gmra.mxu3 %vm1312_vm0, %v13353_v22 }
 0xe0b   : > { %v6015_v47 = vpop.f32.mrf.mxu2 }
 0xe0c   : > { %v8223_v48 = vmax.f32 %v6015_v47, 0.0  ;;  %v6664_v49 = vpop.f32.mrf.mxu3  ;;  %v4719_v50 = vpop.f32.mrf.mxu0 }
 0xe0d   : > { %v8224_v25 = vmax.f32 %v6664_v49, 0.0  ;;  %v8229_v51 = vmax.f32 %v4719_v50, 0.0  ;;  %v5368_v52 = vpop.f32.mrf.mxu1 }
 0xe0e   : > { %v10640_v53 = vadd.f32 %v10639_v42, %v8223_v48  ;;  %v8230_v26 = vmax.f32 %v5368_v52, 0.0 }
 0xe0f   : > { %v10895_v54 = vadd.f32 %v10894_v44, %v8224_v25  ;;  %v10131_v55 = vadd.f32 %v10130_v45, %v8229_v51 }
 0xe10   : > { %v10386_v56 = vadd.f32 %v10385_v46, %v8230_v26 }
 0xe13   : > { %v6017_v36 = vpop.f32.mrf.mxu2 }
 0xe14   : > { %v8231_v57 = vmax.f32 %v6017_v36, 0.0  ;;  %v6666_v58 = vpop.f32.mrf.mxu3  ;;  %v4722_v59 = vpop.f32.mrf.mxu0 }
 0xe15   : > { %v8232_v62 = vmax.f32 %v6666_v58, 0.0  ;;  %v8237_v63 = vmax.f32 %v4722_v59, 0.0  ;;  %v5371_v39 = vpop.f32.mrf.mxu1 }
 0xe16   : > { %v10641_v0 = vadd.f32 %v10640_v53, %v8231_v57  ;;  %v8238_v1 = vmax.f32 %v5371_v39, 0.0 }
 0xe17   : > { %v10896_v3 = vadd.f32 %v10895_v54, %v8232_v62  ;;  %v10132_v2 = vadd.f32 %v10131_v55, %v8237_v63  ;;  %12620 = vmatmul.msk.bf16.gmra.mxu0 %vm1312_vm0, %v13354_v4  ;;  %12748 = vmatmul.msk.bf16.gmra.mxu1 %vm1312_vm0, %v13354_v4  ;;  %v13356_v54 = vld [vmem:[%s13583_s29 + $0x2f0] sm:$0xff] }
 0xe18   : > { %v10387_v5 = vadd.f32 %v10386_v56, %v8238_v1  ;;  %12876 = vmatmul.msk.bf16.gmra.mxu2 %vm1312_vm0, %v13354_v4 }
 0xe19   : > { %13004 = vmatmul.msk.bf16.gmra.mxu3 %vm1312_vm0, %v13354_v4 }
 0xe1b   : > { %v6020_v60 = vpop.f32.mrf.mxu2 }
 0xe1c   : > { %v8239_v7 = vmax.f32 %v6020_v60, 0.0  ;;  %v6669_v6 = vpop.f32.mrf.mxu3  ;;  %v4724_v9 = vpop.f32.mrf.mxu0 }
 0xe1d   : > { %v8240_v61 = vmax.f32 %v6669_v6, 0.0  ;;  %v8245_v10 = vmax.f32 %v4724_v9, 0.0  ;;  %v5373_v8 = vpop.f32.mrf.mxu1 }
 0xe1e   : > { %v10642_v11 = vadd.f32 %v10641_v0, %v8239_v7  ;;  %v8246_v14 = vmax.f32 %v5373_v8, 0.0 }
 0xe1f   : > { %v10897_v15 = vadd.f32 %v10896_v3, %v8240_v61  ;;  %v10133_v18 = vadd.f32 %v10132_v2, %v8245_v10 }
 0xe20   : > { %v10388_v12 = vadd.f32 %v10387_v5, %v8246_v14 }
 0xe23   : > { %v6022_v19 = vpop.f32.mrf.mxu2 }
 0xe24   : > { %v8247_v20 = vmax.f32 %v6022_v19, 0.0  ;;  %v6671_v23 = vpop.f32.mrf.mxu3  ;;  %v4727_v24 = vpop.f32.mrf.mxu0 }
 0xe25   : > { %v8248_v29 = vmax.f32 %v6671_v23, 0.0  ;;  %v8253_v13 = vmax.f32 %v4727_v24, 0.0  ;;  %v5376_v30 = vpop.f32.mrf.mxu1 }
 0xe26   : > { %v10643_v27 = vadd.f32 %v10642_v11, %v8247_v20  ;;  %v8254_v31 = vmax.f32 %v5376_v30, 0.0 }
 0xe27   : > { %v10898_v16 = vadd.f32 %v10897_v15, %v8248_v29  ;;  %v10134_v28 = vadd.f32 %v10133_v18, %v8253_v13  ;;  %12621 = vmatmul.msk.bf16.gmra.mxu0 %vm1312_vm0, %v13355_v17  ;;  %12749 = vmatmul.msk.bf16.gmra.mxu1 %vm1312_vm0, %v13355_v17  ;;  %v13357_v15 = vld [vmem:[%s13583_s29 + $0x2f8] sm:$0xff] }
 0xe28   : > { %v10389_v32 = vadd.f32 %v10388_v12, %v8254_v31  ;;  %12877 = vmatmul.msk.bf16.gmra.mxu2 %vm1312_vm0, %v13355_v17 }
 0xe29   : > { %13005 = vmatmul.msk.bf16.gmra.mxu3 %vm1312_vm0, %v13355_v17 }
 0xe2b   : > { %v6025_v33 = vpop.f32.mrf.mxu2 }
 0xe2c   : > { %v8255_v34 = vmax.f32 %v6025_v33, 0.0  ;;  %v6674_v35 = vpop.f32.mrf.mxu3  ;;  %v4729_v37 = vpop.f32.mrf.mxu0 }
 0xe2d   : > { %v8256_v21 = vmax.f32 %v6674_v35, 0.0  ;;  %v8261_v38 = vmax.f32 %v4729_v37, 0.0  ;;  %v5378_v40 = vpop.f32.mrf.mxu1 }
 0xe2e   : > { %v10644_v41 = vadd.f32 %v10643_v27, %v8255_v34  ;;  %v8262_v42 = vmax.f32 %v5378_v40, 0.0 }
 0xe2f   : > { %v10899_v43 = vadd.f32 %v10898_v16, %v8256_v21  ;;  %v10135_v44 = vadd.f32 %v10134_v28, %v8261_v38 }
 0xe30   : > { %v10390_v45 = vadd.f32 %v10389_v32, %v8262_v42 }
 0xe33   : > { %v6027_v22 = vpop.f32.mrf.mxu2 }
 0xe34   : > { %v8263_v46 = vmax.f32 %v6027_v22, 0.0  ;;  %v6676_v47 = vpop.f32.mrf.mxu3  ;;  %v4732_v48 = vpop.f32.mrf.mxu0 }
 0xe35   : > { %v8264_v49 = vmax.f32 %v6676_v47, 0.0  ;;  %v8269_v50 = vmax.f32 %v4732_v48, 0.0  ;;  %v5381_v25 = vpop.f32.mrf.mxu1 }
 0xe36   : > { %v10645_v51 = vadd.f32 %v10644_v41, %v8263_v46  ;;  %v8270_v52 = vmax.f32 %v5381_v25, 0.0 }
 0xe37   : > { %v10900_v53 = vadd.f32 %v10899_v43, %v8264_v49  ;;  %v10136_v26 = vadd.f32 %v10135_v44, %v8269_v50  ;;  %12622 = vmatmul.msk.bf16.gmra.mxu0 %vm1312_vm0, %v13356_v54  ;;  %12750 = vmatmul.msk.bf16.gmra.mxu1 %vm1312_vm0, %v13356_v54  ;;  %v13358_v43 = vld [vmem:[%s13583_s29 + $0x300] sm:$0xff] }
 0xe38   : > { %v10391_v55 = vadd.f32 %v10390_v45, %v8270_v52  ;;  %12878 = vmatmul.msk.bf16.gmra.mxu2 %vm1312_vm0, %v13356_v54 }
 0xe39   : > { %13006 = vmatmul.msk.bf16.gmra.mxu3 %vm1312_vm0, %v13356_v54 }
 0xe3b   : > { %v6030_v56 = vpop.f32.mrf.mxu2 }
 0xe3c   : > { %v8271_v36 = vmax.f32 %v6030_v56, 0.0  ;;  %v6679_v57 = vpop.f32.mrf.mxu3  ;;  %v4734_v58 = vpop.f32.mrf.mxu0 }
 0xe3d   : > { %v8272_v59 = vmax.f32 %v6679_v57, 0.0  ;;  %v8277_v62 = vmax.f32 %v4734_v58, 0.0  ;;  %v5383_v63 = vpop.f32.mrf.mxu1 }
 0xe3e   : > { %v10646_v39 = vadd.f32 %v10645_v51, %v8271_v36  ;;  %v8278_v0 = vmax.f32 %v5383_v63, 0.0 }
 0xe3f   : > { %v10901_v1 = vadd.f32 %v10900_v53, %v8272_v59  ;;  %v10137_v3 = vadd.f32 %v10136_v26, %v8277_v62 }
 0xe40   : > { %v10392_v2 = vadd.f32 %v10391_v55, %v8278_v0 }
 0xe43   : > { %v6032_v4 = vpop.f32.mrf.mxu2 }
 0xe44   : > { %v8279_v5 = vmax.f32 %v6032_v4, 0.0  ;;  %v6681_v60 = vpop.f32.mrf.mxu3  ;;  %v4737_v7 = vpop.f32.mrf.mxu0 }
 0xe45   : > { %v8280_v6 = vmax.f32 %v6681_v60, 0.0  ;;  %v8285_v9 = vmax.f32 %v4737_v7, 0.0  ;;  %v5386_v61 = vpop.f32.mrf.mxu1 }
 0xe46   : > { %v10647_v10 = vadd.f32 %v10646_v39, %v8279_v5  ;;  %v8286_v8 = vmax.f32 %v5386_v61, 0.0 }
 0xe47   : > { %v10902_v11 = vadd.f32 %v10901_v1, %v8280_v6  ;;  %v10138_v14 = vadd.f32 %v10137_v3, %v8285_v9  ;;  %12623 = vmatmul.msk.bf16.gmra.mxu0 %vm1312_vm0, %v13357_v15  ;;  %12751 = vmatmul.msk.bf16.gmra.mxu1 %vm1312_vm0, %v13357_v15  ;;  %v13359_v1 = vld [vmem:[%s13583_s29 + $0x308] sm:$0xff] }
 0xe48   : > { %v10393_v18 = vadd.f32 %v10392_v2, %v8286_v8  ;;  %12879 = vmatmul.msk.bf16.gmra.mxu2 %vm1312_vm0, %v13357_v15 }
 0xe49   : > { %13007 = vmatmul.msk.bf16.gmra.mxu3 %vm1312_vm0, %v13357_v15 }
 0xe4b   : > { %v6035_v12 = vpop.f32.mrf.mxu2 }
 0xe4c   : > { %v8287_v19 = vmax.f32 %v6035_v12, 0.0  ;;  %v6684_v20 = vpop.f32.mrf.mxu3  ;;  %v4739_v23 = vpop.f32.mrf.mxu0 }
 0xe4d   : > { %v8288_v24 = vmax.f32 %v6684_v20, 0.0  ;;  %v8293_v29 = vmax.f32 %v4739_v23, 0.0  ;;  %v5388_v13 = vpop.f32.mrf.mxu1 }
 0xe4e   : > { %v10648_v30 = vadd.f32 %v10647_v10, %v8287_v19  ;;  %v8294_v27 = vmax.f32 %v5388_v13, 0.0 }
 0xe4f   : > { %v10903_v31 = vadd.f32 %v10902_v11, %v8288_v24  ;;  %v10139_v16 = vadd.f32 %v10138_v14, %v8293_v29 }
 0xe50   : > { %v10394_v28 = vadd.f32 %v10393_v18, %v8294_v27 }
 0xe53   : > { %v6037_v17 = vpop.f32.mrf.mxu2 }
 0xe54   : > { %v8295_v32 = vmax.f32 %v6037_v17, 0.0  ;;  %v6686_v33 = vpop.f32.mrf.mxu3  ;;  %v4742_v34 = vpop.f32.mrf.mxu0 }
 0xe55   : > { %v8296_v35 = vmax.f32 %v6686_v33, 0.0  ;;  %v8301_v37 = vmax.f32 %v4742_v34, 0.0  ;;  %v5391_v21 = vpop.f32.mrf.mxu1 }
 0xe56   : > { %v10649_v38 = vadd.f32 %v10648_v30, %v8295_v32  ;;  %v8302_v40 = vmax.f32 %v5391_v21, 0.0 }
 0xe57   : > { %v10904_v41 = vadd.f32 %v10903_v31, %v8296_v35  ;;  %v10140_v42 = vadd.f32 %v10139_v16, %v8301_v37  ;;  %12624 = vmatmul.msk.bf16.gmra.mxu0 %vm1312_vm0, %v13358_v43  ;;  %12752 = vmatmul.msk.bf16.gmra.mxu1 %vm1312_vm0, %v13358_v43  ;;  %v13360_v31 = vld [vmem:[%s13583_s29 + $0x310] sm:$0xff] }
 0xe58   : > { %v10395_v44 = vadd.f32 %v10394_v28, %v8302_v40  ;;  %12880 = vmatmul.msk.bf16.gmra.mxu2 %vm1312_vm0, %v13358_v43 }
 0xe59   : > { %13008 = vmatmul.msk.bf16.gmra.mxu3 %vm1312_vm0, %v13358_v43 }
 0xe5b   : > { %v6040_v45 = vpop.f32.mrf.mxu2 }
 0xe5c   : > { %v8303_v22 = vmax.f32 %v6040_v45, 0.0  ;;  %v6689_v46 = vpop.f32.mrf.mxu3  ;;  %v4744_v47 = vpop.f32.mrf.mxu0 }
 0xe5d   : > { %v8304_v48 = vmax.f32 %v6689_v46, 0.0  ;;  %v8309_v49 = vmax.f32 %v4744_v47, 0.0  ;;  %v5393_v50 = vpop.f32.mrf.mxu1 }
 0xe5e   : > { %v10650_v25 = vadd.f32 %v10649_v38, %v8303_v22  ;;  %v8310_v51 = vmax.f32 %v5393_v50, 0.0 }
 0xe5f   : > { %v10905_v52 = vadd.f32 %v10904_v41, %v8304_v48  ;;  %v10141_v53 = vadd.f32 %v10140_v42, %v8309_v49 }
 0xe60   : > { %v10396_v26 = vadd.f32 %v10395_v44, %v8310_v51 }
 0xe63   : > { %v6042_v54 = vpop.f32.mrf.mxu2 }
 0xe64   : > { %v8311_v55 = vmax.f32 %v6042_v54, 0.0  ;;  %v6691_v56 = vpop.f32.mrf.mxu3  ;;  %v4747_v36 = vpop.f32.mrf.mxu0 }
 0xe65   : > { %v8312_v57 = vmax.f32 %v6691_v56, 0.0  ;;  %v8317_v58 = vmax.f32 %v4747_v36, 0.0  ;;  %v5396_v59 = vpop.f32.mrf.mxu1 }
 0xe66   : > { %v10651_v62 = vadd.f32 %v10650_v25, %v8311_v55  ;;  %v8318_v63 = vmax.f32 %v5396_v59, 0.0 }
 0xe67   : > { %v10906_v39 = vadd.f32 %v10905_v52, %v8312_v57  ;;  %v10142_v0 = vadd.f32 %v10141_v53, %v8317_v58  ;;  %12625 = vmatmul.msk.bf16.gmra.mxu0 %vm1312_vm0, %v13359_v1  ;;  %12753 = vmatmul.msk.bf16.gmra.mxu1 %vm1312_vm0, %v13359_v1  ;;  %v13361_v52 = vld [vmem:[%s13583_s29 + $0x318] sm:$0xff] }
 0xe68   : > { %v10397_v3 = vadd.f32 %v10396_v26, %v8318_v63  ;;  %12881 = vmatmul.msk.bf16.gmra.mxu2 %vm1312_vm0, %v13359_v1 }
 0xe69   : > { %13009 = vmatmul.msk.bf16.gmra.mxu3 %vm1312_vm0, %v13359_v1 }
 0xe6b   : > { %v6045_v2 = vpop.f32.mrf.mxu2 }
 0xe6c   : > { %v8319_v4 = vmax.f32 %v6045_v2, 0.0  ;;  %v6694_v5 = vpop.f32.mrf.mxu3  ;;  %v4749_v60 = vpop.f32.mrf.mxu0 }
 0xe6d   : > { %v8320_v7 = vmax.f32 %v6694_v5, 0.0  ;;  %v8325_v6 = vmax.f32 %v4749_v60, 0.0  ;;  %v5398_v9 = vpop.f32.mrf.mxu1 }
 0xe6e   : > { %v10652_v61 = vadd.f32 %v10651_v62, %v8319_v4  ;;  %v8326_v10 = vmax.f32 %v5398_v9, 0.0 }
 0xe6f   : > { %v10907_v8 = vadd.f32 %v10906_v39, %v8320_v7  ;;  %v10143_v11 = vadd.f32 %v10142_v0, %v8325_v6 }
 0xe70   : > { %v10398_v14 = vadd.f32 %v10397_v3, %v8326_v10 }
 0xe73   : > { %v6047_v15 = vpop.f32.mrf.mxu2 }
 0xe74   : > { %v8327_v18 = vmax.f32 %v6047_v15, 0.0  ;;  %v6696_v12 = vpop.f32.mrf.mxu3  ;;  %v4752_v19 = vpop.f32.mrf.mxu0 }
 0xe75   : > { %v8328_v20 = vmax.f32 %v6696_v12, 0.0  ;;  %v8333_v23 = vmax.f32 %v4752_v19, 0.0  ;;  %v5401_v24 = vpop.f32.mrf.mxu1 }
 0xe76   : > { %v10653_v29 = vadd.f32 %v10652_v61, %v8327_v18  ;;  %v8334_v13 = vmax.f32 %v5401_v24, 0.0 }
 0xe77   : > { %v10908_v30 = vadd.f32 %v10907_v8, %v8328_v20  ;;  %v10144_v27 = vadd.f32 %v10143_v11, %v8333_v23  ;;  %12626 = vmatmul.msk.bf16.gmra.mxu0 %vm1312_vm0, %v13360_v31  ;;  %12754 = vmatmul.msk.bf16.gmra.mxu1 %vm1312_vm0, %v13360_v31  ;;  %v13362_v8 = vld [vmem:[%s13583_s29 + $0x320] sm:$0xff] }
 0xe78   : > { %v10399_v16 = vadd.f32 %v10398_v14, %v8334_v13  ;;  %12882 = vmatmul.msk.bf16.gmra.mxu2 %vm1312_vm0, %v13360_v31 }
 0xe79   : > { %13010 = vmatmul.msk.bf16.gmra.mxu3 %vm1312_vm0, %v13360_v31 }
 0xe7b   : > { %v6050_v28 = vpop.f32.mrf.mxu2 }
 0xe7c   : > { %v8335_v17 = vmax.f32 %v6050_v28, 0.0  ;;  %v6699_v32 = vpop.f32.mrf.mxu3  ;;  %v4754_v33 = vpop.f32.mrf.mxu0 }
 0xe7d   : > { %v8336_v34 = vmax.f32 %v6699_v32, 0.0  ;;  %v8341_v35 = vmax.f32 %v4754_v33, 0.0  ;;  %v5403_v37 = vpop.f32.mrf.mxu1 }
 0xe7e   : > { %v10654_v21 = vadd.f32 %v10653_v29, %v8335_v17  ;;  %v8342_v38 = vmax.f32 %v5403_v37, 0.0 }
 0xe7f   : > { %v10909_v40 = vadd.f32 %v10908_v30, %v8336_v34  ;;  %v10145_v41 = vadd.f32 %v10144_v27, %v8341_v35 }
 0xe80   : > { %v10400_v42 = vadd.f32 %v10399_v16, %v8342_v38 }
 0xe83   : > { %v6052_v43 = vpop.f32.mrf.mxu2 }
 0xe84   : > { %v8343_v44 = vmax.f32 %v6052_v43, 0.0  ;;  %v6701_v45 = vpop.f32.mrf.mxu3  ;;  %v4757_v22 = vpop.f32.mrf.mxu0 }
 0xe85   : > { %v8344_v46 = vmax.f32 %v6701_v45, 0.0  ;;  %v8349_v47 = vmax.f32 %v4757_v22, 0.0  ;;  %v5406_v48 = vpop.f32.mrf.mxu1 }
 0xe86   : > { %v10655_v49 = vadd.f32 %v10654_v21, %v8343_v44  ;;  %v8350_v50 = vmax.f32 %v5406_v48, 0.0 }
 0xe87   : > { %v10910_v25 = vadd.f32 %v10909_v40, %v8344_v46  ;;  %v10146_v51 = vadd.f32 %v10145_v41, %v8349_v47  ;;  %12627 = vmatmul.msk.bf16.gmra.mxu0 %vm1312_vm0, %v13361_v52  ;;  %12755 = vmatmul.msk.bf16.gmra.mxu1 %vm1312_vm0, %v13361_v52  ;;  %v13363_v40 = vld [vmem:[%s13583_s29 + $0x328] sm:$0xff] }
 0xe88   : > { %v10401_v53 = vadd.f32 %v10400_v42, %v8350_v50  ;;  %12883 = vmatmul.msk.bf16.gmra.mxu2 %vm1312_vm0, %v13361_v52 }
 0xe89   : > { %13011 = vmatmul.msk.bf16.gmra.mxu3 %vm1312_vm0, %v13361_v52 }
 0xe8b   : > { %v6055_v26 = vpop.f32.mrf.mxu2 }
 0xe8c   : > { %v8351_v54 = vmax.f32 %v6055_v26, 0.0  ;;  %v6704_v55 = vpop.f32.mrf.mxu3  ;;  %v4759_v56 = vpop.f32.mrf.mxu0 }
 0xe8d   : > { %v8352_v36 = vmax.f32 %v6704_v55, 0.0  ;;  %v8357_v57 = vmax.f32 %v4759_v56, 0.0  ;;  %v5408_v58 = vpop.f32.mrf.mxu1 }
 0xe8e   : > { %v10656_v59 = vadd.f32 %v10655_v49, %v8351_v54  ;;  %v8358_v62 = vmax.f32 %v5408_v58, 0.0 }
 0xe8f   : > { %v10911_v63 = vadd.f32 %v10910_v25, %v8352_v36  ;;  %v10147_v39 = vadd.f32 %v10146_v51, %v8357_v57 }
 0xe90   : > { %v10402_v0 = vadd.f32 %v10401_v53, %v8358_v62 }
 0xe93   : > { %v6057_v1 = vpop.f32.mrf.mxu2 }
 0xe94   : > { %v8359_v3 = vmax.f32 %v6057_v1, 0.0  ;;  %v6706_v2 = vpop.f32.mrf.mxu3  ;;  %v4762_v4 = vpop.f32.mrf.mxu0 }
 0xe95   : > { %v8360_v5 = vmax.f32 %v6706_v2, 0.0  ;;  %v8365_v60 = vmax.f32 %v4762_v4, 0.0  ;;  %v5411_v7 = vpop.f32.mrf.mxu1 }
 0xe96   : > { %v10657_v6 = vadd.f32 %v10656_v59, %v8359_v3  ;;  %v8366_v9 = vmax.f32 %v5411_v7, 0.0 }
 0xe97   : > { %v10912_v61 = vadd.f32 %v10911_v63, %v8360_v5  ;;  %v10148_v10 = vadd.f32 %v10147_v39, %v8365_v60  ;;  %12628 = vmatmul.msk.bf16.gmra.mxu0 %vm1312_vm0, %v13362_v8  ;;  %12756 = vmatmul.msk.bf16.gmra.mxu1 %vm1312_vm0, %v13362_v8  ;;  %v13364_v63 = vld [vmem:[%s13583_s29 + $0x330] sm:$0xff] }
 0xe98   : > { %v10403_v11 = vadd.f32 %v10402_v0, %v8366_v9  ;;  %12884 = vmatmul.msk.bf16.gmra.mxu2 %vm1312_vm0, %v13362_v8 }
 0xe99   : > { %13012 = vmatmul.msk.bf16.gmra.mxu3 %vm1312_vm0, %v13362_v8 }
 0xe9b   : > { %v6060_v14 = vpop.f32.mrf.mxu2 }
 0xe9c   : > { %v8367_v15 = vmax.f32 %v6060_v14, 0.0  ;;  %v6709_v18 = vpop.f32.mrf.mxu3  ;;  %v4764_v12 = vpop.f32.mrf.mxu0 }
 0xe9d   : > { %v8368_v19 = vmax.f32 %v6709_v18, 0.0  ;;  %v8373_v20 = vmax.f32 %v4764_v12, 0.0  ;;  %v5413_v23 = vpop.f32.mrf.mxu1 }
 0xe9e   : > { %v10658_v24 = vadd.f32 %v10657_v6, %v8367_v15  ;;  %v8374_v29 = vmax.f32 %v5413_v23, 0.0 }
 0xe9f   : > { %v10913_v13 = vadd.f32 %v10912_v61, %v8368_v19  ;;  %v10149_v30 = vadd.f32 %v10148_v10, %v8373_v20 }
 0xea0   : > { %v10404_v27 = vadd.f32 %v10403_v11, %v8374_v29 }
 0xea3   : > { %v6062_v31 = vpop.f32.mrf.mxu2 }
 0xea4   : > { %v8375_v16 = vmax.f32 %v6062_v31, 0.0  ;;  %v6711_v28 = vpop.f32.mrf.mxu3  ;;  %v4767_v17 = vpop.f32.mrf.mxu0 }
 0xea5   : > { %v8376_v32 = vmax.f32 %v6711_v28, 0.0  ;;  %v8381_v33 = vmax.f32 %v4767_v17, 0.0  ;;  %v5416_v34 = vpop.f32.mrf.mxu1 }
 0xea6   : > { %v10659_v35 = vadd.f32 %v10658_v24, %v8375_v16  ;;  %v8382_v37 = vmax.f32 %v5416_v34, 0.0 }
 0xea7   : > { %v10914_v21 = vadd.f32 %v10913_v13, %v8376_v32  ;;  %v10150_v38 = vadd.f32 %v10149_v30, %v8381_v33  ;;  %12629 = vmatmul.msk.bf16.gmra.mxu0 %vm1312_vm0, %v13363_v40  ;;  %12757 = vmatmul.msk.bf16.gmra.mxu1 %vm1312_vm0, %v13363_v40  ;;  %v13365_v13 = vld [vmem:[%s13583_s29 + $0x338] sm:$0xff] }
 0xea8   : > { %v10405_v41 = vadd.f32 %v10404_v27, %v8382_v37  ;;  %12885 = vmatmul.msk.bf16.gmra.mxu2 %vm1312_vm0, %v13363_v40 }
 0xea9   : > { %13013 = vmatmul.msk.bf16.gmra.mxu3 %vm1312_vm0, %v13363_v40 }
 0xeab   : > { %v6065_v42 = vpop.f32.mrf.mxu2 }
 0xeac   : > { %v8383_v43 = vmax.f32 %v6065_v42, 0.0  ;;  %v6714_v44 = vpop.f32.mrf.mxu3  ;;  %v4769_v45 = vpop.f32.mrf.mxu0 }
 0xead   : > { %v8384_v22 = vmax.f32 %v6714_v44, 0.0  ;;  %v8389_v46 = vmax.f32 %v4769_v45, 0.0  ;;  %v5418_v47 = vpop.f32.mrf.mxu1 }
 0xeae   : > { %v10660_v48 = vadd.f32 %v10659_v35, %v8383_v43  ;;  %v8390_v49 = vmax.f32 %v5418_v47, 0.0 }
 0xeaf   : > { %v10915_v50 = vadd.f32 %v10914_v21, %v8384_v22  ;;  %v10151_v25 = vadd.f32 %v10150_v38, %v8389_v46 }
 0xeb0   : > { %v10406_v51 = vadd.f32 %v10405_v41, %v8390_v49 }
 0xeb3   : > { %v6067_v52 = vpop.f32.mrf.mxu2 }
 0xeb4   : > { %v8391_v53 = vmax.f32 %v6067_v52, 0.0  ;;  %v6716_v26 = vpop.f32.mrf.mxu3  ;;  %v4772_v54 = vpop.f32.mrf.mxu0 }
 0xeb5   : > { %v8392_v55 = vmax.f32 %v6716_v26, 0.0  ;;  %v8397_v56 = vmax.f32 %v4772_v54, 0.0  ;;  %v5421_v36 = vpop.f32.mrf.mxu1 }
 0xeb6   : > { %v10661_v57 = vadd.f32 %v10660_v48, %v8391_v53  ;;  %v8398_v58 = vmax.f32 %v5421_v36, 0.0 }
 0xeb7   : > { %v10916_v59 = vadd.f32 %v10915_v50, %v8392_v55  ;;  %v10152_v62 = vadd.f32 %v10151_v25, %v8397_v56  ;;  %12630 = vmatmul.msk.bf16.gmra.mxu0 %vm1312_vm0, %v13364_v63  ;;  %12758 = vmatmul.msk.bf16.gmra.mxu1 %vm1312_vm0, %v13364_v63  ;;  %v13366_v50 = vld [vmem:[%s13583_s29 + $0x340] sm:$0xff] }
 0xeb8   : > { %v10407_v39 = vadd.f32 %v10406_v51, %v8398_v58  ;;  %12886 = vmatmul.msk.bf16.gmra.mxu2 %vm1312_vm0, %v13364_v63 }
 0xeb9   : > { %13014 = vmatmul.msk.bf16.gmra.mxu3 %vm1312_vm0, %v13364_v63 }
 0xebb   : > { %v6070_v0 = vpop.f32.mrf.mxu2 }
 0xebc   : > { %v8399_v1 = vmax.f32 %v6070_v0, 0.0  ;;  %v6719_v3 = vpop.f32.mrf.mxu3  ;;  %v4774_v2 = vpop.f32.mrf.mxu0 }
 0xebd   : > { %v8400_v4 = vmax.f32 %v6719_v3, 0.0  ;;  %v8405_v5 = vmax.f32 %v4774_v2, 0.0  ;;  %v5423_v60 = vpop.f32.mrf.mxu1 }
 0xebe   : > { %v10662_v7 = vadd.f32 %v10661_v57, %v8399_v1  ;;  %v8406_v6 = vmax.f32 %v5423_v60, 0.0 }
 0xebf   : > { %v10917_v9 = vadd.f32 %v10916_v59, %v8400_v4  ;;  %v10153_v61 = vadd.f32 %v10152_v62, %v8405_v5 }
 0xec0   : > { %v10408_v10 = vadd.f32 %v10407_v39, %v8406_v6 }
 0xec3   : > { %v6072_v8 = vpop.f32.mrf.mxu2 }
 0xec4   : > { %v8407_v11 = vmax.f32 %v6072_v8, 0.0  ;;  %v6721_v14 = vpop.f32.mrf.mxu3  ;;  %v4777_v15 = vpop.f32.mrf.mxu0 }
 0xec5   : > { %v8408_v18 = vmax.f32 %v6721_v14, 0.0  ;;  %v8413_v12 = vmax.f32 %v4777_v15, 0.0  ;;  %v5426_v19 = vpop.f32.mrf.mxu1 }
 0xec6   : > { %v10663_v20 = vadd.f32 %v10662_v7, %v8407_v11  ;;  %v8414_v23 = vmax.f32 %v5426_v19, 0.0 }
 0xec7   : > { %v10918_v24 = vadd.f32 %v10917_v9, %v8408_v18  ;;  %v10154_v29 = vadd.f32 %v10153_v61, %v8413_v12  ;;  %12631 = vmatmul.msk.bf16.gmra.mxu0 %vm1312_vm0, %v13365_v13  ;;  %12759 = vmatmul.msk.bf16.gmra.mxu1 %vm1312_vm0, %v13365_v13  ;;  %v13367_v9 = vld [vmem:[%s13583_s29 + $0x348] sm:$0xff] }
 0xec8   : > { %v10409_v30 = vadd.f32 %v10408_v10, %v8414_v23  ;;  %12887 = vmatmul.msk.bf16.gmra.mxu2 %vm1312_vm0, %v13365_v13 }
 0xec9   : > { %13015 = vmatmul.msk.bf16.gmra.mxu3 %vm1312_vm0, %v13365_v13 }
 0xecb   : > { %v6075_v27 = vpop.f32.mrf.mxu2 }
 0xecc   : > { %v8415_v31 = vmax.f32 %v6075_v27, 0.0  ;;  %v6724_v16 = vpop.f32.mrf.mxu3  ;;  %v4779_v28 = vpop.f32.mrf.mxu0 }
 0xecd   : > { %v8416_v17 = vmax.f32 %v6724_v16, 0.0  ;;  %v8421_v32 = vmax.f32 %v4779_v28, 0.0  ;;  %v5428_v33 = vpop.f32.mrf.mxu1 }
 0xece   : > { %v10664_v34 = vadd.f32 %v10663_v20, %v8415_v31  ;;  %v8422_v35 = vmax.f32 %v5428_v33, 0.0 }
 0xecf   : > { %v10919_v37 = vadd.f32 %v10918_v24, %v8416_v17  ;;  %v10155_v21 = vadd.f32 %v10154_v29, %v8421_v32 }
 0xed0   : > { %v10410_v38 = vadd.f32 %v10409_v30, %v8422_v35 }
 0xed3   : > { %v6077_v40 = vpop.f32.mrf.mxu2 }
 0xed4   : > { %v8423_v41 = vmax.f32 %v6077_v40, 0.0  ;;  %v6726_v42 = vpop.f32.mrf.mxu3  ;;  %v4782_v43 = vpop.f32.mrf.mxu0 }
 0xed5   : > { %v8424_v44 = vmax.f32 %v6726_v42, 0.0  ;;  %v8429_v45 = vmax.f32 %v4782_v43, 0.0  ;;  %v5431_v22 = vpop.f32.mrf.mxu1 }
 0xed6   : > { %v10665_v46 = vadd.f32 %v10664_v34, %v8423_v41  ;;  %v8430_v47 = vmax.f32 %v5431_v22, 0.0 }
 0xed7   : > { %v10920_v48 = vadd.f32 %v10919_v37, %v8424_v44  ;;  %v10156_v49 = vadd.f32 %v10155_v21, %v8429_v45  ;;  %12632 = vmatmul.msk.bf16.gmra.mxu0 %vm1312_vm0, %v13366_v50  ;;  %12760 = vmatmul.msk.bf16.gmra.mxu1 %vm1312_vm0, %v13366_v50  ;;  %v13368_v37 = vld [vmem:[%s13583_s29 + $0x350] sm:$0xff] }
 0xed8   : > { %v10411_v25 = vadd.f32 %v10410_v38, %v8430_v47  ;;  %12888 = vmatmul.msk.bf16.gmra.mxu2 %vm1312_vm0, %v13366_v50 }
 0xed9   : > { %13016 = vmatmul.msk.bf16.gmra.mxu3 %vm1312_vm0, %v13366_v50 }
 0xedb   : > { %v6080_v51 = vpop.f32.mrf.mxu2 }
 0xedc   : > { %v8431_v52 = vmax.f32 %v6080_v51, 0.0  ;;  %v6729_v53 = vpop.f32.mrf.mxu3  ;;  %v4784_v26 = vpop.f32.mrf.mxu0 }
 0xedd   : > { %v8432_v54 = vmax.f32 %v6729_v53, 0.0  ;;  %v8437_v55 = vmax.f32 %v4784_v26, 0.0  ;;  %v5433_v56 = vpop.f32.mrf.mxu1 }
 0xede   : > { %v10666_v36 = vadd.f32 %v10665_v46, %v8431_v52  ;;  %v8438_v57 = vmax.f32 %v5433_v56, 0.0 }
 0xedf   : > { %v10921_v58 = vadd.f32 %v10920_v48, %v8432_v54  ;;  %v10157_v59 = vadd.f32 %v10156_v49, %v8437_v55 }
 0xee0   : > { %v10412_v62 = vadd.f32 %v10411_v25, %v8438_v57 }
 0xee3   : > { %v6082_v63 = vpop.f32.mrf.mxu2 }
 0xee4   : > { %v8439_v39 = vmax.f32 %v6082_v63, 0.0  ;;  %v6731_v0 = vpop.f32.mrf.mxu3  ;;  %v4787_v1 = vpop.f32.mrf.mxu0 }
 0xee5   : > { %v8440_v3 = vmax.f32 %v6731_v0, 0.0  ;;  %v8445_v2 = vmax.f32 %v4787_v1, 0.0  ;;  %v5436_v4 = vpop.f32.mrf.mxu1 }
 0xee6   : > { %v10667_v5 = vadd.f32 %v10666_v36, %v8439_v39  ;;  %v8446_v60 = vmax.f32 %v5436_v4, 0.0 }
 0xee7   : > { %v10922_v7 = vadd.f32 %v10921_v58, %v8440_v3  ;;  %v10158_v6 = vadd.f32 %v10157_v59, %v8445_v2  ;;  %12633 = vmatmul.msk.bf16.gmra.mxu0 %vm1312_vm0, %v13367_v9  ;;  %12761 = vmatmul.msk.bf16.gmra.mxu1 %vm1312_vm0, %v13367_v9  ;;  %v13369_v58 = vld [vmem:[%s13583_s29 + $0x358] sm:$0xff] }
 0xee8   : > { %v10413_v61 = vadd.f32 %v10412_v62, %v8446_v60  ;;  %12889 = vmatmul.msk.bf16.gmra.mxu2 %vm1312_vm0, %v13367_v9 }
 0xee9   : > { %13017 = vmatmul.msk.bf16.gmra.mxu3 %vm1312_vm0, %v13367_v9 }
 0xeeb   : > { %v6085_v10 = vpop.f32.mrf.mxu2 }
 0xeec   : > { %v8447_v8 = vmax.f32 %v6085_v10, 0.0  ;;  %v6734_v11 = vpop.f32.mrf.mxu3  ;;  %v4789_v14 = vpop.f32.mrf.mxu0 }
 0xeed   : > { %v8448_v15 = vmax.f32 %v6734_v11, 0.0  ;;  %v8453_v18 = vmax.f32 %v4789_v14, 0.0  ;;  %v5438_v12 = vpop.f32.mrf.mxu1 }
 0xeee   : > { %v10668_v19 = vadd.f32 %v10667_v5, %v8447_v8  ;;  %v8454_v20 = vmax.f32 %v5438_v12, 0.0 }
 0xeef   : > { %v10923_v23 = vadd.f32 %v10922_v7, %v8448_v15  ;;  %v10159_v24 = vadd.f32 %v10158_v6, %v8453_v18 }
 0xef0   : > { %v10414_v29 = vadd.f32 %v10413_v61, %v8454_v20 }
 0xef3   : > { %v6087_v13 = vpop.f32.mrf.mxu2 }
 0xef4   : > { %v8455_v30 = vmax.f32 %v6087_v13, 0.0  ;;  %v6736_v27 = vpop.f32.mrf.mxu3  ;;  %v4792_v31 = vpop.f32.mrf.mxu0 }
 0xef5   : > { %v8456_v16 = vmax.f32 %v6736_v27, 0.0  ;;  %v8461_v28 = vmax.f32 %v4792_v31, 0.0  ;;  %v5441_v17 = vpop.f32.mrf.mxu1 }
 0xef6   : > { %v10669_v32 = vadd.f32 %v10668_v19, %v8455_v30  ;;  %v8462_v33 = vmax.f32 %v5441_v17, 0.0 }
 0xef7   : > { %v10924_v34 = vadd.f32 %v10923_v23, %v8456_v16  ;;  %v10160_v35 = vadd.f32 %v10159_v24, %v8461_v28  ;;  %12634 = vmatmul.msk.bf16.gmra.mxu0 %vm1312_vm0, %v13368_v37  ;;  %12762 = vmatmul.msk.bf16.gmra.mxu1 %vm1312_vm0, %v13368_v37  ;;  %v13370_v23 = vld [vmem:[%s13583_s29 + $0x360] sm:$0xff] }
 0xef8   : > { %v10415_v21 = vadd.f32 %v10414_v29, %v8462_v33  ;;  %12890 = vmatmul.msk.bf16.gmra.mxu2 %vm1312_vm0, %v13368_v37 }
 0xef9   : > { %13018 = vmatmul.msk.bf16.gmra.mxu3 %vm1312_vm0, %v13368_v37 }
 0xefb   : > { %v6090_v38 = vpop.f32.mrf.mxu2 }
 0xefc   : > { %v8463_v40 = vmax.f32 %v6090_v38, 0.0  ;;  %v6739_v41 = vpop.f32.mrf.mxu3  ;;  %v4794_v42 = vpop.f32.mrf.mxu0 }
 0xefd   : > { %v8464_v43 = vmax.f32 %v6739_v41, 0.0  ;;  %v8469_v44 = vmax.f32 %v4794_v42, 0.0  ;;  %v5443_v45 = vpop.f32.mrf.mxu1 }
 0xefe   : > { %v10670_v22 = vadd.f32 %v10669_v32, %v8463_v40  ;;  %v8470_v46 = vmax.f32 %v5443_v45, 0.0 }
 0xeff   : > { %v10925_v47 = vadd.f32 %v10924_v34, %v8464_v43  ;;  %v10161_v48 = vadd.f32 %v10160_v35, %v8469_v44 }
 0xf00   : > { %v10416_v49 = vadd.f32 %v10415_v21, %v8470_v46 }
 0xf03   : > { %v6092_v50 = vpop.f32.mrf.mxu2 }
 0xf04   : > { %v8471_v25 = vmax.f32 %v6092_v50, 0.0  ;;  %v6741_v51 = vpop.f32.mrf.mxu3  ;;  %v4797_v52 = vpop.f32.mrf.mxu0 }
 0xf05   : > { %v8472_v53 = vmax.f32 %v6741_v51, 0.0  ;;  %v8477_v26 = vmax.f32 %v4797_v52, 0.0  ;;  %v5446_v54 = vpop.f32.mrf.mxu1 }
 0xf06   : > { %v10671_v55 = vadd.f32 %v10670_v22, %v8471_v25  ;;  %v8478_v56 = vmax.f32 %v5446_v54, 0.0 }
 0xf07   : > { %v10926_v36 = vadd.f32 %v10925_v47, %v8472_v53  ;;  %v10162_v57 = vadd.f32 %v10161_v48, %v8477_v26  ;;  %12635 = vmatmul.msk.bf16.gmra.mxu0 %vm1312_vm0, %v13369_v58  ;;  %12763 = vmatmul.msk.bf16.gmra.mxu1 %vm1312_vm0, %v13369_v58  ;;  %v13371_v47 = vld [vmem:[%s13583_s29 + $0x368] sm:$0xff] }
 0xf08   : > { %v10417_v59 = vadd.f32 %v10416_v49, %v8478_v56  ;;  %12891 = vmatmul.msk.bf16.gmra.mxu2 %vm1312_vm0, %v13369_v58 }
 0xf09   : > { %13019 = vmatmul.msk.bf16.gmra.mxu3 %vm1312_vm0, %v13369_v58 }
 0xf0b   : > { %v6095_v62 = vpop.f32.mrf.mxu2 }
 0xf0c   : > { %v8479_v63 = vmax.f32 %v6095_v62, 0.0  ;;  %v6744_v39 = vpop.f32.mrf.mxu3  ;;  %v4799_v0 = vpop.f32.mrf.mxu0 }
 0xf0d   : > { %v8480_v1 = vmax.f32 %v6744_v39, 0.0  ;;  %v8485_v3 = vmax.f32 %v4799_v0, 0.0  ;;  %v5448_v2 = vpop.f32.mrf.mxu1 }
 0xf0e   : > { %v10672_v4 = vadd.f32 %v10671_v55, %v8479_v63  ;;  %v8486_v5 = vmax.f32 %v5448_v2, 0.0 }
 0xf0f   : > { %v10927_v60 = vadd.f32 %v10926_v36, %v8480_v1  ;;  %v10163_v7 = vadd.f32 %v10162_v57, %v8485_v3 }
 0xf10   : > { %v10418_v6 = vadd.f32 %v10417_v59, %v8486_v5 }
 0xf13   : > { %v6097_v9 = vpop.f32.mrf.mxu2 }
 0xf14   : > { %v8487_v61 = vmax.f32 %v6097_v9, 0.0  ;;  %v6746_v10 = vpop.f32.mrf.mxu3  ;;  %v4802_v8 = vpop.f32.mrf.mxu0 }
 0xf15   : > { %v8488_v11 = vmax.f32 %v6746_v10, 0.0  ;;  %v8493_v14 = vmax.f32 %v4802_v8, 0.0  ;;  %v5451_v15 = vpop.f32.mrf.mxu1 }
 0xf16   : > { %v10673_v18 = vadd.f32 %v10672_v4, %v8487_v61  ;;  %v8494_v12 = vmax.f32 %v5451_v15, 0.0 }
 0xf17   : > { %v10928_v19 = vadd.f32 %v10927_v60, %v8488_v11  ;;  %v10164_v20 = vadd.f32 %v10163_v7, %v8493_v14  ;;  %12636 = vmatmul.msk.bf16.gmra.mxu0 %vm1312_vm0, %v13370_v23  ;;  %12764 = vmatmul.msk.bf16.gmra.mxu1 %vm1312_vm0, %v13370_v23  ;;  %v13372_v60 = vld [vmem:[%s13583_s29 + $0x370] sm:$0xff] }
 0xf18   : > { %v10419_v24 = vadd.f32 %v10418_v6, %v8494_v12  ;;  %12892 = vmatmul.msk.bf16.gmra.mxu2 %vm1312_vm0, %v13370_v23 }
 0xf19   : > { %13020 = vmatmul.msk.bf16.gmra.mxu3 %vm1312_vm0, %v13370_v23 }
 0xf1b   : > { %v6100_v29 = vpop.f32.mrf.mxu2 }
 0xf1c   : > { %v8495_v13 = vmax.f32 %v6100_v29, 0.0  ;;  %v6749_v30 = vpop.f32.mrf.mxu3  ;;  %v4804_v27 = vpop.f32.mrf.mxu0 }
 0xf1d   : > { %v8496_v31 = vmax.f32 %v6749_v30, 0.0  ;;  %v8501_v16 = vmax.f32 %v4804_v27, 0.0  ;;  %v5453_v28 = vpop.f32.mrf.mxu1 }
 0xf1e   : > { %v10674_v17 = vadd.f32 %v10673_v18, %v8495_v13  ;;  %v8502_v32 = vmax.f32 %v5453_v28, 0.0 }
 0xf1f   : > { %v10929_v33 = vadd.f32 %v10928_v19, %v8496_v31  ;;  %v10165_v34 = vadd.f32 %v10164_v20, %v8501_v16 }
 0xf20   : > { %v10420_v35 = vadd.f32 %v10419_v24, %v8502_v32 }
 0xf23   : > { %v6102_v37 = vpop.f32.mrf.mxu2 }
 0xf24   : > { %v8503_v21 = vmax.f32 %v6102_v37, 0.0  ;;  %v6751_v38 = vpop.f32.mrf.mxu3  ;;  %v4807_v40 = vpop.f32.mrf.mxu0 }
 0xf25   : > { %v8504_v41 = vmax.f32 %v6751_v38, 0.0  ;;  %v8509_v42 = vmax.f32 %v4807_v40, 0.0  ;;  %v5456_v43 = vpop.f32.mrf.mxu1 }
 0xf26   : > { %v10675_v44 = vadd.f32 %v10674_v17, %v8503_v21  ;;  %v8510_v45 = vmax.f32 %v5456_v43, 0.0 }
 0xf27   : > { %v10930_v22 = vadd.f32 %v10929_v33, %v8504_v41  ;;  %v10166_v46 = vadd.f32 %v10165_v34, %v8509_v42  ;;  %12637 = vmatmul.msk.bf16.gmra.mxu0 %vm1312_vm0, %v13371_v47  ;;  %12765 = vmatmul.msk.bf16.gmra.mxu1 %vm1312_vm0, %v13371_v47  ;;  %v13373_v33 = vld [vmem:[%s13583_s29 + $0x378] sm:$0xff] }
 0xf28   : > { %v10421_v48 = vadd.f32 %v10420_v35, %v8510_v45  ;;  %12893 = vmatmul.msk.bf16.gmra.mxu2 %vm1312_vm0, %v13371_v47 }
 0xf29   : > { %13021 = vmatmul.msk.bf16.gmra.mxu3 %vm1312_vm0, %v13371_v47 }
 0xf2b   : > { %v6105_v49 = vpop.f32.mrf.mxu2 }
 0xf2c   : > { %v8511_v50 = vmax.f32 %v6105_v49, 0.0  ;;  %v6754_v25 = vpop.f32.mrf.mxu3  ;;  %v4809_v51 = vpop.f32.mrf.mxu0 }
 0xf2d   : > { %v8512_v52 = vmax.f32 %v6754_v25, 0.0  ;;  %v8517_v53 = vmax.f32 %v4809_v51, 0.0  ;;  %v5458_v26 = vpop.f32.mrf.mxu1 }
 0xf2e   : > { %v10676_v54 = vadd.f32 %v10675_v44, %v8511_v50  ;;  %v8518_v55 = vmax.f32 %v5458_v26, 0.0 }
 0xf2f   : > { %v10931_v56 = vadd.f32 %v10930_v22, %v8512_v52  ;;  %v10167_v36 = vadd.f32 %v10166_v46, %v8517_v53 }
 0xf30   : > { %v10422_v57 = vadd.f32 %v10421_v48, %v8518_v55 }
 0xf33   : > { %v6107_v58 = vpop.f32.mrf.mxu2 }
 0xf34   : > { %v8519_v59 = vmax.f32 %v6107_v58, 0.0  ;;  %v6756_v62 = vpop.f32.mrf.mxu3  ;;  %v4812_v63 = vpop.f32.mrf.mxu0 }
 0xf35   : > { %v8520_v39 = vmax.f32 %v6756_v62, 0.0  ;;  %v8525_v0 = vmax.f32 %v4812_v63, 0.0  ;;  %v5461_v1 = vpop.f32.mrf.mxu1 }
 0xf36   : > { %v10677_v3 = vadd.f32 %v10676_v54, %v8519_v59  ;;  %v8526_v2 = vmax.f32 %v5461_v1, 0.0 }
 0xf37   : > { %v10932_v4 = vadd.f32 %v10931_v56, %v8520_v39  ;;  %v10168_v5 = vadd.f32 %v10167_v36, %v8525_v0  ;;  %12638 = vmatmul.msk.bf16.gmra.mxu0 %vm1312_vm0, %v13372_v60  ;;  %12766 = vmatmul.msk.bf16.gmra.mxu1 %vm1312_vm0, %v13372_v60  ;;  %v13374_v56 = vld [vmem:[%s13583_s29 + $0x380] sm:$0xff] }
 0xf38   : > { %v10423_v7 = vadd.f32 %v10422_v57, %v8526_v2  ;;  %12894 = vmatmul.msk.bf16.gmra.mxu2 %vm1312_vm0, %v13372_v60 }
 0xf39   : > { %13022 = vmatmul.msk.bf16.gmra.mxu3 %vm1312_vm0, %v13372_v60 }
 0xf3b   : > { %v6110_v6 = vpop.f32.mrf.mxu2 }
 0xf3c   : > { %v8527_v9 = vmax.f32 %v6110_v6, 0.0  ;;  %v6759_v61 = vpop.f32.mrf.mxu3  ;;  %v4814_v10 = vpop.f32.mrf.mxu0 }
 0xf3d   : > { %v8528_v8 = vmax.f32 %v6759_v61, 0.0  ;;  %v8533_v11 = vmax.f32 %v4814_v10, 0.0  ;;  %v5463_v14 = vpop.f32.mrf.mxu1 }
 0xf3e   : > { %v10678_v15 = vadd.f32 %v10677_v3, %v8527_v9  ;;  %v8534_v18 = vmax.f32 %v5463_v14, 0.0 }
 0xf3f   : > { %v10933_v12 = vadd.f32 %v10932_v4, %v8528_v8  ;;  %v10169_v19 = vadd.f32 %v10168_v5, %v8533_v11 }
 0xf40   : > { %v10424_v20 = vadd.f32 %v10423_v7, %v8534_v18 }
 0xf43   : > { %v6112_v23 = vpop.f32.mrf.mxu2 }
 0xf44   : > { %v8535_v24 = vmax.f32 %v6112_v23, 0.0  ;;  %v6761_v29 = vpop.f32.mrf.mxu3  ;;  %v4817_v13 = vpop.f32.mrf.mxu0 }
 0xf45   : > { %v8536_v30 = vmax.f32 %v6761_v29, 0.0  ;;  %v8541_v27 = vmax.f32 %v4817_v13, 0.0  ;;  %v5466_v31 = vpop.f32.mrf.mxu1 }
 0xf46   : > { %v10679_v16 = vadd.f32 %v10678_v15, %v8535_v24  ;;  %v8542_v28 = vmax.f32 %v5466_v31, 0.0 }
 0xf47   : > { %v10934_v17 = vadd.f32 %v10933_v12, %v8536_v30  ;;  %v10170_v32 = vadd.f32 %v10169_v19, %v8541_v27  ;;  %12639 = vmatmul.msk.bf16.gmra.mxu0 %vm1312_vm0, %v13373_v33  ;;  %12767 = vmatmul.msk.bf16.gmra.mxu1 %vm1312_vm0, %v13373_v33  ;;  %v13375_v12 = vld [vmem:[%s13583_s29 + $0x388] sm:$0xff] }
 0xf48   : > { %v10425_v34 = vadd.f32 %v10424_v20, %v8542_v28  ;;  %12895 = vmatmul.msk.bf16.gmra.mxu2 %vm1312_vm0, %v13373_v33 }
 0xf49   : > { %13023 = vmatmul.msk.bf16.gmra.mxu3 %vm1312_vm0, %v13373_v33 }
 0xf4b   : > { %v6115_v35 = vpop.f32.mrf.mxu2 }
 0xf4c   : > { %v8543_v37 = vmax.f32 %v6115_v35, 0.0  ;;  %v6764_v21 = vpop.f32.mrf.mxu3  ;;  %v4819_v38 = vpop.f32.mrf.mxu0 }
 0xf4d   : > { %v8544_v40 = vmax.f32 %v6764_v21, 0.0  ;;  %v8549_v41 = vmax.f32 %v4819_v38, 0.0  ;;  %v5468_v42 = vpop.f32.mrf.mxu1 }
 0xf4e   : > { %v10680_v43 = vadd.f32 %v10679_v16, %v8543_v37  ;;  %v8550_v44 = vmax.f32 %v5468_v42, 0.0 }
 0xf4f   : > { %v10935_v45 = vadd.f32 %v10934_v17, %v8544_v40  ;;  %v10171_v22 = vadd.f32 %v10170_v32, %v8549_v41 }
 0xf50   : > { %v10426_v46 = vadd.f32 %v10425_v34, %v8550_v44 }
 0xf53   : > { %v6117_v47 = vpop.f32.mrf.mxu2 }
 0xf54   : > { %v8551_v48 = vmax.f32 %v6117_v47, 0.0  ;;  %v6766_v49 = vpop.f32.mrf.mxu3  ;;  %v4822_v50 = vpop.f32.mrf.mxu0 }
 0xf55   : > { %v8552_v25 = vmax.f32 %v6766_v49, 0.0  ;;  %v8557_v51 = vmax.f32 %v4822_v50, 0.0  ;;  %v5471_v52 = vpop.f32.mrf.mxu1 }
 0xf56   : > { %v10681_v53 = vadd.f32 %v10680_v43, %v8551_v48  ;;  %v8558_v26 = vmax.f32 %v5471_v52, 0.0 }
 0xf57   : > { %v10936_v54 = vadd.f32 %v10935_v45, %v8552_v25  ;;  %v10172_v55 = vadd.f32 %v10171_v22, %v8557_v51  ;;  %12640 = vmatmul.msk.bf16.gmra.mxu0 %vm1312_vm0, %v13374_v56  ;;  %12768 = vmatmul.msk.bf16.gmra.mxu1 %vm1312_vm0, %v13374_v56  ;;  %v13376_v45 = vld [vmem:[%s13583_s29 + $0x390] sm:$0xff] }
 0xf58   : > { %v10427_v36 = vadd.f32 %v10426_v46, %v8558_v26  ;;  %12896 = vmatmul.msk.bf16.gmra.mxu2 %vm1312_vm0, %v13374_v56 }
 0xf59   : > { %13024 = vmatmul.msk.bf16.gmra.mxu3 %vm1312_vm0, %v13374_v56 }
 0xf5b   : > { %v6120_v57 = vpop.f32.mrf.mxu2 }
 0xf5c   : > { %v8559_v58 = vmax.f32 %v6120_v57, 0.0  ;;  %v6769_v59 = vpop.f32.mrf.mxu3  ;;  %v4824_v62 = vpop.f32.mrf.mxu0 }
 0xf5d   : > { %v8560_v63 = vmax.f32 %v6769_v59, 0.0  ;;  %v8565_v39 = vmax.f32 %v4824_v62, 0.0  ;;  %v5473_v0 = vpop.f32.mrf.mxu1 }
 0xf5e   : > { %v10682_v1 = vadd.f32 %v10681_v53, %v8559_v58  ;;  %v8566_v3 = vmax.f32 %v5473_v0, 0.0 }
 0xf5f   : > { %v10937_v2 = vadd.f32 %v10936_v54, %v8560_v63  ;;  %v10173_v4 = vadd.f32 %v10172_v55, %v8565_v39 }
 0xf60   : > { %v10428_v5 = vadd.f32 %v10427_v36, %v8566_v3 }
 0xf63   : > { %v6122_v60 = vpop.f32.mrf.mxu2 }
 0xf64   : > { %v8567_v7 = vmax.f32 %v6122_v60, 0.0  ;;  %v6771_v6 = vpop.f32.mrf.mxu3  ;;  %v4827_v9 = vpop.f32.mrf.mxu0 }
 0xf65   : > { %v8568_v61 = vmax.f32 %v6771_v6, 0.0  ;;  %v8573_v10 = vmax.f32 %v4827_v9, 0.0  ;;  %v5476_v8 = vpop.f32.mrf.mxu1 }
 0xf66   : > { %v10683_v11 = vadd.f32 %v10682_v1, %v8567_v7  ;;  %v8574_v14 = vmax.f32 %v5476_v8, 0.0 }
 0xf67   : > { %v10938_v15 = vadd.f32 %v10937_v2, %v8568_v61  ;;  %v10174_v18 = vadd.f32 %v10173_v4, %v8573_v10  ;;  %12641 = vmatmul.msk.bf16.gmra.mxu0 %vm1312_vm0, %v13375_v12  ;;  %12769 = vmatmul.msk.bf16.gmra.mxu1 %vm1312_vm0, %v13375_v12  ;;  %v13377_v2 = vld [vmem:[%s13583_s29 + $0x398] sm:$0xff] }
 0xf68   : > { %v10429_v19 = vadd.f32 %v10428_v5, %v8574_v14  ;;  %12897 = vmatmul.msk.bf16.gmra.mxu2 %vm1312_vm0, %v13375_v12 }
 0xf69   : > { %13025 = vmatmul.msk.bf16.gmra.mxu3 %vm1312_vm0, %v13375_v12 }
 0xf6b   : > { %v6125_v20 = vpop.f32.mrf.mxu2 }
 0xf6c   : > { %v8575_v23 = vmax.f32 %v6125_v20, 0.0  ;;  %v6774_v24 = vpop.f32.mrf.mxu3  ;;  %v4829_v29 = vpop.f32.mrf.mxu0 }
 0xf6d   : > { %v8576_v13 = vmax.f32 %v6774_v24, 0.0  ;;  %v8581_v30 = vmax.f32 %v4829_v29, 0.0  ;;  %v5478_v27 = vpop.f32.mrf.mxu1 }
 0xf6e   : > { %v10684_v31 = vadd.f32 %v10683_v11, %v8575_v23  ;;  %v8582_v16 = vmax.f32 %v5478_v27, 0.0 }
 0xf6f   : > { %v10939_v28 = vadd.f32 %v10938_v15, %v8576_v13  ;;  %v10175_v17 = vadd.f32 %v10174_v18, %v8581_v30 }
 0xf70   : > { %v10430_v32 = vadd.f32 %v10429_v19, %v8582_v16 }
 0xf73   : > { %v6127_v33 = vpop.f32.mrf.mxu2 }
 0xf74   : > { %v8583_v34 = vmax.f32 %v6127_v33, 0.0  ;;  %v6776_v35 = vpop.f32.mrf.mxu3  ;;  %v4832_v37 = vpop.f32.mrf.mxu0 }
 0xf75   : > { %v8584_v21 = vmax.f32 %v6776_v35, 0.0  ;;  %v8589_v38 = vmax.f32 %v4832_v37, 0.0  ;;  %v5481_v40 = vpop.f32.mrf.mxu1 }
 0xf76   : > { %v10685_v41 = vadd.f32 %v10684_v31, %v8583_v34  ;;  %v8590_v42 = vmax.f32 %v5481_v40, 0.0 }
 0xf77   : > { %v10940_v43 = vadd.f32 %v10939_v28, %v8584_v21  ;;  %v10176_v44 = vadd.f32 %v10175_v17, %v8589_v38  ;;  %12642 = vmatmul.msk.bf16.gmra.mxu0 %vm1312_vm0, %v13376_v45  ;;  %12770 = vmatmul.msk.bf16.gmra.mxu1 %vm1312_vm0, %v13376_v45  ;;  %v13378_v28 = vld [vmem:[%s13583_s29 + $0x3a0] sm:$0xff] }
 0xf78   : > { %v10431_v22 = vadd.f32 %v10430_v32, %v8590_v42  ;;  %12898 = vmatmul.msk.bf16.gmra.mxu2 %vm1312_vm0, %v13376_v45 }
 0xf79   : > { %13026 = vmatmul.msk.bf16.gmra.mxu3 %vm1312_vm0, %v13376_v45 }
 0xf7b   : > { %v6130_v46 = vpop.f32.mrf.mxu2 }
 0xf7c   : > { %v8591_v47 = vmax.f32 %v6130_v46, 0.0  ;;  %v6779_v48 = vpop.f32.mrf.mxu3  ;;  %v4834_v49 = vpop.f32.mrf.mxu0 }
 0xf7d   : > { %v8592_v50 = vmax.f32 %v6779_v48, 0.0  ;;  %v8597_v25 = vmax.f32 %v4834_v49, 0.0  ;;  %v5483_v51 = vpop.f32.mrf.mxu1 }
 0xf7e   : > { %v10686_v52 = vadd.f32 %v10685_v41, %v8591_v47  ;;  %v8598_v53 = vmax.f32 %v5483_v51, 0.0 }
 0xf7f   : > { %v10941_v26 = vadd.f32 %v10940_v43, %v8592_v50  ;;  %v10177_v54 = vadd.f32 %v10176_v44, %v8597_v25 }
 0xf80   : > { %v10432_v55 = vadd.f32 %v10431_v22, %v8598_v53 }
 0xf83   : > { %v6132_v56 = vpop.f32.mrf.mxu2 }
 0xf84   : > { %v8599_v36 = vmax.f32 %v6132_v56, 0.0  ;;  %v6781_v57 = vpop.f32.mrf.mxu3  ;;  %v4837_v58 = vpop.f32.mrf.mxu0 }
 0xf85   : > { %v8600_v59 = vmax.f32 %v6781_v57, 0.0  ;;  %v8605_v62 = vmax.f32 %v4837_v58, 0.0  ;;  %v5486_v63 = vpop.f32.mrf.mxu1 }
 0xf86   : > { %v10687_v39 = vadd.f32 %v10686_v52, %v8599_v36  ;;  %v8606_v0 = vmax.f32 %v5486_v63, 0.0 }
 0xf87   : > { %v10942_v1 = vadd.f32 %v10941_v26, %v8600_v59  ;;  %v10178_v3 = vadd.f32 %v10177_v54, %v8605_v62  ;;  %12643 = vmatmul.msk.bf16.gmra.mxu0 %vm1312_vm0, %v13377_v2  ;;  %12771 = vmatmul.msk.bf16.gmra.mxu1 %vm1312_vm0, %v13377_v2  ;;  %v13379_v26 = vld [vmem:[%s13583_s29 + $0x3a8] sm:$0xff] }
 0xf88   : > { %v10433_v4 = vadd.f32 %v10432_v55, %v8606_v0  ;;  %12899 = vmatmul.msk.bf16.gmra.mxu2 %vm1312_vm0, %v13377_v2 }
 0xf89   : > { %13027 = vmatmul.msk.bf16.gmra.mxu3 %vm1312_vm0, %v13377_v2 }
 0xf8b   : > { %v6135_v5 = vpop.f32.mrf.mxu2 }
 0xf8c   : > { %v8607_v60 = vmax.f32 %v6135_v5, 0.0  ;;  %v6784_v7 = vpop.f32.mrf.mxu3  ;;  %v4839_v6 = vpop.f32.mrf.mxu0 }
 0xf8d   : > { %v8608_v9 = vmax.f32 %v6784_v7, 0.0  ;;  %v8613_v61 = vmax.f32 %v4839_v6, 0.0  ;;  %v5488_v10 = vpop.f32.mrf.mxu1 }
 0xf8e   : > { %v10688_v8 = vadd.f32 %v10687_v39, %v8607_v60  ;;  %v8614_v11 = vmax.f32 %v5488_v10, 0.0 }
 0xf8f   : > { %v10943_v14 = vadd.f32 %v10942_v1, %v8608_v9  ;;  %v10179_v15 = vadd.f32 %v10178_v3, %v8613_v61 }
 0xf90   : > { %v10434_v18 = vadd.f32 %v10433_v4, %v8614_v11 }
 0xf93   : > { %v6137_v12 = vpop.f32.mrf.mxu2 }
 0xf94   : > { %v8615_v19 = vmax.f32 %v6137_v12, 0.0  ;;  %v6786_v20 = vpop.f32.mrf.mxu3  ;;  %v4842_v23 = vpop.f32.mrf.mxu0 }
 0xf95   : > { %v8616_v24 = vmax.f32 %v6786_v20, 0.0  ;;  %v8621_v29 = vmax.f32 %v4842_v23, 0.0  ;;  %v5491_v13 = vpop.f32.mrf.mxu1 }
 0xf96   : > { %v10689_v30 = vadd.f32 %v10688_v8, %v8615_v19  ;;  %v8622_v27 = vmax.f32 %v5491_v13, 0.0 }
 0xf97   : > { %v10944_v31 = vadd.f32 %v10943_v14, %v8616_v24  ;;  %v10180_v16 = vadd.f32 %v10179_v15, %v8621_v29  ;;  %12644 = vmatmul.msk.bf16.gmra.mxu0 %vm1312_vm0, %v13378_v28  ;;  %12772 = vmatmul.msk.bf16.gmra.mxu1 %vm1312_vm0, %v13378_v28  ;;  %v13380_v14 = vld [vmem:[%s13583_s29 + $0x3b0] sm:$0xff] }
 0xf98   : > { %v10435_v17 = vadd.f32 %v10434_v18, %v8622_v27  ;;  %12900 = vmatmul.msk.bf16.gmra.mxu2 %vm1312_vm0, %v13378_v28 }
 0xf99   : > { %13028 = vmatmul.msk.bf16.gmra.mxu3 %vm1312_vm0, %v13378_v28 }
 0xf9b   : > { %v6140_v32 = vpop.f32.mrf.mxu2 }
 0xf9c   : > { %v8623_v33 = vmax.f32 %v6140_v32, 0.0  ;;  %v6789_v34 = vpop.f32.mrf.mxu3  ;;  %v4844_v35 = vpop.f32.mrf.mxu0 }
 0xf9d   : > { %v8624_v37 = vmax.f32 %v6789_v34, 0.0  ;;  %v8629_v21 = vmax.f32 %v4844_v35, 0.0  ;;  %v5493_v38 = vpop.f32.mrf.mxu1 }
 0xf9e   : > { %v10690_v40 = vadd.f32 %v10689_v30, %v8623_v33  ;;  %v8630_v41 = vmax.f32 %v5493_v38, 0.0 }
 0xf9f   : > { %v10945_v42 = vadd.f32 %v10944_v31, %v8624_v37  ;;  %v10181_v43 = vadd.f32 %v10180_v16, %v8629_v21 }
 0xfa0   : > { %v10436_v44 = vadd.f32 %v10435_v17, %v8630_v41 }
 0xfa3   : > { %v6142_v45 = vpop.f32.mrf.mxu2 }
 0xfa4   : > { %v8631_v22 = vmax.f32 %v6142_v45, 0.0  ;;  %v6791_v46 = vpop.f32.mrf.mxu3  ;;  %v4847_v47 = vpop.f32.mrf.mxu0 }
 0xfa5   : > { %v8632_v48 = vmax.f32 %v6791_v46, 0.0  ;;  %v8637_v49 = vmax.f32 %v4847_v47, 0.0  ;;  %v5496_v50 = vpop.f32.mrf.mxu1 }
 0xfa6   : > { %v10691_v25 = vadd.f32 %v10690_v40, %v8631_v22  ;;  %v8638_v51 = vmax.f32 %v5496_v50, 0.0 }
 0xfa7   : > { %v10946_v52 = vadd.f32 %v10945_v42, %v8632_v48  ;;  %v10182_v53 = vadd.f32 %v10181_v43, %v8637_v49  ;;  %12645 = vmatmul.msk.bf16.gmra.mxu0 %vm1312_vm0, %v13379_v26  ;;  %12773 = vmatmul.msk.bf16.gmra.mxu1 %vm1312_vm0, %v13379_v26  ;;  %v13381_v42 = vld [vmem:[%s13583_s29 + $0x3b8] sm:$0xff] }
 0xfa8   : > { %v10437_v54 = vadd.f32 %v10436_v44, %v8638_v51  ;;  %12901 = vmatmul.msk.bf16.gmra.mxu2 %vm1312_vm0, %v13379_v26 }
 0xfa9   : > { %13029 = vmatmul.msk.bf16.gmra.mxu3 %vm1312_vm0, %v13379_v26 }
 0xfab   : > { %v6145_v55 = vpop.f32.mrf.mxu2 }
 0xfac   : > { %v8639_v56 = vmax.f32 %v6145_v55, 0.0  ;;  %v6794_v36 = vpop.f32.mrf.mxu3  ;;  %v4849_v57 = vpop.f32.mrf.mxu0 }
 0xfad   : > { %v8640_v58 = vmax.f32 %v6794_v36, 0.0  ;;  %v8645_v59 = vmax.f32 %v4849_v57, 0.0  ;;  %v5498_v62 = vpop.f32.mrf.mxu1 }
 0xfae   : > { %v10692_v63 = vadd.f32 %v10691_v25, %v8639_v56  ;;  %v8646_v39 = vmax.f32 %v5498_v62, 0.0 }
 0xfaf   : > { %v10947_v0 = vadd.f32 %v10946_v52, %v8640_v58  ;;  %v10183_v1 = vadd.f32 %v10182_v53, %v8645_v59 }
 0xfb0   : > { %v10438_v3 = vadd.f32 %v10437_v54, %v8646_v39 }
 0xfb3   : > { %v6147_v2 = vpop.f32.mrf.mxu2 }
 0xfb4   : > { %v8647_v4 = vmax.f32 %v6147_v2, 0.0  ;;  %v6796_v5 = vpop.f32.mrf.mxu3  ;;  %v4852_v60 = vpop.f32.mrf.mxu0 }
 0xfb5   : > { %v8648_v7 = vmax.f32 %v6796_v5, 0.0  ;;  %v8653_v6 = vmax.f32 %v4852_v60, 0.0  ;;  %v5501_v9 = vpop.f32.mrf.mxu1 }
 0xfb6   : > { %v10693_v61 = vadd.f32 %v10692_v63, %v8647_v4  ;;  %v8654_v10 = vmax.f32 %v5501_v9, 0.0 }
 0xfb7   : > { %v10948_v8 = vadd.f32 %v10947_v0, %v8648_v7  ;;  %v10184_v11 = vadd.f32 %v10183_v1, %v8653_v6  ;;  %12646 = vmatmul.msk.bf16.gmra.mxu0 %vm1312_vm0, %v13380_v14  ;;  %12774 = vmatmul.msk.bf16.gmra.mxu1 %vm1312_vm0, %v13380_v14  ;;  %v13382_v0 = vld [vmem:[%s13583_s29 + $0x3c0] sm:$0xff] }
 0xfb8   : > { %v10439_v15 = vadd.f32 %v10438_v3, %v8654_v10  ;;  %12902 = vmatmul.msk.bf16.gmra.mxu2 %vm1312_vm0, %v13380_v14 }
 0xfb9   : > { %13030 = vmatmul.msk.bf16.gmra.mxu3 %vm1312_vm0, %v13380_v14 }
 0xfbb   : > { %v6150_v18 = vpop.f32.mrf.mxu2 }
 0xfbc   : > { %v8655_v12 = vmax.f32 %v6150_v18, 0.0  ;;  %v6799_v19 = vpop.f32.mrf.mxu3  ;;  %v4854_v20 = vpop.f32.mrf.mxu0 }
 0xfbd   : > { %v8656_v23 = vmax.f32 %v6799_v19, 0.0  ;;  %v8661_v24 = vmax.f32 %v4854_v20, 0.0  ;;  %v5503_v29 = vpop.f32.mrf.mxu1 }
 0xfbe   : > { %v10694_v13 = vadd.f32 %v10693_v61, %v8655_v12  ;;  %v8662_v30 = vmax.f32 %v5503_v29, 0.0 }
 0xfbf   : > { %v10949_v27 = vadd.f32 %v10948_v8, %v8656_v23  ;;  %v10185_v31 = vadd.f32 %v10184_v11, %v8661_v24 }
 0xfc0   : > { %v10440_v16 = vadd.f32 %v10439_v15, %v8662_v30 }
 0xfc3   : > { %v6152_v28 = vpop.f32.mrf.mxu2 }
 0xfc4   : > { %v8663_v17 = vmax.f32 %v6152_v28, 0.0  ;;  %v6801_v32 = vpop.f32.mrf.mxu3  ;;  %v4857_v33 = vpop.f32.mrf.mxu0 }
 0xfc5   : > { %v8664_v34 = vmax.f32 %v6801_v32, 0.0  ;;  %v8669_v35 = vmax.f32 %v4857_v33, 0.0  ;;  %v5506_v37 = vpop.f32.mrf.mxu1 }
 0xfc6   : > { %v10695_v21 = vadd.f32 %v10694_v13, %v8663_v17  ;;  %v8670_v38 = vmax.f32 %v5506_v37, 0.0 }
 0xfc7   : > { %v10950_v40 = vadd.f32 %v10949_v27, %v8664_v34  ;;  %v10186_v41 = vadd.f32 %v10185_v31, %v8669_v35  ;;  %12647 = vmatmul.msk.bf16.gmra.mxu0 %vm1312_vm0, %v13381_v42  ;;  %12775 = vmatmul.msk.bf16.gmra.mxu1 %vm1312_vm0, %v13381_v42  ;;  %v13383_v27 = vld [vmem:[%s13583_s29 + $0x3c8] sm:$0xff] }
 0xfc8   : > { %v10441_v43 = vadd.f32 %v10440_v16, %v8670_v38  ;;  %12903 = vmatmul.msk.bf16.gmra.mxu2 %vm1312_vm0, %v13381_v42 }
 0xfc9   : > { %13031 = vmatmul.msk.bf16.gmra.mxu3 %vm1312_vm0, %v13381_v42 }
 0xfcb   : > { %v6155_v44 = vpop.f32.mrf.mxu2 }
 0xfcc   : > { %v8671_v45 = vmax.f32 %v6155_v44, 0.0  ;;  %v6804_v22 = vpop.f32.mrf.mxu3  ;;  %v4859_v46 = vpop.f32.mrf.mxu0 }
 0xfcd   : > { %v8672_v47 = vmax.f32 %v6804_v22, 0.0  ;;  %v8677_v48 = vmax.f32 %v4859_v46, 0.0  ;;  %v5508_v49 = vpop.f32.mrf.mxu1 }
 0xfce   : > { %v10696_v50 = vadd.f32 %v10695_v21, %v8671_v45  ;;  %v8678_v25 = vmax.f32 %v5508_v49, 0.0 }
 0xfcf   : > { %v10951_v51 = vadd.f32 %v10950_v40, %v8672_v47  ;;  %v10187_v52 = vadd.f32 %v10186_v41, %v8677_v48 }
 0xfd0   : > { %v10442_v53 = vadd.f32 %v10441_v43, %v8678_v25 }
 0xfd3   : > { %v6157_v26 = vpop.f32.mrf.mxu2 }
 0xfd4   : > { %v8679_v54 = vmax.f32 %v6157_v26, 0.0  ;;  %v6806_v55 = vpop.f32.mrf.mxu3  ;;  %v4862_v56 = vpop.f32.mrf.mxu0 }
 0xfd5   : > { %v8680_v36 = vmax.f32 %v6806_v55, 0.0  ;;  %v8685_v57 = vmax.f32 %v4862_v56, 0.0  ;;  %v5511_v58 = vpop.f32.mrf.mxu1 }
 0xfd6   : > { %v10697_v59 = vadd.f32 %v10696_v50, %v8679_v54  ;;  %v8686_v62 = vmax.f32 %v5511_v58, 0.0 }
 0xfd7   : > { %v10952_v63 = vadd.f32 %v10951_v51, %v8680_v36  ;;  %v10188_v39 = vadd.f32 %v10187_v52, %v8685_v57  ;;  %12648 = vmatmul.msk.bf16.gmra.mxu0 %vm1312_vm0, %v13382_v0  ;;  %12776 = vmatmul.msk.bf16.gmra.mxu1 %vm1312_vm0, %v13382_v0  ;;  %v13384_v51 = vld [vmem:[%s13583_s29 + $0x3d0] sm:$0xff] }
 0xfd8   : > { %v10443_v1 = vadd.f32 %v10442_v53, %v8686_v62  ;;  %12904 = vmatmul.msk.bf16.gmra.mxu2 %vm1312_vm0, %v13382_v0 }
 0xfd9   : > { %13032 = vmatmul.msk.bf16.gmra.mxu3 %vm1312_vm0, %v13382_v0 }
 0xfdb   : > { %v6160_v3 = vpop.f32.mrf.mxu2 }
 0xfdc   : > { %v8687_v2 = vmax.f32 %v6160_v3, 0.0  ;;  %v6809_v4 = vpop.f32.mrf.mxu3  ;;  %v4864_v5 = vpop.f32.mrf.mxu0 }
 0xfdd   : > { %v8688_v60 = vmax.f32 %v6809_v4, 0.0  ;;  %v8693_v7 = vmax.f32 %v4864_v5, 0.0  ;;  %v5513_v6 = vpop.f32.mrf.mxu1 }
 0xfde   : > { %v10698_v9 = vadd.f32 %v10697_v59, %v8687_v2  ;;  %v8694_v61 = vmax.f32 %v5513_v6, 0.0 }
 0xfdf   : > { %v10953_v10 = vadd.f32 %v10952_v63, %v8688_v60  ;;  %v10189_v8 = vadd.f32 %v10188_v39, %v8693_v7 }
 0xfe0   : > { %v10444_v11 = vadd.f32 %v10443_v1, %v8694_v61 }
 0xfe3   : > { %v6162_v14 = vpop.f32.mrf.mxu2 }
 0xfe4   : > { %v8695_v15 = vmax.f32 %v6162_v14, 0.0  ;;  %v6811_v18 = vpop.f32.mrf.mxu3  ;;  %v4867_v12 = vpop.f32.mrf.mxu0 }
 0xfe5   : > { %v8696_v19 = vmax.f32 %v6811_v18, 0.0  ;;  %v8701_v20 = vmax.f32 %v4867_v12, 0.0  ;;  %v5516_v23 = vpop.f32.mrf.mxu1 }
 0xfe6   : > { %v10699_v24 = vadd.f32 %v10698_v9, %v8695_v15  ;;  %v8702_v29 = vmax.f32 %v5516_v23, 0.0 }
 0xfe7   : > { %v10954_v13 = vadd.f32 %v10953_v10, %v8696_v19  ;;  %v10190_v30 = vadd.f32 %v10189_v8, %v8701_v20  ;;  %12649 = vmatmul.msk.bf16.gmra.mxu0 %vm1312_vm0, %v13383_v27  ;;  %12777 = vmatmul.msk.bf16.gmra.mxu1 %vm1312_vm0, %v13383_v27  ;;  %v13385_v10 = vld [vmem:[%s13583_s29 + $0x3d8] sm:$0xff] }
 0xfe8   : > { %v10445_v31 = vadd.f32 %v10444_v11, %v8702_v29  ;;  %12905 = vmatmul.msk.bf16.gmra.mxu2 %vm1312_vm0, %v13383_v27 }
 0xfe9   : > { %13033 = vmatmul.msk.bf16.gmra.mxu3 %vm1312_vm0, %v13383_v27 }
 0xfeb   : > { %v6165_v16 = vpop.f32.mrf.mxu2 }
 0xfec   : > { %v8703_v28 = vmax.f32 %v6165_v16, 0.0  ;;  %v6814_v17 = vpop.f32.mrf.mxu3  ;;  %v4869_v32 = vpop.f32.mrf.mxu0 }
 0xfed   : > { %v8704_v33 = vmax.f32 %v6814_v17, 0.0  ;;  %v8709_v34 = vmax.f32 %v4869_v32, 0.0  ;;  %v5518_v35 = vpop.f32.mrf.mxu1 }
 0xfee   : > { %v10700_v37 = vadd.f32 %v10699_v24, %v8703_v28  ;;  %v8710_v21 = vmax.f32 %v5518_v35, 0.0 }
 0xfef   : > { %v10955_v38 = vadd.f32 %v10954_v13, %v8704_v33  ;;  %v10191_v40 = vadd.f32 %v10190_v30, %v8709_v34 }
 0xff0   : > { %v10446_v41 = vadd.f32 %v10445_v31, %v8710_v21 }
 0xff3   : > { %v6167_v42 = vpop.f32.mrf.mxu2 }
 0xff4   : > { %v8711_v43 = vmax.f32 %v6167_v42, 0.0  ;;  %v6816_v44 = vpop.f32.mrf.mxu3  ;;  %v4872_v45 = vpop.f32.mrf.mxu0 }
 0xff5   : > { %v8712_v22 = vmax.f32 %v6816_v44, 0.0  ;;  %v8717_v46 = vmax.f32 %v4872_v45, 0.0  ;;  %v5521_v47 = vpop.f32.mrf.mxu1 }
 0xff6   : > { %v10701_v48 = vadd.f32 %v10700_v37, %v8711_v43  ;;  %v8718_v49 = vmax.f32 %v5521_v47, 0.0 }
 0xff7   : > { %v10956_v50 = vadd.f32 %v10955_v38, %v8712_v22  ;;  %v10192_v25 = vadd.f32 %v10191_v40, %v8717_v46  ;;  %12650 = vmatmul.msk.bf16.gmra.mxu0 %vm1312_vm0, %v13384_v51  ;;  %12778 = vmatmul.msk.bf16.gmra.mxu1 %vm1312_vm0, %v13384_v51  ;;  %v13386_v38 = vld [vmem:[%s13583_s29 + $0x3e0] sm:$0xff] }
 0xff8   : > { %v10447_v52 = vadd.f32 %v10446_v41, %v8718_v49  ;;  %12906 = vmatmul.msk.bf16.gmra.mxu2 %vm1312_vm0, %v13384_v51 }
 0xff9   : > { %13034 = vmatmul.msk.bf16.gmra.mxu3 %vm1312_vm0, %v13384_v51 }
 0xffb   : > { %v6170_v53 = vpop.f32.mrf.mxu2 }
 0xffc   : > { %v8719_v26 = vmax.f32 %v6170_v53, 0.0  ;;  %v6819_v54 = vpop.f32.mrf.mxu3  ;;  %v4874_v55 = vpop.f32.mrf.mxu0 }
 0xffd   : > { %v8720_v56 = vmax.f32 %v6819_v54, 0.0  ;;  %v8725_v36 = vmax.f32 %v4874_v55, 0.0  ;;  %v5523_v57 = vpop.f32.mrf.mxu1 }
 0xffe   : > { %v10702_v58 = vadd.f32 %v10701_v48, %v8719_v26  ;;  %v8726_v59 = vmax.f32 %v5523_v57, 0.0 }
 0xfff   : > { %v10957_v62 = vadd.f32 %v10956_v50, %v8720_v56  ;;  %v10193_v63 = vadd.f32 %v10192_v25, %v8725_v36 }
0x1000   : > { %v10448_v39 = vadd.f32 %v10447_v52, %v8726_v59 }
0x1003   : > { %v6172_v0 = vpop.f32.mrf.mxu2 }
0x1004   : > { %v8727_v1 = vmax.f32 %v6172_v0, 0.0  ;;  %v6821_v3 = vpop.f32.mrf.mxu3  ;;  %v4877_v2 = vpop.f32.mrf.mxu0 }
0x1005   : > { %v8728_v4 = vmax.f32 %v6821_v3, 0.0  ;;  %v8733_v5 = vmax.f32 %v4877_v2, 0.0  ;;  %v5526_v60 = vpop.f32.mrf.mxu1 }
0x1006   : > { %v10703_v7 = vadd.f32 %v10702_v58, %v8727_v1  ;;  %v8734_v6 = vmax.f32 %v5526_v60, 0.0 }
0x1007   : > { %v10958_v9 = vadd.f32 %v10957_v62, %v8728_v4  ;;  %v10194_v61 = vadd.f32 %v10193_v63, %v8733_v5  ;;  %12651 = vmatmul.msk.bf16.gmra.mxu0 %vm1312_vm0, %v13385_v10  ;;  %12779 = vmatmul.msk.bf16.gmra.mxu1 %vm1312_vm0, %v13385_v10  ;;  %v13387_v62 = vld [vmem:[%s13583_s29 + $0x3e8] sm:$0xff] }
0x1008   : > { %v10449_v8 = vadd.f32 %v10448_v39, %v8734_v6  ;;  %12907 = vmatmul.msk.bf16.gmra.mxu2 %vm1312_vm0, %v13385_v10 }
0x1009   : > { %13035 = vmatmul.msk.bf16.gmra.mxu3 %vm1312_vm0, %v13385_v10 }
0x100b   : > { %v6175_v11 = vpop.f32.mrf.mxu2 }
0x100c   : > { %v8735_v14 = vmax.f32 %v6175_v11, 0.0  ;;  %v6824_v15 = vpop.f32.mrf.mxu3  ;;  %v4879_v18 = vpop.f32.mrf.mxu0 }
0x100d   : > { %v8736_v12 = vmax.f32 %v6824_v15, 0.0  ;;  %v8741_v19 = vmax.f32 %v4879_v18, 0.0  ;;  %v5528_v20 = vpop.f32.mrf.mxu1 }
0x100e   : > { %v10704_v23 = vadd.f32 %v10703_v7, %v8735_v14  ;;  %v8742_v24 = vmax.f32 %v5528_v20, 0.0 }
0x100f   : > { %v10959_v29 = vadd.f32 %v10958_v9, %v8736_v12  ;;  %v10195_v13 = vadd.f32 %v10194_v61, %v8741_v19 }
0x1010   : > { %v10450_v30 = vadd.f32 %v10449_v8, %v8742_v24 }
0x1013   : > { %v6177_v27 = vpop.f32.mrf.mxu2 }
0x1014   : > { %v8743_v31 = vmax.f32 %v6177_v27, 0.0  ;;  %v6826_v16 = vpop.f32.mrf.mxu3  ;;  %v4882_v28 = vpop.f32.mrf.mxu0 }
0x1015   : > { %v8744_v17 = vmax.f32 %v6826_v16, 0.0  ;;  %v8749_v32 = vmax.f32 %v4882_v28, 0.0  ;;  %v5531_v33 = vpop.f32.mrf.mxu1 }
0x1016   : > { %v10705_v34 = vadd.f32 %v10704_v23, %v8743_v31  ;;  %v8750_v35 = vmax.f32 %v5531_v33, 0.0 }
0x1017   : > { %v10960_v37 = vadd.f32 %v10959_v29, %v8744_v17  ;;  %v10196_v21 = vadd.f32 %v10195_v13, %v8749_v32  ;;  %12652 = vmatmul.msk.bf16.gmra.mxu0 %vm1312_vm0, %v13386_v38  ;;  %12780 = vmatmul.msk.bf16.gmra.mxu1 %vm1312_vm0, %v13386_v38  ;;  %v13388_v29 = vld [vmem:[%s13583_s29 + $0x3f0] sm:$0xff] }
0x1018   : > { %v10451_v40 = vadd.f32 %v10450_v30, %v8750_v35  ;;  %12908 = vmatmul.msk.bf16.gmra.mxu2 %vm1312_vm0, %v13386_v38 }
0x1019   : > { %13036 = vmatmul.msk.bf16.gmra.mxu3 %vm1312_vm0, %v13386_v38 }
0x101b   : > { %v6180_v41 = vpop.f32.mrf.mxu2 }
0x101c   : > { %v8751_v42 = vmax.f32 %v6180_v41, 0.0  ;;  %v6829_v43 = vpop.f32.mrf.mxu3  ;;  %v4884_v44 = vpop.f32.mrf.mxu0 }
0x101d   : > { %v8752_v45 = vmax.f32 %v6829_v43, 0.0  ;;  %v8757_v22 = vmax.f32 %v4884_v44, 0.0  ;;  %v5533_v46 = vpop.f32.mrf.mxu1 }
0x101e   : > { %v10706_v47 = vadd.f32 %v10705_v34, %v8751_v42  ;;  %v8758_v48 = vmax.f32 %v5533_v46, 0.0 }
0x101f   : > { %v10961_v49 = vadd.f32 %v10960_v37, %v8752_v45  ;;  %v10197_v50 = vadd.f32 %v10196_v21, %v8757_v22 }
0x1020   : > { %v10452_v25 = vadd.f32 %v10451_v40, %v8758_v48 }
0x1023   : > { %v6182_v51 = vpop.f32.mrf.mxu2 }
0x1024   : > { %v8759_v52 = vmax.f32 %v6182_v51, 0.0  ;;  %v6831_v53 = vpop.f32.mrf.mxu3  ;;  %v4887_v26 = vpop.f32.mrf.mxu0 }
0x1025   : > { %v8760_v54 = vmax.f32 %v6831_v53, 0.0  ;;  %v8765_v55 = vmax.f32 %v4887_v26, 0.0  ;;  %v5536_v56 = vpop.f32.mrf.mxu1 }
0x1026   : > { %v10707_v36 = vadd.f32 %v10706_v47, %v8759_v52  ;;  %v8766_v57 = vmax.f32 %v5536_v56, 0.0 }
0x1027   : > { %v10962_v58 = vadd.f32 %v10961_v49, %v8760_v54  ;;  %v10198_v59 = vadd.f32 %v10197_v50, %v8765_v55  ;;  %12653 = vmatmul.msk.bf16.gmra.mxu0 %vm1312_vm0, %v13387_v62  ;;  %12781 = vmatmul.msk.bf16.gmra.mxu1 %vm1312_vm0, %v13387_v62  ;;  %v13389_v49 = vld [vmem:[%s13583_s29 + $0x3f8] sm:$0xff] }
0x1028   : > { %v10453_v63 = vadd.f32 %v10452_v25, %v8766_v57  ;;  %12909 = vmatmul.msk.bf16.gmra.mxu2 %vm1312_vm0, %v13387_v62 }
0x1029   : > { %13037 = vmatmul.msk.bf16.gmra.mxu3 %vm1312_vm0, %v13387_v62 }
0x102b   : > { %v6185_v39 = vpop.f32.mrf.mxu2 }
0x102c   : > { %v8767_v0 = vmax.f32 %v6185_v39, 0.0  ;;  %v6834_v1 = vpop.f32.mrf.mxu3  ;;  %v4889_v3 = vpop.f32.mrf.mxu0 }
0x102d   : > { %v8768_v2 = vmax.f32 %v6834_v1, 0.0  ;;  %v8773_v4 = vmax.f32 %v4889_v3, 0.0  ;;  %v5538_v5 = vpop.f32.mrf.mxu1 }
0x102e   : > { %v10708_v60 = vadd.f32 %v10707_v36, %v8767_v0  ;;  %v8774_v7 = vmax.f32 %v5538_v5, 0.0 }
0x102f   : > { %v10963_v6 = vadd.f32 %v10962_v58, %v8768_v2  ;;  %v10199_v9 = vadd.f32 %v10198_v59, %v8773_v4 }
0x1030   : > { %v10454_v61 = vadd.f32 %v10453_v63, %v8774_v7 }
0x1033   : > { %v6187_v10 = vpop.f32.mrf.mxu2 }
0x1034   : > { %v8775_v8 = vmax.f32 %v6187_v10, 0.0  ;;  %v6836_v11 = vpop.f32.mrf.mxu3  ;;  %v4892_v14 = vpop.f32.mrf.mxu0 }
0x1035   : > { %v8776_v15 = vmax.f32 %v6836_v11, 0.0  ;;  %v8781_v18 = vmax.f32 %v4892_v14, 0.0  ;;  %v5541_v12 = vpop.f32.mrf.mxu1 }
0x1036   : > { %v10709_v19 = vadd.f32 %v10708_v60, %v8775_v8  ;;  %v8782_v20 = vmax.f32 %v5541_v12, 0.0 }
0x1037   : > { %v10964_v23 = vadd.f32 %v10963_v6, %v8776_v15  ;;  %v10200_v24 = vadd.f32 %v10199_v9, %v8781_v18  ;;  %12654 = vmatmul.msk.bf16.gmra.mxu0 %vm1312_vm0, %v13388_v29  ;;  %12782 = vmatmul.msk.bf16.gmra.mxu1 %vm1312_vm0, %v13388_v29 }
0x1038   : > { %v10455_v13 = vadd.f32 %v10454_v61, %v8782_v20  ;;  %12910 = vmatmul.msk.bf16.gmra.mxu2 %vm1312_vm0, %v13388_v29 }
0x1039   : > { %13038 = vmatmul.msk.bf16.gmra.mxu3 %vm1312_vm0, %v13388_v29 }
0x103b   : > { %v6190_v30 = vpop.f32.mrf.mxu2 }
0x103c   : > { %v8783_v27 = vmax.f32 %v6190_v30, 0.0  ;;  %v6839_v31 = vpop.f32.mrf.mxu3  ;;  %v4894_v16 = vpop.f32.mrf.mxu0 }
0x103d   : > { %v8784_v28 = vmax.f32 %v6839_v31, 0.0  ;;  %v8789_v17 = vmax.f32 %v4894_v16, 0.0  ;;  %v5543_v32 = vpop.f32.mrf.mxu1 }
0x103e   : > { %v10710_v33 = vadd.f32 %v10709_v19, %v8783_v27  ;;  %v8790_v34 = vmax.f32 %v5543_v32, 0.0 }
0x103f   : > { %v10965_v35 = vadd.f32 %v10964_v23, %v8784_v28  ;;  %v10201_v37 = vadd.f32 %v10200_v24, %v8789_v17 }
0x1040   : > { %v10456_v21 = vadd.f32 %v10455_v13, %v8790_v34 }
0x1043   : > { %v6192_v38 = vpop.f32.mrf.mxu2 }
0x1044   : > { %v8791_v40 = vmax.f32 %v6192_v38, 0.0  ;;  %v6841_v41 = vpop.f32.mrf.mxu3  ;;  %v4897_v42 = vpop.f32.mrf.mxu0 }
0x1045   : > { %v8792_v43 = vmax.f32 %v6841_v41, 0.0  ;;  %v8797_v44 = vmax.f32 %v4897_v42, 0.0  ;;  %v5546_v45 = vpop.f32.mrf.mxu1 }
0x1046   : > { %v10711_v22 = vadd.f32 %v10710_v33, %v8791_v40  ;;  %v8798_v46 = vmax.f32 %v5546_v45, 0.0 }
0x1047   : > { %v10966_v47 = vadd.f32 %v10965_v35, %v8792_v43  ;;  %v10202_v48 = vadd.f32 %v10201_v37, %v8797_v44  ;;  %12655 = vmatmul.msk.bf16.gmra.mxu0 %vm1312_vm0, %v13389_v49  ;;  %12783 = vmatmul.msk.bf16.gmra.mxu1 %vm1312_vm0, %v13389_v49 }
0x1048   : > { %v10457_v50 = vadd.f32 %v10456_v21, %v8798_v46  ;;  %12911 = vmatmul.msk.bf16.gmra.mxu2 %vm1312_vm0, %v13389_v49 }
0x1049   : > { %13039 = vmatmul.msk.bf16.gmra.mxu3 %vm1312_vm0, %v13389_v49 }
0x104b   : > { %v6195_v25 = vpop.f32.mrf.mxu2 }
0x104c   : > { %v8799_v51 = vmax.f32 %v6195_v25, 0.0  ;;  %v6844_v52 = vpop.f32.mrf.mxu3  ;;  %v4899_v53 = vpop.f32.mrf.mxu0 }
0x104d   : > { %v8800_v26 = vmax.f32 %v6844_v52, 0.0  ;;  %v8805_v54 = vmax.f32 %v4899_v53, 0.0  ;;  %v5548_v55 = vpop.f32.mrf.mxu1 }
0x104e   : > { %v10712_v56 = vadd.f32 %v10711_v22, %v8799_v51  ;;  %v8806_v36 = vmax.f32 %v5548_v55, 0.0 }
0x104f   : > { %v10967_v57 = vadd.f32 %v10966_v47, %v8800_v26  ;;  %v10203_v58 = vadd.f32 %v10202_v48, %v8805_v54 }
0x1050   : > { %v10458_v59 = vadd.f32 %v10457_v50, %v8806_v36 }
0x1053   : > { %v6197_v62 = vpop.f32.mrf.mxu2 }
0x1054   : > { %v8807_v63 = vmax.f32 %v6197_v62, 0.0  ;;  %v6846_v39 = vpop.f32.mrf.mxu3  ;;  %v4902_v0 = vpop.f32.mrf.mxu0 }
0x1055   : > { %v8808_v1 = vmax.f32 %v6846_v39, 0.0  ;;  %v8813_v3 = vmax.f32 %v4902_v0, 0.0  ;;  %v5551_v2 = vpop.f32.mrf.mxu1 }
0x1056   : > { %v10713_v4 = vadd.f32 %v10712_v56, %v8807_v63  ;;  %v8814_v5 = vmax.f32 %v5551_v2, 0.0 }
0x1057   : > { %v10968_v60 = vadd.f32 %v10967_v57, %v8808_v1  ;;  %v10204_v7 = vadd.f32 %v10203_v58, %v8813_v3 }
0x1058   : > { %v10459_v6 = vadd.f32 %v10458_v59, %v8814_v5 }
0x105b   : > { %v6200_v9 = vpop.f32.mrf.mxu2 }
0x105c   : > { %v8815_v61 = vmax.f32 %v6200_v9, 0.0  ;;  %v6849_v10 = vpop.f32.mrf.mxu3  ;;  %v4904_v8 = vpop.f32.mrf.mxu0 }
0x105d   : > { %v8816_v11 = vmax.f32 %v6849_v10, 0.0  ;;  %v8821_v14 = vmax.f32 %v4904_v8, 0.0  ;;  %v5553_v15 = vpop.f32.mrf.mxu1 }
0x105e   : > { %v10714_v18 = vadd.f32 %v10713_v4, %v8815_v61  ;;  %v8822_v12 = vmax.f32 %v5553_v15, 0.0 }
0x105f   : > { %v10969_v19 = vadd.f32 %v10968_v60, %v8816_v11  ;;  %v10205_v20 = vadd.f32 %v10204_v7, %v8821_v14 }
0x1060   : > { %v10460_v23 = vadd.f32 %v10459_v6, %v8822_v12 }
0x1063   : > { %v6202_v24 = vpop.f32.mrf.mxu2 }
0x1064   : > { %v8823_v29 = vmax.f32 %v6202_v24, 0.0  ;;  %v6851_v13 = vpop.f32.mrf.mxu3  ;;  %v4907_v30 = vpop.f32.mrf.mxu0 }
0x1065   : > { %v8824_v27 = vmax.f32 %v6851_v13, 0.0  ;;  %v8829_v31 = vmax.f32 %v4907_v30, 0.0  ;;  %v5556_v16 = vpop.f32.mrf.mxu1 }
0x1066   : > { %v10715_v28 = vadd.f32 %v10714_v18, %v8823_v29  ;;  %v8830_v17 = vmax.f32 %v5556_v16, 0.0 }
0x1067   : > { %v10970_v32 = vadd.f32 %v10969_v19, %v8824_v27  ;;  %v10206_v33 = vadd.f32 %v10205_v20, %v8829_v31 }
0x1068   : > { %v10461_v34 = vadd.f32 %v10460_v23, %v8830_v17 }
0x106b   : > { %v6205_v35 = vpop.f32.mrf.mxu2 }
0x106c   : > { %v8831_v37 = vmax.f32 %v6205_v35, 0.0  ;;  %v6854_v21 = vpop.f32.mrf.mxu3  ;;  %v4909_v38 = vpop.f32.mrf.mxu0 }
0x106d   : > { %v8832_v40 = vmax.f32 %v6854_v21, 0.0  ;;  %v8837_v41 = vmax.f32 %v4909_v38, 0.0  ;;  %v5558_v42 = vpop.f32.mrf.mxu1 }
0x106e   : > { %v10716_v43 = vadd.f32 %v10715_v28, %v8831_v37  ;;  %v8838_v44 = vmax.f32 %v5558_v42, 0.0 }
0x106f   : > { %v10971_v45 = vadd.f32 %v10970_v32, %v8832_v40  ;;  %v10207_v22 = vadd.f32 %v10206_v33, %v8837_v41 }
0x1070   : > { %v10462_v46 = vadd.f32 %v10461_v34, %v8838_v44 }
0x1073   : > { %v6207_v47 = vpop.f32.mrf.mxu2 }
0x1074   : > { %v8839_v48 = vmax.f32 %v6207_v47, 0.0  ;;  %v6856_v49 = vpop.f32.mrf.mxu3  ;;  %v4912_v50 = vpop.f32.mrf.mxu0 }
0x1075   : > { %v8840_v25 = vmax.f32 %v6856_v49, 0.0  ;;  %v8845_v51 = vmax.f32 %v4912_v50, 0.0  ;;  %v5561_v52 = vpop.f32.mrf.mxu1 }
0x1076   : > { %v10717_v53 = vadd.f32 %v10716_v43, %v8839_v48  ;;  %v8846_v26 = vmax.f32 %v5561_v52, 0.0 }
0x1077   : > { %v10972_v54 = vadd.f32 %v10971_v45, %v8840_v25  ;;  %v10208_v55 = vadd.f32 %v10207_v22, %v8845_v51 }
0x1078   : > { %v10463_v56 = vadd.f32 %v10462_v46, %v8846_v26 }
0x107b   : > { %v6210_v36 = vpop.f32.mrf.mxu2 }
0x107c   : > { %v8847_v57 = vmax.f32 %v6210_v36, 0.0  ;;  %v6859_v58 = vpop.f32.mrf.mxu3  ;;  %v4914_v59 = vpop.f32.mrf.mxu0 }
0x107d   : > { %v8848_v62 = vmax.f32 %v6859_v58, 0.0  ;;  %v5563_v63 = vpop.f32.mrf.mxu1  ;;  %v8853_v17 = vmax.f32 %v4914_v59, 0.0 }
0x107e   : > { %v10718_v39 = vadd.f32 %v10717_v53, %v8847_v57  ;;  %v8854_v32 = vmax.f32 %v5563_v63, 0.0 }
0x107f   : > { %v10973_v0 = vadd.f32 %v10972_v54, %v8848_v62  ;;  %v10209_v35 = vadd.f32 %v10208_v55, %v8853_v17 }
0x1080   : > { %v10464_v38 = vadd.f32 %v10463_v56, %v8854_v32 }
0x1083   : > { %v6212_v1 = vpop.f32.mrf.mxu2 }
0x1084   : > { %v6861_v3 = vpop.f32.mrf.mxu3  ;;  %v4917_v2 = vpop.f32.mrf.mxu0  ;;  %v8855_v22 = vmax.f32 %v6212_v1, 0.0 }
0x1085   : > { %v5566_v4 = vpop.f32.mrf.mxu1  ;;  %v8861_v33 = vmax.f32 %v4917_v2, 0.0  ;;  %v8856_v48 = vmax.f32 %v6861_v3, 0.0 }
0x1086   : > { %v8862_v34 = vmax.f32 %v5566_v4, 0.0  ;;  %v10719_v55 = vadd.f32 %v10718_v39, %v8855_v22 }
0x1087   : > { %v10210_v43 = vadd.f32 %v10209_v35, %v8861_v33  ;;  %v10974_v58 = vadd.f32 %v10973_v0, %v8856_v48 }
0x1088   : > { %v10465_v46 = vadd.f32 %v10464_v38, %v8862_v34 }
0x108b   : > { %v6215_v5 = vpop.f32.mrf.mxu2 }
0x108c   : > { %v15001_v60 = vpop.f32.mrf.mxu3  ;;  %v4919_v7 = vpop.f32.mrf.mxu0  ;;  %v8863_v25 = vmax.f32 %v6215_v5, 0.0 }
0x108d   : > { %v5568_v6 = vpop.f32.mrf.mxu1  ;;  %v8869_v37 = vmax.f32 %v4919_v7, 0.0  ;;  %v8864_v53 = vmax.f32 %v15001_v60, 0.0 }
0x108e   : > { %v8870_v40 = vmax.f32 %v5568_v6, 0.0  ;;  %v10720_v3 = vadd.f32 %v10719_v55, %v8863_v25  ;;  %v8942_v55 = vld [vmem:[#allocation2 + $0x20] sm:$0xff] }
0x108f   : > { %v10211_v49 = vadd.f32 %v10210_v43, %v8869_v37  ;;  %v10975_v6 = vadd.f32 %v10974_v58, %v8864_v53 }
0x1090   : > { %v10466_v51 = vadd.f32 %v10465_v46, %v8870_v40 }
0x1093   : > { %v15003_v9 = vpop.f32.mrf.mxu2 }
0x1094   : > { %v15005_v61 = vpop.f32.mrf.mxu3  ;;  %v4922_v10 = vpop.f32.mrf.mxu0  ;;  %v8871_v56 = vmax.f32 %v15003_v9, 0.0 }
0x1095   : > { %v5571_v8 = vpop.f32.mrf.mxu1  ;;  %v8877_v44 = vmax.f32 %v4922_v10, 0.0  ;;  %v8872_v59 = vmax.f32 %v15005_v61, 0.0 }
0x1096   : > { %v8878_v47 = vmax.f32 %v5571_v8, 0.0  ;;  %v10721_v0 = vadd.f32 %v10720_v3, %v8871_v56 }
0x1097   : > { %v10212_v26 = vadd.f32 %v10211_v49, %v8877_v44 }
0x1098   : > { %v10467_v36 = vadd.f32 %v10466_v51, %v8878_v47 }
0x109b   : > { %v15007_v11 = vpop.f32.mrf.mxu2 }
0x109c   : > { %v15009_v14 = vpop.f32.mrf.mxu3  ;;  %v4924_v15 = vpop.f32.mrf.mxu0  ;;  %v8879_v2 = vmax.f32 %v15007_v11, 0.0 }
0x109d   : > { %v5573_v18 = vpop.f32.mrf.mxu1  ;;  %v8885_v50 = vmax.f32 %v4924_v15, 0.0  ;;  %v8880_v39 = vmax.f32 %v15009_v14, 0.0 }
0x109e   : > { %v8886_v52 = vmax.f32 %v5573_v18, 0.0 }
0x109f   : > { %v10213_v62 = vadd.f32 %v10212_v26, %v8885_v50 }
0x10a0   : > { %v10468_v4 = vadd.f32 %v10467_v36, %v8886_v52  ;;  %v8941_v52 = vld [vmem:[#allocation2 + $0x8] sm:$0xff] }
0x10a3   : > { %v15011_v12 = vpop.f32.mrf.mxu2 }
0x10a4   : > { %v15013_v19 = vpop.f32.mrf.mxu3  ;;  %v4927_v20 = vpop.f32.mrf.mxu0  ;;  %v8887_v61 = vmax.f32 %v15011_v12, 0.0 }
0x10a5   : > { %v5576_v23 = vpop.f32.mrf.mxu1  ;;  %v8893_v54 = vmax.f32 %v4927_v20, 0.0  ;;  %v10976_v20 = vadd.f32 %v10975_v6, %v8872_v59  ;;  %v8888_v11 = vmax.f32 %v15013_v19, 0.0 }
0x10a6   : > { %v8894_v57 = vmax.f32 %v5576_v23, 0.0 }
0x10a7   : > { %v10214_v10 = vadd.f32 %v10213_v62, %v8893_v54  ;;  %v10977_v33 = vadd.f32 %v10976_v20, %v8880_v39  ;;  %v8944_v39 = vld [vmem:[#allocation2 + $0x38] sm:$0xff] }
0x10a8   : > { %v10469_v15 = vadd.f32 %v10468_v4, %v8894_v57 }
0x10a9   : > { %v10978_v40 = vadd.f32 %v10977_v33, %v8888_v11 }
0x10ab   : > { %v15015_v24 = vpop.f32.mrf.mxu2 }
0x10ac   : > { %v15017_v29 = vpop.f32.mrf.mxu3  ;;  %v4929_v13 = vpop.f32.mrf.mxu0  ;;  %v8895_v17 = vmax.f32 %v15015_v24, 0.0 }
0x10ad   : > { %v5578_v30 = vpop.f32.mrf.mxu1  ;;  %v8901_v63 = vmax.f32 %v4929_v13, 0.0 }
0x10ae   : > { %v8902_v5 = vmax.f32 %v5578_v30, 0.0  ;;  %v10722_v30 = vadd.f32 %v10721_v0, %v8879_v2 }
0x10af   : > { %v10215_v23 = vadd.f32 %v10214_v10, %v8901_v63 }
0x10b0   : > { %v10470_v32 = vadd.f32 %v10469_v15, %v8902_v5  ;;  %v10723_v37 = vadd.f32 %v10722_v30, %v8887_v61 }
0x10b2   : > { %v10724_v44 = vadd.f32 %v10723_v37, %v8895_v17 }
0x10b3   : > { %v15019_v27 = vpop.f32.mrf.mxu2 }
0x10b4   : > { %v15021_v31 = vpop.f32.mrf.mxu3  ;;  %v15023_v16 = vpop.f32.mrf.mxu0  ;;  %v8903_v12 = vmax.f32 %v15019_v27, 0.0 }
0x10b5   : > { %v15025_v28 = vpop.f32.mrf.mxu1  ;;  %v8909_v9 = vmax.f32 %v15023_v16, 0.0  ;;  %v8896_v16 = vmax.f32 %v15017_v29, 0.0  ;;  %v8904_v19 = vmax.f32 %v15021_v31, 0.0 }
0x10b6   : > { %v8910_v18 = vmax.f32 %v15025_v28, 0.0  ;;  %v10725_v27 = vadd.f32 %v10724_v44, %v8903_v12 }
0x10b7   : > { %v10216_v34 = vadd.f32 %v10215_v23, %v8909_v9  ;;  %v10979_v47 = vadd.f32 %v10978_v40, %v8896_v16 }
0x10b8   : > { %v10471_v38 = vadd.f32 %v10470_v32, %v8910_v18 }
0x10b9   : > { %v10980_v31 = vadd.f32 %v10979_v47, %v8904_v19 }
0x10bb   : > { %v15027_v21 = vpop.f32.mrf.mxu2 }
0x10bc   : > { %v15029_v41 = vpop.f32.mrf.mxu3  ;;  %v4934_v42 = vpop.f32.mrf.mxu0  ;;  %v8911_v24 = vmax.f32 %v15027_v21, 0.0 }
0x10bd   : > { %v5583_v45 = vpop.f32.mrf.mxu1  ;;  %v8917_v13 = vmax.f32 %v4934_v42, 0.0  ;;  %v8912_v29 = vmax.f32 %v15029_v41, 0.0 }
0x10be   : > { %v8918_v14 = vmax.f32 %v5583_v45, 0.0  ;;  %v10726_v56 = vadd.f32 %v10725_v27, %v8911_v24 }
0x10bf   : > { %v10217_v43 = vadd.f32 %v10216_v34, %v8917_v13  ;;  %v10981_v57 = vadd.f32 %v10980_v31, %v8912_v29 }
0x10c0   : > { %v10472_v22 = vadd.f32 %v10471_v38, %v8918_v14 }
0x10c3   : > { %v6232_v1 = vpop.f32.mrf.mxu2 }
0x10c4   : > { %v6881_v7 = vpop.f32.mrf.mxu3  ;;  %v4937_v60 = vpop.f32.mrf.mxu0  ;;  %v8919_v25 = vmax.f32 %v6232_v1, 0.0 }
0x10c5   : > { %v5586_v8 = vpop.f32.mrf.mxu1  ;;  %v8925_v35 = vmax.f32 %v4937_v60, 0.0  ;;  %v8920_v26 = vmax.f32 %v6881_v7, 0.0  ;;  %v8943_v60 = vld [vmem:[#allocation2 + $0x28] sm:$0xff] }
0x10c6   : > { %v8926_v28 = vmax.f32 %v5586_v8, 0.0  ;;  %v10727_v62 = vadd.f32 %v10726_v56, %v8919_v25 }
0x10c7   : > { %v10218_v48 = vadd.f32 %v10217_v43, %v8925_v35  ;;  %v10982_v63 = vadd.f32 %v10981_v57, %v8920_v26 }
0x10c8   : > { %v10473_v51 = vadd.f32 %v10472_v22, %v8926_v28 }
0x10cb   : > { %v6235_v42 = vpop.f32.mrf.mxu2 }
0x10cc   : > { %v6884_v45 = vpop.f32.mrf.mxu3  ;;  %v4939_v46 = vpop.f32.mrf.mxu0  ;;  %v8927_v21 = vmax.f32 %v6235_v42, 0.0 }
0x10cd   : > { %v8933_v49 = vmax.f32 %v4939_v46, 0.0  ;;  %v5588_v50 = vpop.f32.mrf.mxu1  ;;  %v8928_v58 = vmax.f32 %v6884_v45, 0.0 }
0x10ce   : > { %v8934_v53 = vmax.f32 %v5588_v50, 0.0  ;;  %v10728_v2 = vadd.f32 %v10727_v62, %v8927_v21 }
0x10cf   : > { %v10219_v54 = vadd.f32 %v10218_v48, %v8933_v49  ;;  %v10983_v5 = vadd.f32 %v10982_v63, %v8928_v58 }
0x10d0   : > { %v10474_v36 = vadd.f32 %v10473_v51, %v8934_v53 }
0x10d1   : > { %v10989_v59 = vadd.f32 %v10219_v54, %v8941_v52 }
0x10d2   : > { %v10990_v41 = vadd.f32 %v10474_v36, %v8942_v55 }
0x10d3   : > { %10997 = vst [vmem:[#allocation2 + $0x8] sm:$0xff] %v10989_v59  ;;  %v6237_v3 = vpop.f32.mrf.mxu2 }
0x10d4   : > { %10998 = vst [vmem:[#allocation2 + $0x20] sm:$0xff] %v10990_v41  ;;  %v8935_v1 = vmax.f32 %v6237_v3, 0.0  ;;  %v6886_v4 = vpop.f32.mrf.mxu3 }
0x10d5   : > { %v8936_v7 = vmax.f32 %v6886_v4, 0.0 }
0x10d6   : > { %v10729_v6 = vadd.f32 %v10728_v2, %v8935_v1 }
0x10d7   : > { %v10984_v10 = vadd.f32 %v10983_v5, %v8936_v7  ;;  %11004 = sbr.rel (%p13040_p2) target bundleno = 4520 (0x11a8), region = 63 }
0x10d8   : > { %v10991_v9 = vadd.f32 %v10729_v6, %v8943_v60 }
0x10d9   : > { %v10992_v8 = vadd.f32 %v10984_v10, %v8944_v39 }
0x10da   : > { %10999 = vst [vmem:[#allocation2 + $0x28] sm:$0xff] %v10991_v9 }
0x10db   : > { %11000 = vst [vmem:[#allocation2 + $0x38] sm:$0xff] %v10992_v8 }
0x10dc   : > { %v11028_v0 = vld [vmem:[%s13589_s6 + $0x78] sm:$0xff]  ;;  %v11027_v15 = vld [vmem:[%s13589_s6 + $0x70] sm:$0xff]  ;;  %v11026_v23 = vld [vmem:[%s13589_s6 + $0x68] sm:$0xff] }
0x10dd   : > { %v11060_v61 = vld [vmem:[%s13589_s6 + $0x178] sm:$0xff]  ;;  %11141 = vmatpush.msra.mxu0 %v11028_v0  ;;  %v11059_v20 = vld [vmem:[%s13589_s6 + $0x170] sm:$0xff]  ;;  %v11058_v30 = vld [vmem:[%s13589_s6 + $0x168] sm:$0xff] }
0x10de   : > { %11181 = vmatpush.msra.mxu2 %v11060_v61  ;;  %v11044_v18 = vld [vmem:[%s13589_s6 + $0xf8] sm:$0xff]  ;;  %v11043_v13 = vld [vmem:[%s13589_s6 + $0xf0] sm:$0xff]  ;;  %v11042_v32 = vld [vmem:[%s13589_s6 + $0xe8] sm:$0xff] }
0x10df   : > { %v11076_v11 = vld [vmem:[%s13589_s6 + $0x1f8] sm:$0xff]  ;;  %11161 = vmatpush.msra.mxu1 %v11044_v18  ;;  %11142 = vmatpush.msra.mxu0 %v11027_v15  ;;  %v11075_v17 = vld [vmem:[%s13589_s6 + $0x1f0] sm:$0xff]  ;;  %v11025_v14 = vld [vmem:[%s13589_s6 + $0x60] sm:$0xff] }
0x10e0   : > { %11201 = vmatpush.msra.mxu3 %v11076_v11  ;;  %11182 = vmatpush.msra.mxu2 %v11059_v20  ;;  %v11057_v33 = vld [vmem:[%s13589_s6 + $0x160] sm:$0xff]  ;;  %v11074_v16 = vld [vmem:[%s13589_s6 + $0x1e8] sm:$0xff]  ;;  %v11024_v37 = vld [vmem:[%s13589_s6 + $0x58] sm:$0xff] }
0x10e1   : > { %11162 = vmatpush.msra.mxu1 %v11043_v13  ;;  %11143 = vmatpush.msra.mxu0 %v11026_v23  ;;  %v11041_v34 = vld [vmem:[%s13589_s6 + $0xe0] sm:$0xff]  ;;  %v11056_v12 = vld [vmem:[%s13589_s6 + $0x158] sm:$0xff]  ;;  %v11023_v40 = vld [vmem:[%s13589_s6 + $0x50] sm:$0xff] }
0x10e2   : > { %11202 = vmatpush.msra.mxu3 %v11075_v17  ;;  %11183 = vmatpush.msra.mxu2 %v11058_v30  ;;  %v11073_v35 = vld [vmem:[%s13589_s6 + $0x1e0] sm:$0xff]  ;;  %v11040_v38 = vld [vmem:[%s13589_s6 + $0xd8] sm:$0xff]  ;;  %v11055_v19 = vld [vmem:[%s13589_s6 + $0x150] sm:$0xff] }
0x10e3   : > { %11163 = vmatpush.msra.mxu1 %v11042_v32  ;;  %11144 = vmatpush.msra.mxu0 %v11025_v14  ;;  %v11072_v28 = vld [vmem:[%s13589_s6 + $0x1d8] sm:$0xff]  ;;  %v11039_v43 = vld [vmem:[%s13589_s6 + $0xd0] sm:$0xff]  ;;  %v11022_v44 = vld [vmem:[%s13589_s6 + $0x48] sm:$0xff] }
0x10e4   : > { %11203 = vmatpush.msra.mxu3 %v11074_v16  ;;  %11184 = vmatpush.msra.mxu2 %v11057_v33  ;;  %v11071_v42 = vld [vmem:[%s13589_s6 + $0x1d0] sm:$0xff]  ;;  %v11054_v24 = vld [vmem:[%s13589_s6 + $0x148] sm:$0xff]  ;;  %v11021_v46 = vld [vmem:[%s13589_s6 + $0x40] sm:$0xff] }
0x10e5   : > { %11164 = vmatpush.msra.mxu1 %v11041_v34  ;;  %11145 = vmatpush.msra.mxu0 %v11024_v37  ;;  %v11038_v22 = vld [vmem:[%s13589_s6 + $0xc8] sm:$0xff]  ;;  %v11053_v47 = vld [vmem:[%s13589_s6 + $0x140] sm:$0xff]  ;;  %v11020_v49 = vld [vmem:[%s13589_s6 + $0x38] sm:$0xff] }
0x10e6   : > { %11204 = vmatpush.msra.mxu3 %v11073_v35  ;;  %11185 = vmatpush.msra.mxu2 %v11056_v12  ;;  %v11070_v45 = vld [vmem:[%s13589_s6 + $0x1c8] sm:$0xff]  ;;  %v11037_v29 = vld [vmem:[%s13589_s6 + $0xc0] sm:$0xff]  ;;  %v11052_v50 = vld [vmem:[%s13589_s6 + $0x138] sm:$0xff] }
0x10e7   : > { %11165 = vmatpush.msra.mxu1 %v11040_v38  ;;  %11146 = vmatpush.msra.mxu0 %v11023_v40  ;;  %v11069_v48 = vld [vmem:[%s13589_s6 + $0x1c0] sm:$0xff]  ;;  %v11036_v27 = vld [vmem:[%s13589_s6 + $0xb8] sm:$0xff]  ;;  %v11019_v51 = vld [vmem:[%s13589_s6 + $0x30] sm:$0xff] }
0x10e8   : > { %11205 = vmatpush.msra.mxu3 %v11072_v28  ;;  %11186 = vmatpush.msra.mxu2 %v11055_v19  ;;  %v11068_v25 = vld [vmem:[%s13589_s6 + $0x1b8] sm:$0xff]  ;;  %v11051_v52 = vld [vmem:[%s13589_s6 + $0x130] sm:$0xff]  ;;  %v11018_v26 = vld [vmem:[%s13589_s6 + $0x28] sm:$0xff] }
0x10e9   : > { %11166 = vmatpush.msra.mxu1 %v11039_v43  ;;  %11147 = vmatpush.msra.mxu0 %v11022_v44  ;;  %v11035_v53 = vld [vmem:[%s13589_s6 + $0xb0] sm:$0xff]  ;;  %v11050_v54 = vld [vmem:[%s13589_s6 + $0x128] sm:$0xff]  ;;  %v11017_v21 = vld [vmem:[%s13589_s6 + $0x20] sm:$0xff] }
0x10ea   : > { %11206 = vmatpush.msra.mxu3 %v11071_v42  ;;  %11187 = vmatpush.msra.mxu2 %v11054_v24  ;;  %v11067_v31 = vld [vmem:[%s13589_s6 + $0x1b0] sm:$0xff]  ;;  %v11034_v55 = vld [vmem:[%s13589_s6 + $0xa8] sm:$0xff]  ;;  %v11049_v36 = vld [vmem:[%s13589_s6 + $0x120] sm:$0xff] }
0x10eb   : > { %11167 = vmatpush.msra.mxu1 %v11038_v22  ;;  %11148 = vmatpush.msra.mxu0 %v11021_v46  ;;  %v11066_v56 = vld [vmem:[%s13589_s6 + $0x1a8] sm:$0xff]  ;;  %v11033_v57 = vld [vmem:[%s13589_s6 + $0xa0] sm:$0xff]  ;;  %v11016_v59 = vld [vmem:[%s13589_s6 + $0x18] sm:$0xff] }
0x10ec   : > { %11207 = vmatpush.msra.mxu3 %v11070_v45  ;;  %11188 = vmatpush.msra.mxu2 %v11053_v47  ;;  %v11065_v58 = vld [vmem:[%s13589_s6 + $0x1a0] sm:$0xff]  ;;  %v11048_v62 = vld [vmem:[%s13589_s6 + $0x118] sm:$0xff]  ;;  %v11015_v3 = vld [vmem:[%s13589_s6 + $0x10] sm:$0xff] }
0x10ed   : > { %11168 = vmatpush.msra.mxu1 %v11037_v29  ;;  %11149 = vmatpush.msra.mxu0 %v11020_v49  ;;  %v11032_v41 = vld [vmem:[%s13589_s6 + $0x98] sm:$0xff]  ;;  %v11047_v2 = vld [vmem:[%s13589_s6 + $0x110] sm:$0xff]  ;;  %v11014_v5 = vld [vmem:[%s13589_s6 + $0x8] sm:$0xff] }
0x10ee   : > { %11208 = vmatpush.msra.mxu3 %v11069_v48  ;;  %11189 = vmatpush.msra.mxu2 %v11052_v50  ;;  %v11064_v63 = vld [vmem:[%s13589_s6 + $0x198] sm:$0xff]  ;;  %v11031_v1 = vld [vmem:[%s13589_s6 + $0x90] sm:$0xff]  ;;  %v11046_v60 = vld [vmem:[%s13589_s6 + $0x108] sm:$0xff] }
0x10ef   : > { %11169 = vmatpush.msra.mxu1 %v11036_v27  ;;  %11150 = vmatpush.msra.mxu0 %v11019_v51  ;;  %v11063_v4 = vld [vmem:[%s13589_s6 + $0x190] sm:$0xff]  ;;  %v11030_v7 = vld [vmem:[%s13589_s6 + $0x88] sm:$0xff]  ;;  %v11013_v39 = vld [vmem:[%s13589_s6] sm:$0xff] }
0x10f0   : > { %11209 = vmatpush.msra.mxu3 %v11068_v25  ;;  %11190 = vmatpush.msra.mxu2 %v11051_v52  ;;  %v11062_v6 = vld [vmem:[%s13589_s6 + $0x188] sm:$0xff]  ;;  %v11045_v10 = vld [vmem:[%s13589_s6 + $0x100] sm:$0xff]  ;;  %v11092_v9 = vld [vmem:[%s13589_s6 + $0x278] sm:$0xff] }
0x10f1   : > { %11170 = vmatpush.msra.mxu1 %v11035_v53  ;;  %11151 = vmatpush.msra.mxu0 %v11018_v26  ;;  %v11124_v8 = vld [vmem:[%s13589_s6 + $0x378] sm:$0xff]  ;;  %v11029_v0 = vld [vmem:[%s13589_s6 + $0x80] sm:$0xff]  ;;  %v11091_v15 = vld [vmem:[%s13589_s6 + $0x270] sm:$0xff] }
0x10f2   : > { %11210 = vmatpush.msra.mxu3 %v11067_v31  ;;  %11191 = vmatpush.msra.mxu2 %v11050_v54  ;;  %v11061_v61 = vld [vmem:[%s13589_s6 + $0x180] sm:$0xff]  ;;  %v11108_v18 = vld [vmem:[%s13589_s6 + $0x2f8] sm:$0xff]  ;;  %v11123_v20 = vld [vmem:[%s13589_s6 + $0x370] sm:$0xff] }
0x10f3   : > { %11171 = vmatpush.msra.mxu1 %v11034_v55  ;;  %11152 = vmatpush.msra.mxu0 %v11017_v21  ;;  %v11140_v11 = vld [vmem:[%s13589_s6 + $0x3f8] sm:$0xff]  ;;  %v11090_v23 = vld [vmem:[%s13589_s6 + $0x268] sm:$0xff]  ;;  %v11107_v13 = vld [vmem:[%s13589_s6 + $0x2f0] sm:$0xff] }
0x10f4   : > { %11211 = vmatpush.msra.mxu3 %v11066_v56  ;;  %11192 = vmatpush.msra.mxu2 %v11049_v36  ;;  %v11122_v30 = vld [vmem:[%s13589_s6 + $0x368] sm:$0xff]  ;;  %v11139_v17 = vld [vmem:[%s13589_s6 + $0x3f0] sm:$0xff]  ;;  %v11089_v32 = vld [vmem:[%s13589_s6 + $0x260] sm:$0xff] }
0x10f5   : > { %11172 = vmatpush.msra.mxu1 %v11033_v57  ;;  %11153 = vmatpush.msra.mxu0 %v11016_v59  ;;  %v11106_v14 = vld [vmem:[%s13589_s6 + $0x2e8] sm:$0xff]  ;;  %v11121_v33 = vld [vmem:[%s13589_s6 + $0x360] sm:$0xff]  ;;  %v11088_v34 = vld [vmem:[%s13589_s6 + $0x258] sm:$0xff] }
0x10f6   : > { %11212 = vmatpush.msra.mxu3 %v11065_v58  ;;  %11193 = vmatpush.msra.mxu2 %v11048_v62  ;;  %v11138_v16 = vld [vmem:[%s13589_s6 + $0x3e8] sm:$0xff]  ;;  %v11105_v35 = vld [vmem:[%s13589_s6 + $0x2e0] sm:$0xff]  ;;  %v11120_v37 = vld [vmem:[%s13589_s6 + $0x358] sm:$0xff] }
0x10f7   : > { %11173 = vmatpush.msra.mxu1 %v11032_v41  ;;  %11154 = vmatpush.msra.mxu0 %v11015_v3  ;;  %v11137_v12 = vld [vmem:[%s13589_s6 + $0x3e0] sm:$0xff]  ;;  %v11087_v38 = vld [vmem:[%s13589_s6 + $0x250] sm:$0xff]  ;;  %v11104_v28 = vld [vmem:[%s13589_s6 + $0x2d8] sm:$0xff] }
0x10f8   : > { %11213 = vmatpush.msra.mxu3 %v11064_v63  ;;  %11194 = vmatpush.msra.mxu2 %v11047_v2  ;;  %v11119_v40 = vld [vmem:[%s13589_s6 + $0x350] sm:$0xff]  ;;  %v11136_v19 = vld [vmem:[%s13589_s6 + $0x3d8] sm:$0xff]  ;;  %v11086_v43 = vld [vmem:[%s13589_s6 + $0x248] sm:$0xff] }
0x10f9   : > { %11174 = vmatpush.msra.mxu1 %v11031_v1  ;;  %11155 = vmatpush.msra.mxu0 %v11014_v5  ;;  %v11103_v42 = vld [vmem:[%s13589_s6 + $0x2d0] sm:$0xff]  ;;  %v11118_v44 = vld [vmem:[%s13589_s6 + $0x348] sm:$0xff]  ;;  %v11085_v22 = vld [vmem:[%s13589_s6 + $0x240] sm:$0xff] }
0x10fa   : > { %11214 = vmatpush.msra.mxu3 %v11063_v4  ;;  %11195 = vmatpush.msra.mxu2 %v11046_v60  ;;  %v11135_v24 = vld [vmem:[%s13589_s6 + $0x3d0] sm:$0xff]  ;;  %v11102_v45 = vld [vmem:[%s13589_s6 + $0x2c8] sm:$0xff]  ;;  %v11117_v46 = vld [vmem:[%s13589_s6 + $0x340] sm:$0xff] }
0x10fb   : > { %11175 = vmatpush.msra.mxu1 %v11030_v7  ;;  %11156 = vmatpush.msra.mxu0 %v11013_v39  ;;  %v11134_v47 = vld [vmem:[%s13589_s6 + $0x3c8] sm:$0xff]  ;;  %v11084_v29 = vld [vmem:[%s13589_s6 + $0x238] sm:$0xff]  ;;  %v11101_v48 = vld [vmem:[%s13589_s6 + $0x2c0] sm:$0xff] }
0x10fc   : > { %11215 = vmatpush.msra.mxu3 %v11062_v6  ;;  %11196 = vmatpush.msra.mxu2 %v11045_v10  ;;  %v11116_v49 = vld [vmem:[%s13589_s6 + $0x338] sm:$0xff]  ;;  %v11133_v50 = vld [vmem:[%s13589_s6 + $0x3c0] sm:$0xff]  ;;  %v11083_v27 = vld [vmem:[%s13589_s6 + $0x230] sm:$0xff] }
0x10fd   : > { %11221 = vmatpush.msrb.mxu0 %v11092_v9  ;;  %11176 = vmatpush.msra.mxu1 %v11029_v0  ;;  %v11100_v25 = vld [vmem:[%s13589_s6 + $0x2b8] sm:$0xff]  ;;  %v11115_v51 = vld [vmem:[%s13589_s6 + $0x330] sm:$0xff]  ;;  %v11082_v53 = vld [vmem:[%s13589_s6 + $0x228] sm:$0xff] }
0x10fe   : > { %11261 = vmatpush.msrb.mxu2 %v11124_v8  ;;  %11216 = vmatpush.msra.mxu3 %v11061_v61  ;;  %v11132_v52 = vld [vmem:[%s13589_s6 + $0x3b8] sm:$0xff]  ;;  %v11099_v31 = vld [vmem:[%s13589_s6 + $0x2b0] sm:$0xff]  ;;  %v11114_v26 = vld [vmem:[%s13589_s6 + $0x328] sm:$0xff] }
0x10ff   : > { %11222 = vmatpush.msrb.mxu0 %v11091_v15  ;;  %11241 = vmatpush.msrb.mxu1 %v11108_v18  ;;  %v11131_v54 = vld [vmem:[%s13589_s6 + $0x3b0] sm:$0xff]  ;;  %v11007_v55 = vld [vmem:[#allocation2 + $0x18] sm:$0xff]  ;;  %v11081_v56 = vld [vmem:[%s13589_s6 + $0x220] sm:$0xff] }
0x1100   : > { %11262 = vmatpush.msrb.mxu2 %v11123_v20  ;;  %11281 = vmatpush.msrb.mxu3 %v11140_v11  ;;  %v11098_v21 = vld [vmem:[%s13589_s6 + $0x2a8] sm:$0xff]  ;;  %v11113_v36 = vld [vmem:[%s13589_s6 + $0x320] sm:$0xff]  ;;  %v11005_v58 = vld [vmem:[#allocation2 + $0x30] sm:$0xff] }
0x1101   : > { %11223 = vmatpush.msrb.mxu0 %v11090_v23  ;;  %11242 = vmatpush.msrb.mxu1 %v11107_v13  ;;  %v11130_v57 = vld [vmem:[%s13589_s6 + $0x3a8] sm:$0xff]  ;;  %v11008_v59 = vld [vmem:[#allocation2 + $0x10] sm:$0xff]  ;;  %v11080_v62 = vld [vmem:[%s13589_s6 + $0x218] sm:$0xff] }
0x1102   : > { %11263 = vmatpush.msrb.mxu2 %v11122_v30  ;;  %11282 = vmatpush.msrb.mxu3 %v11139_v17  ;;  %v11097_v41 = vld [vmem:[%s13589_s6 + $0x2a0] sm:$0xff]  ;;  %v11112_v63 = vld [vmem:[%s13589_s6 + $0x318] sm:$0xff]  ;;  %v11079_v1 = vld [vmem:[%s13589_s6 + $0x210] sm:$0xff] }
0x1103   : > { %11224 = vmatpush.msrb.mxu0 %v11089_v32  ;;  %11243 = vmatpush.msrb.mxu1 %v11106_v14  ;;  %v11129_v3 = vld [vmem:[%s13589_s6 + $0x3a0] sm:$0xff]  ;;  %v11096_v4 = vld [vmem:[%s13589_s6 + $0x298] sm:$0xff]  ;;  %v11111_v5 = vld [vmem:[%s13589_s6 + $0x310] sm:$0xff] }
0x1104   : > { %11264 = vmatpush.msrb.mxu2 %v11121_v33  ;;  %11283 = vmatpush.msrb.mxu3 %v11138_v16  ;;  %v11006_v2 = vld [vmem:[#allocation2] sm:$0xff]  ;;  %v11128_v60 = vld [vmem:[%s13589_s6 + $0x398] sm:$0xff]  ;;  %v11078_v7 = vld [vmem:[%s13589_s6 + $0x208] sm:$0xff] }
0x1105   : > { %11225 = vmatpush.msrb.mxu0 %v11088_v34  ;;  %11244 = vmatpush.msrb.mxu1 %v11105_v35  ;;  %v11095_v6 = vld [vmem:[%s13589_s6 + $0x290] sm:$0xff]  ;;  %v11110_v39 = vld [vmem:[%s13589_s6 + $0x308] sm:$0xff]  ;;  %v11077_v9 = vld [vmem:[%s13589_s6 + $0x200] sm:$0xff] }
0x1106   : > { %11265 = vmatpush.msrb.mxu2 %v11120_v37  ;;  %11284 = vmatpush.msrb.mxu3 %v11137_v12  ;;  %v11127_v10 = vld [vmem:[%s13589_s6 + $0x390] sm:$0xff]  ;;  %v11094_v8 = vld [vmem:[%s13589_s6 + $0x288] sm:$0xff]  ;;  %v11109_v0 = vld [vmem:[%s13589_s6 + $0x300] sm:$0xff] }
0x1107   : > { %11226 = vmatpush.msrb.mxu0 %v11087_v38  ;;  %11245 = vmatpush.msrb.mxu1 %v11104_v28  ;;  %v11126_v61 = vld [vmem:[%s13589_s6 + $0x388] sm:$0xff]  ;;  %v11093_v20 = vld [vmem:[%s13589_s6 + $0x280] sm:$0xff]  ;;  %v11012_v13 = vld [vmem:[#allocation2 + $0x38] sm:$0xff] }
0x1108   : > { %11266 = vmatpush.msrb.mxu2 %v11119_v40  ;;  %11285 = vmatpush.msrb.mxu3 %v11136_v19  ;;  %v11009_v15 = vld [vmem:[#allocation2 + $0x8] sm:$0xff]  ;;  %v11125_v11 = vld [vmem:[%s13589_s6 + $0x380] sm:$0xff] }
0x1109   : > { %11227 = vmatpush.msrb.mxu0 %v11086_v43  ;;  %11246 = vmatpush.msrb.mxu1 %v11103_v42  ;;  %v11011_v18 = vld [vmem:[#allocation2 + $0x28] sm:$0xff]  ;;  %v11010_v23 = vld [vmem:[#allocation2 + $0x20] sm:$0xff] }
0x110a   : > { %11267 = vmatpush.msrb.mxu2 %v11118_v44  ;;  %11286 = vmatpush.msrb.mxu3 %v11135_v24 }
0x110b   : > { %11228 = vmatpush.msrb.mxu0 %v11085_v22  ;;  %11247 = vmatpush.msrb.mxu1 %v11102_v45 }
0x110c   : > { %11268 = vmatpush.msrb.mxu2 %v11117_v46  ;;  %11287 = vmatpush.msrb.mxu3 %v11134_v47 }
0x110d   : > { %11229 = vmatpush.msrb.mxu0 %v11084_v29  ;;  %11248 = vmatpush.msrb.mxu1 %v11101_v48 }
0x110e   : > { %11269 = vmatpush.msrb.mxu2 %v11116_v49  ;;  %11288 = vmatpush.msrb.mxu3 %v11133_v50 }
0x110f   : > { %11230 = vmatpush.msrb.mxu0 %v11083_v27  ;;  %11249 = vmatpush.msrb.mxu1 %v11100_v25 }
0x1110   : > { %11270 = vmatpush.msrb.mxu2 %v11115_v51  ;;  %11289 = vmatpush.msrb.mxu3 %v11132_v52 }
0x1111   : > { %11231 = vmatpush.msrb.mxu0 %v11082_v53  ;;  %11250 = vmatpush.msrb.mxu1 %v11099_v31 }
0x1112   : > { %11271 = vmatpush.msrb.mxu2 %v11114_v26  ;;  %11290 = vmatpush.msrb.mxu3 %v11131_v54 }
0x1113   : > { %11197 = vmatmul.f32.vlgmr.msra.gmra.mxu2 %v11007_v55  ;;  %11232 = vmatpush.msrb.mxu0 %v11081_v56 }
0x1114   : > { %11251 = vmatpush.msrb.mxu1 %v11098_v21  ;;  %11272 = vmatpush.msrb.mxu2 %v11113_v36 }
0x1115   : > { %11291 = vmatpush.msrb.mxu3 %v11130_v57  ;;  %11157 = vmatmul.f32.vlgmr.msra.gmra.mxu0 %v11005_v58 }
0x1116   : > { %11217 = vmatmul.f32.vlgmr.msra.gmra.mxu3 %v11008_v59  ;;  %11233 = vmatpush.msrb.mxu0 %v11080_v62 }
0x1117   : > { %11252 = vmatpush.msrb.mxu1 %v11097_v41  ;;  %11273 = vmatpush.msrb.mxu2 %v11112_v63 }
0x1118   : > { %11292 = vmatpush.msrb.mxu3 %v11129_v3  ;;  %11177 = vmatmul.f32.vlgmr.msra.gmra.mxu1 %v11006_v2 }
0x1119   : > { %11234 = vmatpush.msrb.mxu0 %v11079_v1  ;;  %11253 = vmatpush.msrb.mxu1 %v11096_v4 }
0x111a   : > { %11274 = vmatpush.msrb.mxu2 %v11111_v5  ;;  %11293 = vmatpush.msrb.mxu3 %v11128_v60 }
0x111b   : > { %11235 = vmatpush.msrb.mxu0 %v11078_v7  ;;  %11254 = vmatpush.msrb.mxu1 %v11095_v6 }
0x111c   : > { %11275 = vmatpush.msrb.mxu2 %v11110_v39  ;;  %11294 = vmatpush.msrb.mxu3 %v11127_v10 }
0x111d   : > { %11236 = vmatpush.msrb.mxu0 %v11077_v9  ;;  %11255 = vmatpush.msrb.mxu1 %v11094_v8 }
0x111e   : > { %11276 = vmatpush.msrb.mxu2 %v11109_v0  ;;  %11295 = vmatpush.msrb.mxu3 %v11126_v61 }
0x111f   : > { %11237 = vmatmul.f32.vlgmr.msrb.gmra.mxu0 %v11009_v15  ;;  %11277 = vmatmul.f32.vlgmr.msrb.gmra.mxu2 %v11011_v18 }
0x1120   : > { %11256 = vmatpush.msrb.mxu1 %v11093_v20  ;;  %11296 = vmatpush.msrb.mxu3 %v11125_v11 }
0x1121   : > { %11257 = vmatmul.f32.vlgmr.msrb.gmra.mxu1 %v11010_v23  ;;  %11297 = vmatmul.f32.vlgmr.msrb.gmra.mxu3 %v11012_v13 }
0x1192   : > { %v11158_v30 = vpop.f32.mrf.mxu0 }
0x1195   : > { %v11178_v17 = vpop.f32.mrf.mxu1 }
0x1196   : > { %v11179_v32 = vadd.f32 %v11178_v17, %v11158_v30  ;;  %v11198_v14 = vpop.f32.mrf.mxu2 }
0x1198   : > { %v11199_v33 = vadd.f32 %v11198_v14, %v11179_v32 }
0x1199   : > { %v11218_v16 = vpop.f32.mrf.mxu3 }
0x119a   : > { %v11219_v34 = vadd.f32 %v11218_v16, %v11199_v33 }
0x119c   : > { %v11238_v35 = vpop.f32.mrf.mxu0 }
0x119d   : > { %v11239_v37 = vadd.f32 %v11238_v35, %v11219_v34 }
0x119e   : > { %v11258_v12 = vpop.f32.mrf.mxu1 }
0x119f   : > { %v11259_v38 = vadd.f32 %v11258_v12, %v11239_v37 }
0x11a2   : > { %v11278_v28 = vpop.f32.mrf.mxu2 }
0x11a3   : > { %v11279_v40 = vadd.f32 %v11278_v28, %v11259_v38 }
0x11a4   : > { %v11298_v19 = vpop.f32.mrf.mxu3 }
0x11a5   : > { %v11299_v43 = vadd.f32 %v11298_v19, %v11279_v40 }
0x11a7   : > { %11301 = vst [vmem:[%s13594_s10] sm:$0xff] %v11299_v43 }
0x11a8 PF: > { %s13_s20 = sadd.s32 1, %s13460_s20   ;;  %s15210_s1 = sld [smem:[#allocation4_spill]] }
0x11a9   : > { %p10_p3 = scmp.ge.s32.totalorder %s13_s20, 22   ;;  %s15211_s12 = smov %s13432_s13 }
0x11aa   : > { %s15212_s13 = smov %s13546_s26  ;;  %s15213_s14 = smov %s13448_s17 }
0x11ab   : > { %s15214_s15 = smov %s13452_s18  ;;  %s15215_s16 = smov %s13456_s19 }
0x11ac   : > { %s15216_s17 = smov %s15220_s21  ;;  %s15217_s18 = smov %s15224_s22 }
0x11ad   :  { %12 = sbr.rel (!%p10_p3) target bundleno = 7 (0x7), region = 104 }
0x11ae   : > { %s15218_s19 = smov %s15210_s1 }

</bundles_post_ra>
